<compile_context>
chip_gen: v6e
topology: v6e:2x2x1
jax: 0.10.0
libtpu: 0.0.40
codegen_flags: <defaults>
</compile_context>

<pallas_src>
import jax
import jax.numpy as jnp
from jax.experimental import pallas as pl
from jax.experimental.pallas import tpu as pltpu

H_DIM = 400       # logical hidden width (PyTorch h_dim)
H_PAD = 512       # zero-padded hidden width (multiple of 128 / 256)
IN_DIM = 2
OUT_DIM = 1
_MAX_BATCH_TILE = 1024


# ------------------------------ kernels ------------------------------------
def _trunk(x_ref, p_ref, w2_ref, w3_ref):
    """Layers 1-3 in feature-major layout (batch on the lane axis)."""
    x = x_ref[...]                                   # (2, T) f32
    p = p_ref[...]                                   # (H_PAD, 8) f32 packed params
    # Layer 1 (K=2): two VPU broadcast-FMAs (MXU would waste the K dim).
    h = p[:, 0:1] * x[0:1, :] + p[:, 1:2] * x[1:2, :] + p[:, 2:3]
    h = jnp.maximum(h, 0.0)                          # (H_PAD, T) f32
    # Layers 2 & 3: bf16 MXU matmuls, f32 accumulation, f32 bias + ReLU.
    h = jnp.dot(w2_ref[...], h.astype(jnp.bfloat16),
                preferred_element_type=jnp.float32) + p[:, 3:4]
    h = jnp.maximum(h, 0.0)
    h = jnp.dot(w3_ref[...], h.astype(jnp.bfloat16),
                preferred_element_type=jnp.float32) + p[:, 4:5]
    h = jnp.maximum(h, 0.0)
    return h, p


def _mlp_kernel_mxu_head(x_ref, p_ref, w2_ref, w3_ref, w4t_ref, o_ref):
    """Head on the MXU (v6e/v7x: VALU is the binding unit, MXU has slack)."""
    h, p = _trunk(x_ref, p_ref, w2_ref, w3_ref)
    head = jnp.dot(w4t_ref[...], h.astype(jnp.bfloat16),
                   preferred_element_type=jnp.float32)        # (8, T); row 0 is real
    logits = head[0:1, :] + p[0:1, 6:7]                       # (1, T)
    o_ref[...] = (1.0 / (1.0 + jnp.exp(-logits))).astype(o_ref.dtype)


def _mlp_kernel_vpu_head(x_ref, p_ref, w2_ref, w3_ref, o_ref):
    """Head as a sublane reduction (v5e: keep MXU free, VPU has slack)."""
    h, p = _trunk(x_ref, p_ref, w2_ref, w3_ref)
    logits = jnp.sum(h * p[:, 5:6], axis=0, keepdims=True) + p[0:1, 6:7]
    o_ref[...] = (1.0 / (1.0 + jnp.exp(-logits))).astype(o_ref.dtype)


# ------------------------------ parameters ---------------------------------
def init_params(key):
    """PyTorch nn.Linear default init U(-1/sqrt(fan_in), 1/sqrt(fan_in)),
    weights in PyTorch [out, in] layout (raw / unpadded)."""
    def linear(k, fan_in, fan_out):
        kw, kb = jax.random.split(k)
        bound = 1.0 / (fan_in ** 0.5)
        w = jax.random.uniform(kw, (fan_out, fan_in), jnp.float32, -bound, bound)
        b = jax.random.uniform(kb, (fan_out,), jnp.float32, -bound, bound)
        return w, b

    k1, k2, k3, k4 = jax.random.split(key, 4)
    return (linear(k1, IN_DIM, H_DIM),       # (400, 2), (400,)
            linear(k2, H_DIM, H_DIM),        # (400, 400), (400,)
            linear(k3, H_DIM, H_DIM),
            linear(k4, H_DIM, OUT_DIM))      # (1, 400), (1,)


def pack_params(raw):
    """One-time packing/padding/casting for the kernel.
    Padded rows/cols MUST stay exactly zero for the math to be exact."""
    (w1, b1), (w2, b2), (w3, b3), (w4, b4) = raw
    packed = jnp.zeros((H_PAD, 8), jnp.float32)
    packed = packed.at[:H_DIM, 0].set(w1[:, 0])       # w1 col 0
    packed = packed.at[:H_DIM, 1].set(w1[:, 1])       # w1 col 1
    packed = packed.at[:H_DIM, 2].set(b1)             # b1
    packed = packed.at[:H_DIM, 3].set(b2)             # b2
    packed = packed.at[:H_DIM, 4].set(b3)             # b3
    packed = packed.at[:H_DIM, 5].set(w4[0])          # w4 (VPU-head form)
    packed = packed.at[0, 6].set(b4[0])               # b4

    w2b = jnp.zeros((H_PAD, H_PAD), jnp.bfloat16).at[:H_DIM, :H_DIM].set(
        w2.astype(jnp.bfloat16))
    w3b = jnp.zeros((H_PAD, H_PAD), jnp.bfloat16).at[:H_DIM, :H_DIM].set(
        w3.astype(jnp.bfloat16))
    w4t = jnp.zeros((8, H_PAD), jnp.bfloat16).at[0, :H_DIM].set(
        w4[0].astype(jnp.bfloat16))                   # MXU-head form
    # TODO(synk): optional fp8 (e4m3) w2/w3 path for the v7x MXU (halves the
    # dominant weight DMA); skipped to stay within the WGAN-GP tolerance.
    return {"packed": packed, "w2": w2b, "w3": w3b, "w4t": w4t}


# ------------------------------ wrapper ------------------------------------
def _device_kind():
    try:
        return jax.devices()[0].device_kind.lower()
    except Exception:
        return ""


def _num_tc_shards():
    # v7x has 2 TensorCores per chip; older generations have 1.
    return 2 if "v7" in _device_kind() else 1


def _use_mxu_head_default():
    # On v5e keep the VPU head (MXU closer to saturation); elsewhere use MXU.
    return "v5" not in _device_kind()


def _round_up(x, m):
    return -(-x // m) * m


def _default_batch_tile(B, num_shards):
    # One big tile per TensorCore shard; 256-aligned when possible so the
    # MXU N dimension (batch, on lanes) is fully filled on v6e/v7x.
    per_shard = pl.cdiv(B, num_shards)
    align = 256 if per_shard >= 256 else 128
    return min(_round_up(per_shard, align), _MAX_BATCH_TILE)


def discriminator_forward(x, kparams, *, batch_tile=None, use_mxu_head=None):
    """x: [B, 2] float32 -> [B, 1] float32 (sigmoid scores)."""
    B, in_dim = x.shape
    assert in_dim == IN_DIM
    if use_mxu_head is None:
        use_mxu_head = _use_mxu_head_default()
    if batch_tile is None:
        batch_tile = _default_batch_tile(B, _num_tc_shards())
    assert batch_tile % 128 == 0, "batch tile must be lane-aligned"

    # Pad the batch to the tile so output stores are always full-lane.
    B_pad = _round_up(B, batch_tile)
    num_tiles = B_pad // batch_tile

    xt = x.T                                          # (2, B) feature-major
    if B_pad != B:
        xt = jnp.pad(xt, ((0, 0), (0, B_pad - B)))

    packed = kparams["packed"]
    w2b = kparams["w2"]
    w3b = kparams["w3"]
    w4t = kparams["w4t"]

    def x_map(i):
        return (0, i)

    def p_map(i):
        return (0, 0)

    def w_spec(arr):
        # Grid-invariant parameters: single-buffered, fetched once.
        return pl.BlockSpec(arr.shape, p_map, pipeline_mode=pl.Buffered(1))

    in_specs = [pl.BlockSpec((IN_DIM, batch_tile), x_map),
                w_spec(packed), w_spec(w2b), w_spec(w3b)]
    args = [xt, packed, w2b, w3b]
    if use_mxu_head:
        kernel = _mlp_kernel_mxu_head
        in_specs.append(w_spec(w4t))
        args.append(w4t)
    else:
        kernel = _mlp_kernel_vpu_head

    out = pl.pallas_call(
        kernel,
        out_shape=jax.ShapeDtypeStruct((1, B_pad), jnp.float32),
        grid_spec=pltpu.PrefetchScalarGridSpec(
            num_scalar_prefetch=0,
            grid=(num_tiles,),
            in_specs=in_specs,
            out_specs=pl.BlockSpec((1, batch_tile), x_map),
        ),
        compiler_params=pltpu.CompilerParams(
            dimension_semantics=("parallel",),
        ),
    )(*args)

    return out[0, :B].reshape(B, OUT_DIM)


# ------------------------------ references ---------------------------------
def _reference_f32(x, raw):
    """Plain-JAX f32 reference of the original (unpadded) module."""
    (w1, b1), (w2, b2), (w3, b3), (w4, b4) = raw
    hp = jax.lax.Precision.HIGHEST
    h = jnp.maximum(jnp.dot(x, w1.T, precision=hp) + b1, 0.0)
    h = jnp.maximum(jnp.dot(h, w2.T, precision=hp) + b2, 0.0)
    h = jnp.maximum(jnp.dot(h, w3.T, precision=hp) + b3, 0.0)
    logits = jnp.dot(h, w4.T, precision=hp) + b4
    return 1.0 / (1.0 + jnp.exp(-logits))             # (B, 1)


def _reference_kernel_numerics(x, raw, use_mxu_head):
    """Plain-JAX reference mimicking the kernel's feature-major / bf16 math."""
    (w1, b1), (w2, b2), (w3, b3), (w4, b4) = raw
    bf16, f32 = jnp.bfloat16, jnp.float32
    xt = x.T                                          # (2, B)
    h = jnp.maximum(w1[:, 0:1] * xt[0:1, :] + w1[:, 1:2] * xt[1:2, :]
                    + b1[:, None], 0.0)
    h = jnp.maximum(jnp.dot(w2.astype(bf16), h.astype(bf16),
                            preferred_element_type=f32) + b2[:, None], 0.0)
    h = jnp.maximum(jnp.dot(w3.astype(bf16), h.astype(bf16),
                            preferred_element_type=f32) + b3[:, None], 0.0)
    if use_mxu_head:
        logits = jnp.dot(w4.astype(bf16), h.astype(bf16),
                         preferred_element_type=f32) + b4[:, None]
    else:
        logits = jnp.sum(h * w4.T, axis=0, keepdims=True) + b4[:, None]
    return (1.0 / (1.0 + jnp.exp(-logits))).T          # (B, 1)


# ------------------------------ main ---------------------------------------
if __name__ == "__main__":
    key = jax.random.PRNGKey(0)
    key, kx = jax.random.split(key)

    B = 256                                  # small 2-D toy-GAN batch
    x = jax.random.normal(kx, (B, IN_DIM), jnp.float32)

    raw = init_params(key)
    kparams = pack_params(raw)               # one-time pad/pack/bf16-cast
    use_mxu_head = _use_mxu_head_default()

    out = discriminator_forward(x, kparams, use_mxu_head=use_mxu_head)
    out = jax.block_until_ready(out)
    assert out.shape == (B, OUT_DIM)

    # Tight check vs a reference using the same padded / bf16 numerics.
    ref_mimic = _reference_kernel_numerics(x, raw, use_mxu_head)
    err_m = float(jnp.max(jnp.abs(out - ref_mimic)))
    assert err_m < 3e-3, f"kernel-numerics mismatch, max err {err_m}"

    # Semantic check vs the original full-f32 module (bf16 matmul tolerance).
    ref_f32 = _reference_f32(x, raw)
    err_f = float(jnp.max(jnp.abs(out - ref_f32)))
    assert err_f < 1e-2, f"semantic mismatch vs f32 module, max err {err_f}"

    # Exercise the ragged-batch path (B not lane-aligned -> padded internally).
    B2 = 200
    x2 = jax.random.normal(jax.random.PRNGKey(1), (B2, IN_DIM), jnp.float32)
    out2 = jax.block_until_ready(
        discriminator_forward(x2, kparams, use_mxu_head=use_mxu_head))
    err2 = float(jnp.max(jnp.abs(out2 - _reference_f32(x2, raw))))
    assert out2.shape == (B2, OUT_DIM) and err2 < 1e-2, \
        f"ragged-batch mismatch, max err {err2}"

    print("KERNEL_OK")
</pallas_src>

<mosaic_0001>
module attributes {stable_mosaic.version = 11 : i64} {
  func.func @_mlp_kernel_mxu_head(%arg0: i32, %arg1: memref<2x256xf32, #tpu.memory_space<vmem>>, %arg2: memref<512x8xf32, #tpu.memory_space<vmem>>, %arg3: memref<512x512xbf16, #tpu.memory_space<vmem>>, %arg4: memref<512x512xbf16, #tpu.memory_space<vmem>>, %arg5: memref<8x512xbf16, #tpu.memory_space<vmem>>, %arg6: memref<1x256xf32, #tpu.memory_space<vmem>>) attributes {dimension_semantics = [#tpu.dimension_semantics<parallel>], iteration_bounds = array<i64: 1>, scalar_prefetch = 0 : i64, scratch_operands = 0 : i64, tpu.core_type = #tpu.core_type<tc>, window_params = [{transform_indices = @transform_0, window_bounds = array<i64: 2, 256>}, {pipeline_mode = #tpu.pipeline_mode<synchronous>, transform_indices = @transform_1, window_bounds = array<i64: 512, 8>}, {pipeline_mode = #tpu.pipeline_mode<synchronous>, transform_indices = @transform_2, window_bounds = array<i64: 512, 512>}, {pipeline_mode = #tpu.pipeline_mode<synchronous>, transform_indices = @transform_3, window_bounds = array<i64: 512, 512>}, {pipeline_mode = #tpu.pipeline_mode<synchronous>, transform_indices = @transform_4, window_bounds = array<i64: 8, 512>}, {transform_indices = @transform_5, window_bounds = array<i64: 1, 256>}]} {
    %c0 = arith.constant 0 : index
    %c0_0 = arith.constant 0 : index
    %0 = vector.load %arg1[%c0, %c0_0] : memref<2x256xf32, #tpu.memory_space<vmem>>, vector<2x256xf32>
    %c0_1 = arith.constant 0 : index
    %c0_2 = arith.constant 0 : index
    %1 = vector.load %arg2[%c0_1, %c0_2] : memref<512x8xf32, #tpu.memory_space<vmem>>, vector<512x8xf32>
    %2 = vector.extract_strided_slice %1 {offsets = [0, 0], sizes = [512, 1], strides = [1, 1]} : vector<512x8xf32> to vector<512x1xf32>
    %3 = vector.extract_strided_slice %0 {offsets = [0, 0], sizes = [1, 256], strides = [1, 1]} : vector<2x256xf32> to vector<1x256xf32>
    %4 = vector.broadcast %2 : vector<512x1xf32> to vector<512x256xf32>
    %5 = vector.broadcast %3 : vector<1x256xf32> to vector<512x256xf32>
    %6 = arith.mulf %4, %5 : vector<512x256xf32>
    %7 = vector.extract_strided_slice %1 {offsets = [0, 1], sizes = [512, 1], strides = [1, 1]} : vector<512x8xf32> to vector<512x1xf32>
    %8 = vector.extract_strided_slice %0 {offsets = [1, 0], sizes = [1, 256], strides = [1, 1]} : vector<2x256xf32> to vector<1x256xf32>
    %9 = vector.broadcast %7 : vector<512x1xf32> to vector<512x256xf32>
    %10 = vector.broadcast %8 : vector<1x256xf32> to vector<512x256xf32>
    %11 = arith.mulf %9, %10 : vector<512x256xf32>
    %12 = arith.addf %6, %11 : vector<512x256xf32>
    %13 = vector.extract_strided_slice %1 {offsets = [0, 2], sizes = [512, 1], strides = [1, 1]} : vector<512x8xf32> to vector<512x1xf32>
    %14 = vector.broadcast %13 : vector<512x1xf32> to vector<512x256xf32>
    %15 = arith.addf %12, %14 : vector<512x256xf32>
    %cst = arith.constant 0.000000e+00 : f32
    %16 = vector.broadcast %cst : f32 to vector<512x256xf32>
    %17 = arith.maximumf %15, %16 : vector<512x256xf32>
    %c0_3 = arith.constant 0 : index
    %c0_4 = arith.constant 0 : index
    %18 = vector.load %arg3[%c0_3, %c0_4] : memref<512x512xbf16, #tpu.memory_space<vmem>>, vector<512x512xbf16>
    %19 = arith.truncf %17 : vector<512x256xf32> to vector<512x256xbf16>
    %cst_5 = arith.constant dense<0.000000e+00> : vector<512x256xf32>
    %20 = tpu.matmul %18, %19, %cst_5 {dimension_numbers = #tpu.dot_dimension_numbers<[1], [0], [0], [1], [0, 0, 1, 1], [], []>} : vector<512x512xbf16>, vector<512x256xbf16>, vector<512x256xf32> -> vector<512x256xf32>
    %21 = vector.extract_strided_slice %1 {offsets = [0, 3], sizes = [512, 1], strides = [1, 1]} : vector<512x8xf32> to vector<512x1xf32>
    %22 = vector.broadcast %21 : vector<512x1xf32> to vector<512x256xf32>
    %23 = arith.addf %20, %22 : vector<512x256xf32>
    %cst_6 = arith.constant 0.000000e+00 : f32
    %24 = vector.broadcast %cst_6 : f32 to vector<512x256xf32>
    %25 = arith.maximumf %23, %24 : vector<512x256xf32>
    %c0_7 = arith.constant 0 : index
    %c0_8 = arith.constant 0 : index
    %26 = vector.load %arg4[%c0_7, %c0_8] : memref<512x512xbf16, #tpu.memory_space<vmem>>, vector<512x512xbf16>
    %27 = arith.truncf %25 : vector<512x256xf32> to vector<512x256xbf16>
    %cst_9 = arith.constant dense<0.000000e+00> : vector<512x256xf32>
    %28 = tpu.matmul %26, %27, %cst_9 {dimension_numbers = #tpu.dot_dimension_numbers<[1], [0], [0], [1], [0, 0, 1, 1], [], []>} : vector<512x512xbf16>, vector<512x256xbf16>, vector<512x256xf32> -> vector<512x256xf32>
    %29 = vector.extract_strided_slice %1 {offsets = [0, 4], sizes = [512, 1], strides = [1, 1]} : vector<512x8xf32> to vector<512x1xf32>
    %30 = vector.broadcast %29 : vector<512x1xf32> to vector<512x256xf32>
    %31 = arith.addf %28, %30 : vector<512x256xf32>
    %cst_10 = arith.constant 0.000000e+00 : f32
    %32 = vector.broadcast %cst_10 : f32 to vector<512x256xf32>
    %33 = arith.maximumf %31, %32 : vector<512x256xf32>
    %c0_11 = arith.constant 0 : index
    %c0_12 = arith.constant 0 : index
    %34 = vector.load %arg5[%c0_11, %c0_12] : memref<8x512xbf16, #tpu.memory_space<vmem>>, vector<8x512xbf16>
    %35 = arith.truncf %33 : vector<512x256xf32> to vector<512x256xbf16>
    %cst_13 = arith.constant dense<0.000000e+00> : vector<8x256xf32>
    %36 = tpu.matmul %34, %35, %cst_13 {dimension_numbers = #tpu.dot_dimension_numbers<[1], [0], [0], [1], [0, 0, 1, 1], [], []>} : vector<8x512xbf16>, vector<512x256xbf16>, vector<8x256xf32> -> vector<8x256xf32>
    %37 = vector.extract_strided_slice %36 {offsets = [0, 0], sizes = [1, 256], strides = [1, 1]} : vector<8x256xf32> to vector<1x256xf32>
    %38 = vector.extract_strided_slice %1 {offsets = [0, 6], sizes = [1, 1], strides = [1, 1]} : vector<512x8xf32> to vector<1x1xf32>
    %39 = vector.broadcast %38 : vector<1x1xf32> to vector<1x256xf32>
    %40 = arith.addf %37, %39 : vector<1x256xf32>
    %cst_14 = arith.constant 0.000000e+00 : f32
    %41 = vector.broadcast %cst_14 : f32 to vector<1x256xf32>
    %42 = arith.subf %41, %40 : vector<1x256xf32>
    %43 = math.exp %42 : vector<1x256xf32>
    %cst_15 = arith.constant 1.000000e+00 : f32
    %44 = vector.broadcast %cst_15 : f32 to vector<1x256xf32>
    %45 = arith.addf %44, %43 : vector<1x256xf32>
    %cst_16 = arith.constant 1.000000e+00 : f32
    %46 = vector.broadcast %cst_16 : f32 to vector<1x256xf32>
    %47 = arith.divf %46, %45 : vector<1x256xf32>
    %c0_17 = arith.constant 0 : index
    %c0_18 = arith.constant 0 : index
    %48 = vector.load %arg6[%c0_17, %c0_18] : memref<1x256xf32, #tpu.memory_space<vmem>>, vector<1x256xf32>
    tpu.vector_store %arg6[%c0_17, %c0_18], %47 {strides = array<i32>} : memref<1x256xf32, #tpu.memory_space<vmem>>, vector<1x256xf32>,
    return
  }
  func.func @transform_0(%arg0: i32) -> (i32, i32) {
    %c0_i32 = arith.constant 0 : i32
    %c0_i32_0 = arith.constant 0 : i32
    return %c0_i32, %arg0 : i32, i32
  }
  func.func @transform_1(%arg0: i32) -> (i32, i32) {
    %c0_i32 = arith.constant 0 : i32
    %c0_i32_0 = arith.constant 0 : i32
    %c0_i32_1 = arith.constant 0 : i32
    return %c0_i32, %c0_i32_0 : i32, i32
  }
  func.func @transform_2(%arg0: i32) -> (i32, i32) {
    %c0_i32 = arith.constant 0 : i32
    %c0_i32_0 = arith.constant 0 : i32
    %c0_i32_1 = arith.constant 0 : i32
    return %c0_i32, %c0_i32_0 : i32, i32
  }
  func.func @transform_3(%arg0: i32) -> (i32, i32) {
    %c0_i32 = arith.constant 0 : i32
    %c0_i32_0 = arith.constant 0 : i32
    %c0_i32_1 = arith.constant 0 : i32
    return %c0_i32, %c0_i32_0 : i32, i32
  }
  func.func @transform_4(%arg0: i32) -> (i32, i32) {
    %c0_i32 = arith.constant 0 : i32
    %c0_i32_0 = arith.constant 0 : i32
    %c0_i32_1 = arith.constant 0 : i32
    return %c0_i32, %c0_i32_0 : i32, i32
  }
  func.func @transform_5(%arg0: i32) -> (i32, i32) {
    %c0_i32 = arith.constant 0 : i32
    %c0_i32_0 = arith.constant 0 : i32
    return %c0_i32, %arg0 : i32, i32
  }
}

</mosaic_0001>

<bundles_post_ra>
// kernel: tpu_custom_call.1
= control target key start
LH: loop header
LB: loop body
LE: loop exit
PB: predicated region body
PF: predicated region fallthrough
CT: control target
= control target key end

     0   :  { %10 = vsyncpa [#allocation3], 0  ;;  %s10110_s0 = inlined_call_operand.vmem [shape: f32[2,256], index: 0, kind: input, shape index: {}]   ;;  %s10111_s1 = inlined_call_operand.vmem [shape: f32[512,8], index: 1, kind: input, shape index: {}]   ;;  %s10112_s2 = inlined_call_operand.hbm [shape: bf16[512,512], index: 2, kind: input, shape index: {}]   ;;  %s10113_s3 = inlined_call_operand.hbm [shape: bf16[512,512], index: 3, kind: input, shape index: {}]   ;;  %s10114_s4 = inlined_call_operand.vmem [shape: bf16[8,512], index: 4, kind: input, shape index: {}]   ;;  %s10115_s5 = inlined_call_operand.hbm [shape: f32[1,256], index: 5, kind: output, shape index: {}]  }
   0x1   :  { %11 = vsyncpa [#allocation6], 0 }
   0x2   :  { %12 = vsyncpa [#allocation4], 0  ;;  %s6661_s18 = smov [#allocation2]  }
   0x3   :  { %s22_s19 = sshll.u32 %s6661_s18, 4  ;;  %s23_s19 = int_to_ptr.vmem [resolvable:$true] %s22_s19 }
   0x4   :  { %s6603_s20 = scalar_lea.vmem %s23_s19, 16384  ;;  %p6608_p1 = scmp.lt.s32.totalorder %s23_s19, %s23_s19 }
   0x5   :  { %p6604_p0 = scmp.ne.s32.totalorder %s23_s19, %s6603_s20  ;;  %p6609_p2 = scmp.lt.s32.totalorder %s6603_s20, %s6603_s20 }
   0x7   :  { %p6610_p3 = por %p6609_p2, %p6608_p1 }
   0x9   :  { %p6611_p4 = pnand %p6610_p3, %p6604_p0 }
   0xb   :  { %6614 = shalt.err (!%p6611_p4)
}
   0xc   :  { %s6662_s21 = smov 256   ;;  %s6663_s22 = smov 16  }
   0xd   :  { %28 = dma.hbm_to_vmem [thread:$0]  %s10112_s2, 16384, %s23_s19, [#allocation3], %s6662_s21, %s6662_s21, %s6663_s22  }
   0xe   :  { %s6664_s25 = smov [#allocation5]  }
   0xf   :  { %s34_s26 = sshll.u32 %s6664_s25, 4  ;;  %s35_s26 = int_to_ptr.vmem [resolvable:$true] %s34_s26 }
  0x10   :  { %s6623_s27 = scalar_lea.vmem %s35_s26, 16384  ;;  %p6628_p6 = scmp.lt.s32.totalorder %s35_s26, %s35_s26 }
  0x11   :  { %p6624_p5 = scmp.ne.s32.totalorder %s35_s26, %s6623_s27  ;;  %p6629_p7 = scmp.lt.s32.totalorder %s6623_s27, %s6623_s27 }
  0x13   :  { %p6630_p8 = por %p6629_p7, %p6628_p6 }
  0x15   :  { %p6631_p9 = pnand %p6630_p8, %p6624_p5 }
  0x17   :  { %6634 = shalt.err (!%p6631_p9)
}
  0x18   :  { %40 = dma.hbm_to_vmem [thread:$0]  %s10113_s3, 16384, %s35_s26, [#allocation6], %s6662_s21, %s6662_s21, %s6663_s22  }
  0x19   :  { %6655 = dma.done.wait [#allocation3], 16384  }
  0x1a   :  { %6656 = vsyncadd [#allocation3], 4294950912 }
  0x1b   :  { %6657 = dma.done.wait [#allocation6], 16384  }
  0x1c   :  { %6658 = vsyncadd [#allocation6], 4294950912  ;;  %v10118_v0 = vmov 1   ;;  %v10116_v1 = vmov 0   ;;  %v6714_v2 = vld [vmem:[%s10111_s1 + $0x70] sm:$0xff]  ;;  %v65_v3 = vld [vmem:[%s10111_s1 + $0x78] sm:$0xff] }
  0x1d   :  { %5959 = vset.pattern.permute.xlu1 %v10118_v0  ;;  %5958 = vset.pattern.permute.xlu0 %v10116_v1  ;;  %v6724_v4 = vld [vmem:[%s10111_s1 + $0x170] sm:$0xff]  ;;  %v97_v5 = vld [vmem:[%s10111_s1 + $0x178] sm:$0xff]  ;;  %v63_v6 = vld [vmem:[%s10111_s1 + $0x68] sm:$0xff]  ;;  %v10126_v12 = vmov 2  }
  0x1e   :  { %638 = vperm.xlu1 %5959, %v6714_v2   ;;  %186 = vperm.xlu0 %5958, %v6714_v2   ;;  %v6741_v7 = vld [vmem:[%s10111_s1 + $0x60] sm:$0xff]  ;;  %v6746_v8 = vld [vmem:[%s10111_s1 + $0x168] sm:$0xff]  ;;  %v6753_v9 = vld [vmem:[%s10111_s1 + $0x58] sm:$0xff] }
  0x1f   :  { %v6761_v10 = vld [vmem:[%s10111_s1 + $0x158] sm:$0xff]  ;;  %v6767_v11 = vld [vmem:[%s10111_s1 + $0x48] sm:$0xff]  ;;  %v6774_v13 = vld [vmem:[%s10111_s1 + $0x160] sm:$0xff] }
  0x20   :  { %v6779_v14 = vld [vmem:[%s10111_s1 + $0x148] sm:$0xff]  ;;  %v6786_v15 = vld [vmem:[%s10111_s1 + $0x38] sm:$0xff]  ;;  %v6815_v19 = vld [vmem:[%s10111_s1 + $0x50] sm:$0xff] }
  0x21   :  { %v6796_v16 = vld [vmem:[%s10111_s1 + $0x138] sm:$0xff]  ;;  %v6801_v17 = vld [vmem:[%s10111_s1 + $0x28] sm:$0xff]  ;;  %v6854_v25 = vld [vmem:[%s10111_s1 + $0x150] sm:$0xff] }
  0x22   :  { %642 = vperm.xlu1 %5959, %v65_v3   ;;  %5961 = vset.pattern.permute.xlu0 %v10118_v0  ;;  %v6808_v18 = vld [vmem:[%s10111_s1 + $0x128] sm:$0xff]  ;;  %v6820_v20 = vld [vmem:[%s10111_s1 + $0x18] sm:$0xff]  ;;  %v6881_v31 = vld [vmem:[%s10111_s1 + $0x40] sm:$0xff] }
  0x23   :  { %766 = vperm.xlu0 %5961, %v6724_v4   ;;  %v6828_v21 = vld [vmem:[%s10111_s1 + $0x118] sm:$0xff]  ;;  %v6837_v22 = vld [vmem:[%s10111_s1 + $0x8] sm:$0xff]  ;;  %v6905_v36 = vld [vmem:[%s10111_s1 + $0x140] sm:$0xff] }
  0x24   :  { %v6842_v23 = vld [vmem:[%s10111_s1 + $0x108] sm:$0xff]  ;;  %v81_v24 = vld [vmem:[%s10111_s1 + $0xf8] sm:$0xff]  ;;  %v56_v46 = vld [vmem:[%s10111_s1 + $0x30] sm:$0xff] }
  0x25   :  { %v113_v26 = vld [vmem:[%s10111_s1 + $0x1f8] sm:$0xff]  ;;  %v79_v27 = vld [vmem:[%s10111_s1 + $0xe8] sm:$0xff]  ;;  %v88_v57 = vld [vmem:[%s10111_s1 + $0x130] sm:$0xff] }
  0x26   :  { %5960 = vset.pattern.permute.xlu1 %v10116_v1  ;;  %v111_v28 = vld [vmem:[%s10111_s1 + $0x1e8] sm:$0xff]  ;;  %v77_v29 = vld [vmem:[%s10111_s1 + $0xd8] sm:$0xff] }
  0x27   :  { %351 = vperm.xlu1 %5960, %v97_v5   ;;  %5962 = vset.pattern.permute.xlu0 %v10116_v1  ;;  %v109_v30 = vld [vmem:[%s10111_s1 + $0x1d8] sm:$0xff]  ;;  %v75_v32 = vld [vmem:[%s10111_s1 + $0xc8] sm:$0xff] }
  0x28   :  { %191 = vperm.xlu0 %5962, %v65_v3   ;;  %v107_v33 = vld [vmem:[%s10111_s1 + $0x1c8] sm:$0xff]  ;;  %v73_v34 = vld [vmem:[%s10111_s1 + $0xb8] sm:$0xff] }
  0x29   :  { %v105_v35 = vld [vmem:[%s10111_s1 + $0x1b8] sm:$0xff]  ;;  %v71_v37 = vld [vmem:[%s10111_s1 + $0xa8] sm:$0xff] }
  0x2a   :  { %v103_v38 = vld [vmem:[%s10111_s1 + $0x1a8] sm:$0xff]  ;;  %v69_v39 = vld [vmem:[%s10111_s1 + $0x98] sm:$0xff] }
  0x2b   :  { %5963 = vset.pattern.permute.xlu1 %v10118_v0  ;;  %v101_v41 = vld [vmem:[%s10111_s1 + $0x198] sm:$0xff]  ;;  %v6934_v44 = vld [vmem:[%s10111_s1 + $0x88] sm:$0xff] }
  0x2c   :  { %770 = vperm.xlu1 %5963, %v97_v5   ;;  %346 = vperm.xlu0 %5962, %v6724_v4   ;;  %10253 = vst [vmem:[#allocation11_spill] sm:$0xff] %v6934_v44  ;;  %v6946_v47 = vld [vmem:[%s10111_s1 + $0x188] sm:$0xff] }
  0x2d   :  { %10254 = vst [vmem:[#allocation12_spill] sm:$0xff] %v6946_v47 }
  0x30   :  { %5964 = vset.pattern.permute.xlu1 %v10116_v1  ;;  %181 = vperm.xlu0 %5962, %v63_v6  }
  0x31   :  { %176 = vperm.xlu1 %5964, %v6741_v7  }
  0x34   :  { %341 = vperm.xlu0 %5962, %v6746_v8  }
  0x35   :  { %5965 = vset.pattern.permute.xlu1 %v10118_v0 }
  0x36   :  { %630 = vperm.xlu1 %5965, %v6741_v7  }
  0x38   :  { %171 = vperm.xlu0 %5962, %v6753_v9  }
  0x3a   :  { %634 = vperm.xlu1 %5965, %v63_v6  }
  0x3c   :  { %331 = vperm.xlu0 %5962, %v6761_v10  }
  0x3e   :  { %5966 = vset.pattern.permute.xlu1 %v10126_v12 }
  0x3f   :  { %1172 = vperm.xlu1 %5966, %v65_v3  }
  0x40   :  { %161 = vperm.xlu0 %5962, %v6767_v11  }
  0x43   :  { %5967 = vset.pattern.permute.xlu1 %v10116_v1 }
  0x44   :  { %336 = vperm.xlu1 %5967, %v6774_v13   ;;  %321 = vperm.xlu0 %5962, %v6779_v14  }
  0x48   :  { %5968 = vset.pattern.permute.xlu1 %v10118_v0  ;;  %151 = vperm.xlu0 %5962, %v6786_v15  }
  0x49   :  { %758 = vperm.xlu1 %5968, %v6774_v13  }
  0x4c   :  { %311 = vperm.xlu0 %5962, %v6796_v16  }
  0x4d   :  { %762 = vperm.xlu1 %5968, %v6746_v8  }
  0x50   :  { %141 = vperm.xlu0 %5962, %v6801_v17  }
  0x51   :  { %5969 = vset.pattern.permute.xlu1 %v10126_v12 }
  0x52   :  { %1300 = vperm.xlu1 %5969, %v97_v5  }
  0x54   :  { %301 = vperm.xlu0 %5962, %v6808_v18  }
  0x56   :  { %5970 = vset.pattern.permute.xlu1 %v10116_v1 }
  0x57   :  { %166 = vperm.xlu1 %5970, %v6815_v19  }
  0x58   :  { %131 = vperm.xlu0 %5962, %v6820_v20  }
  0x5b   :  { %5971 = vset.pattern.permute.xlu1 %v10118_v0 }
  0x5c   :  { %622 = vperm.xlu1 %5971, %v6815_v19   ;;  %291 = vperm.xlu0 %5962, %v6828_v21  }
  0x60   :  { %626 = vperm.xlu1 %5971, %v6753_v9   ;;  %121 = vperm.xlu0 %5962, %v6837_v22  }
  0x64   :  { %5972 = vset.pattern.permute.xlu1 %v10126_v12  ;;  %281 = vperm.xlu0 %5962, %v6842_v23  }
  0x65   :  { %1164 = vperm.xlu1 %5972, %v63_v6  }
  0x68   :  { %271 = vperm.xlu0 %5962, %v81_v24   ;;  %v52_v24 = vld [vmem:[%s10111_s1 + $0x10] sm:$0xff] }
  0x69   :  { %5973 = vset.pattern.permute.xlu1 %v10116_v1 }
  0x6a   :  { %326 = vperm.xlu1 %5973, %v6854_v25  }
  0x6c   :  { %431 = vperm.xlu0 %5962, %v113_v26  }
  0x6e   :  { %5974 = vset.pattern.permute.xlu1 %v10118_v0 }
  0x6f   :  { %750 = vperm.xlu1 %5974, %v6854_v25  }
  0x70   :  { %261 = vperm.xlu0 %5962, %v79_v27   ;;  %v84_v27 = vld [vmem:[%s10111_s1 + $0x110] sm:$0xff] }
  0x73   :  { %754 = vperm.xlu1 %5974, %v6761_v10  }
  0x74   :  { %421 = vperm.xlu0 %5962, %v111_v28  }
  0x77   :  { %5975 = vset.pattern.permute.xlu1 %v10126_v12 }
  0x78   :  { %1292 = vperm.xlu1 %5975, %v6746_v8   ;;  %251 = vperm.xlu0 %5962, %v77_v29   ;;  %v7053_v29 = vld [vmem:[%s10111_s1] sm:$0xff] }
  0x7c   :  { %5976 = vset.pattern.permute.xlu1 %v10116_v1  ;;  %411 = vperm.xlu0 %5962, %v109_v30  }
  0x7d   :  { %156 = vperm.xlu1 %5976, %v6881_v31  }
  0x80   :  { %241 = vperm.xlu0 %5962, %v75_v32   ;;  %v7064_v32 = vld [vmem:[%s10111_s1 + $0x100] sm:$0xff] }
  0x81   :  { %5977 = vset.pattern.permute.xlu1 %v10118_v0 }
  0x82   :  { %614 = vperm.xlu1 %5977, %v6881_v31  }
  0x84   :  { %401 = vperm.xlu0 %5962, %v107_v33  }
  0x86   :  { %618 = vperm.xlu1 %5977, %v6767_v11  }
  0x88   :  { %231 = vperm.xlu0 %5962, %v73_v34   ;;  %v7073_v34 = vld [vmem:[%s10111_s1 + $0xf0] sm:$0xff] }
  0x89   :  { %10265 = vst [vmem:[#allocation23_spill] sm:$0xff] %v7073_v34 }
  0x8a   :  { %5978 = vset.pattern.permute.xlu1 %v10126_v12 }
  0x8b   :  { %1156 = vperm.xlu1 %5978, %v6753_v9  }
  0x8c   :  { %391 = vperm.xlu0 %5962, %v105_v35  }
  0x8f   :  { %5979 = vset.pattern.permute.xlu1 %v10116_v1 }
  0x90   :  { %316 = vperm.xlu1 %5979, %v6905_v36   ;;  %221 = vperm.xlu0 %5962, %v71_v37   ;;  %v7084_v37 = vld [vmem:[%s10111_s1 + $0x1f0] sm:$0xff] }
  0x91   :  { %10267 = vst [vmem:[#allocation25_spill] sm:$0xff] %v7084_v37 }
  0x94   :  { %5980 = vset.pattern.permute.xlu1 %v10118_v0  ;;  %381 = vperm.xlu0 %5962, %v103_v38  }
  0x95   :  { %742 = vperm.xlu1 %5980, %v6905_v36  }
  0x98   :  { %211 = vperm.xlu0 %5962, %v69_v39  }
  0x99   :  { %v6920_v40 = vpop.permute.xlu1 %638  ;;  %746 = vperm.xlu1 %5980, %v6779_v14   ;;  %v6926_v42 = vpop.permute.xlu0 %186 }
  0x9c   :  { %371 = vperm.xlu0 %5962, %v101_v41  }
  0x9d   :  { %v6928_v43 = vpop.permute.xlu1 %642  ;;  %5981 = vset.pattern.permute.xlu1 %v10126_v12 }
  0x9e   :  { %1284 = vperm.xlu1 %5981, %v6761_v10   ;;  %v6937_v45 = vpop.permute.xlu0 %766 }
  0xa0   :  { %201 = vperm.xlu0 %5962, %v6934_v44  }
  0xa2   :  { %v6948_v48 = vpop.permute.xlu1 %351  ;;  %5982 = vset.pattern.permute.xlu1 %v10116_v1 }
  0xa3   :  { %v6951_v49 = vpop.permute.xlu0 %191  ;;  %146 = vperm.xlu1 %5982, %v56_v46  }
  0xa4   :  { %361 = vperm.xlu0 %5962, %v6946_v47  }
  0xa7   :  { %v6954_v50 = vpop.permute.xlu1 %770  ;;  %5983 = vset.pattern.permute.xlu1 %v10118_v0  ;;  %v6957_v51 = vpop.permute.xlu0 %346 }
  0xa8   :  { %606 = vperm.xlu1 %5983, %v56_v46   ;;  %6052 = vset.pattern.permute.xlu0 %v10126_v12 }
  0xa9   :  { %1168 = vperm.xlu0 %6052, %v6714_v2  }
  0xab   :  { %v6961_v52 = vpop.permute.xlu0 %181 }
  0xac   :  { %v6963_v53 = vpop.permute.xlu1 %176  ;;  %610 = vperm.xlu1 %5983, %v6786_v15  }
  0xad   :  { %1296 = vperm.xlu0 %6052, %v6724_v4   ;;  %v54_v4 = vld [vmem:[%s10111_s1 + $0x20] sm:$0xff] }
  0xaf   :  { %v6967_v54 = vpop.permute.xlu0 %341 }
  0xb0   :  { %5984 = vset.pattern.permute.xlu1 %v10126_v12 }
  0xb1   :  { %v6970_v55 = vpop.permute.xlu1 %630  ;;  %1148 = vperm.xlu1 %5984, %v6767_v11   ;;  %1160 = vperm.xlu0 %6052, %v6741_v7  }
  0xb3   :  { %v6974_v56 = vpop.permute.xlu0 %171 }
  0xb5   :  { %v6979_v58 = vpop.permute.xlu1 %634  ;;  %5985 = vset.pattern.permute.xlu1 %v10116_v1  ;;  %1288 = vperm.xlu0 %6052, %v6774_v13   ;;  %v86_v13 = vld [vmem:[%s10111_s1 + $0x120] sm:$0xff] }
  0xb6   :  { %306 = vperm.xlu1 %5985, %v88_v57  }
  0xb7   :  { %v6983_v59 = vpop.permute.xlu0 %331 }
  0xb9   :  { %1152 = vperm.xlu0 %6052, %v6815_v19  }
  0xba   :  { %v6986_v60 = vpop.permute.xlu1 %1172  ;;  %5986 = vset.pattern.permute.xlu1 %v10118_v0 }
  0xbb   :  { %734 = vperm.xlu1 %5986, %v88_v57   ;;  %v6989_v61 = vpop.permute.xlu0 %161 }
  0xbd   :  { %1280 = vperm.xlu0 %6052, %v6854_v25  }
  0xbf   :  { %v6992_v62 = vpop.permute.xlu1 %336  ;;  %738 = vperm.xlu1 %5986, %v6796_v16   ;;  %v6995_v63 = vpop.permute.xlu0 %321 }
  0xc1   :  { %1144 = vperm.xlu0 %6052, %v6881_v31  }
  0xc3   :  { %5987 = vset.pattern.permute.xlu1 %v10126_v12  ;;  %v6999_v2 = vpop.permute.xlu0 %151 }
  0xc4   :  { %10255 = vst [vmem:[#allocation13_spill] sm:$0xff] %v6999_v2  ;;  %v7001_v3 = vpop.permute.xlu1 %758  ;;  %1276 = vperm.xlu1 %5987, %v6779_v14  }
  0xc5   :  { %1272 = vperm.xlu0 %6052, %v6905_v36  }
  0xc7   :  { %v7008_v5 = vpop.permute.xlu0 %311 }
  0xc8   :  { %10256 = vst [vmem:[#allocation14_spill] sm:$0xff] %v7008_v5  ;;  %v7010_v6 = vpop.permute.xlu1 %762  ;;  %5988 = vset.pattern.permute.xlu1 %v10116_v1 }
  0xc9   :  { %136 = vperm.xlu1 %5988, %v54_v4   ;;  %1136 = vperm.xlu0 %6052, %v56_v46  }
  0xcb   :  { %v7013_v7 = vpop.permute.xlu0 %141 }
  0xcc   :  { %10257 = vst [vmem:[#allocation15_spill] sm:$0xff] %v7013_v7 }
  0xcd   :  { %v7015_v8 = vpop.permute.xlu1 %1300  ;;  %5989 = vset.pattern.permute.xlu1 %v10118_v0  ;;  %1264 = vperm.xlu0 %6052, %v88_v57   ;;  %v7106_v57 = vld [vmem:[%s10111_s1 + $0x1e0] sm:$0xff] }
  0xce   :  { %598 = vperm.xlu1 %5989, %v54_v4   ;;  %10271 = vst [vmem:[#allocation29_spill] sm:$0xff] %v7106_v57 }
  0xcf   :  { %v7018_v9 = vpop.permute.xlu0 %301 }
  0xd0   :  { %10258 = vst [vmem:[#allocation16_spill] sm:$0xff] %v7018_v9 }
  0xd1   :  { %1128 = vperm.xlu0 %6052, %v54_v4  }
  0xd2   :  { %v7020_v10 = vpop.permute.xlu1 %166  ;;  %602 = vperm.xlu1 %5989, %v6801_v17  }
  0xd3   :  { %v7023_v11 = vpop.permute.xlu0 %131 }
  0xd4   :  { %10259 = vst [vmem:[#allocation17_spill] sm:$0xff] %v7023_v11 }
  0xd5   :  { %1256 = vperm.xlu0 %6052, %v86_v13  }
  0xd6   :  { %5990 = vset.pattern.permute.xlu1 %v10126_v12 }
  0xd7   :  { %v7029_v14 = vpop.permute.xlu1 %622  ;;  %1140 = vperm.xlu1 %5990, %v6786_v15   ;;  %v7032_v19 = vpop.permute.xlu0 %291 }
  0xd8   :  { %10260 = vst [vmem:[#allocation18_spill] sm:$0xff] %v7032_v19 }
  0xd9   :  { %1120 = vperm.xlu0 %6052, %v52_v24  }
  0xdb   :  { %v7037_v25 = vpop.permute.xlu1 %626  ;;  %5991 = vset.pattern.permute.xlu1 %v10116_v1  ;;  %v7040_v26 = vpop.permute.xlu0 %121 }
  0xdc   :  { %10261 = vst [vmem:[#allocation19_spill] sm:$0xff] %v7040_v26  ;;  %296 = vperm.xlu1 %5991, %v86_v13  }
  0xdd   :  { %1248 = vperm.xlu0 %6052, %v84_v27  }
  0xdf   :  { %v7045_v15 = vpop.permute.xlu0 %281 }
  0xe0   :  { %10262 = vst [vmem:[#allocation20_spill] sm:$0xff] %v7045_v15  ;;  %v7047_v28 = vpop.permute.xlu1 %1164  ;;  %5992 = vset.pattern.permute.xlu1 %v10118_v0 }
  0xe1   :  { %726 = vperm.xlu1 %5992, %v86_v13   ;;  %1112 = vperm.xlu0 %6052, %v7053_v29  }
  0xe3   :  { %v7056_v30 = vpop.permute.xlu0 %271 }
  0xe4   :  { %10263 = vst [vmem:[#allocation21_spill] sm:$0xff] %v7056_v30 }
  0xe5   :  { %v7058_v31 = vpop.permute.xlu1 %326  ;;  %730 = vperm.xlu1 %5992, %v6808_v18   ;;  %1240 = vperm.xlu0 %6052, %v7064_v32  }
  0xe7   :  { %v7067_v33 = vpop.permute.xlu0 %431 }
  0xe8   :  { %10264 = vst [vmem:[#allocation22_spill] sm:$0xff] %v7067_v33 }
  0xe9   :  { %5993 = vset.pattern.permute.xlu1 %v10126_v12  ;;  %1232 = vperm.xlu0 %6052, %v7073_v34  }
  0xea   :  { %v7075_v35 = vpop.permute.xlu1 %750  ;;  %1268 = vperm.xlu1 %5993, %v6796_v16   ;;  %v7095_v16 = vld [vmem:[%s10111_s1 + $0xe0] sm:$0xff] }
  0xeb   :  { %v7079_v36 = vpop.permute.xlu0 %261  ;;  %10269 = vst [vmem:[#allocation27_spill] sm:$0xff] %v7095_v16 }
  0xec   :  { %10266 = vst [vmem:[#allocation24_spill] sm:$0xff] %v7079_v36  ;;  %v10275_v36 = vmov 0  }
  0xed   :  { %1360 = vperm.xlu0 %6052, %v7084_v37  }
  0xee   :  { %v7086_v38 = vpop.permute.xlu1 %754  ;;  %5994 = vset.pattern.permute.xlu1 %v10116_v1 }
  0xef   :  { %126 = vperm.xlu1 %5994, %v52_v24   ;;  %v7090_v39 = vpop.permute.xlu0 %421 }
  0xf0   :  { %10268 = vst [vmem:[#allocation26_spill] sm:$0xff] %v7090_v39 }
  0xf1   :  { %1224 = vperm.xlu0 %6052, %v7095_v16  }
  0xf3   :  { %v7098_v41 = vpop.permute.xlu1 %1292  ;;  %5995 = vset.pattern.permute.xlu1 %v10118_v0  ;;  %v7101_v46 = vpop.permute.xlu0 %251 }
  0xf4   :  { %10270 = vst [vmem:[#allocation28_spill] sm:$0xff] %v7101_v46  ;;  %590 = vperm.xlu1 %5995, %v52_v24   ;;  %v10131_v46 = vlaneseq }
  0xf5   :  { %1352 = vperm.xlu0 %6052, %v7106_v57   ;;  %v10283_v57 = vmov 2  }
  0xf6   :  { %v7128_v33 = vshrl.u32 %v10131_v46, 7  ;;  %v49_v46 = vld [vmem:[%s10110_s0] sm:$0xf] }
  0xf7   :  { %v7109_v4 = vpop.permute.xlu0 %411 }
  0xf8   :  { %10272 = vst [vmem:[#allocation30_spill] sm:$0xff] %v7109_v4  ;;  %v7111_v13 = vpop.permute.xlu1 %156  ;;  %594 = vperm.xlu1 %5995, %v6820_v20   ;;  %10277 = vst [vmem:[#allocation34_spill] sm:$0xff] %v7128_v33  ;;  %v437_v15 = vsub.s32 0, %v7128_v33 }
  0xfa   :  { %v438_v11 = vrot.slane %v49_v46, %v437_v15 }
  0xfb   :  { %v7114_v1 = vpop.permute.xlu0 %241 }
  0xfc   :  { %10273 = vst [vmem:[#allocation31_spill] sm:$0xff] %v7114_v1  ;;  %5996 = vset.pattern.permute.xlu1 %v10126_v12  ;;  %v10278_v12 = vmov 1  }
  0xfd   :  { %v7117_v0 = vpop.permute.xlu1 %614  ;;  %1132 = vperm.xlu1 %5996, %v6801_v17   ;;  %v7138_v17 = vld [vmem:[%s10111_s1 + $0xd0] sm:$0xff] }
  0xfe   :  { %10280 = vst [vmem:[#allocation36_spill] sm:$0xff] %v7138_v17  ;;  %1216 = vperm.xlu0 %6052, %v7138_v17  }
  0xff   :  { %v7120_v24 = vpop.permute.xlu0 %401 }
 0x100   :  { %10274 = vst [vmem:[#allocation32_spill] sm:$0xff] %v7120_v24  ;;  %v839_v24 = vsub.s32 1, %v7128_v33 }
 0x101   :  { %v7122_v39 = vpop.permute.xlu1 %618  ;;  %5997 = vset.pattern.permute.xlu1 %v10275_v36 }
 0x102   :  { %286 = vperm.xlu1 %5997, %v84_v27   ;;  %v840_v19 = vrot.slane %v49_v46, %v839_v24 }
 0x103   :  { %v7125_v4 = vpop.permute.xlu0 %231 }
 0x104   :  { %10276 = vst [vmem:[#allocation33_spill] sm:$0xff] %v7125_v4  ;;  %v843_v4 = vsub.s32 3, %v7128_v33  ;;  %v7159_v44 = vrot.slane %v840_v19, %v839_v24 }
 0x106   :  { %v7130_v1 = vpop.permute.xlu1 %1156  ;;  %5998 = vset.pattern.permute.xlu1 %v10278_v12  ;;  %v844_v9 = vrot.slane %v49_v46, %v843_v4 }
 0x107   :  { %718 = vperm.xlu1 %5998, %v84_v27   ;;  %v7133_v30 = vpop.permute.xlu0 %391  ;;  %v441_v27 = vsub.s32 2, %v7128_v33  ;;  %v7161_v33 = vrot.slane %v438_v11, %v437_v15 }
 0x108   :  { %10279 = vst [vmem:[#allocation35_spill] sm:$0xff] %v7133_v30  ;;  %v7163_v16 = vrot.slane %v844_v9, %v839_v24  ;;  %v947_v24 = vmul.f32 %v7159_v44, %v6937_v45 }
 0x109   :  { %v442_v47 = vrot.slane %v49_v46, %v441_v27  ;;  %v883_v46 = vmul.f32 %v7159_v44, %v6920_v40  ;;  %v483_v11 = vmul.f32 %v7161_v33, %v6951_v49  ;;  %v949_v27 = vmul.f32 %v7159_v44, %v6954_v50 }
 0x10a   :  { %v884_v9 = vmul.f32 %v7163_v16, %v6920_v40  ;;  %v545_v40 = vmul.f32 %v7161_v33, %v6957_v51  ;;  %v547_v37 = vmul.f32 %v7161_v33, %v6948_v48  ;;  %v950_v2 = vmul.f32 %v7163_v16, %v6954_v50 }
 0x10b   :  { %v7148_v30 = vpop.permute.xlu1 %316  ;;  %722 = vperm.xlu1 %5998, %v6828_v21   ;;  %v7151_v26 = vpop.permute.xlu0 %221  ;;  %v7165_v5 = vrot.slane %v442_v47, %v437_v15  ;;  %v879_v50 = vmul.f32 %v7159_v44, %v6970_v55 }
 0x10c   :  { %10281 = vst [vmem:[#allocation37_spill] sm:$0xff] %v7148_v30  ;;  %10282 = vst [vmem:[#allocation38_spill] sm:$0xff] %v7151_v26 }
 0x10d   :  { %v482_v47 = vmul.f32 %v7165_v5, %v6926_v42  ;;  %v484_v19 = vmul.f32 %v7165_v5, %v6951_v49  ;;  %v546_v34 = vmul.f32 %v7165_v5, %v6957_v51  ;;  %v880_v51 = vmul.f32 %v7163_v16, %v6970_v55 }
 0x10e   :  { %v477_v55 = vmul.f32 %v7161_v33, %v6963_v53 }
 0x10f   :  { %5999 = vset.pattern.permute.xlu1 %v10283_v57  ;;  %v7154_v17 = vpop.permute.xlu0 %381 }
 0x110   :  { %10284 = vst [vmem:[#allocation39_spill] sm:$0xff] %v7154_v17  ;;  %v7156_v7 = vpop.permute.xlu1 %742  ;;  %1260 = vperm.xlu1 %5999, %v6808_v18   ;;  %v481_v18 = vmul.f32 %v7161_v33, %v6926_v42  ;;  %v885_v42 = vmul.f32 %v7159_v44, %v6928_v43 }
 0x111   :  { %10285 = vst [vmem:[#allocation40_spill] sm:$0xff] %v7156_v7 }
 0x112   :  { %v1011_v49 = vadd.f32 %v883_v46, %v481_v18  ;;  %v1013_v7 = vadd.f32 %v885_v42, %v483_v11  ;;  %v1012_v46 = vadd.f32 %v884_v9, %v482_v47  ;;  %v881_v9 = vmul.f32 %v7159_v44, %v6979_v58 }
 0x113   :  { %v7167_v26 = vpop.permute.xlu0 %211  ;;  %v882_v47 = vmul.f32 %v7163_v16, %v6979_v58 }
 0x114   :  { %10286 = vst [vmem:[#allocation41_spill] sm:$0xff] %v7167_v26  ;;  %v7169_v4 = vpop.permute.xlu1 %746  ;;  %6000 = vset.pattern.permute.xlu1 %v10275_v36  ;;  %v886_v26 = vmul.f32 %v7163_v16, %v6928_v43  ;;  %v548_v43 = vmul.f32 %v7165_v5, %v6948_v48  ;;  %v479_v48 = vmul.f32 %v7161_v33, %v6961_v52 }
 0x115   :  { %10287 = vst [vmem:[#allocation42_spill] sm:$0xff] %v7169_v4  ;;  %116 = vperm.xlu1 %6000, %v7053_v29   ;;  %v7222_v4 = vadd.f32 %v947_v24, %v545_v40  ;;  %v1397_v58 = vadd.f32 %v6986_v60, %v1013_v7  ;;  %v7264_v7 = vmul.f32 %v7165_v5, %v6983_v59 }
 0x116   :  { %v1014_v18 = vadd.f32 %v886_v26, %v484_v19  ;;  %v480_v26 = vmul.f32 %v7165_v5, %v6961_v52  ;;  %v1078_v24 = vadd.f32 %v950_v2, %v548_v43  ;;  %v543_v52 = vmul.f32 %v7161_v33, %v6967_v54 }
 0x117   :  { %v7185_v15 = vpop.permute.xlu0 %371  ;;  %v7254_v2 = vadd.f32 %v879_v50, %v477_v55  ;;  %v7268_v43 = vmul.f32 %v7161_v33, %v6989_v61  ;;  %v944_v50 = vmul.f32 %v7163_v16, %v7001_v3 }
 0x118   :  { %10288 = vst [vmem:[#allocation43_spill] sm:$0xff] %v7185_v15  ;;  %v948_v15 = vmul.f32 %v7163_v16, %v6937_v45  ;;  %v7216_v45 = vld [vmem:[%s10111_s1 + $0x1d0] sm:$0xff]  ;;  %v1398_v42 = vadd.f32 %v6986_v60, %v1014_v18  ;;  %v1009_v60 = vadd.f32 %v881_v9, %v479_v48  ;;  %v943_v18 = vmul.f32 %v7159_v44, %v7001_v3 }
 0x119   :  { %v7197_v17 = vpop.permute.xlu1 %1284  ;;  %6001 = vset.pattern.permute.xlu1 %v10278_v12  ;;  %10290 = vst [vmem:[#allocation45_spill] sm:$0xff] %v7216_v45  ;;  %1344 = vperm.xlu0 %6052, %v7216_v45   ;;  %v542_v9 = vmul.f32 %v7165_v5, %v6992_v62  ;;  %v7290_v3 = vmul.f32 %v7161_v33, %v6995_v63 }
 0x11a   :  { %582 = vperm.xlu1 %6001, %v7053_v29   ;;  %v1077_v29 = vadd.f32 %v949_v27, %v547_v37  ;;  %v478_v37 = vmul.f32 %v7165_v5, %v6963_v53  ;;  %v1076_v19 = vadd.f32 %v948_v15, %v546_v34  ;;  %v544_v27 = vmul.f32 %v7165_v5, %v6967_v54 }
 0x11b   :  { %v7211_v30 = vpop.permute.xlu0 %201  ;;  %v475_v53 = vmul.f32 %v7161_v33, %v6974_v56  ;;  %v7260_v54 = vmul.f32 %v7161_v33, %v6983_v59  ;;  %v1010_v15 = vadd.f32 %v882_v47, %v480_v26  ;;  %v541_v59 = vmul.f32 %v7161_v33, %v6992_v62 }
 0x11c   :  { %10289 = vst [vmem:[#allocation44_spill] sm:$0xff] %v7211_v30  ;;  %v7256_v34 = vadd.f32 %v880_v51, %v478_v37  ;;  %v945_v51 = vmul.f32 %v7159_v44, %v7010_v6  ;;  %v1525_v26 = vmax.f32 %v1397_v58, 0.0  ;;  %v946_v47 = vmul.f32 %v7163_v16, %v7010_v6 }
 0x11d   :  { %v1462_v55 = vadd.f32 %v7015_v8, %v1078_v24  ;;  %v7297_v37 = vmul.f32 %v7165_v5, %v6995_v63  ;;  %v875_v58 = vmul.f32 %v7159_v44, %v7029_v14  ;;  %v876_v62 = vmul.f32 %v7163_v16, %v7029_v14 }
 0x11e   :  { %v7237_v11 = vpop.permute.xlu1 %146  ;;  %586 = vperm.xlu1 %6001, %v6837_v22   ;;  %v7252_v22 = vmul.f32 %v7165_v5, %v6974_v56  ;;  %v7272_v56 = vmul.f32 %v7165_v5, %v6989_v61  ;;  %v1526_v61 = vmax.f32 %v1398_v42, 0.0  ;;  %v7304_v45 = vadd.f32 %v943_v18, %v541_v59 }
 0x11f   :  { %10291 = vst [vmem:[#allocation46_spill] sm:$0xff] %v7237_v11  ;;  %v7245_v40 = vpop.permute.xlu0 %361  ;;  %v7306_v6 = vadd.f32 %v944_v50, %v542_v9  ;;  %v473_v24 = vmul.f32 %v7161_v33, %v7020_v10  ;;  %v474_v63 = vmul.f32 %v7165_v5, %v7020_v10  ;;  %v1074_v14 = vadd.f32 %v946_v47, %v544_v27 }
 0x120   :  { %10292 = vst [vmem:[#allocation47_spill] sm:$0xff] %v7245_v40  ;;  %v1590_v18 = vmax.f32 %v1462_v55, 0.0  ;;  %v878_v50 = vmul.f32 %v7163_v16, %v7037_v25  ;;  %v1393_v27 = vadd.f32 %v7047_v28, %v1009_v60  ;;  %v1394_v47 = vadd.f32 %v7047_v28, %v1010_v15 }
 0x121   :  { %v7320_v10 = vadd.f32 %v875_v58, %v473_v24  ;;  %v941_v55 = vmul.f32 %v7159_v44, %v7086_v38  ;;  %v537_v60 = vmul.f32 %v7161_v33, %v7058_v31  ;;  %v7348_v58 = vld [vmem:[%s10111_s1 + $0xc0] sm:$0xff] }
 0x122   :  { %6002 = vset.pattern.permute.xlu1 %v10283_v57  ;;  %1208 = vperm.xlu0 %6052, %v7348_v58  }
 0x123   :  { %v7283_v48 = vpop.permute.xlu1 %606  ;;  %1124 = vperm.xlu1 %6002, %v6820_v20   ;;  %v1461_v20 = vadd.f32 %v7015_v8, %v1077_v29  ;;  %v877_v8 = vmul.f32 %v7159_v44, %v7037_v25  ;;  %v1073_v29 = vadd.f32 %v945_v51, %v543_v52 }
 0x124   :  { %10293 = vst [vmem:[#allocation48_spill] sm:$0xff] %v7283_v48  ;;  %v1169_v42 = vpop.permute.xlu0 %1168 }
 0x125   :  { %v1395_v40 = vadd.f32 %v1169_v42, %v1011_v49  ;;  %v1396_v30 = vadd.f32 %v1169_v42, %v1012_v46  ;;  %v1589_v9 = vmax.f32 %v1461_v20, 0.0  ;;  %v7322_v42 = vadd.f32 %v876_v62, %v474_v63 }
 0x126   :  { %v1005_v25 = vadd.f32 %v877_v8, %v475_v53  ;;  %v1521_v62 = vmax.f32 %v1393_v27, 0.0  ;;  %v1522_v63 = vmax.f32 %v1394_v47, 0.0  ;;  %v1457_v8 = vadd.f32 %v7098_v41, %v1073_v29 }
 0x127   :  { %v7314_v11 = vpop.permute.xlu1 %610  ;;  %6003 = vset.pattern.permute.xlu1 %v10275_v36  ;;  %v1524_v49 = vmax.f32 %v1396_v30, 0.0  ;;  %v1523_v46 = vmax.f32 %v1395_v40, 0.0  ;;  %v939_v30 = vmul.f32 %v7159_v44, %v7075_v35  ;;  %v940_v40 = vmul.f32 %v7163_v16, %v7075_v35 }
 0x128   :  { %10294 = vst [vmem:[#allocation49_spill] sm:$0xff] %v7314_v11  ;;  %276 = vperm.xlu1 %6003, %v7064_v32   ;;  %v1297_v59 = vpop.permute.xlu0 %1296  ;;  %v942_v35 = vmul.f32 %v7163_v16, %v7086_v38  ;;  %v1389_v29 = vadd.f32 %v7130_v1, %v1005_v25 }
 0x129   :  { %v1459_v52 = vadd.f32 %v1297_v59, %v7222_v4  ;;  %v1766_v51 = vpack.c.bf16 %v1526_v61, %v1524_v49  ;;  %v1765_v11 = vpack.c.bf16 %v1525_v26, %v1523_v46  ;;  %v1460_v48 = vadd.f32 %v1297_v59, %v1076_v19 }
 0x12a   :  { %v538_v61 = vmul.f32 %v7165_v5, %v7058_v31  ;;  %v1006_v31 = vadd.f32 %v878_v50, %v7252_v22  ;;  %v1067_v24 = vadd.f32 %v939_v30, %v537_v60  ;;  %v871_v49 = vmul.f32 %v7159_v44, %v7117_v0 }
 0x12b   :  { %2711 = vmatprep.subr.bf16.mxu0 %v1766_v51  ;;  %v1588_v4 = vmax.f32 %v1460_v48, 0.0  ;;  %v1587_v19 = vmax.f32 %v1459_v52, 0.0  ;;  %v1070_v46 = vadd.f32 %v942_v35, %v7264_v7  ;;  %v1585_v30 = vmax.f32 %v1457_v8, 0.0 }
 0x12c   :  { %v7333_v20 = vpop.permute.xlu1 %1148  ;;  %6004 = vset.pattern.permute.xlu1 %v10278_v12  ;;  %v1161_v28 = vpop.permute.xlu0 %1160  ;;  %2712 = vmatpush1.bf16.msra.mxu0 %v1765_v11  ;;  %v1068_v38 = vadd.f32 %v940_v40, %v538_v61  ;;  %v1069_v11 = vadd.f32 %v941_v55, %v7260_v54  ;;  %v469_v54 = vmul.f32 %v7161_v33, %v7111_v13  ;;  %v1517_v55 = vmax.f32 %v1389_v29, 0.0 }
 0x12d   :  { %710 = vperm.xlu1 %6004, %v7064_v32   ;;  %v1391_v53 = vadd.f32 %v1161_v28, %v7254_v2  ;;  %v1392_v15 = vadd.f32 %v1161_v28, %v7256_v34  ;;  %v1798_v26 = vpack.c.bf16 %v1590_v18, %v1588_v4  ;;  %v1797_v48 = vpack.c.bf16 %v1589_v9, %v1587_v19 }
 0x12e   :  { %v1458_v32 = vadd.f32 %v7098_v41, %v1074_v14  ;;  %v872_v14 = vmul.f32 %v7163_v16, %v7117_v0  ;;  %v1390_v7 = vadd.f32 %v7130_v1, %v1006_v31  ;;  %v873_v0 = vmul.f32 %v7159_v44, %v7122_v39 }
 0x12f   :  { %v1519_v2 = vmax.f32 %v1391_v53, 0.0  ;;  %v1520_v34 = vmax.f32 %v1392_v15, 0.0  ;;  %3064 = vmatprep.subr.bf16.mxu1 %v1798_v26  ;;  %v999_v1 = vadd.f32 %v871_v49, %v469_v54  ;;  %v1454_v61 = vadd.f32 %v7197_v17, %v1070_v46 }
 0x130   :  { %v1289_v22 = vpop.permute.xlu0 %1288  ;;  %3065 = vmatpush1.bf16.msra.mxu1 %v1797_v48  ;;  %v1586_v52 = vmax.f32 %v1458_v32, 0.0  ;;  %v1518_v4 = vmax.f32 %v1390_v7, 0.0 }
 0x131   :  { %v7358_v18 = vpop.permute.xlu1 %306  ;;  %714 = vperm.xlu1 %6004, %v6842_v23   ;;  %v1455_v50 = vadd.f32 %v1289_v22, %v7304_v45  ;;  %v1456_v41 = vadd.f32 %v1289_v22, %v7306_v6  ;;  %v1764_v59 = vpack.c.bf16 %v1522_v63, %v1520_v34  ;;  %v1763_v9 = vpack.c.bf16 %v1521_v62, %v1519_v2  ;;  %v10297_v63 = vld [vmem:[#allocation40_spill] sm:$0xff] }
 0x132   :  { %v470_v23 = vmul.f32 %v7165_v5, %v7111_v13  ;;  %v874_v45 = vmul.f32 %v7163_v16, %v7122_v39  ;;  %v1453_v39 = vadd.f32 %v7197_v17, %v1069_v11  ;;  %v10296_v11 = vld [vmem:[#allocation37_spill] sm:$0xff]  ;;  %v1582_v8 = vmax.f32 %v1454_v61, 0.0 }
 0x133   :  { %v1583_v51 = vmax.f32 %v1455_v50, 0.0  ;;  %v1584_v27 = vmax.f32 %v1456_v41, 0.0  ;;  %2713 = vmatprep.subr.bf16.mxu0 %v1764_v59  ;;  %v533_v2 = vmul.f32 %v7161_v33, %v10296_v11  ;;  %v534_v34 = vmul.f32 %v7165_v5, %v10296_v11  ;;  %v7418_v61 = vld [vmem:[%s10111_s1 + $0xf8] sm:$0xff] }
 0x134   :  { %v1153_v6 = vpop.permute.xlu0 %1152  ;;  %2714 = vmatpush1.bf16.msra.mxu0 %v1763_v9  ;;  %v1000_v60 = vadd.f32 %v872_v14, %v470_v23  ;;  %v1002_v15 = vadd.f32 %v874_v45, %v7272_v56  ;;  %v936_v56 = vmul.f32 %v7163_v16, %v10297_v63 }
 0x135   :  { %6005 = vset.pattern.permute.xlu1 %v10283_v57  ;;  %v1387_v40 = vadd.f32 %v1153_v6, %v7320_v10  ;;  %v1388_v25 = vadd.f32 %v1153_v6, %v7322_v42  ;;  %v1796_v47 = vpack.c.bf16 %v1586_v52, %v1584_v27  ;;  %v1795_v19 = vpack.c.bf16 %v1585_v30, %v1583_v51  ;;  %v10295_v10 = vld [vmem:[#allocation42_spill] sm:$0xff] }
 0x136   :  { %v7378_v13 = vpop.permute.xlu1 %734  ;;  %1252 = vperm.xlu1 %6005, %v6828_v21   ;;  %v937_v42 = vmul.f32 %v7159_v44, %v10295_v10  ;;  %v938_v53 = vmul.f32 %v7163_v16, %v10295_v10  ;;  %v1001_v21 = vadd.f32 %v873_v0, %v7268_v43  ;;  %v935_v43 = vmul.f32 %v7159_v44, %v10297_v63 }
 0x137   :  { %v1515_v35 = vmax.f32 %v1387_v40, 0.0  ;;  %v1516_v28 = vmax.f32 %v1388_v25, 0.0  ;;  %3066 = vmatprep.subr.bf16.mxu1 %v1796_v47  ;;  %v1386_v54 = vadd.f32 %v7333_v20, %v1002_v15  ;;  %v1064_v51 = vadd.f32 %v936_v56, %v534_v34 }
 0x138   :  { %v1281_v26 = vpop.permute.xlu0 %1280  ;;  %3067 = vmatpush1.bf16.msra.mxu1 %v1795_v19  ;;  %v1385_v22 = vadd.f32 %v7333_v20, %v1001_v21  ;;  %v1065_v50 = vadd.f32 %v937_v42, %v7290_v3  ;;  %v1066_v41 = vadd.f32 %v938_v53, %v7297_v37  ;;  %v1063_v23 = vadd.f32 %v935_v43, %v533_v2  ;;  %v7410_v37 = vld [vmem:[%s10111_s1 + $0x1c0] sm:$0xff]  ;;  %v6458_v42 = vld [vmem:[%s10111_s1 + $0x8] sm:$0xff]  ;;  %v10302_v2 = vld [vmem:[#allocation49_spill] sm:$0xff] }
 0x139   :  { %v1451_v48 = vadd.f32 %v1281_v26, %v1067_v24  ;;  %v1452_v62 = vadd.f32 %v1281_v26, %v1068_v38  ;;  %v1762_v17 = vpack.c.bf16 %v1518_v4, %v1516_v28  ;;  %v1761_v32 = vpack.c.bf16 %v1517_v55, %v1515_v35  ;;  %v10298_v24 = vld [vmem:[#allocation23_spill] sm:$0xff]  ;;  %1336 = vperm.xlu0 %6052, %v7410_v37   ;;  %v10299_v53 = vld [vmem:[#allocation48_spill] sm:$0xff]  ;;  %v10300_v26 = vld [vmem:[#allocation13_spill] sm:$0xff] }
 0x13a   :  { %v7389_v31 = vpop.permute.xlu1 %738  ;;  %6006 = vset.pattern.permute.xlu1 %v10275_v36  ;;  %v1581_v38 = vmax.f32 %v1453_v39, 0.0  ;;  %v1513_v20 = vmax.f32 %v1385_v22, 0.0  ;;  %v1514_v3 = vmax.f32 %v1386_v54, 0.0  ;;  %v867_v21 = vmul.f32 %v7159_v44, %v10299_v53 }
 0x13b   :  { %266 = vperm.xlu1 %6006, %v10298_v24   ;;  %v1579_v49 = vmax.f32 %v1451_v48, 0.0  ;;  %v1580_v46 = vmax.f32 %v1452_v62, 0.0  ;;  %2715 = vmatprep.subr.bf16.mxu0 %v1762_v17  ;;  %v868_v15 = vmul.f32 %v7163_v16, %v10299_v53  ;;  %v467_v48 = vmul.f32 %v7161_v33, %v10300_v26  ;;  %v10301_v17 = vld [vmem:[#allocation46_spill] sm:$0xff] }
 0x13c   :  { %v1145_v14 = vpop.permute.xlu0 %1144  ;;  %2716 = vmatpush1.bf16.msra.mxu0 %v1761_v32  ;;  %v468_v62 = vmul.f32 %v7165_v5, %v10300_v26  ;;  %v465_v32 = vmul.f32 %v7161_v33, %v10301_v17  ;;  %v466_v11 = vmul.f32 %v7165_v5, %v10301_v17  ;;  %v869_v34 = vmul.f32 %v7159_v44, %v10302_v2 }
 0x13d   :  { %v1383_v29 = vadd.f32 %v1145_v14, %v999_v1  ;;  %v1384_v7 = vadd.f32 %v1145_v14, %v1000_v60  ;;  %v1794_v59 = vpack.c.bf16 %v1582_v8, %v1580_v46  ;;  %v1793_v9 = vpack.c.bf16 %v1581_v38, %v1579_v49 }
 0x13e   :  { %v870_v63 = vmul.f32 %v7163_v16, %v10302_v2  ;;  %v995_v38 = vadd.f32 %v867_v21, %v465_v32  ;;  %v996_v8 = vadd.f32 %v868_v15, %v466_v11  ;;  %v997_v22 = vadd.f32 %v869_v34, %v467_v48  ;;  %v7504_v21 = vld [vmem:[%s10111_s1 + $0x1a0] sm:$0xff]  ;;  %v7512_v32 = vld [vmem:[%s10111_s1 + $0x90] sm:$0xff] }
 0x13f   :  { %v1277_v52 = vpop.permute.xlu1 %1276  ;;  %6007 = vset.pattern.permute.xlu1 %v10278_v12  ;;  %v1511_v27 = vmax.f32 %v1383_v29, 0.0  ;;  %v1512_v30 = vmax.f32 %v1384_v7, 0.0  ;;  %3068 = vmatprep.subr.bf16.mxu1 %v1794_v59  ;;  %v7452_v29 = vld [vmem:[%s10111_s1 + $0xb0] sm:$0xff] }
 0x140   :  { %v1449_v0 = vadd.f32 %v1277_v52, %v1065_v50  ;;  %v1450_v45 = vadd.f32 %v1277_v52, %v1066_v41  ;;  %702 = vperm.xlu1 %6007, %v10298_v24   ;;  %v1273_v6 = vpop.permute.xlu0 %1272  ;;  %3069 = vmatpush1.bf16.msra.mxu1 %v1793_v9  ;;  %v10303_v24 = vld [vmem:[#allocation25_spill] sm:$0xff]  ;;  %v998_v54 = vadd.f32 %v870_v63, %v468_v62 }
 0x141   :  { %v1447_v25 = vadd.f32 %v1273_v6, %v1063_v23  ;;  %v1448_v47 = vadd.f32 %v1273_v6, %v1064_v51  ;;  %v1760_v55 = vpack.c.bf16 %v1514_v3, %v1512_v30  ;;  %v1759_v4 = vpack.c.bf16 %v1513_v20, %v1511_v27  ;;  %1200 = vperm.xlu0 %6052, %v7452_v29   ;;  %v7460_v51 = vld [vmem:[%s10111_s1 + $0x1f8] sm:$0xff]  ;;  %v6460_v20 = vld [vmem:[%s10111_s1 + $0x108] sm:$0xff]  ;;  %v7478_v3 = vld [vmem:[%s10111_s1 + $0xa0] sm:$0xff] }
 0x142   :  { %v1577_v1 = vmax.f32 %v1449_v0, 0.0  ;;  %v1578_v40 = vmax.f32 %v1450_v45, 0.0  ;;  %v7466_v0 = vld [vmem:[%s10111_s1 + $0x1b0] sm:$0xff]  ;;  %v931_v6 = vmul.f32 %v7159_v44, %v7378_v13 }
 0x143   :  { %v1575_v19 = vmax.f32 %v1447_v25, 0.0  ;;  %v1576_v60 = vmax.f32 %v1448_v47, 0.0  ;;  %2717 = vmatprep.subr.bf16.mxu0 %v1760_v55  ;;  %v529_v55 = vmul.f32 %v7161_v33, %v7358_v18 }
 0x144   :  { %v7413_v39 = vpop.permute.xlu1 %136  ;;  %706 = vperm.xlu1 %6007, %v7418_v61   ;;  %2718 = vmatpush1.bf16.msra.mxu0 %v1759_v4  ;;  %v1137_v56 = vpop.permute.xlu0 %1136  ;;  %v530_v4 = vmul.f32 %v7165_v5, %v7358_v18 }
 0x145   :  { %v1792_v35 = vpack.c.bf16 %v1578_v40, %v1576_v60  ;;  %v1791_v28 = vpack.c.bf16 %v1577_v1, %v1575_v19  ;;  %v1379_v49 = vadd.f32 %v1137_v56, %v995_v38  ;;  %v1380_v46 = vadd.f32 %v1137_v56, %v996_v8  ;;  %1328 = vperm.xlu0 %6052, %v7466_v0   ;;  %v10304_v40 = vld [vmem:[#allocation14_spill] sm:$0xff]  ;;  %v7518_v56 = vld [vmem:[%s10111_s1 + $0x190] sm:$0xff]  ;;  %v7525_v38 = vld [vmem:[%s10111_s1 + $0xe8] sm:$0xff] }
 0x146   :  { %v932_v1 = vmul.f32 %v7163_v16, %v7378_v13  ;;  %v531_v25 = vmul.f32 %v7161_v33, %v10304_v40  ;;  %v532_v47 = vmul.f32 %v7165_v5, %v10304_v40  ;;  %v933_v19 = vmul.f32 %v7159_v44, %v7389_v31 }
 0x147   :  { %3070 = vmatprep.subr.bf16.mxu1 %v1792_v35  ;;  %v1507_v7 = vmax.f32 %v1379_v49, 0.0  ;;  %v1508_v59 = vmax.f32 %v1380_v46, 0.0  ;;  %v934_v13 = vmul.f32 %v7163_v16, %v7389_v31 }
 0x148   :  { %6008 = vset.pattern.permute.xlu1 %v10283_v57  ;;  %3071 = vmatpush1.bf16.msra.mxu1 %v1791_v28  ;;  %v1265_v35 = vpop.permute.xlu0 %1264  ;;  %v10305_v28 = vld [vmem:[#allocation27_spill] sm:$0xff]  ;;  %v1060_v53 = vadd.f32 %v932_v1, %v530_v4  ;;  %v1061_v26 = vadd.f32 %v933_v19, %v531_v25 }
 0x149   :  { %v7422_v10 = vpop.permute.xlu1 %598  ;;  %1116 = vperm.xlu1 %6008, %v6458_v42   ;;  %1192 = vperm.xlu0 %6052, %v7478_v3   ;;  %v1059_v42 = vadd.f32 %v931_v6, %v529_v55  ;;  %v1062_v31 = vadd.f32 %v934_v13, %v532_v47  ;;  %v10309_v6 = vld [vmem:[#allocation12_spill] sm:$0xff] }
 0x14a   :  { %v1444_v15 = vadd.f32 %v1265_v35, %v1060_v53  ;;  %v863_v46 = vmul.f32 %v7159_v44, %v7422_v10  ;;  %v7562_v53 = vld [vmem:[%s10111_s1 + $0x1e8] sm:$0xff] }
 0x14b   :  { %v1443_v18 = vadd.f32 %v1265_v35, %v1059_v42 }
 0x14c   :  { %v1572_v2 = vmax.f32 %v1444_v15, 0.0 }
 0x14d   :  { %v7443_v43 = vpop.permute.xlu1 %602  ;;  %6009 = vset.pattern.permute.xlu1 %v10275_v36  ;;  %1320 = vperm.xlu0 %6052, %v7504_v21   ;;  %v1571_v11 = vmax.f32 %v1443_v18, 0.0 }
 0x14e   :  { %426 = vperm.xlu1 %6009, %v10303_v24  }
 0x151   :  { %1184 = vperm.xlu0 %6052, %v7512_v32  }
 0x152   :  { %v1141_v14 = vpop.permute.xlu1 %1140  ;;  %6010 = vset.pattern.permute.xlu1 %v10278_v12 }
 0x153   :  { %v1381_v50 = vadd.f32 %v1141_v14, %v997_v22  ;;  %v1382_v41 = vadd.f32 %v1141_v14, %v998_v54  ;;  %830 = vperm.xlu1 %6010, %v10303_v24   ;;  %v864_v22 = vmul.f32 %v7163_v16, %v7422_v10  ;;  %v10306_v14 = vld [vmem:[#allocation11_spill] sm:$0xff]  ;;  %v865_v10 = vmul.f32 %v7159_v44, %v7443_v43 }
 0x155   :  { %v1509_v9 = vmax.f32 %v1381_v50, 0.0  ;;  %v1510_v52 = vmax.f32 %v1382_v41, 0.0  ;;  %1312 = vperm.xlu0 %6052, %v7518_v56   ;;  %v461_v50 = vmul.f32 %v7161_v33, %v7413_v39  ;;  %v462_v41 = vmul.f32 %v7165_v5, %v7413_v39  ;;  %v10308_v39 = vld [vmem:[#allocation29_spill] sm:$0xff] }
 0x157   :  { %v7455_v23 = vpop.permute.xlu1 %296  ;;  %834 = vperm.xlu1 %6010, %v7460_v51   ;;  %v1758_v27 = vpack.c.bf16 %v1510_v52, %v1508_v59  ;;  %v1757_v30 = vpack.c.bf16 %v1509_v9, %v1507_v7  ;;  %v10307_v7 = vld [vmem:[#allocation15_spill] sm:$0xff]  ;;  %v991_v52 = vadd.f32 %v863_v46, %v461_v50 }
 0x158   :  { %v463_v59 = vmul.f32 %v7161_v33, %v10307_v7  ;;  %v464_v9 = vmul.f32 %v7165_v5, %v10307_v7 }
 0x159   :  { %2719 = vmatprep.subr.bf16.mxu0 %v1758_v27  ;;  %1180 = vperm.xlu0 %6052, %v10306_v14   ;;  %v992_v27 = vadd.f32 %v864_v22, %v462_v41 }
 0x15a   :  { %2720 = vmatpush1.bf16.msra.mxu0 %v1757_v30  ;;  %v993_v25 = vadd.f32 %v865_v10, %v463_v59 }
 0x15b   :  { %6011 = vset.pattern.permute.xlu1 %v10283_v57 }
 0x15c   :  { %v7470_v45 = vpop.permute.xlu1 %726  ;;  %1244 = vperm.xlu1 %6011, %v6460_v20   ;;  %v1129_v20 = vpop.permute.xlu0 %1128 }
 0x15d   :  { %1308 = vperm.xlu0 %6052, %v10309_v6   ;;  %v1375_v1 = vadd.f32 %v1129_v20, %v991_v52  ;;  %v1376_v40 = vadd.f32 %v1129_v20, %v992_v27  ;;  %v7594_v27 = vld [vmem:[%s10111_s1 + $0xd8] sm:$0xff] }
 0x15f   :  { %v1503_v19 = vmax.f32 %v1375_v1, 0.0  ;;  %v1504_v13 = vmax.f32 %v1376_v40, 0.0 }
 0x160   :  { %v7497_v60 = vpop.permute.xlu1 %730  ;;  %6012 = vset.pattern.permute.xlu1 %v10275_v36  ;;  %v1257_v46 = vpop.permute.xlu0 %1256 }
 0x161   :  { %256 = vperm.xlu1 %6012, %v10305_v28  }
 0x165   :  { %v1269_v48 = vpop.permute.xlu1 %1268  ;;  %6013 = vset.pattern.permute.xlu1 %v10278_v12 }
 0x166   :  { %v1445_v62 = vadd.f32 %v1269_v48, %v1061_v26  ;;  %v1446_v17 = vadd.f32 %v1269_v48, %v1062_v31  ;;  %694 = vperm.xlu1 %6013, %v10305_v28   ;;  %v927_v26 = vmul.f32 %v7159_v44, %v7470_v45  ;;  %v928_v31 = vmul.f32 %v7163_v16, %v7470_v45 }
 0x167   :  { %v930_v45 = vmul.f32 %v7163_v16, %v7497_v60 }
 0x168   :  { %v1573_v34 = vmax.f32 %v1445_v62, 0.0  ;;  %v1574_v63 = vmax.f32 %v1446_v17, 0.0  ;;  %v525_v62 = vmul.f32 %v7161_v33, %v7455_v23  ;;  %v526_v17 = vmul.f32 %v7165_v5, %v7455_v23  ;;  %v10311_v23 = vld [vmem:[#allocation36_spill] sm:$0xff] }
 0x16a   :  { %v7520_v24 = vpop.permute.xlu1 %126  ;;  %698 = vperm.xlu1 %6013, %v7525_v38   ;;  %v1790_v8 = vpack.c.bf16 %v1574_v63, %v1572_v2  ;;  %v1789_v49 = vpack.c.bf16 %v1573_v34, %v1571_v11  ;;  %v10310_v11 = vld [vmem:[#allocation16_spill] sm:$0xff]  ;;  %v929_v63 = vmul.f32 %v7159_v44, %v7497_v60 }
 0x16b   :  { %v527_v2 = vmul.f32 %v7161_v33, %v10310_v11  ;;  %v528_v34 = vmul.f32 %v7165_v5, %v10310_v11 }
 0x16c   :  { %3072 = vmatprep.subr.bf16.mxu1 %v1790_v8  ;;  %v1055_v8 = vadd.f32 %v927_v26, %v525_v62 }
 0x16d   :  { %3073 = vmatpush1.bf16.msra.mxu1 %v1789_v49  ;;  %v1057_v50 = vadd.f32 %v929_v63, %v527_v2  ;;  %v1058_v41 = vadd.f32 %v930_v45, %v528_v34 }
 0x16e   :  { %6014 = vset.pattern.permute.xlu1 %v10283_v57  ;;  %v1439_v22 = vadd.f32 %v1257_v46, %v1055_v8  ;;  %v7628_v8 = vld [vmem:[%s10111_s1 + $0x1d8] sm:$0xff] }
 0x16f   :  { %v7534_v54 = vpop.permute.xlu1 %590  ;;  %1236 = vperm.xlu1 %6014, %v7418_v61   ;;  %v866_v61 = vmul.f32 %v7163_v16, %v7443_v43 }
 0x170   :  { %v1567_v60 = vmax.f32 %v1439_v22, 0.0  ;;  %v859_v1 = vmul.f32 %v7159_v44, %v7534_v54  ;;  %v860_v40 = vmul.f32 %v7163_v16, %v7534_v54 }
 0x171   :  { %v994_v47 = vadd.f32 %v866_v61, %v464_v9 }
 0x173   :  { %v7550_v30 = vpop.permute.xlu1 %594  ;;  %6015 = vset.pattern.permute.xlu1 %v10275_v36 }
 0x174   :  { %416 = vperm.xlu1 %6015, %v10308_v39  }
 0x178   :  { %v1133_v55 = vpop.permute.xlu1 %1132  ;;  %6016 = vset.pattern.permute.xlu1 %v10278_v12 }
 0x179   :  { %v1377_v4 = vadd.f32 %v1133_v55, %v993_v25  ;;  %v1378_v43 = vadd.f32 %v1133_v55, %v994_v47  ;;  %822 = vperm.xlu1 %6016, %v10308_v39   ;;  %v457_v47 = vmul.f32 %v7161_v33, %v7520_v24  ;;  %v458_v55 = vmul.f32 %v7165_v5, %v7520_v24  ;;  %v10313_v24 = vld [vmem:[#allocation45_spill] sm:$0xff] }
 0x17b   :  { %v1505_v35 = vmax.f32 %v1377_v4, 0.0  ;;  %v1506_v28 = vmax.f32 %v1378_v43, 0.0  ;;  %v10312_v4 = vld [vmem:[#allocation17_spill] sm:$0xff]  ;;  %v987_v54 = vadd.f32 %v859_v1, %v457_v47 }
 0x17c   :  { %v459_v43 = vmul.f32 %v7161_v33, %v10312_v4 }
 0x17d   :  { %v7557_v42 = vpop.permute.xlu1 %286  ;;  %826 = vperm.xlu1 %6016, %v7562_v53   ;;  %v1756_v18 = vpack.c.bf16 %v1506_v28, %v1504_v13  ;;  %v1755_v15 = vpack.c.bf16 %v1505_v35, %v1503_v19  ;;  %v460_v19 = vmul.f32 %v7165_v5, %v10312_v4  ;;  %v861_v13 = vmul.f32 %v7159_v44, %v7550_v30 }
 0x17e   :  { %v988_v35 = vadd.f32 %v860_v40, %v458_v55 }
 0x17f   :  { %2721 = vmatprep.subr.bf16.mxu0 %v1756_v18  ;;  %v1121_v18 = vpop.permute.xlu0 %1120 }
 0x180   :  { %2722 = vmatpush1.bf16.msra.mxu0 %v1755_v15  ;;  %v1371_v15 = vadd.f32 %v1121_v18, %v987_v54  ;;  %v1372_v26 = vadd.f32 %v1121_v18, %v988_v35 }
 0x181   :  { %6017 = vset.pattern.permute.xlu1 %v10283_v57 }
 0x182   :  { %v7570_v48 = vpop.permute.xlu1 %718  ;;  %1364 = vperm.xlu1 %6017, %v7460_v51   ;;  %v1056_v51 = vadd.f32 %v928_v31, %v526_v17  ;;  %v989_v31 = vadd.f32 %v861_v13, %v459_v43  ;;  %v1500_v34 = vmax.f32 %v1372_v26, 0.0 }
 0x183   :  { %v923_v22 = vmul.f32 %v7159_v44, %v7570_v48 }
 0x184   :  { %v1440_v14 = vadd.f32 %v1257_v46, %v1056_v51 }
 0x186   :  { %v7585_v49 = vpop.permute.xlu1 %722  ;;  %6018 = vset.pattern.permute.xlu1 %v10275_v36  ;;  %v1568_v10 = vmax.f32 %v1440_v14, 0.0  ;;  %v924_v14 = vmul.f32 %v7163_v16, %v7570_v48 }
 0x187   :  { %246 = vperm.xlu1 %6018, %v10311_v23  }
 0x18b   :  { %v1261_v7 = vpop.permute.xlu1 %1260  ;;  %6019 = vset.pattern.permute.xlu1 %v10278_v12 }
 0x18c   :  { %v1441_v59 = vadd.f32 %v1261_v7, %v1057_v50  ;;  %v1442_v9 = vadd.f32 %v1261_v7, %v1058_v41  ;;  %686 = vperm.xlu1 %6019, %v10311_v23   ;;  %v521_v41 = vmul.f32 %v7161_v33, %v7557_v42  ;;  %v522_v7 = vmul.f32 %v7165_v5, %v7557_v42 }
 0x18e   :  { %v1569_v61 = vmax.f32 %v1441_v59, 0.0  ;;  %v1570_v52 = vmax.f32 %v1442_v9, 0.0  ;;  %v10314_v59 = vld [vmem:[#allocation18_spill] sm:$0xff]  ;;  %v1051_v48 = vadd.f32 %v923_v22, %v521_v41 }
 0x18f   :  { %v523_v9 = vmul.f32 %v7161_v33, %v10314_v59 }
 0x190   :  { %690 = vperm.xlu1 %6019, %v7594_v27   ;;  %v7597_v20 = vpop.permute.xlu1 %116  ;;  %v1788_v39 = vpack.c.bf16 %v1570_v52, %v1568_v10  ;;  %v1787_v6 = vpack.c.bf16 %v1569_v61, %v1567_v60  ;;  %v524_v60 = vmul.f32 %v7165_v5, %v10314_v59  ;;  %v925_v10 = vmul.f32 %v7159_v44, %v7585_v49 }
 0x191   :  { %v1052_v61 = vadd.f32 %v924_v14, %v522_v7  ;;  %v453_v26 = vmul.f32 %v7161_v33, %v7597_v20 }
 0x192   :  { %3074 = vmatprep.subr.bf16.mxu1 %v1788_v39  ;;  %v1249_v39 = vpop.permute.xlu0 %1248  ;;  %v1053_v1 = vadd.f32 %v925_v10, %v523_v9 }
 0x193   :  { %3075 = vmatpush1.bf16.msra.mxu1 %v1787_v6  ;;  %v1435_v42 = vadd.f32 %v1249_v39, %v1051_v48  ;;  %v1436_v6 = vadd.f32 %v1249_v39, %v1052_v61 }
 0x194   :  { %6020 = vset.pattern.permute.xlu1 %v10283_v57 }
 0x195   :  { %1228 = vperm.xlu1 %6020, %v7525_v38   ;;  %v7605_v25 = vpop.permute.xlu1 %582  ;;  %v862_v38 = vmul.f32 %v7163_v16, %v7550_v30  ;;  %v1499_v30 = vmax.f32 %v1371_v15, 0.0  ;;  %v1564_v43 = vmax.f32 %v1436_v6, 0.0 }
 0x197   :  { %v990_v62 = vadd.f32 %v862_v38, %v460_v19  ;;  %v7662_v38 = vld [vmem:[%s10111_s1 + $0xc8] sm:$0xff] }
 0x199   :  { %6021 = vset.pattern.permute.xlu1 %v10275_v36  ;;  %v7620_v28 = vpop.permute.xlu1 %586 }
 0x19a   :  { %406 = vperm.xlu1 %6021, %v10313_v24  }
 0x19e   :  { %6022 = vset.pattern.permute.xlu1 %v10278_v12  ;;  %v1125_v17 = vpop.permute.xlu1 %1124 }
 0x19f   :  { %v1373_v11 = vadd.f32 %v1125_v17, %v989_v31  ;;  %v1374_v2 = vadd.f32 %v1125_v17, %v990_v62  ;;  %814 = vperm.xlu1 %6022, %v10313_v24   ;;  %v856_v24 = vmul.f32 %v7163_v16, %v7605_v25  ;;  %v454_v31 = vmul.f32 %v7165_v5, %v7597_v20  ;;  %v10315_v62 = vld [vmem:[#allocation19_spill] sm:$0xff] }
 0x1a0   :  { %v455_v17 = vmul.f32 %v7161_v33, %v10315_v62 }
 0x1a1   :  { %v1501_v63 = vmax.f32 %v1373_v11, 0.0  ;;  %v1502_v45 = vmax.f32 %v1374_v2, 0.0  ;;  %v456_v11 = vmul.f32 %v7165_v5, %v10315_v62 }
 0x1a3   :  { %818 = vperm.xlu1 %6022, %v7628_v8   ;;  %v7631_v51 = vpop.permute.xlu1 %276  ;;  %v1754_v46 = vpack.c.bf16 %v1502_v45, %v1500_v34  ;;  %v1753_v23 = vpack.c.bf16 %v1501_v63, %v1499_v30  ;;  %v984_v30 = vadd.f32 %v856_v24, %v454_v31  ;;  %v1113_v63 = vpop.permute.xlu0 %1112 }
 0x1a4   :  { %v518_v6 = vmul.f32 %v7165_v5, %v7631_v51 }
 0x1a5   :  { %2723 = vmatprep.subr.bf16.mxu0 %v1754_v46  ;;  %v1368_v45 = vadd.f32 %v1113_v63, %v984_v30 }
 0x1a6   :  { %2724 = vmatpush1.bf16.msra.mxu0 %v1753_v23 }
 0x1a7   :  { %6023 = vset.pattern.permute.xlu1 %v10283_v57 }
 0x1a8   :  { %1356 = vperm.xlu1 %6023, %v7562_v53   ;;  %v7639_v50 = vpop.permute.xlu1 %710  ;;  %v926_v53 = vmul.f32 %v7163_v16, %v7585_v49  ;;  %v1563_v49 = vmax.f32 %v1435_v42, 0.0  ;;  %v517_v42 = vmul.f32 %v7161_v33, %v7631_v51 }
 0x1a9   :  { %v920_v61 = vmul.f32 %v7163_v16, %v7639_v50 }
 0x1aa   :  { %v1054_v40 = vadd.f32 %v926_v53, %v524_v60  ;;  %v7696_v60 = vld [vmem:[%s10111_s1 + $0x1c8] sm:$0xff] }
 0x1ac   :  { %6024 = vset.pattern.permute.xlu1 %v10275_v36  ;;  %v7654_v52 = vpop.permute.xlu1 %714 }
 0x1ad   :  { %236 = vperm.xlu1 %6024, %v7348_v58  }
 0x1b1   :  { %6025 = vset.pattern.permute.xlu1 %v10278_v12  ;;  %v1253_v47 = vpop.permute.xlu1 %1252 }
 0x1b2   :  { %v1437_v55 = vadd.f32 %v1253_v47, %v1053_v1  ;;  %v1438_v4 = vadd.f32 %v1253_v47, %v1054_v40  ;;  %678 = vperm.xlu1 %6025, %v7348_v58   ;;  %v855_v58 = vmul.f32 %v7159_v44, %v7605_v25  ;;  %v857_v25 = vmul.f32 %v7159_v44, %v7620_v28  ;;  %v10316_v1 = vld [vmem:[#allocation20_spill] sm:$0xff] }
 0x1b3   :  { %v519_v40 = vmul.f32 %v7161_v33, %v10316_v1  ;;  %v520_v47 = vmul.f32 %v7165_v5, %v10316_v1  ;;  %v7764_v1 = vld [vmem:[%s10111_s1 + $0x1b8] sm:$0xff] }
 0x1b4   :  { %v1565_v19 = vmax.f32 %v1437_v55, 0.0  ;;  %v1566_v13 = vmax.f32 %v1438_v4, 0.0  ;;  %v983_v2 = vadd.f32 %v855_v58, %v453_v26  ;;  %v985_v46 = vadd.f32 %v857_v25, %v455_v17  ;;  %v7730_v17 = vld [vmem:[%s10111_s1 + $0xb8] sm:$0xff] }
 0x1b5   :  { %v1048_v4 = vadd.f32 %v920_v61, %v518_v6 }
 0x1b6   :  { %682 = vperm.xlu1 %6025, %v7662_v38   ;;  %v7665_v54 = vpop.permute.xlu1 %266  ;;  %v1786_v35 = vpack.c.bf16 %v1566_v13, %v1564_v43  ;;  %v1785_v18 = vpack.c.bf16 %v1565_v19, %v1563_v49  ;;  %v1367_v20 = vadd.f32 %v1113_v63, %v983_v2  ;;  %v1241_v43 = vpop.permute.xlu0 %1240 }
 0x1b7   :  { %v1432_v19 = vadd.f32 %v1241_v43, %v1048_v4  ;;  %v513_v63 = vmul.f32 %v7161_v33, %v7665_v54 }
 0x1b8   :  { %3076 = vmatprep.subr.bf16.mxu1 %v1786_v35  ;;  %v1495_v7 = vmax.f32 %v1367_v20, 0.0  ;;  %v514_v20 = vmul.f32 %v7165_v5, %v7665_v54 }
 0x1b9   :  { %3077 = vmatpush1.bf16.msra.mxu1 %v1785_v18 }
 0x1ba   :  { %6026 = vset.pattern.permute.xlu1 %v10283_v57 }
 0x1bb   :  { %1220 = vperm.xlu1 %6026, %v7594_v27   ;;  %v7673_v15 = vpop.permute.xlu1 %702  ;;  %v858_v27 = vmul.f32 %v7163_v16, %v7620_v28  ;;  %v1496_v28 = vmax.f32 %v1368_v45, 0.0  ;;  %v10317_v45 = vld [vmem:[#allocation21_spill] sm:$0xff] }
 0x1bc   :  { %v916_v25 = vmul.f32 %v7163_v16, %v7673_v15 }
 0x1bd   :  { %v986_v23 = vadd.f32 %v858_v27, %v456_v11 }
 0x1bf   :  { %6027 = vset.pattern.permute.xlu1 %v10275_v36  ;;  %v7688_v34 = vpop.permute.xlu1 %706 }
 0x1c0   :  { %396 = vperm.xlu1 %6027, %v7410_v37  }
 0x1c4   :  { %6028 = vset.pattern.permute.xlu1 %v10278_v12  ;;  %v1117_v22 = vpop.permute.xlu1 %1116 }
 0x1c5   :  { %v1369_v14 = vadd.f32 %v1117_v22, %v985_v46  ;;  %v1370_v41 = vadd.f32 %v1117_v22, %v986_v23  ;;  %806 = vperm.xlu1 %6028, %v7410_v37   ;;  %v919_v37 = vmul.f32 %v7159_v44, %v7639_v50  ;;  %v921_v50 = vmul.f32 %v7159_v44, %v7654_v52 }
 0x1c6   :  { %v515_v46 = vmul.f32 %v7161_v33, %v10317_v45  ;;  %v516_v23 = vmul.f32 %v7165_v5, %v10317_v45 }
 0x1c7   :  { %v1497_v59 = vmax.f32 %v1369_v14, 0.0  ;;  %v1498_v9 = vmax.f32 %v1370_v41, 0.0  ;;  %v1047_v55 = vadd.f32 %v919_v37, %v517_v42  ;;  %v1049_v13 = vadd.f32 %v921_v50, %v519_v40 }
 0x1c8   :  { %v1044_v14 = vadd.f32 %v916_v25, %v514_v20  ;;  %v7798_v20 = vld [vmem:[%s10111_s1 + $0xa8] sm:$0xff] }
 0x1c9   :  { %810 = vperm.xlu1 %6028, %v7696_v60   ;;  %v7699_v10 = vpop.permute.xlu1 %426  ;;  %v1752_v53 = vpack.c.bf16 %v1498_v9, %v1496_v28  ;;  %v1751_v48 = vpack.c.bf16 %v1497_v59, %v1495_v7  ;;  %v1431_v51 = vadd.f32 %v1241_v43, %v1047_v55  ;;  %v1233_v7 = vpop.permute.xlu0 %1232 }
 0x1ca   :  { %v1428_v28 = vadd.f32 %v1233_v7, %v1044_v14  ;;  %v578_v43 = vmul.f32 %v7165_v5, %v7699_v10 }
 0x1cb   :  { %2725 = vmatprep.subr.bf16.mxu0 %v1752_v53  ;;  %v1559_v26 = vmax.f32 %v1431_v51, 0.0  ;;  %v10318_v51 = vld [vmem:[#allocation22_spill] sm:$0xff] }
 0x1cc   :  { %2726 = vmatpush1.bf16.msra.mxu0 %v1751_v48 }
 0x1cd   :  { %6029 = vset.pattern.permute.xlu1 %v10283_v57 }
 0x1ce   :  { %1348 = vperm.xlu1 %6029, %v7628_v8   ;;  %v7707_v39 = vpop.permute.xlu1 %830  ;;  %v922_v8 = vmul.f32 %v7163_v16, %v7654_v52  ;;  %v1560_v52 = vmax.f32 %v1432_v19, 0.0  ;;  %v579_v19 = vmul.f32 %v7161_v33, %v10318_v51 }
 0x1cf   :  { %v980_v4 = vmul.f32 %v7163_v16, %v7707_v39 }
 0x1d0   :  { %v1050_v35 = vadd.f32 %v922_v8, %v520_v47  ;;  %v577_v8 = vmul.f32 %v7161_v33, %v7699_v10 }
 0x1d2   :  { %6030 = vset.pattern.permute.xlu1 %v10275_v36  ;;  %v7722_v49 = vpop.permute.xlu1 %834 }
 0x1d3   :  { %226 = vperm.xlu1 %6030, %v7452_v29  }
 0x1d7   :  { %6031 = vset.pattern.permute.xlu1 %v10278_v12  ;;  %v1245_v18 = vpop.permute.xlu1 %1244 }
 0x1d8   :  { %v1433_v58 = vadd.f32 %v1245_v18, %v1049_v13  ;;  %v1434_v24 = vadd.f32 %v1245_v18, %v1050_v35  ;;  %670 = vperm.xlu1 %6031, %v7452_v29   ;;  %v915_v29 = vmul.f32 %v7159_v44, %v7673_v15  ;;  %v917_v15 = vmul.f32 %v7159_v44, %v7688_v34 }
 0x1d9   :  { %v580_v13 = vmul.f32 %v7165_v5, %v10318_v51  ;;  %v1108_v18 = vadd.f32 %v980_v4, %v578_v43 }
 0x1da   :  { %v1561_v31 = vmax.f32 %v1433_v58, 0.0  ;;  %v1562_v62 = vmax.f32 %v1434_v24, 0.0  ;;  %v1043_v22 = vadd.f32 %v915_v29, %v513_v63  ;;  %v1045_v59 = vadd.f32 %v917_v15, %v515_v46  ;;  %v1361_v24 = vpop.permute.xlu0 %1360 }
 0x1dc   :  { %674 = vperm.xlu1 %6031, %v7730_v17   ;;  %v7733_v11 = vpop.permute.xlu1 %256  ;;  %v1784_v2 = vpack.c.bf16 %v1562_v62, %v1560_v52  ;;  %v1783_v30 = vpack.c.bf16 %v1561_v31, %v1559_v26  ;;  %v1427_v54 = vadd.f32 %v1233_v7, %v1043_v22  ;;  %v1492_v26 = vadd.f32 %v1361_v24, %v1108_v18  ;;  %v10319_v7 = vld [vmem:[#allocation24_spill] sm:$0xff] }
 0x1dd   :  { %v509_v15 = vmul.f32 %v7161_v33, %v7733_v11 }
 0x1de   :  { %3078 = vmatprep.subr.bf16.mxu1 %v1784_v2  ;;  %v1555_v61 = vmax.f32 %v1427_v54, 0.0  ;;  %v511_v54 = vmul.f32 %v7161_v33, %v10319_v7 }
 0x1df   :  { %3079 = vmatpush1.bf16.msra.mxu1 %v1783_v30 }
 0x1e0   :  { %6032 = vset.pattern.permute.xlu1 %v10283_v57 }
 0x1e1   :  { %1212 = vperm.xlu1 %6032, %v7662_v38   ;;  %v7741_v27 = vpop.permute.xlu1 %694  ;;  %v918_v38 = vmul.f32 %v7163_v16, %v7688_v34  ;;  %v1556_v34 = vmax.f32 %v1428_v28, 0.0  ;;  %v512_v28 = vmul.f32 %v7165_v5, %v10319_v7 }
 0x1e2   :  { %v912_v22 = vmul.f32 %v7163_v16, %v7741_v27 }
 0x1e3   :  { %v1046_v9 = vadd.f32 %v918_v38, %v516_v23  ;;  %v510_v38 = vmul.f32 %v7165_v5, %v7733_v11 }
 0x1e5   :  { %6033 = vset.pattern.permute.xlu1 %v10275_v36  ;;  %v7756_v41 = vpop.permute.xlu1 %698 }
 0x1e6   :  { %386 = vperm.xlu1 %6033, %v7466_v0  }
 0x1ea   :  { %6034 = vset.pattern.permute.xlu1 %v10278_v12  ;;  %v1237_v53 = vpop.permute.xlu1 %1236 }
 0x1eb   :  { %v1429_v48 = vadd.f32 %v1237_v53, %v1045_v59  ;;  %v1430_v37 = vadd.f32 %v1237_v53, %v1046_v9  ;;  %798 = vperm.xlu1 %6034, %v7466_v0   ;;  %v979_v0 = vmul.f32 %v7159_v44, %v7707_v39  ;;  %v981_v39 = vmul.f32 %v7159_v44, %v7722_v49 }
 0x1ec   :  { %v1040_v9 = vadd.f32 %v912_v22, %v510_v38 }
 0x1ed   :  { %v1557_v42 = vmax.f32 %v1429_v48, 0.0  ;;  %v1558_v6 = vmax.f32 %v1430_v37, 0.0  ;;  %v1107_v35 = vadd.f32 %v979_v0, %v577_v8  ;;  %v1109_v52 = vadd.f32 %v981_v39, %v579_v19  ;;  %v1225_v48 = vpop.permute.xlu0 %1224  ;;  %v7832_v8 = vld [vmem:[%s10111_s1 + $0x1a8] sm:$0xff] }
 0x1ee   :  { %v1424_v37 = vadd.f32 %v1225_v48, %v1040_v9 }
 0x1ef   :  { %802 = vperm.xlu1 %6034, %v7764_v1   ;;  %v7767_v40 = vpop.permute.xlu1 %416  ;;  %v1782_v47 = vpack.c.bf16 %v1558_v6, %v1556_v34  ;;  %v1781_v55 = vpack.c.bf16 %v1557_v42, %v1555_v61  ;;  %v1491_v10 = vadd.f32 %v1361_v24, %v1107_v35 }
 0x1f0   :  { %v573_v18 = vmul.f32 %v7161_v33, %v7767_v40  ;;  %v574_v39 = vmul.f32 %v7165_v5, %v7767_v40 }
 0x1f1   :  { %2727 = vmatprep.subr.bf16.mxu0 %v1782_v47  ;;  %v1619_v29 = vmax.f32 %v1491_v10, 0.0 }
 0x1f2   :  { %2728 = vmatpush2.bf16.msra.mxu0 %v1781_v55 }
 0x1f3   :  { %6035 = vset.pattern.permute.xlu1 %v10283_v57 }
 0x1f4   :  { %1340 = vperm.xlu1 %6035, %v7696_v60   ;;  %v7775_v50 = vpop.permute.xlu1 %822  ;;  %v982_v60 = vmul.f32 %v7163_v16, %v7722_v49  ;;  %v1620_v49 = vmax.f32 %v1492_v26, 0.0 }
 0x1f6   :  { %v1110_v31 = vadd.f32 %v982_v60, %v580_v13  ;;  %v976_v13 = vmul.f32 %v7163_v16, %v7775_v50 }
 0x1f8   :  { %6036 = vset.pattern.permute.xlu1 %v10275_v36  ;;  %v7790_v58 = vpop.permute.xlu1 %826  ;;  %v1104_v24 = vadd.f32 %v976_v13, %v574_v39 }
 0x1f9   :  { %216 = vperm.xlu1 %6036, %v7478_v3   ;;  %v977_v10 = vmul.f32 %v7159_v44, %v7790_v58  ;;  %v978_v26 = vmul.f32 %v7163_v16, %v7790_v58 }
 0x1fd   :  { %6037 = vset.pattern.permute.xlu1 %v10278_v12  ;;  %v1365_v62 = vpop.permute.xlu1 %1364 }
 0x1fe   :  { %v1493_v2 = vadd.f32 %v1365_v62, %v1109_v52  ;;  %v1494_v30 = vadd.f32 %v1365_v62, %v1110_v31  ;;  %662 = vperm.xlu1 %6037, %v7478_v3   ;;  %v911_v3 = vmul.f32 %v7159_v44, %v7741_v27  ;;  %v913_v27 = vmul.f32 %v7159_v44, %v7756_v41  ;;  %v1353_v52 = vpop.permute.xlu0 %1352  ;;  %v10320_v31 = vld [vmem:[#allocation26_spill] sm:$0xff] }
 0x1ff   :  { %v575_v62 = vmul.f32 %v7161_v33, %v10320_v31  ;;  %v576_v40 = vmul.f32 %v7165_v5, %v10320_v31 }
 0x200   :  { %v1621_v25 = vmax.f32 %v1493_v2, 0.0  ;;  %v1622_v63 = vmax.f32 %v1494_v30, 0.0  ;;  %v1039_v59 = vadd.f32 %v911_v3, %v509_v15  ;;  %v1041_v61 = vadd.f32 %v913_v27, %v511_v54  ;;  %v7866_v15 = vld [vmem:[%s10111_s1 + $0x98] sm:$0xff] }
 0x201   :  { %v1488_v30 = vadd.f32 %v1353_v52, %v1104_v24 }
 0x202   :  { %666 = vperm.xlu1 %6037, %v7798_v20   ;;  %v7801_v45 = vpop.permute.xlu1 %246  ;;  %v1814_v46 = vpack.c.bf16 %v1622_v63, %v1620_v49  ;;  %v1813_v23 = vpack.c.bf16 %v1621_v25, %v1619_v29  ;;  %v1423_v11 = vadd.f32 %v1225_v48, %v1039_v59  ;;  %v1105_v29 = vadd.f32 %v977_v10, %v575_v62  ;;  %v7920_v62 = vld [vmem:[%s10111_s1 + $0x80] sm:$0xff] }
 0x203   :  { %v1106_v49 = vadd.f32 %v978_v26, %v576_v40  ;;  %v505_v9 = vmul.f32 %v7161_v33, %v7801_v45  ;;  %v506_v27 = vmul.f32 %v7165_v5, %v7801_v45 }
 0x204   :  { %3080 = vmatprep.subr.bf16.mxu1 %v1814_v46  ;;  %v1551_v55 = vmax.f32 %v1423_v11, 0.0 }
 0x205   :  { %3081 = vmatpush2.bf16.msra.mxu1 %v1813_v23  ;;  %v1616_v23 = vmax.f32 %v1488_v30, 0.0 }
 0x206   :  { %6038 = vset.pattern.permute.xlu1 %v10283_v57 }
 0x207   :  { %1204 = vperm.xlu1 %6038, %v7730_v17   ;;  %v7809_v14 = vpop.permute.xlu1 %686  ;;  %v914_v17 = vmul.f32 %v7163_v16, %v7756_v41  ;;  %v1552_v41 = vmax.f32 %v1424_v37, 0.0 }
 0x209   :  { %v1042_v34 = vadd.f32 %v914_v17, %v512_v28  ;;  %v908_v28 = vmul.f32 %v7163_v16, %v7809_v14 }
 0x20b   :  { %6039 = vset.pattern.permute.xlu1 %v10275_v36  ;;  %v7824_v53 = vpop.permute.xlu1 %690  ;;  %v1036_v48 = vadd.f32 %v908_v28, %v506_v27  ;;  %v7939_v27 = vld [vmem:[%s10111_s1 + $0x88] sm:$0xff] }
 0x20c   :  { %376 = vperm.xlu1 %6039, %v7504_v21   ;;  %v909_v11 = vmul.f32 %v7159_v44, %v7824_v53  ;;  %v910_v37 = vmul.f32 %v7163_v16, %v7824_v53 }
 0x210   :  { %6040 = vset.pattern.permute.xlu1 %v10278_v12  ;;  %v1229_v42 = vpop.permute.xlu1 %1228 }
 0x211   :  { %v1425_v6 = vadd.f32 %v1229_v42, %v1041_v61  ;;  %v1426_v47 = vadd.f32 %v1229_v42, %v1042_v34  ;;  %790 = vperm.xlu1 %6040, %v7504_v21   ;;  %v975_v21 = vmul.f32 %v7159_v44, %v7775_v50  ;;  %v1217_v61 = vpop.permute.xlu0 %1216  ;;  %v10321_v34 = vld [vmem:[#allocation28_spill] sm:$0xff] }
 0x212   :  { %v507_v42 = vmul.f32 %v7161_v33, %v10321_v34  ;;  %v508_v45 = vmul.f32 %v7165_v5, %v10321_v34 }
 0x213   :  { %v1553_v0 = vmax.f32 %v1425_v6, 0.0  ;;  %v1554_v4 = vmax.f32 %v1426_v47, 0.0  ;;  %v1103_v60 = vadd.f32 %v975_v21, %v573_v18  ;;  %v1420_v47 = vadd.f32 %v1217_v61, %v1036_v48  ;;  %v7900_v18 = vld [vmem:[%s10111_s1 + $0x198] sm:$0xff] }
 0x215   :  { %794 = vperm.xlu1 %6040, %v7832_v8   ;;  %v7835_v43 = vpop.permute.xlu1 %406  ;;  %v1780_v51 = vpack.c.bf16 %v1554_v4, %v1552_v41  ;;  %v1779_v19 = vpack.c.bf16 %v1553_v0, %v1551_v55  ;;  %v1487_v2 = vadd.f32 %v1353_v52, %v1103_v60  ;;  %v1037_v55 = vadd.f32 %v909_v11, %v507_v42 }
 0x216   :  { %v1038_v41 = vadd.f32 %v910_v37, %v508_v45  ;;  %v569_v52 = vmul.f32 %v7161_v33, %v7835_v43  ;;  %v570_v31 = vmul.f32 %v7165_v5, %v7835_v43  ;;  %v10322_v43 = vld [vmem:[#allocation30_spill] sm:$0xff] }
 0x217   :  { %2729 = vmatprep.subr.bf16.mxu0 %v1780_v51  ;;  %v1615_v46 = vmax.f32 %v1487_v2, 0.0 }
 0x218   :  { %2730 = vmatpush2.bf16.msra.mxu0 %v1779_v19  ;;  %v1548_v19 = vmax.f32 %v1420_v47, 0.0 }
 0x219   :  { %6041 = vset.pattern.permute.xlu1 %v10283_v57 }
 0x21a   :  { %1332 = vperm.xlu1 %6041, %v7764_v1   ;;  %v7843_v35 = vpop.permute.xlu1 %814 }
 0x21b   :  { %v972_v10 = vmul.f32 %v7163_v16, %v7843_v35 }
 0x21d   :  { %v1100_v2 = vadd.f32 %v972_v10, %v570_v31 }
 0x21e   :  { %6042 = vset.pattern.permute.xlu1 %v10275_v36  ;;  %v7854_v50 = vpop.permute.xlu1 %818 }
 0x21f   :  { %206 = vperm.xlu1 %6042, %v7512_v32   ;;  %v974_v30 = vmul.f32 %v7163_v16, %v7854_v50 }
 0x223   :  { %6043 = vset.pattern.permute.xlu1 %v10278_v12  ;;  %v1357_v58 = vpop.permute.xlu1 %1356 }
 0x224   :  { %v1489_v25 = vadd.f32 %v1357_v58, %v1105_v29  ;;  %v1490_v63 = vadd.f32 %v1357_v58, %v1106_v49  ;;  %654 = vperm.xlu1 %6043, %v7512_v32   ;;  %v907_v32 = vmul.f32 %v7159_v44, %v7809_v14  ;;  %v1345_v49 = vpop.permute.xlu0 %1344  ;;  %v571_v58 = vmul.f32 %v7161_v33, %v10322_v43 }
 0x226   :  { %v1617_v3 = vmax.f32 %v1489_v25, 0.0  ;;  %v1618_v22 = vmax.f32 %v1490_v63, 0.0  ;;  %v1035_v17 = vadd.f32 %v907_v32, %v505_v9  ;;  %v572_v25 = vmul.f32 %v7165_v5, %v10322_v43 }
 0x228   :  { %658 = vperm.xlu1 %6043, %v7866_v15   ;;  %v7869_v38 = vpop.permute.xlu1 %236  ;;  %v1812_v7 = vpack.c.bf16 %v1618_v22, %v1616_v23  ;;  %v1811_v54 = vpack.c.bf16 %v1617_v3, %v1615_v46  ;;  %v1419_v6 = vadd.f32 %v1217_v61, %v1035_v17  ;;  %v1484_v46 = vadd.f32 %v1345_v49, %v1100_v2 }
 0x229   :  { %v1102_v3 = vadd.f32 %v974_v30, %v572_v25  ;;  %v501_v42 = vmul.f32 %v7161_v33, %v7869_v38  ;;  %v502_v45 = vmul.f32 %v7165_v5, %v7869_v38  ;;  %v10323_v38 = vld [vmem:[#allocation31_spill] sm:$0xff] }
 0x22a   :  { %3082 = vmatprep.subr.bf16.mxu1 %v1812_v7  ;;  %v1547_v51 = vmax.f32 %v1419_v6, 0.0  ;;  %v1612_v32 = vmax.f32 %v1484_v46, 0.0  ;;  %v7959_v6 = vld [vmem:[%s10111_s1 + $0x180] sm:$0xff] }
 0x22b   :  { %3083 = vmatpush2.bf16.msra.mxu1 %v1811_v54 }
 0x22c   :  { %6044 = vset.pattern.permute.xlu1 %v10283_v57 }
 0x22d   :  { %1196 = vperm.xlu1 %6044, %v7798_v20   ;;  %v7877_v59 = vpop.permute.xlu1 %678 }
 0x22e   :  { %v903_v37 = vmul.f32 %v7159_v44, %v7877_v59  ;;  %v904_v61 = vmul.f32 %v7163_v16, %v7877_v59 }
 0x230   :  { %v1031_v47 = vadd.f32 %v903_v37, %v501_v42  ;;  %v6066_v37 = vld [vmem:[#allocation2 + $0xc] ss:$16 sps:$4 sm:$0xff]  }
 0x231   :  { %6045 = vset.pattern.permute.xlu1 %v10275_v36  ;;  %v7888_v14 = vpop.permute.xlu1 %682  ;;  %3096 = vmatprep.mubr.bf16.mxu1 %v6066_v37 }
 0x232   :  { %366 = vperm.xlu1 %6045, %v7518_v56   ;;  %v905_v59 = vmul.f32 %v7159_v44, %v7888_v14 }
 0x236   :  { %6046 = vset.pattern.permute.xlu1 %v10278_v12  ;;  %v1221_v53 = vpop.permute.xlu1 %1220 }
 0x237   :  { %v1421_v0 = vadd.f32 %v1221_v53, %v1037_v55  ;;  %v1422_v4 = vadd.f32 %v1221_v53, %v1038_v41  ;;  %782 = vperm.xlu1 %6046, %v7518_v56   ;;  %v971_v56 = vmul.f32 %v7159_v44, %v7843_v35  ;;  %v973_v35 = vmul.f32 %v7159_v44, %v7854_v50 }
 0x238   :  { %v1032_v55 = vadd.f32 %v904_v61, %v502_v45  ;;  %v906_v41 = vmul.f32 %v7163_v16, %v7888_v14 }
 0x239   :  { %v1549_v21 = vmax.f32 %v1421_v0, 0.0  ;;  %v1550_v13 = vmax.f32 %v1422_v4, 0.0  ;;  %v1099_v40 = vadd.f32 %v971_v56, %v569_v52  ;;  %v1101_v23 = vadd.f32 %v973_v35, %v571_v58  ;;  %v1209_v0 = vpop.permute.xlu0 %1208 }
 0x23a   :  { %v503_v4 = vmul.f32 %v7161_v33, %v10323_v38 }
 0x23b   :  { %786 = vperm.xlu1 %6046, %v7900_v18   ;;  %v7903_v39 = vpop.permute.xlu1 %396  ;;  %v1778_v60 = vpack.c.bf16 %v1550_v13, %v1548_v19  ;;  %v1777_v24 = vpack.c.bf16 %v1549_v21, %v1547_v51  ;;  %v1483_v63 = vadd.f32 %v1345_v49, %v1099_v40  ;;  %v504_v51 = vmul.f32 %v7165_v5, %v10323_v38  ;;  %v7978_v40 = vld [vmem:[%s10111_s1 + $0x188] sm:$0xff] }
 0x23c   :  { %v1415_v19 = vadd.f32 %v1209_v0, %v1031_v47  ;;  %v1416_v21 = vadd.f32 %v1209_v0, %v1032_v55  ;;  %v1033_v13 = vadd.f32 %v905_v59, %v503_v4  ;;  %v565_v58 = vmul.f32 %v7161_v33, %v7903_v39 }
 0x23d   :  { %2731 = vmatprep.subr.bf16.mxu0 %v1778_v60  ;;  %v1611_v54 = vmax.f32 %v1483_v63, 0.0  ;;  %v1034_v60 = vadd.f32 %v906_v41, %v504_v51  ;;  %v566_v25 = vmul.f32 %v7165_v5, %v7903_v39  ;;  %v6063_v39 = vld [vmem:[#allocation2 + $0x4] ss:$16 sps:$4 sm:$0xff]   ;;  %v6668_v51 = vmov 3  }
 0x23e   :  { %2732 = vmatpush2.bf16.msra.mxu0 %v1777_v24  ;;  %v1543_v56 = vmax.f32 %v1415_v19, 0.0  ;;  %v1544_v10 = vmax.f32 %v1416_v21, 0.0  ;;  %2743 = vmatprep.mubr.bf16.mxu0 %v6063_v39  ;;  %v6475_v19 = vld [vmem:[%s10111_s1 + $0x70] sm:$0xff]  ;;  %v6476_v21 = vld [vmem:[%s10111_s1 + $0x78] sm:$0xff]  ;;  %v6481_v39 = vld [vmem:[%s10111_s1 + $0x68] sm:$0xff] }
 0x23f   :  { %6047 = vset.pattern.permute.xlu1 %v10283_v57  ;;  %6056 = vset.pattern.permute.xlu0 %v6668_v51 }
 0x240   :  { %1324 = vperm.xlu1 %6047, %v7832_v8   ;;  %v7911_v26 = vpop.permute.xlu1 %806  ;;  %1876 = vperm.xlu0 %6056, %v6476_v21  }
 0x241   :  { %v967_v30 = vmul.f32 %v7159_v44, %v7911_v26  ;;  %v968_v49 = vmul.f32 %v7163_v16, %v7911_v26 }
 0x243   :  { %v1095_v63 = vadd.f32 %v967_v30, %v565_v58  ;;  %v1096_v46 = vadd.f32 %v968_v49, %v566_v25 }
 0x244   :  { %6048 = vset.pattern.permute.xlu1 %v10275_v36  ;;  %v7927_v29 = vpop.permute.xlu1 %810 }
 0x245   :  { %196 = vperm.xlu1 %6048, %v7920_v62  }
 0x249   :  { %6049 = vset.pattern.permute.xlu1 %v10278_v12  ;;  %v1349_v50 = vpop.permute.xlu1 %1348 }
 0x24a   :  { %v1485_v22 = vadd.f32 %v1349_v50, %v1101_v23  ;;  %v1486_v7 = vadd.f32 %v1349_v50, %v1102_v3  ;;  %646 = vperm.xlu1 %6049, %v7920_v62   ;;  %v970_v23 = vmul.f32 %v7163_v16, %v7927_v29  ;;  %v1337_v3 = vpop.permute.xlu0 %1336  ;;  %v10324_v50 = vld [vmem:[#allocation32_spill] sm:$0xff] }
 0x24c   :  { %v1613_v28 = vmax.f32 %v1485_v22, 0.0  ;;  %v1614_v9 = vmax.f32 %v1486_v7, 0.0  ;;  %v567_v22 = vmul.f32 %v7161_v33, %v10324_v50  ;;  %v568_v7 = vmul.f32 %v7165_v5, %v10324_v50 }
 0x24e   :  { %650 = vperm.xlu1 %6049, %v7939_v27   ;;  %v7942_v17 = vpop.permute.xlu1 %226  ;;  %v1810_v48 = vpack.c.bf16 %v1614_v9, %v1612_v32  ;;  %v1809_v11 = vpack.c.bf16 %v1613_v28, %v1611_v54  ;;  %v1479_v54 = vadd.f32 %v1337_v3, %v1095_v63  ;;  %v1480_v32 = vadd.f32 %v1337_v3, %v1096_v46  ;;  %v6479_v63 = vld [vmem:[%s10111_s1 + $0x178] sm:$0xff] }
 0x24f   :  { %v1098_v9 = vadd.f32 %v970_v23, %v568_v7  ;;  %v6480_v23 = vld [vmem:[%s10111_s1 + $0x160] sm:$0xff] }
 0x250   :  { %3084 = vmatprep.subr.bf16.mxu1 %v1810_v48  ;;  %v1607_v61 = vmax.f32 %v1479_v54, 0.0  ;;  %v1608_v42 = vmax.f32 %v1480_v32, 0.0 }
 0x251   :  { %3085 = vmatpush2.bf16.msra.mxu1 %v1809_v11 }
 0x252   :  { %6050 = vset.pattern.permute.xlu1 %v10283_v57 }
 0x253   :  { %1188 = vperm.xlu1 %6050, %v7866_v15   ;;  %v7950_v34 = vpop.permute.xlu1 %670 }
 0x254   :  { %v899_v0 = vmul.f32 %v7159_v44, %v7950_v34  ;;  %v900_v38 = vmul.f32 %v7163_v16, %v7950_v34  ;;  %v498_v34 = vmul.f32 %v7165_v5, %v7942_v17 }
 0x257   :  { %6051 = vset.pattern.permute.xlu1 %v10275_v36  ;;  %v7966_v53 = vpop.permute.xlu1 %674 }
 0x258   :  { %356 = vperm.xlu1 %6051, %v7959_v6  }
 0x25c   :  { %6053 = vset.pattern.permute.xlu1 %v10278_v12  ;;  %v1213_v14 = vpop.permute.xlu1 %1212 }
 0x25d   :  { %v1417_v24 = vadd.f32 %v1213_v14, %v1033_v13  ;;  %v1418_v36 = vadd.f32 %v1213_v14, %v1034_v60  ;;  %774 = vperm.xlu1 %6053, %v7959_v6   ;;  %v497_v13 = vmul.f32 %v7161_v33, %v7942_v17  ;;  %v1028_v14 = vadd.f32 %v900_v38, %v498_v34 }
 0x25f   :  { %v1545_v52 = vmax.f32 %v1417_v24, 0.0  ;;  %v1546_v31 = vmax.f32 %v1418_v36, 0.0  ;;  %v1027_v60 = vadd.f32 %v899_v0, %v497_v13  ;;  %v901_v24 = vmul.f32 %v7159_v44, %v7966_v53  ;;  %v6487_v13 = vld [vmem:[%s10111_s1 + $0x158] sm:$0xff] }
 0x260   :  { %v902_v36 = vmul.f32 %v7163_v16, %v7966_v53 }
 0x261   :  { %778 = vperm.xlu1 %6053, %v7978_v40   ;;  %v7981_v2 = vpop.permute.xlu1 %386  ;;  %v1776_v35 = vpack.c.bf16 %v1546_v31, %v1544_v10  ;;  %v1775_v12 = vpack.c.bf16 %v1545_v52, %v1543_v56  ;;  %v6477_v10 = vld [vmem:[%s10111_s1 + $0x170] sm:$0xff] }
 0x262   :  { %v10325_v52 = vld [vmem:[#allocation33_spill] sm:$0xff] }
 0x263   :  { %2733 = vmatprep.subr.bf16.mxu0 %v1776_v35  ;;  %v499_v31 = vmul.f32 %v7161_v33, %v10325_v52  ;;  %v500_v17 = vmul.f32 %v7165_v5, %v10325_v52  ;;  %v6478_v35 = vld [vmem:[%s10111_s1 + $0x60] sm:$0xff] }
 0x264   :  { %2734 = vmatpush2.bf16.msra.mxu0 %v1775_v12  ;;  %1864 = vperm.xlu0 %6056, %v6478_v35   ;;  %v1201_v12 = vpop.permute.xlu0 %1200  ;;  %v6490_v35 = vld [vmem:[%s10111_s1 + $0x30] sm:$0xff] }
 0x265   :  { %6054 = vset.pattern.permute.xlu1 %v10283_v57  ;;  %v969_v57 = vmul.f32 %v7159_v44, %v7927_v29  ;;  %v1029_v53 = vadd.f32 %v901_v24, %v499_v31  ;;  %v1030_v30 = vadd.f32 %v902_v36, %v500_v17  ;;  %v1412_v49 = vadd.f32 %v1201_v12, %v1028_v14  ;;  %v6489_v17 = vld [vmem:[%s10111_s1 + $0x48] sm:$0xff] }
 0x266   :  { %1316 = vperm.xlu1 %6054, %v7900_v18   ;;  %v7989_v43 = vpop.permute.xlu1 %798  ;;  %v1411_v58 = vadd.f32 %v1201_v12, %v1027_v60  ;;  %v6488_v60 = vld [vmem:[%s10111_s1 + $0x140] sm:$0xff] }
 0x267   :  { %v1097_v28 = vadd.f32 %v969_v57, %v567_v22  ;;  %v1540_v22 = vmax.f32 %v1412_v49, 0.0  ;;  %v964_v37 = vmul.f32 %v7163_v16, %v7989_v43 }
 0x268   :  { %1992 = vperm.xlu0 %6056, %v6480_v23   ;;  %v1539_v7 = vmax.f32 %v1411_v58, 0.0  ;;  %v1329_v34 = vpop.permute.xlu0 %1328  ;;  %v6493_v23 = vld [vmem:[%s10111_s1 + $0x38] sm:$0xff] }
 0x26a   :  { %1176 = vperm.xlu1 %6054, %v7920_v62   ;;  %v8000_v26 = vpop.permute.xlu1 %802 }
 0x26b   :  { %v965_v0 = vmul.f32 %v7159_v44, %v8000_v26  ;;  %v966_v38 = vmul.f32 %v7163_v16, %v8000_v26 }
 0x26e   :  { %1304 = vperm.xlu1 %6054, %v7959_v6  }
 0x26f   :  { %v1341_v48 = vpop.permute.xlu1 %1340 }
 0x270   :  { %v1481_v29 = vadd.f32 %v1341_v48, %v1097_v28  ;;  %v1482_v11 = vadd.f32 %v1341_v48, %v1098_v9  ;;  %v6482_v9 = vld [vmem:[%s10111_s1 + $0x50] sm:$0xff]  ;;  %v6483_v48 = vld [vmem:[%s10111_s1 + $0x168] sm:$0xff] }
 0x271   :  { %1856 = vperm.xlu0 %6056, %v6482_v9  }
 0x272   :  { %v1609_v45 = vmax.f32 %v1481_v29, 0.0  ;;  %v1610_v47 = vmax.f32 %v1482_v11, 0.0  ;;  %6055 = vset.pattern.permute.xlu1 %v6668_v51  ;;  %v6484_v29 = vld [vmem:[%s10111_s1 + $0x150] sm:$0xff]  ;;  %v963_v11 = vmul.f32 %v7159_v44, %v7989_v43 }
 0x273   :  { %1872 = vperm.xlu1 %6055, %v6475_v19  }
 0x274   :  { %v8007_v55 = vpop.permute.xlu1 %216  ;;  %v1808_v59 = vpack.c.bf16 %v1610_v47, %v1608_v42  ;;  %v1807_v41 = vpack.c.bf16 %v1609_v45, %v1607_v61  ;;  %v561_v42 = vmul.f32 %v7161_v33, %v7981_v2  ;;  %v562_v45 = vmul.f32 %v7165_v5, %v7981_v2  ;;  %v6485_v47 = vld [vmem:[%s10111_s1 + $0x58] sm:$0xff]  ;;  %v10326_v2 = vld [vmem:[#allocation35_spill] sm:$0xff] }
 0x275   :  { %1984 = vperm.xlu0 %6056, %v6484_v29   ;;  %v563_v19 = vmul.f32 %v7161_v33, %v10326_v2  ;;  %v564_v21 = vmul.f32 %v7165_v5, %v10326_v2 }
 0x276   :  { %3086 = vmatprep.subr.bf16.mxu1 %v1808_v59  ;;  %v6486_v59 = vld [vmem:[%s10111_s1 + $0x40] sm:$0xff]  ;;  %v1092_v43 = vadd.f32 %v964_v37, %v562_v45 }
 0x277   :  { %3087 = vmatpush2.bf16.msra.mxu1 %v1807_v41  ;;  %2000 = vperm.xlu1 %6055, %v6477_v10   ;;  %v1091_v41 = vadd.f32 %v963_v11, %v561_v42  ;;  %v1093_v26 = vadd.f32 %v965_v0, %v563_v19  ;;  %v1094_v14 = vadd.f32 %v966_v38, %v564_v21  ;;  %v6496_v37 = vld [vmem:[%s10111_s1 + $0x120] sm:$0xff]  ;;  %v6498_v38 = vld [vmem:[%s10111_s1 + $0x10] sm:$0xff] }
 0x278   :  { %v1476_v24 = vadd.f32 %v1329_v34, %v1092_v43 }
 0x279   :  { %v8013_v4 = vpop.permute.xlu1 %662  ;;  %1848 = vperm.xlu0 %6056, %v6486_v59   ;;  %v1475_v36 = vadd.f32 %v1329_v34, %v1091_v41  ;;  %v6497_v59 = vld [vmem:[%s10111_s1 + $0x28] sm:$0xff] }
 0x27b   :  { %2004 = vperm.xlu1 %6055, %v6479_v63   ;;  %v1603_v49 = vmax.f32 %v1475_v36, 0.0 }
 0x27d   :  { %v8029_v56 = vpop.permute.xlu1 %666  ;;  %1976 = vperm.xlu0 %6056, %v6488_v60  }
 0x27e   :  { %v898_v29 = vmul.f32 %v7163_v16, %v8029_v56 }
 0x27f   :  { %1868 = vperm.xlu1 %6055, %v6481_v39   ;;  %v493_v39 = vmul.f32 %v7161_v33, %v8007_v55 }
 0x281   :  { %1840 = vperm.xlu0 %6056, %v6490_v35  }
 0x282   :  { %v1205_v25 = vpop.permute.xlu1 %1204 }
 0x283   :  { %v1413_v46 = vadd.f32 %v1205_v25, %v1029_v53  ;;  %v1414_v57 = vadd.f32 %v1205_v25, %v1030_v30  ;;  %1996 = vperm.xlu1 %6055, %v6483_v48   ;;  %v1604_v30 = vmax.f32 %v1476_v24, 0.0  ;;  %v897_v48 = vmul.f32 %v7159_v44, %v8029_v56  ;;  %v6500_v24 = vld [vmem:[%s10111_s1 + $0x110] sm:$0xff] }
 0x285   :  { %v1541_v3 = vmax.f32 %v1413_v46, 0.0  ;;  %v1542_v50 = vmax.f32 %v1414_v57, 0.0  ;;  %v6491_v46 = vld [vmem:[%s10111_s1 + $0x148] sm:$0xff]  ;;  %v6492_v57 = vld [vmem:[%s10111_s1 + $0x130] sm:$0xff] }
 0x286   :  { %1968 = vperm.xlu0 %6056, %v6492_v57  }
 0x287   :  { %v8050_v54 = vpop.permute.xlu1 %376  ;;  %v1774_v32 = vpack.c.bf16 %v1542_v50, %v1540_v22  ;;  %v1773_v28 = vpack.c.bf16 %v1541_v3, %v1539_v7  ;;  %1860 = vperm.xlu1 %6055, %v6485_v47   ;;  %v895_v3 = vmul.f32 %v7159_v44, %v8013_v4  ;;  %v896_v50 = vmul.f32 %v7163_v16, %v8013_v4  ;;  %v6494_v7 = vld [vmem:[%s10111_s1 + $0x20] sm:$0xff]  ;;  %v1193_v47 = vpop.permute.xlu0 %1192 }
 0x289   :  { %2735 = vmatprep.subr.bf16.mxu0 %v1774_v32  ;;  %v494_v32 = vmul.f32 %v7165_v5, %v8007_v55  ;;  %v1023_v9 = vadd.f32 %v895_v3, %v493_v39  ;;  %v10327_v55 = vld [vmem:[#allocation38_spill] sm:$0xff] }
 0x28a   :  { %2736 = vmatpush2.bf16.msra.mxu0 %v1773_v28  ;;  %1832 = vperm.xlu0 %6056, %v6494_v7   ;;  %v6495_v28 = vld [vmem:[%s10111_s1 + $0x138] sm:$0xff]  ;;  %v495_v42 = vmul.f32 %v7161_v33, %v10327_v55  ;;  %v496_v45 = vmul.f32 %v7165_v5, %v10327_v55  ;;  %v6506_v7 = vld [vmem:[%s10111_s1 + $0xf0] sm:$0xff] }
 0x28b   :  { %1988 = vperm.xlu1 %6055, %v6487_v13   ;;  %v1024_v4 = vadd.f32 %v896_v50, %v494_v32  ;;  %v1407_v0 = vadd.f32 %v1193_v47, %v1023_v9  ;;  %v6499_v13 = vld [vmem:[%s10111_s1 + $0x128] sm:$0xff]  ;;  %v6508_v55 = vld [vmem:[%s10111_s1 + $0x1f0] sm:$0xff] }
 0x28c   :  { %v8065_v61 = vpop.permute.xlu1 %790  ;;  %v1025_v56 = vadd.f32 %v897_v48, %v495_v42  ;;  %v1026_v41 = vadd.f32 %v898_v29, %v496_v45  ;;  %v6505_v50 = vld [vmem:[%s10111_s1 + $0x8] sm:$0xff] }
 0x28d   :  { %v1408_v43 = vadd.f32 %v1193_v47, %v1024_v4  ;;  %v959_v35 = vmul.f32 %v7159_v44, %v8065_v61  ;;  %v6507_v29 = vld [vmem:[%s10111_s1 + $0x108] sm:$0xff] }
 0x28e   :  { %1960 = vperm.xlu0 %6056, %v6496_v37  }
 0x28f   :  { %1852 = vperm.xlu1 %6055, %v6489_v17   ;;  %v6502_v17 = vld [vmem:[%s10111_s1] sm:$0xff] }
 0x290   :  { %v8081_v51 = vpop.permute.xlu1 %794 }
 0x291   :  { %v961_v57 = vmul.f32 %v7159_v44, %v8081_v51 }
 0x292   :  { %1824 = vperm.xlu0 %6056, %v6498_v38  }
 0x293   :  { %1980 = vperm.xlu1 %6055, %v6491_v46  }
 0x295   :  { %v1333_v10 = vpop.permute.xlu1 %1332 }
 0x296   :  { %v1477_v52 = vadd.f32 %v1333_v10, %v1093_v26  ;;  %v1478_v31 = vadd.f32 %v1333_v10, %v1094_v14  ;;  %v1536_v26 = vmax.f32 %v1408_v43, 0.0  ;;  %v1535_v14 = vmax.f32 %v1407_v0, 0.0  ;;  %1952 = vperm.xlu0 %6056, %v6500_v24   ;;  %v6509_v43 = vld [vmem:[%s10111_s1 + $0xf8] sm:$0xff]  ;;  %v6510_v0 = vld [vmem:[%s10111_s1 + $0xe0] sm:$0xff] }
 0x297   :  { %1844 = vperm.xlu1 %6055, %v6493_v23   ;;  %v962_v23 = vmul.f32 %v7163_v16, %v8081_v51 }
 0x298   :  { %v1605_v12 = vmax.f32 %v1477_v52, 0.0  ;;  %v1606_v53 = vmax.f32 %v1478_v31, 0.0  ;;  %v6501_v31 = vld [vmem:[%s10111_s1 + $0x18] sm:$0xff] }
 0x29a   :  { %v8099_v58 = vpop.permute.xlu1 %206  ;;  %v1806_v25 = vpack.c.bf16 %v1606_v53, %v1604_v30  ;;  %v1805_v63 = vpack.c.bf16 %v1605_v12, %v1603_v49  ;;  %1816 = vperm.xlu0 %6056, %v6502_v17   ;;  %v960_v12 = vmul.f32 %v7163_v16, %v8065_v61  ;;  %v6503_v30 = vld [vmem:[%s10111_s1 + $0x118] sm:$0xff]  ;;  %v6504_v49 = vld [vmem:[%s10111_s1 + $0x100] sm:$0xff] }
 0x29b   :  { %1972 = vperm.xlu1 %6055, %v6495_v28   ;;  %v1321_v28 = vpop.permute.xlu0 %1320  ;;  %v489_v24 = vmul.f32 %v7161_v33, %v8099_v58 }
 0x29c   :  { %3088 = vmatprep.subr.bf16.mxu1 %v1806_v25  ;;  %v557_v25 = vmul.f32 %v7161_v33, %v8050_v54 }
 0x29d   :  { %3089 = vmatpush2.bf16.msra.mxu1 %v1805_v63  ;;  %v558_v63 = vmul.f32 %v7165_v5, %v8050_v54  ;;  %v10328_v54 = vld [vmem:[#allocation39_spill] sm:$0xff] }
 0x29e   :  { %1944 = vperm.xlu0 %6056, %v6504_v49   ;;  %v1087_v46 = vadd.f32 %v959_v35, %v557_v25  ;;  %v559_v39 = vmul.f32 %v7161_v33, %v10328_v54  ;;  %v560_v32 = vmul.f32 %v7165_v5, %v10328_v54 }
 0x29f   :  { %v8114_v22 = vpop.permute.xlu1 %654  ;;  %1836 = vperm.xlu1 %6055, %v6497_v59   ;;  %v1088_v61 = vadd.f32 %v960_v12, %v558_v63  ;;  %v6516_v63 = vld [vmem:[%s10111_s1 + $0x1d0] sm:$0xff] }
 0x2a0   :  { %v1089_v51 = vadd.f32 %v961_v57, %v559_v39  ;;  %v1090_v9 = vadd.f32 %v962_v23, %v560_v32  ;;  %v1471_v48 = vadd.f32 %v1321_v28, %v1087_v46  ;;  %v1185_v46 = vpop.permute.xlu0 %1184  ;;  %v6518_v32 = vld [vmem:[%s10111_s1 + $0xc0] sm:$0xff] }
 0x2a1   :  { %v1472_v4 = vadd.f32 %v1321_v28, %v1088_v61 }
 0x2a2   :  { %1936 = vperm.xlu0 %6056, %v6506_v7   ;;  %v6517_v7 = vld [vmem:[%s10111_s1 + $0xd8] sm:$0xff] }
 0x2a3   :  { %v8130_v11 = vpop.permute.xlu1 %658  ;;  %1964 = vperm.xlu1 %6055, %v6499_v13   ;;  %v6512_v13 = vld [vmem:[%s10111_s1 + $0x1e0] sm:$0xff] }
 0x2a4   :  { %v893_v17 = vmul.f32 %v7159_v44, %v8130_v11  ;;  %v894_v35 = vmul.f32 %v7163_v16, %v8130_v11 }
 0x2a6   :  { %2064 = vperm.xlu0 %6056, %v6508_v55  }
 0x2a7   :  { %1828 = vperm.xlu1 %6055, %v6501_v31  }
 0x2a8   :  { %v1197_v2 = vpop.permute.xlu1 %1196 }
 0x2a9   :  { %v1409_v19 = vadd.f32 %v1197_v2, %v1025_v56  ;;  %v1410_v21 = vadd.f32 %v1197_v2, %v1026_v41  ;;  %v1600_v56 = vmax.f32 %v1472_v4, 0.0  ;;  %v1599_v41 = vmax.f32 %v1471_v48, 0.0  ;;  %v6519_v48 = vld [vmem:[%s10111_s1 + $0x1d8] sm:$0xff] }
 0x2aa   :  { %1928 = vperm.xlu0 %6056, %v6510_v0  }
 0x2ab   :  { %v1537_v34 = vmax.f32 %v1409_v19, 0.0  ;;  %v1538_v60 = vmax.f32 %v1410_v21, 0.0  ;;  %1956 = vperm.xlu1 %6055, %v6503_v30   ;;  %v6511_v21 = vld [vmem:[%s10111_s1 + $0x1f8] sm:$0xff]  ;;  %v6515_v30 = vld [vmem:[%s10111_s1 + $0x1e8] sm:$0xff] }
 0x2ad   :  { %v8151_v36 = vpop.permute.xlu1 %366  ;;  %v1772_v10 = vpack.c.bf16 %v1538_v60, %v1536_v26  ;;  %v1771_v52 = vpack.c.bf16 %v1537_v34, %v1535_v14  ;;  %v891_v34 = vmul.f32 %v7159_v44, %v8114_v22  ;;  %v892_v60 = vmul.f32 %v7163_v16, %v8114_v22  ;;  %v6513_v14 = vld [vmem:[%s10111_s1 + $0xe8] sm:$0xff] }
 0x2ae   :  { %2056 = vperm.xlu0 %6056, %v6512_v13  }
 0x2af   :  { %2737 = vmatprep.subr.bf16.mxu0 %v1772_v10  ;;  %1820 = vperm.xlu1 %6055, %v6505_v50   ;;  %v490_v10 = vmul.f32 %v7165_v5, %v8099_v58  ;;  %v1019_v31 = vadd.f32 %v891_v34, %v489_v24  ;;  %v10329_v58 = vld [vmem:[#allocation41_spill] sm:$0xff]  ;;  %v10330_v24 = vld [vmem:[#allocation43_spill] sm:$0xff] }
 0x2b0   :  { %2738 = vmatpush2.bf16.msra.mxu0 %v1771_v52  ;;  %v6514_v52 = vld [vmem:[%s10111_s1 + $0xd0] sm:$0xff]  ;;  %v491_v49 = vmul.f32 %v7161_v33, %v10329_v58  ;;  %v492_v25 = vmul.f32 %v7165_v5, %v10329_v58 }
 0x2b1   :  { %v1020_v22 = vadd.f32 %v892_v60, %v490_v10  ;;  %v1403_v23 = vadd.f32 %v1185_v46, %v1019_v31  ;;  %v555_v10 = vmul.f32 %v7161_v33, %v10330_v24 }
 0x2b2   :  { %v8163_v53 = vpop.permute.xlu1 %782  ;;  %1920 = vperm.xlu0 %6056, %v6514_v52   ;;  %v1021_v61 = vadd.f32 %v893_v17, %v491_v49  ;;  %v1022_v11 = vadd.f32 %v894_v35, %v492_v25  ;;  %v556_v52 = vmul.f32 %v7165_v5, %v10330_v24  ;;  %v6525_v49 = vld [vmem:[%s10111_s1 + $0xb8] sm:$0xff]  ;;  %v6528_v24 = vld [vmem:[%s10111_s1 + $0x90] sm:$0xff] }
 0x2b3   :  { %1948 = vperm.xlu1 %6055, %v6507_v29   ;;  %v1404_v57 = vadd.f32 %v1185_v46, %v1020_v22  ;;  %v1531_v4 = vmax.f32 %v1403_v23, 0.0  ;;  %v10331_v22 = vld [vmem:[#allocation44_spill] sm:$0xff] }
 0x2b4   :  { %v487_v17 = vmul.f32 %v7161_v33, %v10331_v22 }
 0x2b6   :  { %v8179_v3 = vpop.permute.xlu1 %786  ;;  %2048 = vperm.xlu0 %6056, %v6516_v63  }
 0x2b7   :  { %1940 = vperm.xlu1 %6055, %v6509_v43   ;;  %v6522_v43 = vld [vmem:[%s10111_s1 + $0xb0] sm:$0xff]  ;;  %v957_v13 = vmul.f32 %v7159_v44, %v8179_v3 }
 0x2b9   :  { %v1085_v46 = vadd.f32 %v957_v13, %v555_v10 }
 0x2ba   :  { %1912 = vperm.xlu0 %6056, %v6518_v32  }
 0x2bb   :  { %v1325_v37 = vpop.permute.xlu1 %1324  ;;  %2068 = vperm.xlu1 %6055, %v6511_v21   ;;  %v1313_v21 = vpop.permute.xlu0 %1312 }
 0x2bc   :  { %v1473_v42 = vadd.f32 %v1325_v37, %v1089_v51  ;;  %v1474_v45 = vadd.f32 %v1325_v37, %v1090_v9  ;;  %v1532_v9 = vmax.f32 %v1404_v57, 0.0 }
 0x2be   :  { %v1601_v47 = vmax.f32 %v1473_v42, 0.0  ;;  %v1602_v59 = vmax.f32 %v1474_v45, 0.0  ;;  %v6520_v42 = vld [vmem:[%s10111_s1 + $0x1c0] sm:$0xff]  ;;  %v955_v45 = vmul.f32 %v7159_v44, %v8163_v53 }
 0x2bf   :  { %1932 = vperm.xlu1 %6055, %v6513_v14   ;;  %2040 = vperm.xlu0 %6056, %v6520_v42   ;;  %v6524_v14 = vld [vmem:[%s10111_s1 + $0x1b0] sm:$0xff]  ;;  %v1181_v32 = vpop.permute.xlu0 %1180 }
 0x2c0   :  { %v8203_v38 = vpop.permute.xlu1 %196  ;;  %v1804_v2 = vpack.c.bf16 %v1602_v59, %v1600_v56  ;;  %v1803_v19 = vpack.c.bf16 %v1601_v47, %v1599_v41  ;;  %v956_v47 = vmul.f32 %v7163_v16, %v8163_v53  ;;  %v6521_v59 = vld [vmem:[%s10111_s1 + $0xc8] sm:$0xff]  ;;  %v553_v56 = vmul.f32 %v7161_v33, %v8151_v36 }
 0x2c1   :  { %v554_v41 = vmul.f32 %v7165_v5, %v8151_v36  ;;  %v958_v36 = vmul.f32 %v7163_v16, %v8179_v3  ;;  %v488_v3 = vmul.f32 %v7165_v5, %v10331_v22  ;;  %v485_v57 = vmul.f32 %v7161_v33, %v8203_v38 }
 0x2c2   :  { %3090 = vmatprep.subr.bf16.mxu1 %v1804_v2  ;;  %v1083_v53 = vadd.f32 %v955_v45, %v553_v56 }
 0x2c3   :  { %3091 = vmatpush2.bf16.msra.mxu1 %v1803_v19  ;;  %2060 = vperm.xlu1 %6055, %v6515_v30   ;;  %v1084_v2 = vadd.f32 %v956_v47, %v554_v41  ;;  %v6523_v19 = vld [vmem:[%s10111_s1 + $0x1c8] sm:$0xff]  ;;  %v1309_v13 = vpop.permute.xlu0 %1308 }
 0x2c4   :  { %1904 = vperm.xlu0 %6056, %v6522_v43  }
 0x2c5   :  { %v8215_v26 = vpop.permute.xlu1 %646  ;;  %v1468_v35 = vadd.f32 %v1313_v21, %v1084_v2 }
 0x2c6   :  { %v887_v30 = vmul.f32 %v7159_v44, %v8215_v26  ;;  %v888_v58 = vmul.f32 %v7163_v16, %v8215_v26  ;;  %v486_v26 = vmul.f32 %v7165_v5, %v8203_v38 }
 0x2c7   :  { %1924 = vperm.xlu1 %6055, %v6517_v7   ;;  %v10332_v7 = vld [vmem:[#allocation47_spill] sm:$0xff] }
 0x2c8   :  { %2032 = vperm.xlu0 %6056, %v6524_v14  }
 0x2c9   :  { %v651_v12 = vpop.permute.xlu1 %650 }
 0x2ca   :  { %v889_v34 = vmul.f32 %v7159_v44, %v651_v12  ;;  %v890_v60 = vmul.f32 %v7163_v16, %v651_v12  ;;  %v1467_v12 = vadd.f32 %v1313_v21, %v1083_v53 }
 0x2cb   :  { %2052 = vperm.xlu1 %6055, %v6519_v48  }
 0x2cc   :  { %v1017_v25 = vadd.f32 %v889_v34, %v487_v17  ;;  %v1018_v63 = vadd.f32 %v890_v60, %v488_v3  ;;  %v6529_v3 = vld [vmem:[%s10111_s1 + $0x190] sm:$0xff] }
 0x2ce   :  { %v1189_v50 = vpop.permute.xlu1 %1188  ;;  %v1402_v45 = vadd.f32 %v1181_v32, %v1018_v63  ;;  %v1401_v47 = vadd.f32 %v1181_v32, %v1017_v25  ;;  %v6067_v25 = vld [vmem:[#allocation2 + $0x24] ss:$16 sps:$4 sm:$0xff]   ;;  %v6090_v32 = vld [vmem:[#allocation2 + $0x88] ss:$16 sps:$4 sm:$0xff]  }
 0x2cf   :  { %v1405_v54 = vadd.f32 %v1189_v50, %v1021_v61  ;;  %v1406_v39 = vadd.f32 %v1189_v50, %v1022_v11  ;;  %1916 = vperm.xlu1 %6055, %v6521_v59   ;;  %v1086_v61 = vadd.f32 %v958_v36, %v556_v52  ;;  %v6526_v11 = vld [vmem:[%s10111_s1 + $0xa0] sm:$0xff] }
 0x2d0   :  { %1896 = vperm.xlu0 %6056, %v6526_v11   ;;  %v6527_v59 = vld [vmem:[%s10111_s1 + $0x1a0] sm:$0xff]  ;;  %v1530_v60 = vmax.f32 %v1402_v45, 0.0  ;;  %v1529_v14 = vmax.f32 %v1401_v47, 0.0 }
 0x2d1   :  { %v1533_v28 = vmax.f32 %v1405_v54, 0.0  ;;  %v1534_v51 = vmax.f32 %v1406_v39, 0.0  ;;  %v551_v54 = vmul.f32 %v7161_v33, %v10332_v7  ;;  %v552_v39 = vmul.f32 %v7165_v5, %v10332_v7  ;;  %v6069_v11 = vld [vmem:[#allocation2 + $0x20] ss:$16 sps:$4 sm:$0xff]   ;;  %v6085_v7 = vld [vmem:[#allocation2 + $0x84] ss:$16 sps:$4 sm:$0xff]  }
 0x2d2   :  { %v6105_v45 = vld [vmem:[#allocation2 + $0xe0] ss:$16 sps:$4 sm:$0xff]   ;;  %v6109_v47 = vld [vmem:[#allocation2 + $0x104] ss:$16 sps:$4 sm:$0xff]  }
 0x2d3   :  { %v8250_v29 = vpop.permute.xlu1 %356  ;;  %v1770_v37 = vpack.c.bf16 %v1534_v51, %v1532_v9  ;;  %v1769_v55 = vpack.c.bf16 %v1533_v28, %v1531_v4  ;;  %2044 = vperm.xlu1 %6055, %v6523_v19   ;;  %v1596_v51 = vmax.f32 %v1468_v35, 0.0  ;;  %v1595_v9 = vmax.f32 %v1467_v12, 0.0 }
 0x2d4   :  { %2024 = vperm.xlu0 %6056, %v6527_v59   ;;  %v549_v2 = vmul.f32 %v7161_v33, %v8250_v29  ;;  %v6108_v59 = vld [vmem:[#allocation2 + $0xe8] ss:$16 sps:$4 sm:$0xff]  }
 0x2d5   :  { %2739 = vmatprep.subr.bf16.mxu0 %v1770_v37  ;;  %v1015_v37 = vadd.f32 %v887_v30, %v485_v57  ;;  %v6061_v30 = vld [vmem:[#allocation2] ss:$16 sps:$4 sm:$0xff]   ;;  %v6073_v57 = vld [vmem:[#allocation2 + $0x44] ss:$16 sps:$4 sm:$0xff]  }
 0x2d6   :  { %2740 = vmatpush2.bf16.msra.mxu0 %v1769_v55  ;;  %v1016_v55 = vadd.f32 %v888_v58, %v486_v26  ;;  %v6075_v26 = vld [vmem:[#allocation2 + $0x40] ss:$16 sps:$4 sm:$0xff]  }
 0x2d7   :  { %1908 = vperm.xlu1 %6055, %v6525_v49  }
 0x2d8   :  { %v775_v0 = vpop.permute.xlu1 %774  ;;  %1888 = vperm.xlu0 %6056, %v6528_v24   ;;  %v6129_v24 = vld [vmem:[#allocation2 + $0x160] ss:$16 sps:$4 sm:$0xff]  }
 0x2d9   :  { %v951_v38 = vmul.f32 %v7159_v44, %v775_v0  ;;  %v952_v42 = vmul.f32 %v7163_v16, %v775_v0 }
 0x2db   :  { %2036 = vperm.xlu1 %6055, %v7764_v1   ;;  %v550_v1 = vmul.f32 %v7165_v5, %v8250_v29  ;;  %v1079_v36 = vadd.f32 %v951_v38, %v549_v2  ;;  %v6102_v38 = vld [vmem:[#allocation2 + $0xc8] ss:$16 sps:$4 sm:$0xff]   ;;  %v6118_v2 = vld [vmem:[#allocation2 + $0x12c] ss:$16 sps:$4 sm:$0xff]  }
 0x2dc   :  { %v779_v31 = vpop.permute.xlu1 %778  ;;  %2016 = vperm.xlu0 %6056, %v6529_v3   ;;  %v6138_v3 = vld [vmem:[#allocation2 + $0x188] ss:$16 sps:$4 sm:$0xff]  }
 0x2dd   :  { %v953_v23 = vmul.f32 %v7159_v44, %v779_v31  ;;  %v954_v50 = vmul.f32 %v7163_v16, %v779_v31  ;;  %v1080_v34 = vadd.f32 %v952_v42, %v550_v1  ;;  %v6106_v42 = vld [vmem:[#allocation2 + $0xec] ss:$16 sps:$4 sm:$0xff]   ;;  %v6117_v1 = vld [vmem:[#allocation2 + $0x120] ss:$16 sps:$4 sm:$0xff]  }
 0x2df   :  { %v1081_v56 = vadd.f32 %v953_v23, %v551_v54  ;;  %v1082_v41 = vadd.f32 %v954_v50, %v552_v39  ;;  %1900 = vperm.xlu1 %6055, %v7798_v20   ;;  %v6079_v23 = vld [vmem:[#allocation2 + $0x64] ss:$16 sps:$4 sm:$0xff]   ;;  %v6081_v50 = vld [vmem:[#allocation2 + $0x60] ss:$16 sps:$4 sm:$0xff]   ;;  %v6088_v54 = vld [vmem:[#allocation2 + $0x8c] ss:$16 sps:$4 sm:$0xff]  }
 0x2e0   :  { %1880 = vperm.xlu0 %6056, %v7920_v62   ;;  %v6076_v62 = vld [vmem:[#allocation2 + $0x4c] ss:$16 sps:$4 sm:$0xff]   ;;  %v6087_v39 = vld [vmem:[#allocation2 + $0x80] ss:$16 sps:$4 sm:$0xff]  }
 0x2e1   :  { %v1317_v28 = vpop.permute.xlu1 %1316  ;;  %v1466_v5 = vadd.f32 %v1309_v13, %v1082_v41  ;;  %v1465_v29 = vadd.f32 %v1309_v13, %v1081_v56  ;;  %v6112_v56 = vld [vmem:[#allocation2 + $0x10c] ss:$16 sps:$4 sm:$0xff]   ;;  %v6111_v41 = vld [vmem:[#allocation2 + $0x100] ss:$16 sps:$4 sm:$0xff]   ;;  %v6127_v13 = vld [vmem:[#allocation2 + $0x164] ss:$16 sps:$4 sm:$0xff]  }
 0x2e2   :  { %v1469_v4 = vadd.f32 %v1317_v28, %v1085_v46  ;;  %v1470_v48 = vadd.f32 %v1317_v28, %v1086_v61  ;;  %v6070_v61 = vld [vmem:[#allocation2 + $0x2c] ss:$16 sps:$4 sm:$0xff]  }
 0x2e3   :  { %2028 = vperm.xlu1 %6055, %v7832_v8   ;;  %v1594_v58 = vmax.f32 %v1466_v5, 0.0  ;;  %v1593_v49 = vmax.f32 %v1465_v29, 0.0  ;;  %v6064_v8 = vld [vmem:[#allocation2 + $0x8] ss:$16 sps:$4 sm:$0xff]   ;;  %v6094_v28 = vld [vmem:[#allocation2 + $0xac] ss:$16 sps:$4 sm:$0xff]  }
 0x2e4   :  { %v1597_v43 = vmax.f32 %v1469_v4, 0.0  ;;  %v1598_v53 = vmax.f32 %v1470_v48, 0.0  ;;  %2008 = vperm.xlu0 %6056, %v7959_v6   ;;  %v6082_v6 = vld [vmem:[#allocation2 + $0x6c] ss:$16 sps:$4 sm:$0xff]   ;;  %v6096_v4 = vld [vmem:[#allocation2 + $0xa8] ss:$16 sps:$4 sm:$0xff]  }
 0x2e5   :  { %v1177_v44 = vpop.permute.xlu1 %1176  ;;  %v6100_v48 = vld [vmem:[#allocation2 + $0xcc] ss:$16 sps:$4 sm:$0xff]   ;;  %v6132_v29 = vld [vmem:[#allocation2 + $0x168] ss:$16 sps:$4 sm:$0xff]  }
 0x2e6   :  { %v1399_v19 = vadd.f32 %v1177_v44, %v1015_v37  ;;  %v1400_v16 = vadd.f32 %v1177_v44, %v1016_v55  ;;  %v1802_v0 = vpack.c.bf16 %v1598_v53, %v1596_v51  ;;  %v1801_v21 = vpack.c.bf16 %v1597_v43, %v1595_v9  ;;  %v6093_v51 = vld [vmem:[#allocation2 + $0xa0] ss:$16 sps:$4 sm:$0xff]   ;;  %v6097_v9 = vld [vmem:[#allocation2 + $0xc4] ss:$16 sps:$4 sm:$0xff]   ;;  %v6114_v53 = vld [vmem:[#allocation2 + $0x108] ss:$16 sps:$4 sm:$0xff]  }
 0x2e7   :  { %1892 = vperm.xlu1 %6055, %v7866_v15   ;;  %v6072_v15 = vld [vmem:[#allocation2 + $0x28] ss:$16 sps:$4 sm:$0xff]   ;;  %v6099_v37 = vld [vmem:[#allocation2 + $0xc0] ss:$16 sps:$4 sm:$0xff]   ;;  %v6103_v55 = vld [vmem:[#allocation2 + $0xe4] ss:$16 sps:$4 sm:$0xff]  }
 0x2e8   :  { %v1527_v33 = vmax.f32 %v1399_v19, 0.0  ;;  %v1528_v10 = vmax.f32 %v1400_v16, 0.0  ;;  %3092 = vmatprep.subr.bf16.mxu1 %v1802_v0  ;;  %v6115_v43 = vld [vmem:[#allocation2 + $0x124] ss:$16 sps:$4 sm:$0xff]   ;;  %v6120_v19 = vld [vmem:[#allocation2 + $0x128] ss:$16 sps:$4 sm:$0xff]  }
 0x2e9   :  { %v1305_v52 = vpop.permute.xlu1 %1304  ;;  %3093 = vmatpush2.bf16.msra.mxu1 %v1801_v21  ;;  %v6121_v44 = vld [vmem:[#allocation2 + $0x144] ss:$16 sps:$4 sm:$0xff]   ;;  %v6124_v16 = vld [vmem:[#allocation2 + $0x14c] ss:$16 sps:$4 sm:$0xff]   ;;  %v6123_v21 = vld [vmem:[#allocation2 + $0x140] ss:$16 sps:$4 sm:$0xff]  }
 0x2ea   :  { %v1463_v31 = vadd.f32 %v1305_v52, %v1079_v36  ;;  %v1464_v22 = vadd.f32 %v1305_v52, %v1080_v34  ;;  %v1768_v20 = vpack.c.bf16 %v1530_v60, %v1528_v10  ;;  %v1767_v17 = vpack.c.bf16 %v1529_v14, %v1527_v33  ;;  %v8337_v34 = vpop.permute.xlu0 %1876  ;;  %v6126_v60 = vld [vmem:[#allocation2 + $0x148] ss:$16 sps:$4 sm:$0xff]   ;;  %v6130_v14 = vld [vmem:[#allocation2 + $0x16c] ss:$16 sps:$4 sm:$0xff]   ;;  %v6133_v33 = vld [vmem:[#allocation2 + $0x184] ss:$16 sps:$4 sm:$0xff]  }
 0x2eb   :  { %2020 = vperm.xlu1 %6055, %v7900_v18   ;;  %v6078_v18 = vld [vmem:[#allocation2 + $0x48] ss:$16 sps:$4 sm:$0xff]   ;;  %v6136_v52 = vld [vmem:[#allocation2 + $0x18c] ss:$16 sps:$4 sm:$0xff]  }
 0x2ec   :  { %v1591_v35 = vmax.f32 %v1463_v31, 0.0  ;;  %v1592_v12 = vmax.f32 %v1464_v22, 0.0  ;;  %2741 = vmatprep.subr.bf16.mxu0 %v1768_v20  ;;  %v6135_v20 = vld [vmem:[#allocation2 + $0x180] ss:$16 sps:$4 sm:$0xff]  }
 0x2ed   :  { %2742 = vmatpush2.bf16.msra.mxu0 %v1767_v17  ;;  %v6139_v17 = vld [vmem:[#allocation2 + $0x1a4] ss:$16 sps:$4 sm:$0xff]  }
 0x2ee   :  { %v1800_v63 = vpack.c.bf16 %v1594_v58, %v1592_v12  ;;  %v1799_v46 = vpack.c.bf16 %v1593_v49, %v1591_v35  ;;  %v8333_v0 = vpop.permute.xlu1 %1872  ;;  %v8341_v5 = vpop.permute.xlu0 %1864  ;;  %v6142_v35 = vld [vmem:[#allocation2 + $0x1ac] ss:$16 sps:$4 sm:$0xff]   ;;  %v6141_v58 = vld [vmem:[#allocation2 + $0x1a0] ss:$16 sps:$4 sm:$0xff]   ;;  %v6145_v49 = vld [vmem:[#allocation2 + $0x1c4] ss:$16 sps:$4 sm:$0xff]  }
 0x2ef   :  { %1884 = vperm.xlu1 %6055, %v7939_v27   ;;  %v6084_v27 = vld [vmem:[#allocation2 + $0x68] ss:$16 sps:$4 sm:$0xff]  }
 0x2f0   :  { %2744 = vmatmul.mubr.bf16.vlgmr.msra.gmra.mxu0 %v6061_v30  ;;  %3094 = vmatprep.subr.bf16.mxu1 %v1800_v63 }
 0x2f1   :  { %3095 = vmatpush2.bf16.msra.mxu1 %v1799_v46  ;;  %2753 = vmatprep.mubr.bf16.mxu0 %v6067_v25  ;;  %v6144_v46 = vld [vmem:[#allocation2 + $0x1a8] ss:$16 sps:$4 sm:$0xff]  }
 0x2f2   :  { %v8335_v36 = vpop.permute.xlu1 %2000  ;;  %v8345_v22 = vpop.permute.xlu0 %1992 }
 0x2f3   :  { %2012 = vperm.xlu1 %6055, %v7978_v40   ;;  %v6091_v40 = vld [vmem:[#allocation2 + $0xa4] ss:$16 sps:$4 sm:$0xff]   ;;  %10333 = vst [vmem:[#allocation42_spill] sm:$0xff] %v8335_v36  ;;  %10335 = vst [vmem:[#allocation40_spill] sm:$0xff] %v8345_v22 }
 0x2f4   :  { %3097 = vmatmul.mubr.bf16.vlgmr.msra.gmra.mxu1 %v6064_v8  ;;  %v6148_v8 = vld [vmem:[#allocation2 + $0x1cc] ss:$16 sps:$4 sm:$0xff]  }
 0x2f5   :  { %3106 = vmatprep.mubr.bf16.mxu1 %v6070_v61  ;;  %v6147_v61 = vld [vmem:[#allocation2 + $0x1c0] ss:$16 sps:$4 sm:$0xff]  }
 0x2f6   :  { %v8339_v10 = vpop.permute.xlu1 %2004  ;;  %v8349_v30 = vpop.permute.xlu0 %1856 }
 0x2f7   :  { %10334 = vst [vmem:[#allocation37_spill] sm:$0xff] %v8339_v10 }
 0x2f8   :  { %2754 = vmatmul.mubr.bf16.gmra.mxu0 %v6069_v11  ;;  %v6151_v11 = vld [vmem:[#allocation2 + $0x1e4] ss:$16 sps:$4 sm:$0xff]  }
 0x2f9   :  { %2763 = vmatprep.mubr.bf16.mxu0 %v6073_v57 }
 0x2fa   :  { %v8343_v31 = vpop.permute.xlu1 %1868  ;;  %v8353_v63 = vpop.permute.xlu0 %1984 }
 0x2fb   :  { %10337 = vst [vmem:[#allocation48_spill] sm:$0xff] %v8353_v63  ;;  %v6235_v63 = vld [vmem:[#allocation2 + $0x3a0] ss:$16 sps:$4 sm:$0xff]  }
 0x2fc   :  { %3107 = vmatmul.mubr.bf16.gmra.mxu1 %v6072_v15 }
 0x2fd   :  { %3116 = vmatprep.mubr.bf16.mxu1 %v6076_v62  ;;  %v6150_v62 = vld [vmem:[#allocation2 + $0x1c8] ss:$16 sps:$4 sm:$0xff]  }
 0x2fe   :  { %v8347_v12 = vpop.permute.xlu1 %1996  ;;  %v8357_v15 = vpop.permute.xlu0 %1848 }
 0x2ff   :  { %10336 = vst [vmem:[#allocation23_spill] sm:$0xff] %v8347_v12  ;;  %v6238_v12 = vld [vmem:[#allocation2 + $0x3a8] ss:$16 sps:$4 sm:$0xff]  }
 0x300   :  { %2764 = vmatmul.mubr.bf16.gmra.mxu0 %v6075_v26  ;;  %v6154_v26 = vld [vmem:[#allocation2 + $0x1ec] ss:$16 sps:$4 sm:$0xff]  }
 0x301   :  { %2773 = vmatprep.mubr.bf16.mxu0 %v6079_v23 }
 0x302   :  { %v8351_v25 = vpop.permute.xlu1 %1860 }
 0x304   :  { %3117 = vmatmul.mubr.bf16.gmra.mxu1 %v6078_v18  ;;  %v8361_v18 = vpop.permute.xlu0 %1976 }
 0x305   :  { %3126 = vmatprep.mubr.bf16.mxu1 %v6082_v6  ;;  %10339 = vst [vmem:[#allocation46_spill] sm:$0xff] %v8361_v18  ;;  %v6153_v6 = vld [vmem:[#allocation2 + $0x1e0] ss:$16 sps:$4 sm:$0xff]  }
 0x306   :  { %v8355_v57 = vpop.permute.xlu1 %1988 }
 0x307   :  { %10338 = vst [vmem:[#allocation13_spill] sm:$0xff] %v8355_v57 }
 0x308   :  { %2774 = vmatmul.mubr.bf16.gmra.mxu0 %v6081_v50  ;;  %v6157_v50 = vld [vmem:[#allocation2 + $0x204] ss:$16 sps:$4 sm:$0xff]  }
 0x309   :  { %2783 = vmatprep.mubr.bf16.mxu0 %v6085_v7  ;;  %v6156_v7 = vld [vmem:[#allocation2 + $0x1e8] ss:$16 sps:$4 sm:$0xff]  }
 0x30a   :  { %v8359_v23 = vpop.permute.xlu1 %1852 }
 0x30c   :  { %3127 = vmatmul.mubr.bf16.gmra.mxu1 %v6084_v27  ;;  %v6160_v27 = vld [vmem:[#allocation2 + $0x20c] ss:$16 sps:$4 sm:$0xff]  }
 0x30d   :  { %3136 = vmatprep.mubr.bf16.mxu1 %v6088_v54 }
 0x30e   :  { %v8363_v54 = vpop.permute.xlu1 %1980 }
 0x30f   :  { %10340 = vst [vmem:[#allocation49_spill] sm:$0xff] %v8363_v54 }
 0x310   :  { %2784 = vmatmul.mubr.bf16.gmra.mxu0 %v6087_v39  ;;  %v8365_v39 = vpop.permute.xlu0 %1840 }
 0x311   :  { %2793 = vmatprep.mubr.bf16.mxu0 %v6091_v40  ;;  %v6159_v40 = vld [vmem:[#allocation2 + $0x200] ss:$16 sps:$4 sm:$0xff]  }
 0x314   :  { %3137 = vmatmul.mubr.bf16.gmra.mxu1 %v6090_v32  ;;  %v6163_v32 = vld [vmem:[#allocation2 + $0x224] ss:$16 sps:$4 sm:$0xff]  }
 0x315   :  { %3146 = vmatprep.mubr.bf16.mxu1 %v6094_v28  ;;  %v8367_v28 = vpop.permute.xlu1 %1844 }
 0x318   :  { %2794 = vmatmul.mubr.bf16.gmra.mxu0 %v6093_v51  ;;  %v8369_v51 = vpop.permute.xlu0 %1968 }
 0x319   :  { %2803 = vmatprep.mubr.bf16.mxu0 %v6097_v9  ;;  %10341 = vst [vmem:[#allocation25_spill] sm:$0xff] %v8369_v51  ;;  %v6162_v9 = vld [vmem:[#allocation2 + $0x208] ss:$16 sps:$4 sm:$0xff]  }
 0x31c   :  { %3147 = vmatmul.mubr.bf16.gmra.mxu1 %v6096_v4  ;;  %v6166_v4 = vld [vmem:[#allocation2 + $0x22c] ss:$16 sps:$4 sm:$0xff]  }
 0x31d   :  { %3156 = vmatprep.mubr.bf16.mxu1 %v6100_v48  ;;  %v6165_v48 = vld [vmem:[#allocation2 + $0x220] ss:$16 sps:$4 sm:$0xff]  }
 0x320   :  { %2804 = vmatmul.mubr.bf16.gmra.mxu0 %v6099_v37  ;;  %v6169_v37 = vld [vmem:[#allocation2 + $0x244] ss:$16 sps:$4 sm:$0xff]  }
 0x321   :  { %2813 = vmatprep.mubr.bf16.mxu0 %v6103_v55  ;;  %v8371_v55 = vpop.permute.xlu1 %1972 }
 0x322   :  { %10342 = vst [vmem:[#allocation14_spill] sm:$0xff] %v8371_v55  ;;  %v6246_v55 = vld [vmem:[#allocation2 + $0x3cc] ss:$16 sps:$4 sm:$0xff]  }
 0x324   :  { %3157 = vmatmul.mubr.bf16.gmra.mxu1 %v6102_v38  ;;  %v8373_v38 = vpop.permute.xlu0 %1832 }
 0x325   :  { %3166 = vmatprep.mubr.bf16.mxu1 %v6106_v42  ;;  %v6168_v42 = vld [vmem:[#allocation2 + $0x228] ss:$16 sps:$4 sm:$0xff]  }
 0x328   :  { %2814 = vmatmul.mubr.bf16.gmra.mxu0 %v6105_v45  ;;  %v6172_v45 = vld [vmem:[#allocation2 + $0x24c] ss:$16 sps:$4 sm:$0xff]  }
 0x329   :  { %2823 = vmatprep.mubr.bf16.mxu0 %v6109_v47  ;;  %v8375_v47 = vpop.permute.xlu1 %1836 }
 0x32a   :  { %10343 = vst [vmem:[#allocation27_spill] sm:$0xff] %v8375_v47 }
 0x32c   :  { %3167 = vmatmul.mubr.bf16.gmra.mxu1 %v6108_v59  ;;  %v8377_v59 = vpop.permute.xlu0 %1960 }
 0x32d   :  { %3176 = vmatprep.mubr.bf16.mxu1 %v6112_v56  ;;  %10344 = vst [vmem:[#allocation11_spill] sm:$0xff] %v8377_v59  ;;  %v6171_v56 = vld [vmem:[#allocation2 + $0x240] ss:$16 sps:$4 sm:$0xff]  }
 0x330   :  { %2824 = vmatmul.mubr.bf16.gmra.mxu0 %v6111_v41  ;;  %v6175_v41 = vld [vmem:[#allocation2 + $0x264] ss:$16 sps:$4 sm:$0xff]  }
 0x331   :  { %2833 = vmatprep.mubr.bf16.mxu0 %v6115_v43  ;;  %v6174_v43 = vld [vmem:[#allocation2 + $0x248] ss:$16 sps:$4 sm:$0xff]  }
 0x334   :  { %3177 = vmatmul.mubr.bf16.gmra.mxu1 %v6114_v53  ;;  %v6178_v53 = vld [vmem:[#allocation2 + $0x26c] ss:$16 sps:$4 sm:$0xff]  }
 0x335   :  { %3186 = vmatprep.mubr.bf16.mxu1 %v6118_v2  ;;  %v8379_v2 = vpop.permute.xlu1 %1964 }
 0x336   :  { %10345 = vst [vmem:[#allocation15_spill] sm:$0xff] %v8379_v2 }
 0x338   :  { %2834 = vmatmul.mubr.bf16.gmra.mxu0 %v6117_v1  ;;  %v8381_v1 = vpop.permute.xlu0 %1824 }
 0x339   :  { %2843 = vmatprep.mubr.bf16.mxu0 %v6121_v44  ;;  %v6177_v44 = vld [vmem:[#allocation2 + $0x260] ss:$16 sps:$4 sm:$0xff]  }
 0x33c   :  { %3187 = vmatmul.mubr.bf16.gmra.mxu1 %v6120_v19  ;;  %v6181_v19 = vld [vmem:[#allocation2 + $0x284] ss:$16 sps:$4 sm:$0xff]  }
 0x33d   :  { %3196 = vmatprep.mubr.bf16.mxu1 %v6124_v16  ;;  %v8383_v16 = vpop.permute.xlu1 %1828 }
 0x340   :  { %2844 = vmatmul.mubr.bf16.gmra.mxu0 %v6123_v21  ;;  %v8385_v21 = vpop.permute.xlu0 %1952 }
 0x341   :  { %2853 = vmatprep.mubr.bf16.mxu0 %v6127_v13  ;;  %10346 = vst [vmem:[#allocation29_spill] sm:$0xff] %v8385_v21  ;;  %v6180_v13 = vld [vmem:[#allocation2 + $0x268] ss:$16 sps:$4 sm:$0xff]  }
 0x344   :  { %3197 = vmatmul.mubr.bf16.gmra.mxu1 %v6126_v60  ;;  %v6184_v60 = vld [vmem:[#allocation2 + $0x28c] ss:$16 sps:$4 sm:$0xff]  }
 0x345   :  { %3206 = vmatprep.mubr.bf16.mxu1 %v6130_v14  ;;  %v6183_v14 = vld [vmem:[#allocation2 + $0x280] ss:$16 sps:$4 sm:$0xff]  }
 0x348   :  { %2854 = vmatmul.mubr.bf16.gmra.mxu0 %v6129_v24  ;;  %v6187_v24 = vld [vmem:[#allocation2 + $0x2a4] ss:$16 sps:$4 sm:$0xff]  }
 0x349   :  { %2863 = vmatprep.mubr.bf16.mxu0 %v6133_v33  ;;  %v8387_v33 = vpop.permute.xlu1 %1956 }
 0x34a   :  { %10347 = vst [vmem:[#allocation12_spill] sm:$0xff] %v8387_v33  ;;  %v6241_v33 = vld [vmem:[#allocation2 + $0x3c0] ss:$16 sps:$4 sm:$0xff]  }
 0x34c   :  { %3207 = vmatmul.mubr.bf16.gmra.mxu1 %v6132_v29  ;;  %v1817_v29 = vpop.permute.xlu0 %1816 }
 0x34d   :  { %3216 = vmatprep.mubr.bf16.mxu1 %v6136_v52  ;;  %v6186_v52 = vld [vmem:[#allocation2 + $0x288] ss:$16 sps:$4 sm:$0xff]  }
 0x350   :  { %2864 = vmatmul.mubr.bf16.gmra.mxu0 %v6135_v20  ;;  %v6190_v20 = vld [vmem:[#allocation2 + $0x2ac] ss:$16 sps:$4 sm:$0xff]  }
 0x351   :  { %2873 = vmatprep.mubr.bf16.mxu0 %v6139_v17  ;;  %v8389_v17 = vpop.permute.xlu1 %1820 }
 0x354   :  { %3217 = vmatmul.mubr.bf16.gmra.mxu1 %v6138_v3  ;;  %v8391_v3 = vpop.permute.xlu0 %1944 }
 0x355   :  { %3226 = vmatprep.mubr.bf16.mxu1 %v6142_v35  ;;  %10348 = vst [vmem:[#allocation16_spill] sm:$0xff] %v8391_v3  ;;  %v6189_v35 = vld [vmem:[#allocation2 + $0x2a0] ss:$16 sps:$4 sm:$0xff]  }
 0x358   :  { %2874 = vmatmul.mubr.bf16.gmra.mxu0 %v6141_v58  ;;  %v6193_v58 = vld [vmem:[#allocation2 + $0x2c4] ss:$16 sps:$4 sm:$0xff]  }
 0x359   :  { %2883 = vmatprep.mubr.bf16.mxu0 %v6145_v49  ;;  %v6192_v49 = vld [vmem:[#allocation2 + $0x2a8] ss:$16 sps:$4 sm:$0xff]  }
 0x35c   :  { %3227 = vmatmul.mubr.bf16.gmra.mxu1 %v6144_v46  ;;  %v6196_v46 = vld [vmem:[#allocation2 + $0x2cc] ss:$16 sps:$4 sm:$0xff]  }
 0x35d   :  { %3236 = vmatprep.mubr.bf16.mxu1 %v6148_v8  ;;  %v8393_v8 = vpop.permute.xlu1 %1948 }
 0x35e   :  { %10349 = vst [vmem:[#allocation36_spill] sm:$0xff] %v8393_v8 }
 0x360   :  { %2884 = vmatmul.mubr.bf16.gmra.mxu0 %v6147_v61  ;;  %v8395_v61 = vpop.permute.xlu0 %1936 }
 0x361   :  { %2893 = vmatprep.mubr.bf16.mxu0 %v6151_v11  ;;  %10350 = vst [vmem:[#allocation17_spill] sm:$0xff] %v8395_v61  ;;  %v6195_v11 = vld [vmem:[#allocation2 + $0x2c0] ss:$16 sps:$4 sm:$0xff]  }
 0x364   :  { %3237 = vmatmul.mubr.bf16.gmra.mxu1 %v6150_v62  ;;  %v6199_v62 = vld [vmem:[#allocation2 + $0x2e4] ss:$16 sps:$4 sm:$0xff]  }
 0x365   :  { %3246 = vmatprep.mubr.bf16.mxu1 %v6154_v26  ;;  %v8397_v26 = vpop.permute.xlu1 %1940 }
 0x366   :  { %10351 = vst [vmem:[#allocation45_spill] sm:$0xff] %v8397_v26 }
 0x368   :  { %2894 = vmatmul.mubr.bf16.gmra.mxu0 %v6153_v6  ;;  %v8399_v6 = vpop.permute.xlu0 %2064 }
 0x369   :  { %2903 = vmatprep.mubr.bf16.mxu0 %v6157_v50  ;;  %10352 = vst [vmem:[#allocation18_spill] sm:$0xff] %v8399_v6  ;;  %v6198_v50 = vld [vmem:[#allocation2 + $0x2c8] ss:$16 sps:$4 sm:$0xff]  }
 0x36a   :  { %v6232_v6 = vld [vmem:[#allocation2 + $0x388] ss:$16 sps:$4 sm:$0xff]  }
 0x36c   :  { %3247 = vmatmul.mubr.bf16.gmra.mxu1 %v6156_v7  ;;  %v6202_v7 = vld [vmem:[#allocation2 + $0x2ec] ss:$16 sps:$4 sm:$0xff]  }
 0x36d   :  { %3256 = vmatprep.mubr.bf16.mxu1 %v6160_v27  ;;  %v6201_v27 = vld [vmem:[#allocation2 + $0x2e0] ss:$16 sps:$4 sm:$0xff]  }
 0x370   :  { %2904 = vmatmul.mubr.bf16.gmra.mxu0 %v6159_v40  ;;  %v6205_v40 = vld [vmem:[#allocation2 + $0x304] ss:$16 sps:$4 sm:$0xff]  }
 0x371   :  { %2913 = vmatprep.mubr.bf16.mxu0 %v6163_v32  ;;  %v8401_v32 = vpop.permute.xlu1 %2068 }
 0x372   :  { %10353 = vst [vmem:[#allocation19_spill] sm:$0xff] %v8401_v32 }
 0x374   :  { %3257 = vmatmul.mubr.bf16.gmra.mxu1 %v6162_v9  ;;  %v8403_v9 = vpop.permute.xlu0 %1928 }
 0x375   :  { %3266 = vmatprep.mubr.bf16.mxu1 %v6166_v4  ;;  %10354 = vst [vmem:[#allocation20_spill] sm:$0xff] %v8403_v9  ;;  %v6204_v4 = vld [vmem:[#allocation2 + $0x2e8] ss:$16 sps:$4 sm:$0xff]   ;;  %v6252_v9 = vld [vmem:[#allocation2 + $0x3ec] ss:$16 sps:$4 sm:$0xff]  }
 0x378   :  { %2914 = vmatmul.mubr.bf16.gmra.mxu0 %v6165_v48  ;;  %v6208_v48 = vld [vmem:[#allocation2 + $0x30c] ss:$16 sps:$4 sm:$0xff]  }
 0x379   :  { %2923 = vmatprep.mubr.bf16.mxu0 %v6169_v37  ;;  %v8405_v37 = vpop.permute.xlu1 %1932 }
 0x37a   :  { %10355 = vst [vmem:[#allocation21_spill] sm:$0xff] %v8405_v37 }
 0x37c   :  { %3267 = vmatmul.mubr.bf16.gmra.mxu1 %v6168_v42  ;;  %v8407_v42 = vpop.permute.xlu0 %2056 }
 0x37d   :  { %3276 = vmatprep.mubr.bf16.mxu1 %v6172_v45  ;;  %10356 = vst [vmem:[#allocation22_spill] sm:$0xff] %v8407_v42  ;;  %v6207_v45 = vld [vmem:[#allocation2 + $0x300] ss:$16 sps:$4 sm:$0xff]  }
 0x380   :  { %2924 = vmatmul.mubr.bf16.gmra.mxu0 %v6171_v56  ;;  %v6211_v56 = vld [vmem:[#allocation2 + $0x324] ss:$16 sps:$4 sm:$0xff]  }
 0x381   :  { %2933 = vmatprep.mubr.bf16.mxu0 %v6175_v41 }
 0x384   :  { %3277 = vmatmul.mubr.bf16.gmra.mxu1 %v6174_v43  ;;  %v6210_v43 = vld [vmem:[#allocation2 + $0x308] ss:$16 sps:$4 sm:$0xff]  }
 0x385   :  { %3286 = vmatprep.mubr.bf16.mxu1 %v6178_v53 }
 0x388   :  { %2934 = vmatmul.mubr.bf16.gmra.mxu0 %v6177_v44  ;;  %v6214_v44 = vld [vmem:[#allocation2 + $0x32c] ss:$16 sps:$4 sm:$0xff]  }
 0x389   :  { %2943 = vmatprep.mubr.bf16.mxu0 %v6181_v19  ;;  %v8409_v19 = vpop.permute.xlu1 %2060 }
 0x38a   :  { %10357 = vst [vmem:[#allocation24_spill] sm:$0xff] %v8409_v19  ;;  %v6240_v19 = vld [vmem:[#allocation2 + $0x3ac] ss:$16 sps:$4 sm:$0xff]  }
 0x38c   :  { %3287 = vmatmul.mubr.bf16.gmra.mxu1 %v6180_v13  ;;  %v8411_v13 = vpop.permute.xlu0 %1920 }
 0x38d   :  { %3296 = vmatprep.mubr.bf16.mxu1 %v6184_v60  ;;  %10358 = vst [vmem:[#allocation26_spill] sm:$0xff] %v8411_v13 }
 0x390   :  { %2944 = vmatmul.mubr.bf16.gmra.mxu0 %v6183_v14 }
 0x391   :  { %2953 = vmatprep.mubr.bf16.mxu0 %v6187_v24 }
 0x394   :  { %3297 = vmatmul.mubr.bf16.gmra.mxu1 %v6186_v52  ;;  %v6213_v52 = vld [vmem:[#allocation2 + $0x320] ss:$16 sps:$4 sm:$0xff]  }
 0x395   :  { %3306 = vmatprep.mubr.bf16.mxu1 %v6190_v20 }
 0x398   :  { %2954 = vmatmul.mubr.bf16.gmra.mxu0 %v6189_v35 }
 0x399   :  { %2963 = vmatprep.mubr.bf16.mxu0 %v6193_v58  ;;  %v6217_v58 = vld [vmem:[#allocation2 + $0x344] ss:$16 sps:$4 sm:$0xff]  }
 0x39c   :  { %3307 = vmatmul.mubr.bf16.gmra.mxu1 %v6192_v49 }
 0x39d   :  { %3316 = vmatprep.mubr.bf16.mxu1 %v6196_v46 }
 0x3a0   :  { %2964 = vmatmul.mubr.bf16.gmra.mxu0 %v6195_v11 }
 0x3a1   :  { %2973 = vmatprep.mubr.bf16.mxu0 %v6199_v62 }
 0x3a4   :  { %3317 = vmatmul.mubr.bf16.gmra.mxu1 %v6198_v50  ;;  %v8414_v50 = vpop.permute.xlu1 %1924 }
 0x3a5   :  { %3326 = vmatprep.mubr.bf16.mxu1 %v6202_v7  ;;  %10359 = vst [vmem:[#allocation28_spill] sm:$0xff] %v8414_v50  ;;  %v8416_v7 = vpop.permute.xlu0 %2048  ;;  %v6244_v50 = vld [vmem:[#allocation2 + $0x3c8] ss:$16 sps:$4 sm:$0xff]  }
 0x3a6   :  { %10360 = vst [vmem:[#allocation30_spill] sm:$0xff] %v8416_v7 }
 0x3a8   :  { %2974 = vmatmul.mubr.bf16.gmra.mxu0 %v6201_v27 }
 0x3a9   :  { %2983 = vmatprep.mubr.bf16.mxu0 %v6205_v40 }
 0x3ac   :  { %3327 = vmatmul.mubr.bf16.gmra.mxu1 %v6204_v4  ;;  %v6216_v4 = vld [vmem:[#allocation2 + $0x328] ss:$16 sps:$4 sm:$0xff]  }
 0x3ad   :  { %3336 = vmatprep.mubr.bf16.mxu1 %v6208_v48 }
 0x3b0   :  { %v2745_v41 = vpop.f32.mrf.mxu0  ;;  %2984 = vmatmul.mubr.bf16.gmra.mxu0 %v6207_v45 }
 0x3b1   :  { %v2746_v53 = vadd.f32 %v2745_v41, %v1817_v29  ;;  %2993 = vmatprep.mubr.bf16.mxu0 %v6211_v56  ;;  %v6220_v56 = vld [vmem:[#allocation2 + $0x34c] ss:$16 sps:$4 sm:$0xff]  }
 0x3b2   :  { %v2747_v60 = vpop.f32.mrf.mxu0 }
 0x3b3   :  { %v2748_v20 = vadd.f32 %v2747_v60, %v1817_v29 }
 0x3b4   :  { %v2749_v14 = vpop.f32.mrf.mxu0  ;;  %v3098_v24 = vpop.f32.mrf.mxu1  ;;  %3337 = vmatmul.mubr.bf16.gmra.mxu1 %v6210_v43 }
 0x3b5   :  { %v3099_v35 = vadd.f32 %v3098_v24, %v2746_v53  ;;  %3346 = vmatprep.mubr.bf16.mxu1 %v6214_v44  ;;  %v2750_v11 = vadd.f32 %v2749_v14, %v8389_v17 }
 0x3b6   :  { %v2751_v49 = vpop.f32.mrf.mxu0  ;;  %v3100_v46 = vpop.f32.mrf.mxu1 }
 0x3b7   :  { %v3101_v62 = vadd.f32 %v3100_v46, %v2748_v20  ;;  %v2752_v48 = vadd.f32 %v2751_v49, %v8389_v17  ;;  %v3417_v53 = vmax.f32 %v3099_v35, 0.0  ;;  %v6219_v46 = vld [vmem:[#allocation2 + $0x340] ss:$16 sps:$4 sm:$0xff]  }
 0x3b8   :  { %v2755_v27 = vpop.f32.mrf.mxu0  ;;  %2994 = vmatmul.mubr.bf16.gmra.mxu0 %v6213_v52  ;;  %v3102_v40 = vpop.f32.mrf.mxu1 }
 0x3b9   :  { %v2756_v29 = vadd.f32 %v2755_v27, %v8381_v1  ;;  %v3103_v45 = vadd.f32 %v3102_v40, %v2750_v11  ;;  %3003 = vmatprep.mubr.bf16.mxu0 %v6217_v58  ;;  %v3418_v14 = vmax.f32 %v3101_v62, 0.0  ;;  %v6223_v11 = vld [vmem:[#allocation2 + $0x364] ss:$16 sps:$4 sm:$0xff]   ;;  %v8423_v58 = vpop.permute.xlu1 %2052  ;;  %v8425_v27 = vpop.permute.xlu0 %1912 }
 0x3ba   :  { %v2757_v41 = vpop.f32.mrf.mxu0  ;;  %v3104_v43 = vpop.f32.mrf.mxu1  ;;  %10362 = vst [vmem:[#allocation32_spill] sm:$0xff] %v8423_v58  ;;  %10363 = vst [vmem:[#allocation33_spill] sm:$0xff] %v8425_v27 }
 0x3bb   :  { %v3419_v44 = vmax.f32 %v3103_v45, 0.0  ;;  %v3105_v60 = vadd.f32 %v3104_v43, %v2752_v48  ;;  %v2758_v7 = vadd.f32 %v2757_v41, %v8381_v1  ;;  %v6226_v41 = vld [vmem:[#allocation2 + $0x36c] ss:$16 sps:$4 sm:$0xff]  }
 0x3bc   :  { %v2759_v24 = vpop.f32.mrf.mxu0  ;;  %v3108_v20 = vpop.f32.mrf.mxu1  ;;  %3347 = vmatmul.mubr.bf16.gmra.mxu1 %v6216_v4 }
 0x3bd   :  { %v8420_v52 = vpack.c.bf16 %v3419_v44, %v3417_v53  ;;  %v3420_v17 = vmax.f32 %v3105_v60, 0.0  ;;  %v3109_v49 = vadd.f32 %v3108_v20, %v2756_v29  ;;  %3356 = vmatprep.mubr.bf16.mxu1 %v6220_v56  ;;  %v2760_v62 = vadd.f32 %v2759_v24, %v8383_v16  ;;  %v6222_v53 = vld [vmem:[#allocation2 + $0x348] ss:$16 sps:$4 sm:$0xff]  }
 0x3be   :  { %v2761_v35 = vpop.f32.mrf.mxu0  ;;  %v3110_v40 = vpop.f32.mrf.mxu1 }
 0x3bf   :  { %10361 = vst [vmem:[#allocation31_spill] sm:$0xff] %v8420_v52  ;;  %v3111_v48 = vadd.f32 %v3110_v40, %v2758_v7  ;;  %v8428_v45 = vpack.c.bf16 %v3420_v17, %v3418_v14  ;;  %v2762_v1 = vadd.f32 %v2761_v35, %v8383_v16  ;;  %v3421_v20 = vmax.f32 %v3109_v49, 0.0  ;;  %v8434_v7 = vpop.permute.xlu1 %1916  ;;  %v8436_v14 = vpop.permute.xlu0 %2040  ;;  %v6225_v16 = vld [vmem:[#allocation2 + $0x360] ss:$16 sps:$4 sm:$0xff]  }
 0x3c0   :  { %v2765_v4 = vpop.f32.mrf.mxu0  ;;  %3004 = vmatmul.mubr.bf16.gmra.mxu0 %v6219_v46  ;;  %v3112_v43 = vpop.f32.mrf.mxu1  ;;  %10365 = vst [vmem:[#allocation38_spill] sm:$0xff] %v8434_v7  ;;  %10366 = vst [vmem:[#allocation39_spill] sm:$0xff] %v8436_v14 }
 0x3c1   :  { %10364 = vst [vmem:[#allocation35_spill] sm:$0xff] %v8428_v45  ;;  %v2766_v29 = vadd.f32 %v2765_v4, %v8373_v38  ;;  %v3113_v56 = vadd.f32 %v3112_v43, %v2760_v62  ;;  %3013 = vmatprep.mubr.bf16.mxu0 %v6223_v11  ;;  %v3422_v35 = vmax.f32 %v3111_v48, 0.0  ;;  %v6231_v4 = vld [vmem:[#allocation2 + $0x384] ss:$16 sps:$4 sm:$0xff]  }
 0x3c2   :  { %v8432_v44 = vpop.f32.mrf.mxu0  ;;  %v3114_v60 = vpop.f32.mrf.mxu1 }
 0x3c3   :  { %v3423_v58 = vmax.f32 %v3113_v56, 0.0  ;;  %v3115_v24 = vadd.f32 %v3114_v60, %v2762_v1  ;;  %v8454_v48 = vpop.permute.xlu1 %2044 }
 0x3c4   :  { %v8438_v46 = vpop.f32.mrf.mxu0  ;;  %v3118_v17 = vpop.f32.mrf.mxu1  ;;  %3357 = vmatmul.mubr.bf16.gmra.mxu1 %v6222_v53  ;;  %v6228_v53 = vld [vmem:[#allocation2 + $0x368] ss:$16 sps:$4 sm:$0xff]   ;;  %10373 = vst [vmem:[#allocation52_spill] sm:$0xff] %v8454_v48 }
 0x3c5   :  { %10367 = vst [vmem:[#allocation41_spill] sm:$0xff] %v8438_v46  ;;  %v8440_v40 = vpack.c.bf16 %v3423_v58, %v3421_v20  ;;  %v3424_v11 = vmax.f32 %v3115_v24, 0.0  ;;  %v8442_v62 = vadd.f32 %v3118_v17, %v2766_v29  ;;  %3366 = vmatprep.mubr.bf16.mxu1 %v6226_v41  ;;  %v6234_v58 = vld [vmem:[#allocation2 + $0x38c] ss:$16 sps:$4 sm:$0xff]   ;;  %v8456_v29 = vpop.permute.xlu0 %1904 }
 0x3c6   :  { %v8444_v49 = vpop.f32.mrf.mxu0  ;;  %v8446_v43 = vpop.f32.mrf.mxu1  ;;  %10374 = vst [vmem:[#allocation53_spill] sm:$0xff] %v8456_v29  ;;  %v6250_v29 = vld [vmem:[#allocation2 + $0x3e8] ss:$16 sps:$4 sm:$0xff]  }
 0x3c7   :  { %10368 = vst [vmem:[#allocation43_spill] sm:$0xff] %v8440_v40  ;;  %10369 = vst [vmem:[#allocation44_spill] sm:$0xff] %v8442_v62  ;;  %v8448_v1 = vpack.c.bf16 %v3424_v11, %v3422_v35  ;;  %v6229_v35 = vld [vmem:[#allocation2 + $0x380] ss:$16 sps:$4 sm:$0xff]   ;;  %v8470_v14 = vpop.permute.xlu1 %1908  ;;  %v8530_v62 = vadd.f32 %v8444_v49, %v8375_v47 }
 0x3c8   :  { %10370 = vst [vmem:[#allocation47_spill] sm:$0xff] %v8446_v43  ;;  %v8450_v56 = vpop.f32.mrf.mxu0  ;;  %3014 = vmatmul.mubr.bf16.gmra.mxu0 %v6225_v16  ;;  %v8452_v60 = vpop.f32.mrf.mxu1  ;;  %v6237_v16 = vld [vmem:[#allocation2 + $0x3a4] ss:$16 sps:$4 sm:$0xff]   ;;  %10376 = vst [vmem:[#allocation55_spill] sm:$0xff] %v8470_v14 }
 0x3c9   :  { %10371 = vst [vmem:[#allocation50_spill] sm:$0xff] %v8448_v1  ;;  %10372 = vst [vmem:[#allocation51_spill] sm:$0xff] %v8452_v60  ;;  %3023 = vmatprep.mubr.bf16.mxu0 %v6231_v4  ;;  %v8472_v48 = vpop.permute.xlu0 %2032 }
 0x3ca   :  { %v8458_v41 = vpop.f32.mrf.mxu0  ;;  %v8460_v20 = vpop.f32.mrf.mxu1  ;;  %10377 = vst [vmem:[#allocation56_spill] sm:$0xff] %v8472_v48  ;;  %v6243_v48 = vld [vmem:[#allocation2 + $0x3c4] ss:$16 sps:$4 sm:$0xff]  }
 0x3cb   :  { %v8486_v54 = vpop.permute.xlu1 %2036 }
 0x3cc   :  { %v8462_v24 = vpop.f32.mrf.mxu0  ;;  %v8464_v17 = vpop.f32.mrf.mxu1  ;;  %3367 = vmatmul.mubr.bf16.gmra.mxu1 %v6228_v53  ;;  %10379 = vst [vmem:[#allocation58_spill] sm:$0xff] %v8486_v54 }
 0x3cd   :  { %10375 = vst [vmem:[#allocation54_spill] sm:$0xff] %v8464_v17  ;;  %3376 = vmatprep.mubr.bf16.mxu1 %v6234_v58 }
 0x3ce   :  { %v8466_v11 = vpop.f32.mrf.mxu0  ;;  %v8468_v4 = vpop.f32.mrf.mxu1 }
 0x3d0   :  { %v8474_v42 = vpop.f32.mrf.mxu0  ;;  %3024 = vmatmul.mubr.bf16.gmra.mxu0 %v6229_v35  ;;  %v8476_v32 = vpop.f32.mrf.mxu1 }
 0x3d1   :  { %10378 = vst [vmem:[#allocation57_spill] sm:$0xff] %v8476_v32  ;;  %3033 = vmatprep.mubr.bf16.mxu0 %v6237_v16  ;;  %v8488_v35 = vpop.permute.xlu0 %1896 }
 0x3d2   :  { %v8478_v53 = vpop.f32.mrf.mxu0  ;;  %v8480_v58 = vpop.f32.mrf.mxu1  ;;  %10380 = vst [vmem:[#allocation59_spill] sm:$0xff] %v8488_v35 }
 0x3d4   :  { %v8482_v57 = vpop.f32.mrf.mxu0  ;;  %v8484_v22 = vpop.f32.mrf.mxu1  ;;  %3377 = vmatmul.mubr.bf16.gmra.mxu1 %v6232_v6 }
 0x3d5   :  { %3386 = vmatprep.mubr.bf16.mxu1 %v6240_v19  ;;  %v8500_v19 = vpop.permute.xlu1 %1900  ;;  %v8502_v54 = vpop.permute.xlu0 %2024 }
 0x3d6   :  { %v2791_v10 = vpop.f32.mrf.mxu0  ;;  %v8490_v36 = vpop.f32.mrf.mxu1  ;;  %10381 = vst [vmem:[#allocation60_spill] sm:$0xff] %v8500_v19  ;;  %10382 = vst [vmem:[#allocation61_spill] sm:$0xff] %v8502_v54 }
 0x3d8   :  { %v8492_v16 = vpop.f32.mrf.mxu0  ;;  %3034 = vmatmul.mubr.bf16.gmra.mxu0 %v6235_v63  ;;  %v8494_v18 = vpop.f32.mrf.mxu1  ;;  %v6249_v63 = vld [vmem:[#allocation2 + $0x3e4] ss:$16 sps:$4 sm:$0xff]  }
 0x3d9   :  { %3043 = vmatprep.mubr.bf16.mxu0 %v6243_v48  ;;  %v8512_v3 = vpop.permute.xlu1 %2028  ;;  %v8514_v54 = vpop.permute.xlu0 %1888 }
 0x3da   :  { %v8496_v51 = vpop.f32.mrf.mxu0  ;;  %v8498_v6 = vpop.f32.mrf.mxu1  ;;  %10383 = vst [vmem:[#allocation62_spill] sm:$0xff] %v8512_v3 }
 0x3dc   :  { %v8504_v2 = vpop.f32.mrf.mxu0  ;;  %v8506_v59 = vpop.f32.mrf.mxu1  ;;  %3387 = vmatmul.mubr.bf16.gmra.mxu1 %v6238_v12 }
 0x3dd   :  { %3396 = vmatprep.mubr.bf16.mxu1 %v6246_v55  ;;  %v6247_v55 = vld [vmem:[#allocation2 + $0x3e0] ss:$16 sps:$4 sm:$0xff]   ;;  %v8520_v37 = vpop.permute.xlu0 %2016 }
 0x3de   :  { %v2801_v21 = vpop.f32.mrf.mxu0  ;;  %v8508_v8 = vpop.f32.mrf.mxu1  ;;  %10384 = vst [vmem:[#allocation63_spill] sm:$0xff] %v8520_v37 }
 0x3df   :  { %v2802_v32 = vadd.f32 %v2801_v21, %v8351_v25 }
 0x3e0   :  { %v2805_v48 = vpop.f32.mrf.mxu0  ;;  %3044 = vmatmul.mubr.bf16.gmra.mxu0 %v6241_v33  ;;  %v8510_v13 = vpop.f32.mrf.mxu1 }
 0x3e1   :  { %3053 = vmatprep.mubr.bf16.mxu0 %v6249_v63  ;;  %v8518_v33 = vpop.permute.xlu1 %1892  ;;  %v1881_v1 = vpop.permute.xlu0 %1880 }
 0x3e2   :  { %v2807_v7 = vpop.f32.mrf.mxu0  ;;  %v3154_v26 = vpop.f32.mrf.mxu1 }
 0x3e4   :  { %v2809_v12 = vpop.f32.mrf.mxu0  ;;  %v8516_v27 = vpop.f32.mrf.mxu1  ;;  %3397 = vmatmul.mubr.bf16.gmra.mxu1 %v6244_v50  ;;  %v8524_v50 = vadd.f32 %v8432_v44, %v8373_v38  ;;  %v2782_v38 = vadd.f32 %v8466_v11, %v8367_v28  ;;  %v8542_v44 = vadd.f32 %v8474_v42, %v8357_v15 }
 0x3e5   :  { %3406 = vmatprep.mubr.bf16.mxu1 %v6252_v9  ;;  %v8526_v9 = vpop.permute.xlu1 %2020 }
 0x3e6   :  { %v2811_v14 = vpop.f32.mrf.mxu0  ;;  %v3160_v61 = vpop.f32.mrf.mxu1  ;;  %10385 = vst [vmem:[#allocation64_spill] sm:$0xff] %v8524_v50  ;;  %10386 = vst [vmem:[#allocation65_spill] sm:$0xff] %v8526_v9 }
 0x3e7   :  { %v2812_v37 = vadd.f32 %v2811_v14, %v8343_v31  ;;  %v2792_v14 = vadd.f32 %v2791_v10, %v8359_v23  ;;  %v2796_v10 = vadd.f32 %v8492_v16, %v8349_v30  ;;  %v2800_v16 = vadd.f32 %v8504_v2, %v8351_v25 }
 0x3e8   :  { %v2815_v63 = vpop.f32.mrf.mxu0  ;;  %3054 = vmatmul.mubr.bf16.gmra.mxu0 %v6247_v55  ;;  %v3162_v3 = vpop.f32.mrf.mxu1  ;;  %v8534_v55 = vadd.f32 %v8458_v41, %v8365_v39  ;;  %v2788_v41 = vadd.f32 %v8478_v53, %v8357_v15 }
 0x3e9   :  { %v2816_v60 = vadd.f32 %v2815_v63, %v8333_v0  ;;  %v2808_v63 = vadd.f32 %v2807_v7, %v8341_v5  ;;  %v8558_v7 = vpop.permute.xlu1 %1884 }
 0x3ea   :  { %v2817_v19 = vpop.f32.mrf.mxu0  ;;  %v3164_v52 = vpop.f32.mrf.mxu1  ;;  %10387 = vst [vmem:[#allocation66_spill] sm:$0xff] %v8558_v7 }
 0x3eb   :  { %v2818_v49 = vadd.f32 %v2817_v19, %v8333_v0  ;;  %v3165_v50 = vadd.f32 %v3164_v52, %v2812_v37  ;;  %v2806_v0 = vadd.f32 %v2805_v48, %v8341_v5  ;;  %v2798_v37 = vadd.f32 %v8496_v51, %v8349_v30 }
 0x3ec   :  { %v2819_v45 = vpop.f32.mrf.mxu0  ;;  %v3168_v40 = vpop.f32.mrf.mxu1  ;;  %3407 = vmatmul.mubr.bf16.gmra.mxu1 %v6250_v29  ;;  %v3161_v52 = vadd.f32 %v3160_v61, %v2808_v63 }
 0x3ed   :  { %v2820_v9 = vadd.f32 %v2819_v45, %v8337_v34  ;;  %v2810_v45 = vadd.f32 %v2809_v12, %v8343_v31  ;;  %v3169_v19 = vadd.f32 %v3168_v40, %v2816_v60  ;;  %v3444_v21 = vmax.f32 %v3165_v50, 0.0 }
 0x3ee   :  { %v2821_v29 = vpop.f32.mrf.mxu0  ;;  %v3170_v43 = vpop.f32.mrf.mxu1  ;;  %v3159_v30 = vadd.f32 %v8516_v27, %v2806_v0  ;;  %v8573_v0 = vadd.f32 %v8480_v58, %v2782_v38 }
 0x3ef   :  { %v2822_v11 = vadd.f32 %v2821_v29, %v8337_v34  ;;  %v3171_v47 = vadd.f32 %v3170_v43, %v2818_v49  ;;  %v3163_v43 = vadd.f32 %v3162_v3, %v2810_v45  ;;  %v3445_v51 = vmax.f32 %v3169_v19, 0.0  ;;  %v6255_v3 = vld [vmem:[#allocation5 + $0x4] ss:$16 sps:$4 sm:$0xff]  }
 0x3f0   :  { %v2825_v17 = vpop.f32.mrf.mxu0  ;;  %v3172_v46 = vpop.f32.mrf.mxu1  ;;  %v3153_v29 = vadd.f32 %v8510_v13, %v2800_v16  ;;  %4665 = vmatprep.mubr.bf16.mxu0 %v6255_v3  ;;  %v2790_v45 = vadd.f32 %v8482_v57, %v8359_v23  ;;  %v3441_v13 = vmax.f32 %v3159_v30, 0.0  ;;  %v3432_v16 = vmax.f32 %v8573_v0, 0.0 }
 0x3f1   :  { %v3173_v35 = vadd.f32 %v3172_v46, %v2820_v9  ;;  %v2826_v42 = vadd.f32 %v2825_v17, %v1881_v1  ;;  %v3155_v46 = vadd.f32 %v3154_v26, %v2802_v32  ;;  %v3446_v31 = vmax.f32 %v3171_v47, 0.0 }
 0x3f2   :  { %v2827_v15 = vpop.f32.mrf.mxu0  ;;  %v3174_v53 = vpop.f32.mrf.mxu1  ;;  %v3151_v9 = vadd.f32 %v8508_v8, %v2798_v37  ;;  %v3442_v32 = vmax.f32 %v3161_v52, 0.0  ;;  %v3443_v25 = vmax.f32 %v3163_v43, 0.0  ;;  %v3439_v38 = vmax.f32 %v3153_v29, 0.0  ;;  %v10401_v29 = vld [vmem:[#allocation47_spill] sm:$0xff] }
 0x3f3   :  { %v3175_v34 = vadd.f32 %v3174_v53, %v2822_v11  ;;  %v3447_v17 = vmax.f32 %v3173_v35, 0.0  ;;  %v2828_v40 = vadd.f32 %v2827_v15, %v1881_v1  ;;  %v3145_v1 = vadd.f32 %v8498_v6, %v2792_v14 }
 0x3f4   :  { %v2829_v5 = vpop.f32.mrf.mxu0  ;;  %v3178_v48 = vpop.f32.mrf.mxu1  ;;  %v3440_v27 = vmax.f32 %v3155_v46, 0.0  ;;  %v3149_v6 = vadd.f32 %v8506_v59, %v2796_v10  ;;  %v3141_v15 = vadd.f32 %v8490_v36, %v2788_v41  ;;  %v3438_v53 = vmax.f32 %v3151_v9, 0.0  ;;  %v10395_v9 = vld [vmem:[#allocation59_spill] sm:$0xff] }
 0x3f5   :  { %v3448_v60 = vmax.f32 %v3175_v34, 0.0  ;;  %v3179_v12 = vadd.f32 %v3178_v48, %v2826_v42  ;;  %v2830_v35 = vadd.f32 %v2829_v5, %v8558_v7  ;;  %v3687_v2 = vpack.c.bf16 %v3447_v17, %v3445_v51  ;;  %v10396_v51 = vld [vmem:[#allocation27_spill] sm:$0xff]  ;;  %v10423_v7 = vld [vmem:[#allocation20_spill] sm:$0xff] }
 0x3f6   :  { %v8564_v61 = vpop.f32.mrf.mxu0  ;;  %v3180_v26 = vpop.f32.mrf.mxu1  ;;  %v3686_v42 = vpack.c.bf16 %v3444_v21, %v3442_v32  ;;  %v3143_v34 = vadd.f32 %v8494_v18, %v2790_v45  ;;  %v3436_v58 = vmax.f32 %v3145_v1, 0.0  ;;  %v3685_v46 = vpack.c.bf16 %v3443_v25, %v3441_v13  ;;  %v10398_v32 = vld [vmem:[#allocation54_spill] sm:$0xff] }
 0x3f7   :  { %10388 = vst [vmem:[#allocation67_spill] sm:$0xff] %v8564_v61  ;;  %v8567_v50 = vadd.f32 %v3180_v26, %v2828_v40  ;;  %v3688_v47 = vpack.c.bf16 %v3448_v60, %v3446_v31  ;;  %v3449_v37 = vmax.f32 %v3179_v12, 0.0  ;;  %v3684_v21 = vpack.c.bf16 %v3440_v27, %v3438_v53  ;;  %v10397_v26 = vld [vmem:[#allocation41_spill] sm:$0xff]  ;;  %v10402_v27 = vld [vmem:[#allocation51_spill] sm:$0xff]  ;;  %v10422_v61 = vld [vmem:[#allocation38_spill] sm:$0xff] }
 0x3f8   :  { %v2835_v8 = vpop.f32.mrf.mxu0  ;;  %v3182_v49 = vpop.f32.mrf.mxu1  ;;  %v2776_v36 = vadd.f32 %v8450_v56, %v8365_v39  ;;  %v2780_v41 = vadd.f32 %v8462_v24, %v8367_v28  ;;  %v3139_v18 = vadd.f32 %v8484_v22, %v8542_v44  ;;  %v3437_v17 = vmax.f32 %v3149_v6, 0.0  ;;  %v10394_v28 = vld [vmem:[#allocation57_spill] sm:$0xff] }
 0x3f9   :  { %10389 = vst [vmem:[#allocation68_spill] sm:$0xff] %v8567_v50  ;;  %v2836_v63 = vadd.f32 %v2835_v8, %v8514_v54  ;;  %v3183_v11 = vadd.f32 %v3182_v49, %v2830_v35  ;;  %4633 = vmatprep.subr.bf16.mxu0 %v3688_v47  ;;  %v3131_v31 = vadd.f32 %v8468_v4, %v8534_v55  ;;  %v3435_v22 = vmax.f32 %v3143_v34, 0.0 }
 0x3fa   :  { %v2837_v14 = vpop.f32.mrf.mxu0  ;;  %v8578_v19 = vpop.f32.mrf.mxu1  ;;  %4634 = vmatpush1.bf16.msra.mxu0 %v3687_v2  ;;  %v3125_v39 = vadd.f32 %v8460_v20, %v8530_v62  ;;  %v3133_v56 = vadd.f32 %v10394_v28, %v2780_v41  ;;  %v3683_v24 = vpack.c.bf16 %v3439_v38, %v3437_v17  ;;  %v2770_v3 = vadd.f32 %v10397_v26, %v10396_v51  ;;  %v10400_v20 = vld [vmem:[#allocation64_spill] sm:$0xff] }
 0x3fb   :  { %10390 = vst [vmem:[#allocation69_spill] sm:$0xff] %v8578_v19  ;;  %v3451_v52 = vmax.f32 %v3183_v11, 0.0  ;;  %4635 = vmatprep.subr.bf16.mxu0 %v3686_v42  ;;  %v2838_v59 = vadd.f32 %v2837_v14, %v8514_v54  ;;  %v3434_v54 = vmax.f32 %v3141_v15, 0.0  ;;  %v3129_v35 = vadd.f32 %v10398_v32, %v2776_v36 }
 0x3fc   :  { %v2839_v43 = vpop.f32.mrf.mxu0  ;;  %v3188_v57 = vpop.f32.mrf.mxu1  ;;  %v3433_v47 = vmax.f32 %v3139_v18, 0.0  ;;  %v3121_v25 = vadd.f32 %v10401_v29, %v10400_v20  ;;  %v3430_v2 = vmax.f32 %v3131_v31, 0.0  ;;  %v3431_v11 = vmax.f32 %v3133_v56, 0.0 }
 0x3fd   :  { %v8582_v23 = vpack.c.bf16 %v3451_v52, %v3449_v37  ;;  %v3189_v10 = vadd.f32 %v3188_v57, %v2836_v63  ;;  %v2840_v40 = vadd.f32 %v2839_v43, %v8518_v33  ;;  %v3682_v55 = vpack.c.bf16 %v3436_v58, %v3434_v54  ;;  %v10410_v54 = vld [vmem:[#allocation50_spill] sm:$0xff] }
 0x3fe   :  { %v8591_v5 = vpop.f32.mrf.mxu0  ;;  %v3190_v48 = vpop.f32.mrf.mxu1  ;;  %4636 = vmatpush1.bf16.msra.mxu0 %v3685_v46  ;;  %v3123_v63 = vadd.f32 %v10402_v27, %v2770_v3  ;;  %v3681_v42 = vpack.c.bf16 %v3435_v22, %v3433_v47  ;;  %v3428_v6 = vmax.f32 %v3125_v39, 0.0  ;;  %v3680_v15 = vpack.c.bf16 %v3432_v16, %v3430_v2  ;;  %v10411_v22 = vld [vmem:[#allocation43_spill] sm:$0xff] }
 0x3ff   :  { %10391 = vst [vmem:[#allocation70_spill] sm:$0xff] %v8582_v23  ;;  %10392 = vst [vmem:[#allocation71_spill] sm:$0xff] %v8591_v5  ;;  %v8596_v60 = vadd.f32 %v3190_v48, %v2838_v59  ;;  %4637 = vmatprep.subr.bf16.mxu0 %v3684_v21  ;;  %v3453_v8 = vmax.f32 %v3189_v10, 0.0  ;;  %v3429_v53 = vmax.f32 %v3129_v35, 0.0  ;;  %v3426_v34 = vmax.f32 %v3121_v25, 0.0  ;;  %v10408_v59 = vld [vmem:[#allocation44_spill] sm:$0xff] }
 0x400   :  { %v2845_v44 = vpop.f32.mrf.mxu0  ;;  %v3192_v12 = vpop.f32.mrf.mxu1  ;;  %v3427_v58 = vmax.f32 %v3123_v63, 0.0  ;;  %v3425_v10 = vmax.f32 %v10408_v59, 0.0  ;;  %v10416_v59 = vld [vmem:[#allocation53_spill] sm:$0xff] }
 0x401   :  { %10393 = vst [vmem:[#allocation72_spill] sm:$0xff] %v8596_v60  ;;  %v2846_v30 = vadd.f32 %v2845_v44, %v10395_v9  ;;  %v3193_v4 = vadd.f32 %v3192_v12, %v2840_v40  ;;  %v3679_v38 = vpack.c.bf16 %v3431_v11, %v3429_v53  ;;  %v3678_v57 = vpack.c.bf16 %v3428_v6, %v3426_v34  ;;  %v10420_v60 = vld [vmem:[#allocation33_spill] sm:$0xff] }
 0x402   :  { %v8606_v1 = vpop.f32.mrf.mxu0  ;;  %v8608_v62 = vpop.f32.mrf.mxu1  ;;  %4638 = vmatpush1.bf16.msra.mxu0 %v3683_v24  ;;  %v3677_v41 = vpack.c.bf16 %v3427_v58, %v3425_v10  ;;  %v10412_v24 = vld [vmem:[#allocation35_spill] sm:$0xff] }
 0x403   :  { %10399 = vst [vmem:[#allocation57_spill] sm:$0xff] %v8608_v62  ;;  %v3455_v49 = vmax.f32 %v3193_v4, 0.0  ;;  %4639 = vmatprep.subr.bf16.mxu0 %v3682_v55  ;;  %v10413_v4 = vld [vmem:[#allocation31_spill] sm:$0xff]  ;;  %v8658_v58 = vadd.f32 %v8606_v1, %v10395_v9  ;;  %v10421_v1 = vld [vmem:[#allocation45_spill] sm:$0xff] }
 0x404   :  { %v8613_v0 = vpop.f32.mrf.mxu0  ;;  %v3198_v45 = vpop.f32.mrf.mxu1 }
 0x405   :  { %10403 = vst [vmem:[#allocation59_spill] sm:$0xff] %v8613_v0  ;;  %v8615_v13 = vpack.c.bf16 %v3455_v49, %v3453_v8  ;;  %v8617_v14 = vadd.f32 %v3198_v45, %v2846_v30  ;;  %10414 = vst [vmem:[#allocation51_spill] sm:$0xff] %v8658_v58  ;;  %v10425_v0 = vld [vmem:[#allocation28_spill] sm:$0xff] }
 0x406   :  { %v2851_v37 = vpop.f32.mrf.mxu0  ;;  %v8619_v52 = vpop.f32.mrf.mxu1  ;;  %4640 = vmatpush1.bf16.msra.mxu0 %v3681_v42 }
 0x407   :  { %10404 = vst [vmem:[#allocation27_spill] sm:$0xff] %v8615_v13  ;;  %10405 = vst [vmem:[#allocation41_spill] sm:$0xff] %v8617_v14  ;;  %4641 = vmatprep.subr.bf16.mxu0 %v3680_v15  ;;  %v10419_v13 = vld [vmem:[#allocation55_spill] sm:$0xff] }
 0x408   :  { %10406 = vst [vmem:[#allocation54_spill] sm:$0xff] %v8619_v52  ;;  %v8621_v46 = vpop.f32.mrf.mxu0  ;;  %v8623_v43 = vpop.f32.mrf.mxu1 }
 0x409   :  { %10407 = vst [vmem:[#allocation64_spill] sm:$0xff] %v8623_v43 }
 0x40a   :  { %v2857_v21 = vpop.f32.mrf.mxu0  ;;  %v8626_v36 = vpop.f32.mrf.mxu1  ;;  %4642 = vmatpush1.bf16.msra.mxu0 %v3679_v38  ;;  %v10415_v38 = vld [vmem:[#allocation60_spill] sm:$0xff] }
 0x40b   :  { %4643 = vmatprep.subr.bf16.mxu0 %v3678_v57  ;;  %v8661_v57 = vadd.f32 %v2851_v37, %v10415_v38  ;;  %v8664_v10 = vadd.f32 %v2857_v21, %v10416_v59 }
 0x40c   :  { %v8628_v18 = vpop.f32.mrf.mxu0  ;;  %v8630_v17 = vpop.f32.mrf.mxu1 }
 0x40d   :  { %10409 = vst [vmem:[#allocation47_spill] sm:$0xff] %v8630_v17 }
 0x40e   :  { %v2861_v48 = vpop.f32.mrf.mxu0  ;;  %v8632_v31 = vpop.f32.mrf.mxu1  ;;  %4644 = vmatpush1.bf16.msra.mxu0 %v3677_v41  ;;  %v10417_v41 = vld [vmem:[#allocation21_spill] sm:$0xff] }
 0x40f   :  { %4645 = vmatprep.subr.bf16.mxu0 %v10410_v54  ;;  %v2862_v50 = vadd.f32 %v2861_v48, %v10419_v13  ;;  %v10424_v48 = vld [vmem:[#allocation16_spill] sm:$0xff] }
 0x410   :  { %v2865_v40 = vpop.f32.mrf.mxu0  ;;  %v8635_v39 = vpop.f32.mrf.mxu1 }
 0x411   :  { %v8670_v14 = vadd.f32 %v2865_v40, %v10420_v60 }
 0x412   :  { %v2867_v28 = vpop.f32.mrf.mxu0  ;;  %v8637_v56 = vpop.f32.mrf.mxu1  ;;  %4646 = vmatpush1.bf16.msra.mxu0 %v10411_v22  ;;  %v10418_v22 = vld [vmem:[#allocation17_spill] sm:$0xff] }
 0x413   :  { %4647 = vmatprep.subr.bf16.mxu0 %v10412_v24  ;;  %v2868_v37 = vadd.f32 %v2867_v28, %v10420_v60 }
 0x414   :  { %v8641_v44 = vpop.f32.mrf.mxu0  ;;  %v8643_v12 = vpop.f32.mrf.mxu1 }
 0x416   :  { %v2871_v16 = vpop.f32.mrf.mxu0  ;;  %v8645_v30 = vpop.f32.mrf.mxu1  ;;  %4648 = vmatpush1.bf16.msra.mxu0 %v10413_v4 }
 0x417   :  { %v2872_v21 = vadd.f32 %v2871_v16, %v10422_v61 }
 0x418   :  { %v2875_v55 = vpop.f32.mrf.mxu0  ;;  %v8648_v51 = vpop.f32.mrf.mxu1 }
 0x41a   :  { %v2877_v26 = vpop.f32.mrf.mxu0  ;;  %v8650_v3 = vpop.f32.mrf.mxu1 }
 0x41c   :  { %v2879_v32 = vpop.f32.mrf.mxu0  ;;  %v8652_v35 = vpop.f32.mrf.mxu1 }
 0x41e   :  { %v2881_v47 = vpop.f32.mrf.mxu0  ;;  %v3230_v20 = vpop.f32.mrf.mxu1 }
 0x41f   :  { %v2882_v38 = vadd.f32 %v2881_v47, %v10425_v0 }
 0x420   :  { %v2885_v29 = vpop.f32.mrf.mxu0  ;;  %v8654_v25 = vpop.f32.mrf.mxu1 }
 0x422   :  { %v2887_v2 = vpop.f32.mrf.mxu0  ;;  %v3234_v8 = vpop.f32.mrf.mxu1 }
 0x423   :  { %v2888_v43 = vadd.f32 %v2887_v2, %v10423_v7 }
 0x424   :  { %v2889_v49 = vpop.f32.mrf.mxu0  ;;  %v3238_v27 = vpop.f32.mrf.mxu1 }
 0x426   :  { %v2891_v63 = vpop.f32.mrf.mxu0  ;;  %v3240_v11 = vpop.f32.mrf.mxu1 }
 0x427   :  { %v2892_v54 = vadd.f32 %v2891_v63, %v10417_v41 }
 0x428   :  { %v2895_v42 = vpop.f32.mrf.mxu0  ;;  %v3242_v45 = vpop.f32.mrf.mxu1 }
 0x429   :  { %v2896_v24 = vadd.f32 %v2895_v42, %v10418_v22 }
 0x42a   :  { %v2897_v6 = vpop.f32.mrf.mxu0  ;;  %v3244_v15 = vpop.f32.mrf.mxu1 }
 0x42b   :  { %v2898_v9 = vadd.f32 %v2897_v6, %v10418_v22  ;;  %v3245_v63 = vadd.f32 %v3244_v15, %v2892_v54  ;;  %v2886_v6 = vadd.f32 %v2885_v29, %v10423_v7  ;;  %v10426_v22 = vld [vmem:[#allocation26_spill] sm:$0xff]  ;;  %v3241_v54 = vadd.f32 %v3240_v11, %v2888_v43 }
 0x42c   :  { %v2899_v53 = vpop.f32.mrf.mxu0  ;;  %v3248_v34 = vpop.f32.mrf.mxu1  ;;  %v2876_v2 = vadd.f32 %v2875_v55, %v10426_v22  ;;  %v2878_v15 = vadd.f32 %v2877_v26, %v10426_v22  ;;  %v10428_v26 = vld [vmem:[#allocation36_spill] sm:$0xff] }
 0x42d   :  { %v2900_v19 = vadd.f32 %v2899_v53, %v10421_v1  ;;  %v2890_v53 = vadd.f32 %v2889_v49, %v10417_v41  ;;  %v3249_v60 = vadd.f32 %v3248_v34, %v2896_v24  ;;  %v2880_v34 = vadd.f32 %v2879_v32, %v10425_v0 }
 0x42e   :  { %v2901_v4 = vpop.f32.mrf.mxu0  ;;  %v3250_v23 = vpop.f32.mrf.mxu1  ;;  %v3231_v41 = vadd.f32 %v3230_v20, %v2878_v15  ;;  %v3239_v24 = vadd.f32 %v3238_v27, %v2886_v6  ;;  %v10430_v20 = vld [vmem:[#allocation29_spill] sm:$0xff]  ;;  %v8695_v6 = vadd.f32 %v8637_v56, %v2862_v50 }
 0x42f   :  { %v2902_v52 = vadd.f32 %v2901_v4, %v10421_v1  ;;  %v3251_v58 = vadd.f32 %v3250_v23, %v2898_v9  ;;  %v3235_v4 = vadd.f32 %v3234_v8, %v2882_v38  ;;  %v3243_v23 = vadd.f32 %v3242_v45, %v2890_v53 }
 0x430   :  { %v2905_v62 = vpop.f32.mrf.mxu0  ;;  %v3252_v42 = vpop.f32.mrf.mxu1  ;;  %v3476_v9 = vmax.f32 %v3245_v63, 0.0  ;;  %v3477_v55 = vmax.f32 %v3249_v60, 0.0  ;;  %v3233_v38 = vadd.f32 %v8654_v25, %v2880_v34  ;;  %v2870_v53 = vadd.f32 %v8641_v44, %v10422_v61 }
 0x431   :  { %v2906_v17 = vadd.f32 %v2905_v62, %v10424_v48  ;;  %v3253_v40 = vadd.f32 %v3252_v42, %v2900_v19  ;;  %v3478_v47 = vmax.f32 %v3251_v58, 0.0  ;;  %v3225_v58 = vadd.f32 %v8650_v3, %v2872_v21 }
 0x432   :  { %v2907_v28 = vpop.f32.mrf.mxu0  ;;  %v3254_v16 = vpop.f32.mrf.mxu1  ;;  %v3472_v32 = vmax.f32 %v3235_v4, 0.0  ;;  %v3229_v3 = vadd.f32 %v8652_v35, %v2876_v2  ;;  %v3473_v21 = vmax.f32 %v3239_v24, 0.0  ;;  %v3471_v56 = vmax.f32 %v3233_v38, 0.0  ;;  %v10435_v24 = vld [vmem:[#allocation11_spill] sm:$0xff] }
 0x433   :  { %v3255_v5 = vadd.f32 %v3254_v16, %v2902_v52  ;;  %v3479_v62 = vmax.f32 %v3253_v40, 0.0  ;;  %v2908_v7 = vadd.f32 %v2907_v28, %v10424_v48  ;;  %v3474_v52 = vmax.f32 %v3241_v54, 0.0  ;;  %v10439_v38 = vld [vmem:[#allocation47_spill] sm:$0xff] }
 0x434   :  { %v2909_v19 = vpop.f32.mrf.mxu0  ;;  %v3258_v1 = vpop.f32.mrf.mxu1  ;;  %v3221_v28 = vadd.f32 %v8645_v30, %v2868_v37  ;;  %v3470_v16 = vmax.f32 %v3231_v41, 0.0  ;;  %v3223_v54 = vadd.f32 %v8648_v51, %v2870_v53  ;;  %v3468_v50 = vmax.f32 %v3225_v58, 0.0 }
 0x435   :  { %v3480_v29 = vmax.f32 %v3255_v5, 0.0  ;;  %v3259_v49 = vadd.f32 %v3258_v1, %v2906_v17  ;;  %v2910_v8 = vadd.f32 %v2909_v19, %v10428_v26  ;;  %v3475_v5 = vmax.f32 %v3243_v23, 0.0  ;;  %v10468_v26 = vld [vmem:[#allocation48_spill] sm:$0xff] }
 0x436   :  { %v8686_v42 = vpop.f32.mrf.mxu0  ;;  %v3260_v43 = vpop.f32.mrf.mxu1  ;;  %v3703_v17 = vpack.c.bf16 %v3479_v62, %v3477_v55  ;;  %v3702_v40 = vpack.c.bf16 %v3476_v9, %v3474_v52  ;;  %v3700_v9 = vpack.c.bf16 %v3472_v32, %v3470_v16  ;;  %v2856_v30 = vadd.f32 %v8621_v46, %v10416_v59 }
 0x437   :  { %10427 = vst [vmem:[#allocation44_spill] sm:$0xff] %v8686_v42  ;;  %v8689_v11 = vadd.f32 %v3260_v43, %v2908_v7  ;;  %v3704_v45 = vpack.c.bf16 %v3480_v29, %v3478_v47  ;;  %v3481_v22 = vmax.f32 %v3259_v49, 0.0  ;;  %v3701_v4 = vpack.c.bf16 %v3475_v5, %v3473_v21  ;;  %v10433_v29 = vld [vmem:[#allocation12_spill] sm:$0xff]  ;;  %v10436_v43 = vld [vmem:[#allocation71_spill] sm:$0xff] }
 0x438   :  { %v2915_v63 = vpop.f32.mrf.mxu0  ;;  %v3262_v0 = vpop.f32.mrf.mxu1  ;;  %v2860_v37 = vadd.f32 %v8628_v18, %v10419_v13  ;;  %v3219_v51 = vadd.f32 %v8643_v12, %v8670_v14  ;;  %v3469_v62 = vmax.f32 %v3229_v3, 0.0  ;;  %v3211_v47 = vadd.f32 %v8632_v31, %v8664_v10 }
 0x439   :  { %10429 = vst [vmem:[#allocation50_spill] sm:$0xff] %v8689_v11  ;;  %v2916_v27 = vadd.f32 %v2915_v63, %v10430_v20  ;;  %v3263_v48 = vadd.f32 %v3262_v0, %v2910_v8  ;;  %4649 = vmatprep.subr.bf16.mxu0 %v3704_v45  ;;  %v3466_v7 = vmax.f32 %v3221_v28, 0.0  ;;  %v3205_v13 = vadd.f32 %v8626_v36, %v8661_v57  ;;  %v10437_v8 = vld [vmem:[#allocation60_spill] sm:$0xff]  ;;  %v10438_v45 = vld [vmem:[#allocation59_spill] sm:$0xff]  ;;  %v10442_v63 = vld [vmem:[#allocation54_spill] sm:$0xff] }
 0x43a   :  { %v2917_v25 = vpop.f32.mrf.mxu0  ;;  %v8700_v60 = vpop.f32.mrf.mxu1  ;;  %4650 = vmatpush2.bf16.msra.mxu0 %v3703_v17  ;;  %v3213_v46 = vadd.f32 %v8635_v39, %v2860_v37  ;;  %v3467_v14 = vmax.f32 %v3223_v54, 0.0  ;;  %v3699_v18 = vpack.c.bf16 %v3471_v56, %v3469_v62  ;;  %v3464_v41 = vmax.f32 %v8695_v6, 0.0  ;;  %v10441_v17 = vld [vmem:[#allocation51_spill] sm:$0xff] }
 0x43b   :  { %10431 = vst [vmem:[#allocation43_spill] sm:$0xff] %v8700_v60  ;;  %v3483_v15 = vmax.f32 %v3263_v48, 0.0  ;;  %4651 = vmatprep.subr.bf16.mxu0 %v3702_v40  ;;  %v2918_v35 = vadd.f32 %v2917_v25, %v10430_v20  ;;  %v3698_v10 = vpack.c.bf16 %v3468_v50, %v3466_v7  ;;  %v2842_v52 = vadd.f32 %v10436_v43, %v8518_v33  ;;  %v10443_v48 = vld [vmem:[#allocation57_spill] sm:$0xff]  ;;  %v10444_v40 = vld [vmem:[#allocation64_spill] sm:$0xff] }
 0x43c   :  { %v2919_v23 = vpop.f32.mrf.mxu0  ;;  %v3268_v61 = vpop.f32.mrf.mxu1  ;;  %v2850_v58 = vadd.f32 %v10438_v45, %v10437_v8  ;;  %v3209_v36 = vadd.f32 %v10439_v38, %v2856_v30  ;;  %v3465_v57 = vmax.f32 %v3219_v51, 0.0  ;;  %v3201_v0 = vadd.f32 %v10442_v63, %v10441_v17  ;;  %v10452_v51 = vld [vmem:[#allocation69_spill] sm:$0xff]  ;;  %v10457_v17 = vld [vmem:[#allocation27_spill] sm:$0xff] }
 0x43d   :  { %v8704_v44 = vpack.c.bf16 %v3483_v15, %v3481_v22  ;;  %v3269_v2 = vadd.f32 %v3268_v61, %v2916_v27  ;;  %v2920_v49 = vadd.f32 %v2919_v23, %v10433_v29  ;;  %v3462_v32 = vmax.f32 %v3211_v47, 0.0  ;;  %v10450_v23 = vld [vmem:[#allocation67_spill] sm:$0xff]  ;;  %v10453_v7 = vld [vmem:[#allocation41_spill] sm:$0xff] }
 0x43e   :  { %v8713_v19 = vpop.f32.mrf.mxu0  ;;  %v3270_v1 = vpop.f32.mrf.mxu1  ;;  %4652 = vmatpush2.bf16.msra.mxu0 %v3701_v4  ;;  %v3195_v33 = vadd.f32 %v10443_v48, %v2842_v52  ;;  %v3203_v6 = vadd.f32 %v10444_v40, %v2850_v58  ;;  %v3463_v53 = vmax.f32 %v3213_v46, 0.0  ;;  %v3697_v3 = vpack.c.bf16 %v3467_v14, %v3465_v57  ;;  %v10449_v4 = vld [vmem:[#allocation66_spill] sm:$0xff]  ;;  %v10454_v14 = vld [vmem:[#allocation72_spill] sm:$0xff]  ;;  %v6267_v11 = vld [vmem:[#allocation5 + $0x84] ss:$16 sps:$4 sm:$0xff]  }
 0x43f   :  { %10432 = vst [vmem:[#allocation35_spill] sm:$0xff] %v8704_v44  ;;  %v8718_v34 = vadd.f32 %v3270_v1, %v2918_v35  ;;  %4653 = vmatprep.subr.bf16.mxu0 %v3700_v9  ;;  %v3485_v20 = vmax.f32 %v3269_v2, 0.0  ;;  %v3460_v28 = vmax.f32 %v3205_v13, 0.0  ;;  %v3696_v15 = vpack.c.bf16 %v3464_v41, %v3462_v32  ;;  %v10456_v52 = vld [vmem:[#allocation68_spill] sm:$0xff]  ;;  %v10458_v48 = vld [vmem:[#allocation70_spill] sm:$0xff] }
 0x440   :  { %v2925_v12 = vpop.f32.mrf.mxu0  ;;  %v3272_v59 = vpop.f32.mrf.mxu1  ;;  %v3461_v54 = vmax.f32 %v3209_v36, 0.0  ;;  %v2832_v61 = vadd.f32 %v10450_v23, %v10449_v4  ;;  %v3458_v35 = vmax.f32 %v3201_v0, 0.0  ;;  %v3459_v2 = vmax.f32 %v3203_v6, 0.0  ;;  %v6253_v32 = vld [vmem:[#allocation5] ss:$16 sps:$4 sm:$0xff]  }
 0x441   :  { %10434 = vst [vmem:[#allocation31_spill] sm:$0xff] %v8718_v34  ;;  %v2926_v55 = vadd.f32 %v2925_v12, %v10435_v24  ;;  %v3273_v31 = vadd.f32 %v3272_v59, %v2920_v49  ;;  %v3456_v1 = vmax.f32 %v3195_v33, 0.0  ;;  %v3457_v49 = vmax.f32 %v10453_v7, 0.0  ;;  %v6258_v33 = vld [vmem:[#allocation5 + $0x24] ss:$16 sps:$4 sm:$0xff]   ;;  %v10465_v34 = vld [vmem:[#allocation42_spill] sm:$0xff] }
 0x442   :  { %v8730_v39 = vpop.f32.mrf.mxu0  ;;  %v8732_v5 = vpop.f32.mrf.mxu1  ;;  %4654 = vmatpush2.bf16.msra.mxu0 %v3699_v18  ;;  %v3695_v9 = vpack.c.bf16 %v3463_v53, %v3461_v54  ;;  %v3185_v62 = vadd.f32 %v10452_v51, %v2832_v61  ;;  %v3694_v47 = vpack.c.bf16 %v3460_v28, %v3458_v35  ;;  %v3454_v18 = vmax.f32 %v10454_v14, 0.0  ;;  %v6282_v40 = vld [vmem:[#allocation5 + $0xc] ss:$16 sps:$4 sm:$0xff]   ;;  %v6256_v54 = vld [vmem:[#allocation5 + $0x20] ss:$16 sps:$4 sm:$0xff]  }
 0x443   :  { %10440 = vst [vmem:[#allocation53_spill] sm:$0xff] %v8732_v5  ;;  %v3487_v27 = vmax.f32 %v3273_v31, 0.0  ;;  %4655 = vmatprep.subr.bf16.mxu0 %v3698_v10  ;;  %v3693_v12 = vpack.c.bf16 %v3459_v2, %v3457_v49  ;;  %v3450_v8 = vmax.f32 %v10456_v52, 0.0  ;;  %5018 = vmatprep.mubr.bf16.mxu1 %v6282_v40  ;;  %v6261_v61 = vld [vmem:[#allocation5 + $0x44] ss:$16 sps:$4 sm:$0xff]   ;;  %v6531_v49 = vld [vmem:[%s10111_s1 + $0x78] sm:$0xff]  ;;  %v2009_v5 = vpop.permute.xlu0 %2008 }
 0x444   :  { %v8738_v21 = vpop.f32.mrf.mxu0  ;;  %v3278_v25 = vpop.f32.mrf.mxu1  ;;  %v3692_v31 = vpack.c.bf16 %v3456_v1, %v3454_v18  ;;  %v6530_v1 = vld [vmem:[%s10111_s1 + $0x70] sm:$0xff] }
 0x445   :  { %10445 = vst [vmem:[#allocation21_spill] sm:$0xff] %v8738_v21  ;;  %v8740_v16 = vpack.c.bf16 %v3487_v27, %v3485_v20  ;;  %v8742_v22 = vadd.f32 %v3278_v25, %v2926_v55  ;;  %v3452_v55 = vmax.f32 %v3185_v62, 0.0  ;;  %v6669_v62 = vmov 4   ;;  %v6259_v14 = vld [vmem:[#allocation5 + $0x40] ss:$16 sps:$4 sm:$0xff]  }
 0x446   :  { %v8744_v50 = vpop.f32.mrf.mxu0  ;;  %v8746_v56 = vpop.f32.mrf.mxu1  ;;  %4656 = vmatpush2.bf16.msra.mxu0 %v3697_v3  ;;  %6057 = vset.pattern.permute.xlu0 %v6669_v62 }
 0x447   :  { %10446 = vst [vmem:[#allocation17_spill] sm:$0xff] %v8740_v16  ;;  %10447 = vst [vmem:[#allocation55_spill] sm:$0xff] %v8742_v22  ;;  %4657 = vmatprep.subr.bf16.mxu0 %v3696_v15  ;;  %v3690_v38 = vpack.c.bf16 %v3452_v55, %v3450_v8  ;;  %6058 = vset.pattern.permute.xlu1 %v6669_v62  ;;  %v6264_v55 = vld [vmem:[#allocation5 + $0x64] ss:$16 sps:$4 sm:$0xff]   ;;  %v6262_v62 = vld [vmem:[#allocation5 + $0x60] ss:$16 sps:$4 sm:$0xff]  }
 0x448   :  { %10448 = vst [vmem:[#allocation33_spill] sm:$0xff] %v8746_v56  ;;  %v8750_v30 = vpop.f32.mrf.mxu0  ;;  %v8752_v37 = vpop.f32.mrf.mxu1  ;;  %3794 = vperm.xlu0 %6057, %v6530_v1   ;;  %3798 = vperm.xlu1 %6058, %v6531_v49   ;;  %v10460_v1 = vld [vmem:[#allocation15_spill] sm:$0xff]  ;;  %v10466_v22 = vld [vmem:[#allocation37_spill] sm:$0xff] }
 0x449   :  { %10451 = vst [vmem:[#allocation45_spill] sm:$0xff] %v8752_v37  ;;  %v8836_v49 = vadd.f32 %v8744_v50, %v10460_v1 }
 0x44a   :  { %v8756_v13 = vpop.f32.mrf.mxu0  ;;  %v8758_v46 = vpop.f32.mrf.mxu1  ;;  %4658 = vmatpush2.bf16.msra.mxu0 %v3695_v9 }
 0x44b   :  { %4659 = vmatprep.subr.bf16.mxu0 %v3694_v47 }
 0x44c   :  { %v8761_v59 = vpop.f32.mrf.mxu0  ;;  %v8763_v41 = vpop.f32.mrf.mxu1 }
 0x44d   :  { %10455 = vst [vmem:[#allocation38_spill] sm:$0xff] %v8763_v41 }
 0x44e   :  { %v8765_v10 = vpop.f32.mrf.mxu0  ;;  %v8767_v43 = vpop.f32.mrf.mxu1  ;;  %4660 = vmatpush2.bf16.msra.mxu0 %v3693_v12 }
 0x44f   :  { %4661 = vmatprep.subr.bf16.mxu0 %v3692_v31  ;;  %v6532_v31 = vld [vmem:[%s10111_s1 + $0x178] sm:$0xff] }
 0x450   :  { %v8770_v45 = vpop.f32.mrf.mxu0  ;;  %v8772_v58 = vpop.f32.mrf.mxu1  ;;  %3926 = vperm.xlu0 %6057, %v6532_v31   ;;  %v10462_v31 = vld [vmem:[#allocation14_spill] sm:$0xff] }
 0x452   :  { %v8774_v36 = vpop.f32.mrf.mxu0  ;;  %v8776_v57 = vpop.f32.mrf.mxu1  ;;  %4662 = vmatpush2.bf16.msra.mxu0 %v10457_v17 }
 0x453   :  { %4663 = vmatprep.subr.bf16.mxu0 %v3690_v38  ;;  %v6533_v38 = vld [vmem:[%s10111_s1 + $0x170] sm:$0xff] }
 0x454   :  { %v8779_v63 = vpop.f32.mrf.mxu0  ;;  %v8781_v0 = vpop.f32.mrf.mxu1  ;;  %3922 = vperm.xlu1 %6058, %v6533_v38   ;;  %v8844_v38 = vadd.f32 %v8765_v10, %v10462_v31  ;;  %v6536_v10 = vld [vmem:[%s10111_s1 + $0x168] sm:$0xff] }
 0x456   :  { %v8783_v20 = vpop.f32.mrf.mxu0  ;;  %v8785_v27 = vpop.f32.mrf.mxu1  ;;  %4664 = vmatpush2.bf16.msra.mxu0 %v10458_v48  ;;  %v6534_v48 = vld [vmem:[%s10111_s1 + $0x68] sm:$0xff] }
 0x457   :  { %3790 = vperm.xlu0 %6057, %v6534_v48   ;;  %v10463_v48 = vld [vmem:[#allocation23_spill] sm:$0xff] }
 0x458   :  { %v8788_v6 = vpop.f32.mrf.mxu0  ;;  %v8790_v53 = vpop.f32.mrf.mxu1 }
 0x459   :  { %4666 = vmatmul.mubr.bf16.vlgmr.msra.gmra.mxu0 %v6253_v32 }
 0x45a   :  { %v8792_v3 = vpop.f32.mrf.mxu0  ;;  %v8794_v25 = vpop.f32.mrf.mxu1  ;;  %4675 = vmatprep.mubr.bf16.mxu0 %v6258_v33 }
 0x45b   :  { %3918 = vperm.xlu0 %6057, %v6536_v10   ;;  %v10469_v10 = vld [vmem:[#allocation40_spill] sm:$0xff] }
 0x45c   :  { %v8796_v28 = vpop.f32.mrf.mxu0  ;;  %v8798_v15 = vpop.f32.mrf.mxu1 }
 0x45e   :  { %v8800_v4 = vpop.f32.mrf.mxu0  ;;  %v8802_v23 = vpop.f32.mrf.mxu1 }
 0x460   :  { %v8804_v35 = vpop.f32.mrf.mxu0  ;;  %v8806_v2 = vpop.f32.mrf.mxu1 }
 0x461   :  { %4676 = vmatmul.mubr.bf16.gmra.mxu0 %v6256_v54  ;;  %v6535_v54 = vld [vmem:[%s10111_s1 + $0x60] sm:$0xff] }
 0x462   :  { %v2967_v9 = vpop.f32.mrf.mxu0  ;;  %v8808_v51 = vpop.f32.mrf.mxu1  ;;  %4685 = vmatprep.mubr.bf16.mxu0 %v6261_v61  ;;  %3786 = vperm.xlu1 %6058, %v6535_v54   ;;  %v8832_v61 = vadd.f32 %v8713_v19, %v10433_v29  ;;  %v10464_v19 = vld [vmem:[#allocation46_spill] sm:$0xff] }
 0x463   :  { %v8849_v29 = vadd.f32 %v8770_v45, %v10464_v19  ;;  %v8853_v50 = vadd.f32 %v8774_v36, %v10464_v19  ;;  %v8864_v45 = vadd.f32 %v8788_v6, %v10468_v26 }
 0x464   :  { %v2969_v47 = vpop.f32.mrf.mxu0  ;;  %v8813_v7 = vpop.f32.mrf.mxu1  ;;  %10459 = vst [vmem:[#allocation20_spill] sm:$0xff] %v8832_v61  ;;  %v2968_v61 = vadd.f32 %v2967_v9, %v10469_v10  ;;  %v2966_v9 = vadd.f32 %v8804_v35, %v10469_v10  ;;  %v6539_v35 = vld [vmem:[%s10111_s1 + $0x50] sm:$0xff] }
 0x466   :  { %v2971_v18 = vpop.f32.mrf.mxu0  ;;  %v3320_v12 = vpop.f32.mrf.mxu1 }
 0x467   :  { %v2972_v44 = vadd.f32 %v2971_v18, %v10463_v48  ;;  %v10467_v18 = vld [vmem:[#allocation49_spill] sm:$0xff] }
 0x468   :  { %v2975_v52 = vpop.f32.mrf.mxu0  ;;  %v3322_v8 = vpop.f32.mrf.mxu1  ;;  %v2952_v42 = vadd.f32 %v8783_v20, %v10467_v18 }
 0x469   :  { %4686 = vmatmul.mubr.bf16.gmra.mxu0 %v6259_v14  ;;  %v10461_v14 = vld [vmem:[#allocation25_spill] sm:$0xff]  ;;  %v2976_v37 = vadd.f32 %v2975_v52, %v10465_v34  ;;  %v2970_v52 = vadd.f32 %v2969_v47, %v10463_v48 }
 0x46a   :  { %v2977_v17 = vpop.f32.mrf.mxu0  ;;  %v3324_v32 = vpop.f32.mrf.mxu1  ;;  %4695 = vmatprep.mubr.bf16.mxu0 %v6264_v55  ;;  %v8840_v55 = vadd.f32 %v8756_v13, %v10461_v14  ;;  %v6265_v48 = vld [vmem:[#allocation5 + $0x80] ss:$16 sps:$4 sm:$0xff]  }
 0x46b   :  { %v2978_v13 = vadd.f32 %v2977_v17, %v10465_v34  ;;  %v8867_v36 = vadd.f32 %v3324_v32, %v2972_v44  ;;  %v2958_v34 = vadd.f32 %v8792_v3, %v10468_v26  ;;  %v10470_v44 = vld [vmem:[#allocation13_spill] sm:$0xff]  ;;  %v3323_v3 = vadd.f32 %v3322_v8, %v2970_v52 }
 0x46c   :  { %v2979_v33 = vpop.f32.mrf.mxu0  ;;  %v3328_v40 = vpop.f32.mrf.mxu1  ;;  %v2962_v6 = vadd.f32 %v8800_v4, %v10470_v44  ;;  %v8914_v52 = vadd.f32 %v8776_v57, %v8844_v38 }
 0x46d   :  { %v2980_v60 = vadd.f32 %v2979_v33, %v10466_v22  ;;  %v6537_v33 = vld [vmem:[%s10111_s1 + $0x160] sm:$0xff]  ;;  %v3329_v32 = vadd.f32 %v3328_v40, %v2976_v37  ;;  %v3508_v37 = vmax.f32 %v8867_v36, 0.0  ;;  %v3311_v8 = vadd.f32 %v8802_v23, %v2958_v34 }
 0x46e   :  { %v2981_v54 = vpop.f32.mrf.mxu0  ;;  %v3330_v16 = vpop.f32.mrf.mxu1  ;;  %3914 = vperm.xlu1 %6058, %v6537_v33   ;;  %v3321_v33 = vadd.f32 %v3320_v12, %v2968_v61  ;;  %v8885_v26 = vadd.f32 %v8808_v51, %v2962_v6  ;;  %v2960_v51 = vadd.f32 %v8796_v28, %v10470_v44  ;;  %v8906_v28 = vadd.f32 %v8794_v25, %v2952_v42  ;;  %v6541_v6 = vld [vmem:[%s10111_s1 + $0x150] sm:$0xff] }
 0x46f   :  { %v2982_v20 = vadd.f32 %v2981_v54, %v10466_v22  ;;  %v3331_v41 = vadd.f32 %v3330_v16, %v2978_v13  ;;  %v8891_v12 = vpop.permute.xlu1 %2012  ;;  %v3509_v54 = vmax.f32 %v3329_v32, 0.0  ;;  %v2950_v25 = vadd.f32 %v8779_v63, %v10467_v18  ;;  %v6542_v63 = vld [vmem:[%s10111_s1 + $0x48] sm:$0xff] }
 0x470   :  { %v2985_v19 = vpop.f32.mrf.mxu0  ;;  %v3332_v17 = vpop.f32.mrf.mxu1  ;;  %10471 = vst [vmem:[#allocation16_spill] sm:$0xff] %v8891_v12  ;;  %v3313_v23 = vadd.f32 %v8806_v2, %v2960_v51  ;;  %v3504_v32 = vmax.f32 %v8885_v26, 0.0  ;;  %v3301_v2 = vadd.f32 %v8785_v27, %v8853_v50  ;;  %v3502_v57 = vmax.f32 %v3311_v8, 0.0  ;;  %v10475_v26 = vld [vmem:[#allocation63_spill] sm:$0xff] }
 0x471   :  { %v3333_v56 = vadd.f32 %v3332_v17, %v2980_v60  ;;  %4696 = vmatmul.mubr.bf16.gmra.mxu0 %v6262_v62  ;;  %v2986_v22 = vadd.f32 %v2985_v19, %v2009_v5  ;;  %v6538_v60 = vld [vmem:[%s10111_s1 + $0x58] sm:$0xff]  ;;  %v3510_v40 = vmax.f32 %v3331_v41, 0.0  ;;  %v6270_v19 = vld [vmem:[#allocation5 + $0xa4] ss:$16 sps:$4 sm:$0xff]   ;;  %v3506_v17 = vmax.f32 %v3321_v33, 0.0 }
 0x472   :  { %v2987_v21 = vpop.f32.mrf.mxu0  ;;  %v3334_v1 = vpop.f32.mrf.mxu1  ;;  %4705 = vmatprep.mubr.bf16.mxu0 %v6267_v11  ;;  %3782 = vperm.xlu0 %6057, %v6538_v60   ;;  %v3309_v33 = vadd.f32 %v8798_v15, %v8864_v45  ;;  %v3303_v27 = vadd.f32 %v8790_v53, %v2950_v25  ;;  %v3500_v15 = vmax.f32 %v8906_v28, 0.0  ;;  %v3503_v50 = vmax.f32 %v3313_v23, 0.0 }
 0x473   :  { %v3335_v16 = vadd.f32 %v3334_v1, %v2982_v20  ;;  %v3511_v4 = vmax.f32 %v3333_v56, 0.0  ;;  %3778 = vperm.xlu1 %6058, %v6539_v35   ;;  %v2988_v61 = vadd.f32 %v2987_v21, %v2009_v5  ;;  %v3319_v56 = vadd.f32 %v8813_v7, %v2966_v9  ;;  %v6540_v21 = vld [vmem:[%s10111_s1 + $0x158] sm:$0xff] }
 0x474   :  { %v2989_v47 = vpop.f32.mrf.mxu0  ;;  %v3338_v11 = vpop.f32.mrf.mxu1  ;;  %v3507_v7 = vmax.f32 %v3323_v3, 0.0  ;;  %v3718_v42 = vpack.c.bf16 %v3508_v37, %v3506_v17  ;;  %v2936_v53 = vadd.f32 %v8750_v30, %v10461_v14  ;;  %v3501_v51 = vmax.f32 %v3309_v33, 0.0  ;;  %v10477_v17 = vld [vmem:[#allocation65_spill] sm:$0xff]  ;;  %v6544_v30 = vld [vmem:[%s10111_s1 + $0x148] sm:$0xff] }
 0x475   :  { %v3512_v62 = vmax.f32 %v3335_v16, 0.0  ;;  %v3339_v1 = vadd.f32 %v3338_v11, %v2986_v22  ;;  %v2990_v10 = vadd.f32 %v2989_v47, %v8891_v12  ;;  %v3719_v20 = vpack.c.bf16 %v3511_v4, %v3509_v54  ;;  %v6543_v47 = vld [vmem:[%s10111_s1 + $0x40] sm:$0xff]  ;;  %v6546_v33 = vld [vmem:[%s10111_s1 + $0x38] sm:$0xff] }
 0x476   :  { %v8897_v13 = vpop.f32.mrf.mxu0  ;;  %v3340_v36 = vpop.f32.mrf.mxu1  ;;  %3910 = vperm.xlu0 %6057, %v6540_v21   ;;  %v3505_v22 = vmax.f32 %v3319_v56, 0.0  ;;  %v6273_v54 = vld [vmem:[#allocation5 + $0xc4] ss:$16 sps:$4 sm:$0xff]   ;;  %v3499_v14 = vmax.f32 %v3303_v27, 0.0  ;;  %v3285_v21 = vadd.f32 %v8758_v46, %v8836_v49  ;;  %v3496_v28 = vmax.f32 %v8914_v52, 0.0 }
 0x477   :  { %10472 = vst [vmem:[#allocation28_spill] sm:$0xff] %v8897_v13  ;;  %v8900_v41 = vadd.f32 %v3340_v36, %v2988_v61  ;;  %v3720_v5 = vpack.c.bf16 %v3512_v62, %v3510_v40  ;;  %3906 = vperm.xlu1 %6058, %v6541_v6   ;;  %v3513_v38 = vmax.f32 %v3339_v1, 0.0  ;;  %v3716_v61 = vpack.c.bf16 %v3504_v32, %v3502_v57  ;;  %v6268_v62 = vld [vmem:[#allocation5 + $0xa0] ss:$16 sps:$4 sm:$0xff]  }
 0x478   :  { %v2995_v34 = vpop.f32.mrf.mxu0  ;;  %v3342_v44 = vpop.f32.mrf.mxu1  ;;  %v3717_v18 = vpack.c.bf16 %v3507_v7, %v3505_v22  ;;  %v2940_v1 = vadd.f32 %v8761_v59, %v10462_v31  ;;  %v3291_v36 = vadd.f32 %v8767_v43, %v8840_v55  ;;  %v2928_v59 = vadd.f32 %v8730_v39, %v10435_v24  ;;  %v6545_v55 = vld [vmem:[%s10111_s1 + $0x140] sm:$0xff]  ;;  %v10480_v39 = vld [vmem:[#allocation21_spill] sm:$0xff]  ;;  %v10485_v22 = vld [vmem:[#allocation20_spill] sm:$0xff] }
 0x479   :  { %10473 = vst [vmem:[#allocation26_spill] sm:$0xff] %v8900_v41  ;;  %v3343_v9 = vadd.f32 %v3342_v44, %v2990_v10  ;;  %4986 = vmatprep.subr.bf16.mxu1 %v3720_v5  ;;  %4706 = vmatmul.mubr.bf16.gmra.mxu0 %v6265_v48  ;;  %v2996_v3 = vadd.f32 %v2995_v34, %v10475_v26  ;;  %v10479_v24 = vld [vmem:[#allocation15_spill] sm:$0xff]  ;;  %v10482_v44 = vld [vmem:[#allocation38_spill] sm:$0xff]  ;;  %v10484_v52 = vld [vmem:[#allocation61_spill] sm:$0xff] }
 0x47a   :  { %v2997_v16 = vpop.f32.mrf.mxu0  ;;  %v8923_v60 = vpop.f32.mrf.mxu1  ;;  %4987 = vmatpush1.bf16.msra.mxu1 %v3719_v20  ;;  %4715 = vmatprep.mubr.bf16.mxu0 %v6270_v19  ;;  %v3299_v48 = vadd.f32 %v8781_v0, %v8849_v29  ;;  %v3498_v19 = vmax.f32 %v3301_v2, 0.0  ;;  %v3293_v0 = vadd.f32 %v8772_v58, %v2940_v1  ;;  %v3715_v31 = vpack.c.bf16 %v3503_v50, %v3501_v51  ;;  %v10481_v20 = vld [vmem:[#allocation33_spill] sm:$0xff]  ;;  %v10492_v1 = vld [vmem:[#allocation44_spill] sm:$0xff]  ;;  %v10503_v41 = vld [vmem:[#allocation22_spill] sm:$0xff] }
 0x47b   :  { %10474 = vst [vmem:[#allocation29_spill] sm:$0xff] %v8923_v60  ;;  %v3515_v37 = vmax.f32 %v3343_v9, 0.0  ;;  %4988 = vmatprep.subr.bf16.mxu1 %v3718_v42  ;;  %3774 = vperm.xlu0 %6057, %v6542_v63   ;;  %v2998_v35 = vadd.f32 %v2997_v16, %v10475_v26  ;;  %v2930_v58 = vadd.f32 %v10480_v39, %v10479_v24  ;;  %v3494_v46 = vmax.f32 %v3291_v36, 0.0  ;;  %v10486_v16 = vld [vmem:[#allocation53_spill] sm:$0xff]  ;;  %v6569_v60 = vld [vmem:[%s10111_s1 + $0x1e0] sm:$0xff] }
 0x47c   :  { %v2999_v45 = vpop.f32.mrf.mxu0  ;;  %v3348_v4 = vpop.f32.mrf.mxu1  ;;  %3770 = vperm.xlu1 %6058, %v6543_v47   ;;  %v3714_v7 = vpack.c.bf16 %v3500_v15, %v3498_v19  ;;  %v3281_v34 = vadd.f32 %v10481_v20, %v2928_v59  ;;  %v3289_v6 = vadd.f32 %v10482_v44, %v2936_v53  ;;  %v3497_v32 = vmax.f32 %v3299_v48, 0.0  ;;  %v6547_v15 = vld [vmem:[%s10111_s1 + $0x30] sm:$0xff]  ;;  %v10494_v59 = vld [vmem:[#allocation43_spill] sm:$0xff] }
 0x47d   :  { %v8934_v11 = vpack.c.bf16 %v3515_v37, %v3513_v38  ;;  %v3349_v40 = vadd.f32 %v3348_v4, %v2996_v3  ;;  %v3000_v10 = vadd.f32 %v2999_v45, %v10477_v17  ;;  %v3275_v57 = vadd.f32 %v10486_v16, %v10485_v22  ;;  %v10487_v38 = vld [vmem:[#allocation45_spill] sm:$0xff]  ;;  %v10491_v53 = vld [vmem:[#allocation36_spill] sm:$0xff]  ;;  %v6551_v20 = vld [vmem:[%s10111_s1 + $0x20] sm:$0xff] }
 0x47e   :  { %v8943_v8 = vpop.f32.mrf.mxu0  ;;  %v3350_v56 = vpop.f32.mrf.mxu1  ;;  %4989 = vmatpush1.bf16.msra.mxu1 %v3717_v18  ;;  %v3283_v26 = vadd.f32 %v10487_v38, %v2930_v58  ;;  %v3495_v3 = vmax.f32 %v3293_v0, 0.0  ;;  %v3713_v37 = vpack.c.bf16 %v3499_v14, %v3497_v32  ;;  %v3492_v50 = vmax.f32 %v3285_v21, 0.0  ;;  %v6271_v47 = vld [vmem:[#allocation5 + $0xc0] ss:$16 sps:$4 sm:$0xff]  }
 0x47f   :  { %10476 = vst [vmem:[#allocation12_spill] sm:$0xff] %v8934_v11  ;;  %v8948_v5 = vadd.f32 %v3350_v56, %v2998_v35  ;;  %4990 = vmatprep.subr.bf16.mxu1 %v3716_v61  ;;  %3902 = vperm.xlu0 %6057, %v6544_v30   ;;  %v3517_v49 = vmax.f32 %v3349_v40, 0.0  ;;  %v3712_v4 = vpack.c.bf16 %v3496_v28, %v3494_v46  ;;  %v3493_v35 = vmax.f32 %v3289_v6, 0.0  ;;  %v6548_v56 = vld [vmem:[%s10111_s1 + $0x138] sm:$0xff]  ;;  %v6549_v30 = vld [vmem:[%s10111_s1 + $0x130] sm:$0xff]  ;;  %v10496_v28 = vld [vmem:[#allocation31_spill] sm:$0xff] }
 0x480   :  { %v3005_v29 = vpop.f32.mrf.mxu0  ;;  %v3352_v43 = vpop.f32.mrf.mxu1  ;;  %3898 = vperm.xlu1 %6058, %v6545_v55   ;;  %v2912_v48 = vadd.f32 %v10492_v1, %v10491_v53  ;;  %v3490_v51 = vmax.f32 %v3281_v34, 0.0  ;;  %v3488_v14 = vmax.f32 %v3275_v57, 0.0  ;;  %v6274_v6 = vld [vmem:[#allocation5 + $0xe0] ss:$16 sps:$4 sm:$0xff]   ;;  %v6285_v1 = vld [vmem:[#allocation5 + $0x124] ss:$16 sps:$4 sm:$0xff]  }
 0x481   :  { %10478 = vst [vmem:[#allocation11_spill] sm:$0xff] %v8948_v5  ;;  %v3353_v23 = vadd.f32 %v3352_v43, %v3000_v10  ;;  %4716 = vmatmul.mubr.bf16.gmra.mxu0 %v6268_v62  ;;  %v3006_v25 = vadd.f32 %v3005_v29, %v10484_v52  ;;  %v6276_v62 = vld [vmem:[#allocation5 + $0xe4] ss:$16 sps:$4 sm:$0xff]   ;;  %v3711_v36 = vpack.c.bf16 %v3495_v3, %v3493_v35 }
 0x482   :  { %v8966_v9 = vpop.f32.mrf.mxu0  ;;  %v8968_v42 = vpop.f32.mrf.mxu1  ;;  %4991 = vmatpush1.bf16.msra.mxu1 %v3715_v31  ;;  %4725 = vmatprep.mubr.bf16.mxu0 %v6273_v54  ;;  %v3491_v54 = vmax.f32 %v3283_v26, 0.0  ;;  %v3265_v0 = vadd.f32 %v10494_v59, %v2912_v48  ;;  %v3710_v31 = vpack.c.bf16 %v3492_v50, %v3490_v51  ;;  %v10495_v29 = vld [vmem:[#allocation55_spill] sm:$0xff]  ;;  %v6556_v48 = vld [vmem:[%s10111_s1 + $0x118] sm:$0xff] }
 0x483   :  { %10483 = vst [vmem:[#allocation71_spill] sm:$0xff] %v8968_v42  ;;  %v3519_v2 = vmax.f32 %v3353_v23, 0.0  ;;  %4992 = vmatprep.subr.bf16.mxu1 %v3714_v7  ;;  %3766 = vperm.xlu0 %6057, %v6546_v33   ;;  %v3489_v43 = vmax.f32 %v10495_v29, 0.0  ;;  %v3486_v23 = vmax.f32 %v10496_v28, 0.0  ;;  %v6550_v7 = vld [vmem:[%s10111_s1 + $0x28] sm:$0xff]  ;;  %v6553_v57 = vld [vmem:[%s10111_s1 + $0x120] sm:$0xff] }
 0x484   :  { %v8977_v63 = vpop.f32.mrf.mxu0  ;;  %v3358_v27 = vpop.f32.mrf.mxu1  ;;  %3762 = vperm.xlu1 %6058, %v6547_v15   ;;  %v3484_v34 = vmax.f32 %v3265_v0, 0.0  ;;  %v6552_v33 = vld [vmem:[%s10111_s1 + $0x128] sm:$0xff]  ;;  %v6283_v29 = vld [vmem:[#allocation5 + $0x120] ss:$16 sps:$4 sm:$0xff]  }
 0x485   :  { %v8982_v18 = vpack.c.bf16 %v3519_v2, %v3517_v49  ;;  %v8984_v45 = vadd.f32 %v3358_v27, %v3006_v25  ;;  %v3709_v24 = vpack.c.bf16 %v3491_v54, %v3489_v43  ;;  %v3708_v44 = vpack.c.bf16 %v3488_v14, %v3486_v23  ;;  %v6279_v49 = vld [vmem:[#allocation5 + $0x104] ss:$16 sps:$4 sm:$0xff]   ;;  %v10497_v25 = vld [vmem:[#allocation50_spill] sm:$0xff]  ;;  %v6558_v59 = vld [vmem:[%s10111_s1 + $0x8] sm:$0xff] }
 0x486   :  { %v8986_v40 = vpop.f32.mrf.mxu0  ;;  %v8988_v61 = vpop.f32.mrf.mxu1  ;;  %4993 = vmatpush1.bf16.msra.mxu1 %v3713_v37  ;;  %v3482_v2 = vmax.f32 %v10497_v25, 0.0  ;;  %v10498_v37 = vld [vmem:[#allocation17_spill] sm:$0xff]  ;;  %v10499_v53 = vld [vmem:[#allocation35_spill] sm:$0xff] }
 0x487   :  { %10488 = vst [vmem:[#allocation60_spill] sm:$0xff] %v8982_v18  ;;  %10489 = vst [vmem:[#allocation59_spill] sm:$0xff] %v8984_v45  ;;  %4994 = vmatprep.subr.bf16.mxu1 %v3712_v4  ;;  %3894 = vperm.xlu0 %6057, %v6548_v56   ;;  %v6554_v27 = vld [vmem:[%s10111_s1 + $0x18] sm:$0xff]  ;;  %v6555_v4 = vld [vmem:[%s10111_s1 + $0x10] sm:$0xff] }
 0x488   :  { %10490 = vst [vmem:[#allocation47_spill] sm:$0xff] %v8988_v61  ;;  %v8995_v19 = vpop.f32.mrf.mxu0  ;;  %v8997_v10 = vpop.f32.mrf.mxu1  ;;  %3890 = vperm.xlu1 %6058, %v6549_v30   ;;  %v3706_v38 = vpack.c.bf16 %v3484_v34, %v3482_v2  ;;  %v6557_v54 = vld [vmem:[%s10111_s1 + $0x110] sm:$0xff]  ;;  %v6561_v34 = vld [vmem:[%s10111_s1 + $0x100] sm:$0xff]  ;;  %v6570_v61 = vld [vmem:[%s10111_s1 + $0xd8] sm:$0xff] }
 0x489   :  { %10493 = vst [vmem:[#allocation51_spill] sm:$0xff] %v8997_v10  ;;  %4726 = vmatmul.mubr.bf16.gmra.mxu0 %v6271_v47  ;;  %v6277_v47 = vld [vmem:[#allocation5 + $0x100] ss:$16 sps:$4 sm:$0xff]   ;;  %v6291_v23 = vld [vmem:[#allocation5 + $0x144] ss:$16 sps:$4 sm:$0xff]  }
 0x48a   :  { %v9004_v55 = vpop.f32.mrf.mxu0  ;;  %v9006_v21 = vpop.f32.mrf.mxu1  ;;  %4995 = vmatpush1.bf16.msra.mxu1 %v3711_v36  ;;  %4735 = vmatprep.mubr.bf16.mxu0 %v6276_v62  ;;  %v10502_v11 = vld [vmem:[#allocation19_spill] sm:$0xff] }
 0x48b   :  { %4996 = vmatprep.subr.bf16.mxu1 %v3710_v31  ;;  %3758 = vperm.xlu0 %6057, %v6550_v7   ;;  %v6559_v31 = vld [vmem:[%s10111_s1] sm:$0xff]  ;;  %v6560_v7 = vld [vmem:[%s10111_s1 + $0x108] sm:$0xff] }
 0x48c   :  { %v9012_v39 = vpop.f32.mrf.mxu0  ;;  %v9014_v58 = vpop.f32.mrf.mxu1  ;;  %3754 = vperm.xlu1 %6058, %v6551_v20  }
 0x48e   :  { %v9019_v32 = vpop.f32.mrf.mxu0  ;;  %v9021_v46 = vpop.f32.mrf.mxu1  ;;  %4997 = vmatpush1.bf16.msra.mxu1 %v3709_v24 }
 0x48f   :  { %4998 = vmatprep.subr.bf16.mxu1 %v3708_v44  ;;  %3886 = vperm.xlu0 %6057, %v6552_v33   ;;  %v6563_v33 = vld [vmem:[%s10111_s1 + $0xf0] sm:$0xff] }
 0x490   :  { %v9027_v22 = vpop.f32.mrf.mxu0  ;;  %v9029_v16 = vpop.f32.mrf.mxu1  ;;  %3882 = vperm.xlu1 %6058, %v6553_v57   ;;  %v6289_v57 = vld [vmem:[#allocation5 + $0x140] ss:$16 sps:$4 sm:$0xff]  }
 0x491   :  { %4736 = vmatmul.mubr.bf16.gmra.mxu0 %v6274_v6 }
 0x492   :  { %v9034_v26 = vpop.f32.mrf.mxu0  ;;  %v9036_v3 = vpop.f32.mrf.mxu1  ;;  %4999 = vmatpush1.bf16.msra.mxu1 %v10498_v37  ;;  %4745 = vmatprep.mubr.bf16.mxu0 %v6279_v49  ;;  %v6562_v49 = vld [vmem:[%s10111_s1 + $0xf8] sm:$0xff] }
 0x493   :  { %5000 = vmatprep.subr.bf16.mxu1 %v3706_v38  ;;  %3750 = vperm.xlu0 %6057, %v6554_v27   ;;  %v6297_v27 = vld [vmem:[#allocation5 + $0x164] ss:$16 sps:$4 sm:$0xff]  }
 0x494   :  { %v9042_v15 = vpop.f32.mrf.mxu0  ;;  %v9044_v50 = vpop.f32.mrf.mxu1  ;;  %3746 = vperm.xlu1 %6058, %v6555_v4   ;;  %v6564_v4 = vld [vmem:[%s10111_s1 + $0x1f8] sm:$0xff] }
 0x496   :  { %v9049_v35 = vpop.f32.mrf.mxu0  ;;  %v9051_v62 = vpop.f32.mrf.mxu1  ;;  %5001 = vmatpush1.bf16.msra.mxu1 %v10499_v53 }
 0x497   :  { %3878 = vperm.xlu0 %6057, %v6556_v48  }
 0x498   :  { %v9057_v51 = vpop.f32.mrf.mxu0  ;;  %v9059_v56 = vpop.f32.mrf.mxu1  ;;  %3874 = vperm.xlu1 %6058, %v6557_v54  }
 0x499   :  { %4746 = vmatmul.mubr.bf16.gmra.mxu0 %v6277_v47 }
 0x49a   :  { %v9064_v36 = vpop.f32.mrf.mxu0  ;;  %v9066_v30 = vpop.f32.mrf.mxu1  ;;  %4755 = vmatprep.mubr.bf16.mxu0 %v6285_v1  ;;  %v6565_v1 = vld [vmem:[%s10111_s1 + $0x1f0] sm:$0xff] }
 0x49b   :  { %3742 = vperm.xlu0 %6057, %v6558_v59   ;;  %v6566_v59 = vld [vmem:[%s10111_s1 + $0xe8] sm:$0xff] }
 0x49c   :  { %v9071_v0 = vpop.f32.mrf.mxu0  ;;  %v9073_v14 = vpop.f32.mrf.mxu1  ;;  %3738 = vperm.xlu1 %6058, %v6559_v31  }
 0x49e   :  { %v3041_v43 = vpop.f32.mrf.mxu0  ;;  %v9078_v28 = vpop.f32.mrf.mxu1 }
 0x49f   :  { %3870 = vperm.xlu0 %6057, %v6560_v7   ;;  %v6295_v7 = vld [vmem:[#allocation5 + $0x160] ss:$16 sps:$4 sm:$0xff]  }
 0x4a0   :  { %v9083_v24 = vpop.f32.mrf.mxu0  ;;  %v9085_v20 = vpop.f32.mrf.mxu1  ;;  %3866 = vperm.xlu1 %6058, %v6561_v34  }
 0x4a1   :  { %4756 = vmatmul.mubr.bf16.gmra.mxu0 %v6283_v29 }
 0x4a2   :  { %v3047_v44 = vpop.f32.mrf.mxu0  ;;  %v3394_v6 = vpop.f32.mrf.mxu1  ;;  %4765 = vmatprep.mubr.bf16.mxu0 %v6291_v23  ;;  %v6567_v23 = vld [vmem:[%s10111_s1 + $0xe0] sm:$0xff] }
 0x4a3   :  { %3862 = vperm.xlu0 %6057, %v6562_v49   ;;  %v3048_v5 = vadd.f32 %v3047_v44, %v10503_v41  ;;  %v10504_v44 = vld [vmem:[#allocation32_spill] sm:$0xff] }
 0x4a4   :  { %v3049_v25 = vpop.f32.mrf.mxu0  ;;  %v9093_v2 = vpop.f32.mrf.mxu1  ;;  %3858 = vperm.xlu1 %6058, %v6563_v33   ;;  %v6303_v33 = vld [vmem:[#allocation5 + $0x184] ss:$16 sps:$4 sm:$0xff]   ;;  %v3042_v10 = vadd.f32 %v3041_v43, %v10504_v44 }
 0x4a6   :  { %v3051_v38 = vpop.f32.mrf.mxu0  ;;  %v3400_v37 = vpop.f32.mrf.mxu1 }
 0x4a7   :  { %3990 = vperm.xlu0 %6057, %v6564_v4  }
 0x4a8   :  { %v3055_v47 = vpop.f32.mrf.mxu0  ;;  %v3402_v53 = vpop.f32.mrf.mxu1  ;;  %3986 = vperm.xlu1 %6058, %v6565_v1   ;;  %v10501_v1 = vld [vmem:[#allocation18_spill] sm:$0xff] }
 0x4a9   :  { %4766 = vmatmul.mubr.bf16.gmra.mxu0 %v6289_v57  ;;  %v10500_v57 = vld [vmem:[#allocation24_spill] sm:$0xff]  ;;  %v3056_v45 = vadd.f32 %v3055_v47, %v10501_v1  ;;  %v3401_v47 = vadd.f32 %v3400_v37, %v3048_v5  ;;  %v3395_v5 = vadd.f32 %v3394_v6, %v3042_v10 }
 0x4aa   :  { %v3057_v48 = vpop.f32.mrf.mxu0  ;;  %v3404_v54 = vpop.f32.mrf.mxu1  ;;  %4775 = vmatprep.mubr.bf16.mxu0 %v6297_v27  ;;  %v3052_v4 = vadd.f32 %v3051_v38, %v10500_v57  ;;  %v3050_v12 = vadd.f32 %v3049_v25, %v10500_v57 }
 0x4ab   :  { %3854 = vperm.xlu0 %6057, %v6566_v59   ;;  %v3058_v27 = vadd.f32 %v3057_v48, %v10501_v1  ;;  %v6568_v59 = vld [vmem:[%s10111_s1 + $0x1e8] sm:$0xff] }
 0x4ac   :  { %v3059_v31 = vpop.f32.mrf.mxu0  ;;  %v3408_v29 = vpop.f32.mrf.mxu1  ;;  %3850 = vperm.xlu1 %6058, %v6567_v23   ;;  %v3405_v38 = vadd.f32 %v3404_v54, %v3052_v4  ;;  %v3403_v54 = vadd.f32 %v3402_v53, %v3050_v12  ;;  %v3538_v53 = vmax.f32 %v3401_v47, 0.0  ;;  %v3536_v4 = vmax.f32 %v3395_v5, 0.0 }
 0x4ad   :  { %v3060_v18 = vadd.f32 %v3059_v31, %v10502_v11  ;;  %v3409_v42 = vadd.f32 %v3408_v29, %v3056_v45  ;;  %v6571_v45 = vld [vmem:[%s10111_s1 + $0xd0] sm:$0xff] }
 0x4ae   :  { %v3061_v34 = vpop.f32.mrf.mxu0  ;;  %v3410_v49 = vpop.f32.mrf.mxu1  ;;  %v3540_v43 = vmax.f32 %v3405_v38, 0.0  ;;  %v3539_v6 = vmax.f32 %v3403_v54, 0.0  ;;  %v10508_v38 = vld [vmem:[#allocation58_spill] sm:$0xff] }
 0x4af   :  { %3982 = vperm.xlu0 %6057, %v6568_v59   ;;  %v3062_v48 = vadd.f32 %v3061_v34, %v10502_v11  ;;  %v3411_v13 = vadd.f32 %v3410_v49, %v3058_v27  ;;  %v3541_v34 = vmax.f32 %v3409_v42, 0.0  ;;  %v6309_v49 = vld [vmem:[#allocation5 + $0x1a4] ss:$16 sps:$4 sm:$0xff]  }
 0x4b0   :  { %v3412_v23 = vpop.f32.mrf.mxu1  ;;  %3978 = vperm.xlu1 %6058, %v6569_v60   ;;  %v10505_v60 = vld [vmem:[#allocation30_spill] sm:$0xff]  ;;  %v3734_v27 = vpack.c.bf16 %v3540_v43, %v3538_v53 }
 0x4b1   :  { %v3413_v31 = vadd.f32 %v3412_v23, %v3060_v18  ;;  %4776 = vmatmul.mubr.bf16.gmra.mxu0 %v6295_v7  ;;  %v3038_v11 = vadd.f32 %v9064_v36, %v10505_v60  ;;  %v3046_v18 = vadd.f32 %v9083_v24, %v10503_v41  ;;  %v3542_v37 = vmax.f32 %v3411_v13, 0.0  ;;  %v6301_v7 = vld [vmem:[#allocation5 + $0x180] ss:$16 sps:$4 sm:$0xff]   ;;  %v6572_v13 = vld [vmem:[%s10111_s1 + $0x1d8] sm:$0xff] }
 0x4b2   :  { %v3414_v59 = vpop.f32.mrf.mxu1  ;;  %4785 = vmatprep.mubr.bf16.mxu0 %v6303_v33  ;;  %v10506_v41 = vld [vmem:[#allocation52_spill] sm:$0xff]  ;;  %v3036_v10 = vadd.f32 %v9057_v51, %v10505_v60 }
 0x4b3   :  { %v3415_v1 = vadd.f32 %v3414_v59, %v3062_v48  ;;  %3846 = vperm.xlu0 %6057, %v6570_v61   ;;  %v3543_v25 = vmax.f32 %v3413_v31, 0.0  ;;  %v3040_v61 = vadd.f32 %v9071_v0, %v10504_v44  ;;  %v3399_v36 = vadd.f32 %v9093_v2, %v3046_v18  ;;  %v6307_v18 = vld [vmem:[#allocation5 + $0x1a0] ss:$16 sps:$4 sm:$0xff]  }
 0x4b4   :  { %3842 = vperm.xlu1 %6058, %v6571_v45   ;;  %v3032_v12 = vadd.f32 %v9049_v35, %v10506_v41  ;;  %v3391_v24 = vadd.f32 %v9078_v28, %v3038_v11  ;;  %v6573_v35 = vld [vmem:[%s10111_s1 + $0x1d0] sm:$0xff]  ;;  %v10507_v28 = vld [vmem:[#allocation39_spill] sm:$0xff]  ;;  %v3030_v51 = vadd.f32 %v9042_v15, %v10506_v41  ;;  %v3022_v48 = vadd.f32 %v9019_v32, %v10508_v38  ;;  %v10510_v45 = vld [vmem:[#allocation62_spill] sm:$0xff] }
 0x4b5   :  { %v3544_v29 = vmax.f32 %v3415_v1, 0.0  ;;  %v3393_v0 = vadd.f32 %v9085_v20, %v3040_v61  ;;  %v3735_v42 = vpack.c.bf16 %v3543_v25, %v3541_v34  ;;  %v3028_v2 = vadd.f32 %v9034_v26, %v10507_v28  ;;  %v6575_v32 = vld [vmem:[%s10111_s1 + $0xc0] sm:$0xff] }
 0x4b6   :  { %v3385_v57 = vadd.f32 %v9066_v30, %v3032_v12  ;;  %v3389_v20 = vadd.f32 %v9073_v14, %v3036_v10  ;;  %v3537_v23 = vmax.f32 %v3399_v36, 0.0  ;;  %v3534_v26 = vmax.f32 %v3391_v24, 0.0  ;;  %v6574_v30 = vld [vmem:[%s10111_s1 + $0xc8] sm:$0xff]  ;;  %v6315_v25 = vld [vmem:[#allocation5 + $0x1c4] ss:$16 sps:$4 sm:$0xff]  }
 0x4b7   :  { %v3736_v33 = vpack.c.bf16 %v3544_v29, %v3542_v37  ;;  %3974 = vperm.xlu0 %6057, %v6572_v13   ;;  %v3381_v31 = vadd.f32 %v9051_v62, %v3028_v2  ;;  %v3026_v15 = vadd.f32 %v9027_v22, %v10507_v28  ;;  %v3383_v14 = vadd.f32 %v9059_v56, %v3030_v51  ;;  %v10509_v62 = vld [vmem:[#allocation56_spill] sm:$0xff]  ;;  %v10511_v41 = vld [vmem:[#allocation47_spill] sm:$0xff] }
 0x4b8   :  { %3970 = vperm.xlu1 %6058, %v6573_v35   ;;  %v3535_v59 = vmax.f32 %v3393_v0, 0.0  ;;  %v3733_v44 = vpack.c.bf16 %v3539_v6, %v3537_v23  ;;  %v3018_v47 = vadd.f32 %v9004_v55, %v10509_v62  ;;  %v3375_v1 = vadd.f32 %v9036_v3, %v3022_v48  ;;  %v6576_v55 = vld [vmem:[%s10111_s1 + $0x1c8] sm:$0xff]  ;;  %v6313_v10 = vld [vmem:[#allocation5 + $0x1c0] ss:$16 sps:$4 sm:$0xff]   ;;  %v6321_v6 = vld [vmem:[#allocation5 + $0x1e4] ss:$16 sps:$4 sm:$0xff]  }
 0x4b9   :  { %5002 = vmatprep.subr.bf16.mxu1 %v3736_v33  ;;  %4786 = vmatmul.mubr.bf16.gmra.mxu0 %v6301_v7  ;;  %v3532_v60 = vmax.f32 %v3385_v57, 0.0  ;;  %v3732_v11 = vpack.c.bf16 %v3536_v4, %v3534_v26  ;;  %v3020_v22 = vadd.f32 %v9012_v39, %v10508_v38  ;;  %v3379_v56 = vadd.f32 %v9044_v50, %v3026_v15  ;;  %v10513_v33 = vld [vmem:[#allocation71_spill] sm:$0xff]  ;;  %v10515_v35 = vld [vmem:[#allocation28_spill] sm:$0xff]  ;;  %v6580_v57 = vld [vmem:[%s10111_s1 + $0x1b8] sm:$0xff] }
 0x4ba   :  { %5003 = vmatpush2.bf16.msra.mxu1 %v3735_v42  ;;  %4795 = vmatprep.mubr.bf16.mxu0 %v6309_v49  ;;  %v3533_v54 = vmax.f32 %v3389_v20, 0.0  ;;  %v3012_v5 = vadd.f32 %v8986_v40, %v10510_v45  ;;  %v3371_v43 = vadd.f32 %v9021_v46, %v3018_v47  ;;  %v3530_v37 = vmax.f32 %v3381_v31, 0.0  ;;  %v6577_v40 = vld [vmem:[%s10111_s1 + $0x1c0] sm:$0xff]  ;;  %v10514_v42 = vld [vmem:[#allocation16_spill] sm:$0xff]  ;;  %v10516_v20 = vld [vmem:[#allocation29_spill] sm:$0xff] }
 0x4bb   :  { %5004 = vmatprep.subr.bf16.mxu1 %v3734_v27  ;;  %3838 = vperm.xlu0 %6057, %v6574_v30   ;;  %v3016_v39 = vadd.f32 %v8995_v19, %v10509_v62  ;;  %v3373_v3 = vadd.f32 %v9029_v16, %v3020_v22  ;;  %v3531_v50 = vmax.f32 %v3383_v14, 0.0  ;;  %v3008_v46 = vadd.f32 %v8966_v9, %v10484_v52  ;;  %v6578_v9 = vld [vmem:[%s10111_s1 + $0xb8] sm:$0xff]  ;;  %v10512_v52 = vld [vmem:[#allocation51_spill] sm:$0xff]  ;;  %v6581_v51 = vld [vmem:[%s10111_s1 + $0x1b0] sm:$0xff] }
 0x4bc   :  { %3834 = vperm.xlu1 %6058, %v6575_v32   ;;  %v3731_v29 = vpack.c.bf16 %v3535_v59, %v3533_v54  ;;  %v3365_v7 = vadd.f32 %v9006_v21, %v3012_v5  ;;  %v3528_v61 = vmax.f32 %v3375_v1, 0.0  ;;  %v3730_v36 = vpack.c.bf16 %v3532_v60, %v3530_v37  ;;  %v10517_v31 = vld [vmem:[#allocation59_spill] sm:$0xff]  ;;  %v10519_v60 = vld [vmem:[#allocation26_spill] sm:$0xff]  ;;  %v10520_v54 = vld [vmem:[#allocation60_spill] sm:$0xff] }
 0x4bd   :  { %v3010_v19 = vadd.f32 %v8977_v63, %v10510_v45  ;;  %v3369_v16 = vadd.f32 %v9014_v58, %v3016_v39  ;;  %v3529_v34 = vmax.f32 %v3379_v56, 0.0  ;;  %v3002_v49 = vadd.f32 %v8943_v8, %v10477_v17  ;;  %v6579_v58 = vld [vmem:[%s10111_s1 + $0xb0] sm:$0xff]  ;;  %v10518_v30 = vld [vmem:[#allocation11_spill] sm:$0xff] }
 0x4be   :  { %5005 = vmatpush2.bf16.msra.mxu1 %v3733_v44  ;;  %v3361_v12 = vadd.f32 %v10511_v41, %v3008_v46  ;;  %v3526_v24 = vmax.f32 %v3371_v43, 0.0  ;;  %v3527_v63 = vmax.f32 %v3373_v3, 0.0  ;;  %v3524_v17 = vmax.f32 %v3365_v7, 0.0  ;;  %v6582_v14 = vld [vmem:[%s10111_s1 + $0xa8] sm:$0xff]  ;;  %v6583_v44 = vld [vmem:[%s10111_s1 + $0xa0] sm:$0xff]  ;;  %v6587_v45 = vld [vmem:[%s10111_s1 + $0x90] sm:$0xff] }
 0x4bf   :  { %5006 = vmatprep.subr.bf16.mxu1 %v3732_v11  ;;  %3966 = vperm.xlu0 %6057, %v6576_v55   ;;  %v3363_v21 = vadd.f32 %v10512_v52, %v3010_v19  ;;  %v3729_v53 = vpack.c.bf16 %v3531_v50, %v3529_v34  ;;  %v3355_v8 = vadd.f32 %v10513_v33, %v3002_v49  ;;  %v3525_v0 = vmax.f32 %v3369_v16, 0.0  ;;  %v6319_v47 = vld [vmem:[#allocation5 + $0x1e0] ss:$16 sps:$4 sm:$0xff]   ;;  %v6327_v1 = vld [vmem:[#allocation5 + $0x204] ss:$16 sps:$4 sm:$0xff]   ;;  %v6588_v3 = vld [vmem:[%s10111_s1 + $0x198] sm:$0xff] }
 0x4c0   :  { %3962 = vperm.xlu1 %6058, %v6577_v40   ;;  %v3728_v13 = vpack.c.bf16 %v3528_v61, %v3526_v24  ;;  %v2992_v28 = vadd.f32 %v10515_v35, %v10514_v42  ;;  %v3522_v2 = vmax.f32 %v3361_v12, 0.0  ;;  %v3521_v26 = vmax.f32 %v10517_v31, 0.0  ;;  %v6585_v22 = vld [vmem:[%s10111_s1 + $0x1a0] sm:$0xff]  ;;  %v6280_v5 = vld [vmem:[#allocation5 + $0x8] ss:$16 sps:$4 sm:$0xff]   ;;  %v6589_v50 = vld [vmem:[%s10111_s1 + $0x190] sm:$0xff] }
 0x4c1   :  { %4796 = vmatmul.mubr.bf16.gmra.mxu0 %v6307_v18  ;;  %v3523_v4 = vmax.f32 %v3363_v21, 0.0  ;;  %v3727_v27 = vpack.c.bf16 %v3527_v63, %v3525_v0  ;;  %v3520_v38 = vmax.f32 %v3355_v8, 0.0  ;;  %v3518_v15 = vmax.f32 %v10518_v30, 0.0  ;;  %v6584_v18 = vld [vmem:[%s10111_s1 + $0x1a8] sm:$0xff]  ;;  %v6325_v43 = vld [vmem:[#allocation5 + $0x200] ss:$16 sps:$4 sm:$0xff]  }
 0x4c2   :  { %5007 = vmatpush2.bf16.msra.mxu1 %v3731_v29  ;;  %4805 = vmatprep.mubr.bf16.mxu0 %v6315_v25  ;;  %v3345_v23 = vadd.f32 %v10516_v20, %v2992_v28  ;;  %v3726_v48 = vpack.c.bf16 %v3524_v17, %v3522_v2  ;;  %v3514_v11 = vmax.f32 %v10519_v60, 0.0  ;;  %v6586_v25 = vld [vmem:[%s10111_s1 + $0x98] sm:$0xff]  ;;  %v10521_v37 = vld [vmem:[#allocation12_spill] sm:$0xff]  ;;  %v6333_v39 = vld [vmem:[#allocation5 + $0x224] ss:$16 sps:$4 sm:$0xff]  }
 0x4c3   :  { %5008 = vmatprep.subr.bf16.mxu1 %v3730_v36  ;;  %3830 = vperm.xlu0 %6057, %v6578_v9   ;;  %v3725_v59 = vpack.c.bf16 %v3523_v4, %v3521_v26  ;;  %v3724_v62 = vpack.c.bf16 %v3520_v38, %v3518_v15  ;;  %v6288_v55 = vld [vmem:[#allocation5 + $0x2c] ss:$16 sps:$4 sm:$0xff]   ;;  %v6591_v40 = vld [vmem:[%s10111_s1 + $0x80] sm:$0xff]  ;;  %v6286_v46 = vld [vmem:[#allocation5 + $0x28] ss:$16 sps:$4 sm:$0xff]  }
 0x4c4   :  { %3826 = vperm.xlu1 %6058, %v6579_v58   ;;  %v3516_v32 = vmax.f32 %v3345_v23, 0.0  ;;  %v6590_v29 = vld [vmem:[%s10111_s1 + $0x88] sm:$0xff]  ;;  %v6331_v7 = vld [vmem:[#allocation5 + $0x220] ss:$16 sps:$4 sm:$0xff]   ;;  %v6339_v36 = vld [vmem:[#allocation5 + $0x244] ss:$16 sps:$4 sm:$0xff]  }
 0x4c5   :  { %v6294_v61 = vld [vmem:[#allocation5 + $0x4c] ss:$16 sps:$4 sm:$0xff]   ;;  %v6593_v16 = vld [vmem:[%s10111_s1 + $0x180] sm:$0xff]  ;;  %v6292_v34 = vld [vmem:[#allocation5 + $0x48] ss:$16 sps:$4 sm:$0xff]  }
 0x4c6   :  { %5009 = vmatpush2.bf16.msra.mxu1 %v3729_v53  ;;  %v3722_v56 = vpack.c.bf16 %v3516_v32, %v3514_v11  ;;  %v6592_v19 = vld [vmem:[%s10111_s1 + $0x188] sm:$0xff]  ;;  %v6337_v49 = vld [vmem:[#allocation5 + $0x240] ss:$16 sps:$4 sm:$0xff]   ;;  %v6345_v12 = vld [vmem:[#allocation5 + $0x264] ss:$16 sps:$4 sm:$0xff]  }
 0x4c7   :  { %5010 = vmatprep.subr.bf16.mxu1 %v3728_v13  ;;  %3958 = vperm.xlu0 %6057, %v6580_v57   ;;  %v6300_v41 = vld [vmem:[#allocation5 + $0x6c] ss:$16 sps:$4 sm:$0xff]   ;;  %v6298_v24 = vld [vmem:[#allocation5 + $0x68] ss:$16 sps:$4 sm:$0xff]   ;;  %v6343_v9 = vld [vmem:[#allocation5 + $0x260] ss:$16 sps:$4 sm:$0xff]  }
 0x4c8   :  { %3954 = vperm.xlu1 %6058, %v6581_v51   ;;  %v6306_v52 = vld [vmem:[#allocation5 + $0x8c] ss:$16 sps:$4 sm:$0xff]   ;;  %v6351_v21 = vld [vmem:[#allocation5 + $0x284] ss:$16 sps:$4 sm:$0xff]   ;;  %v6304_v63 = vld [vmem:[#allocation5 + $0x88] ss:$16 sps:$4 sm:$0xff]  }
 0x4c9   :  { %4806 = vmatmul.mubr.bf16.gmra.mxu0 %v6313_v10  ;;  %v6349_v53 = vld [vmem:[#allocation5 + $0x280] ss:$16 sps:$4 sm:$0xff]   ;;  %v6312_v58 = vld [vmem:[#allocation5 + $0xac] ss:$16 sps:$4 sm:$0xff]   ;;  %v6357_v33 = vld [vmem:[#allocation5 + $0x2a4] ss:$16 sps:$4 sm:$0xff]  }
 0x4ca   :  { %5011 = vmatpush2.bf16.msra.mxu1 %v3727_v27  ;;  %4815 = vmatprep.mubr.bf16.mxu0 %v6321_v6  ;;  %v6310_v8 = vld [vmem:[#allocation5 + $0xa8] ss:$16 sps:$4 sm:$0xff]   ;;  %v6355_v17 = vld [vmem:[#allocation5 + $0x2a0] ss:$16 sps:$4 sm:$0xff]   ;;  %v6318_v13 = vld [vmem:[#allocation5 + $0xcc] ss:$16 sps:$4 sm:$0xff]  }
 0x4cb   :  { %5012 = vmatprep.subr.bf16.mxu1 %v3726_v48  ;;  %3822 = vperm.xlu0 %6057, %v6582_v14   ;;  %v6363_v10 = vld [vmem:[#allocation5 + $0x2c4] ss:$16 sps:$4 sm:$0xff]   ;;  %v6316_v0 = vld [vmem:[#allocation5 + $0xc8] ss:$16 sps:$4 sm:$0xff]   ;;  %v6361_v6 = vld [vmem:[#allocation5 + $0x2c0] ss:$16 sps:$4 sm:$0xff]   ;;  %v9258_v14 = vpop.permute.xlu1 %3798 }
 0x4cc   :  { %3818 = vperm.xlu1 %6058, %v6583_v44   ;;  %v6324_v42 = vld [vmem:[#allocation5 + $0xec] ss:$16 sps:$4 sm:$0xff]   ;;  %v6369_v35 = vld [vmem:[#allocation5 + $0x2e4] ss:$16 sps:$4 sm:$0xff]   ;;  %v6322_v28 = vld [vmem:[#allocation5 + $0xe8] ss:$16 sps:$4 sm:$0xff]  }
 0x4cd   :  { %v6367_v2 = vld [vmem:[#allocation5 + $0x2e0] ss:$16 sps:$4 sm:$0xff]   ;;  %v6330_v57 = vld [vmem:[#allocation5 + $0x10c] ss:$16 sps:$4 sm:$0xff]   ;;  %v6375_v4 = vld [vmem:[#allocation5 + $0x304] ss:$16 sps:$4 sm:$0xff]  }
 0x4ce   :  { %5013 = vmatpush2.bf16.msra.mxu1 %v3725_v59  ;;  %v6328_v27 = vld [vmem:[#allocation5 + $0x108] ss:$16 sps:$4 sm:$0xff]   ;;  %v6373_v51 = vld [vmem:[#allocation5 + $0x300] ss:$16 sps:$4 sm:$0xff]   ;;  %v6336_v20 = vld [vmem:[#allocation5 + $0x12c] ss:$16 sps:$4 sm:$0xff]  }
 0x4cf   :  { %5014 = vmatprep.subr.bf16.mxu1 %v3724_v62  ;;  %3950 = vperm.xlu0 %6057, %v6584_v18   ;;  %v6381_v23 = vld [vmem:[#allocation5 + $0x324] ss:$16 sps:$4 sm:$0xff]   ;;  %v6334_v31 = vld [vmem:[#allocation5 + $0x128] ss:$16 sps:$4 sm:$0xff]   ;;  %v6379_v30 = vld [vmem:[#allocation5 + $0x320] ss:$16 sps:$4 sm:$0xff]   ;;  %v9264_v62 = vpop.permute.xlu0 %3794 }
 0x4d0   :  { %3946 = vperm.xlu1 %6058, %v6585_v22   ;;  %v6342_v15 = vld [vmem:[#allocation5 + $0x14c] ss:$16 sps:$4 sm:$0xff]   ;;  %v6387_v59 = vld [vmem:[#allocation5 + $0x344] ss:$16 sps:$4 sm:$0xff]   ;;  %v6340_v60 = vld [vmem:[#allocation5 + $0x148] ss:$16 sps:$4 sm:$0xff]  }
 0x4d1   :  { %4816 = vmatmul.mubr.bf16.gmra.mxu0 %v6319_v47  ;;  %v6385_v18 = vld [vmem:[#allocation5 + $0x340] ss:$16 sps:$4 sm:$0xff]   ;;  %v6348_v22 = vld [vmem:[#allocation5 + $0x16c] ss:$16 sps:$4 sm:$0xff]  }
 0x4d2   :  { %5015 = vmatpush2.bf16.msra.mxu1 %v10520_v54  ;;  %4825 = vmatprep.mubr.bf16.mxu0 %v6327_v1  ;;  %v9268_v1 = vpop.permute.xlu1 %3922 }
 0x4d3   :  { %5016 = vmatprep.subr.bf16.mxu1 %v3722_v56  ;;  %3814 = vperm.xlu0 %6057, %v6586_v25   ;;  %10522 = vst [vmem:[#allocation54_spill] sm:$0xff] %v9268_v1  ;;  %v6393_v56 = vld [vmem:[#allocation5 + $0x364] ss:$16 sps:$4 sm:$0xff]   ;;  %v9274_v25 = vpop.permute.xlu0 %3926 }
 0x4d4   :  { %3810 = vperm.xlu1 %6058, %v6587_v45   ;;  %10523 = vst [vmem:[#allocation57_spill] sm:$0xff] %v9274_v25  ;;  %v6396_v25 = vld [vmem:[#allocation5 + $0x26c] ss:$16 sps:$4 sm:$0xff]  }
 0x4d6   :  { %5017 = vmatpush2.bf16.msra.mxu1 %v10521_v37  ;;  %v6346_v37 = vld [vmem:[#allocation5 + $0x168] ss:$16 sps:$4 sm:$0xff]  }
 0x4d7   :  { %3942 = vperm.xlu0 %6057, %v6588_v3   ;;  %v6354_v3 = vld [vmem:[#allocation5 + $0x18c] ss:$16 sps:$4 sm:$0xff]  }
 0x4d8   :  { %3938 = vperm.xlu1 %6058, %v6589_v50   ;;  %v9284_v50 = vpop.permute.xlu0 %3790 }
 0x4d9   :  { %5019 = vmatmul.mubr.bf16.vlgmr.msra.gmra.mxu1 %v6280_v5  ;;  %4826 = vmatmul.mubr.bf16.gmra.mxu0 %v6325_v43 }
 0x4da   :  { %5028 = vmatprep.mubr.bf16.mxu1 %v6288_v55  ;;  %4835 = vmatprep.mubr.bf16.mxu0 %v6333_v39  ;;  %v6391_v39 = vld [vmem:[#allocation5 + $0x360] ss:$16 sps:$4 sm:$0xff]  }
 0x4db   :  { %3806 = vperm.xlu0 %6057, %v6590_v29   ;;  %v6399_v29 = vld [vmem:[#allocation5 + $0x384] ss:$16 sps:$4 sm:$0xff]  }
 0x4dc   :  { %3802 = vperm.xlu1 %6058, %v6591_v40  }
 0x4dd   :  { %v9278_v5 = vpop.permute.xlu1 %3786 }
 0x4df   :  { %3934 = vperm.xlu0 %6057, %v6592_v19   ;;  %v6352_v19 = vld [vmem:[#allocation5 + $0x188] ss:$16 sps:$4 sm:$0xff]  }
 0x4e0   :  { %3930 = vperm.xlu1 %6058, %v6593_v16  }
 0x4e1   :  { %5029 = vmatmul.mubr.bf16.gmra.mxu1 %v6286_v46  ;;  %4836 = vmatmul.mubr.bf16.gmra.mxu0 %v6331_v7 }
 0x4e2   :  { %5038 = vmatprep.mubr.bf16.mxu1 %v6294_v61  ;;  %4845 = vmatprep.mubr.bf16.mxu0 %v6339_v36  ;;  %v9294_v36 = vpop.permute.xlu0 %3918 }
 0x4e3   :  { %10525 = vst [vmem:[#allocation66_spill] sm:$0xff] %v9294_v36 }
 0x4e9   :  { %5039 = vmatmul.mubr.bf16.gmra.mxu1 %v6292_v34  ;;  %4846 = vmatmul.mubr.bf16.gmra.mxu0 %v6337_v49  ;;  %v9288_v46 = vpop.permute.xlu1 %3914  ;;  %v6397_v34 = vld [vmem:[#allocation5 + $0x380] ss:$16 sps:$4 sm:$0xff]   ;;  %v6360_v49 = vld [vmem:[#allocation5 + $0x1ac] ss:$16 sps:$4 sm:$0xff]  }
 0x4ea   :  { %5048 = vmatprep.mubr.bf16.mxu1 %v6300_v41  ;;  %4855 = vmatprep.mubr.bf16.mxu0 %v6345_v12  ;;  %10524 = vst [vmem:[#allocation64_spill] sm:$0xff] %v9288_v46  ;;  %v6405_v12 = vld [vmem:[#allocation5 + $0x3a4] ss:$16 sps:$4 sm:$0xff]   ;;  %v6388_v46 = vld [vmem:[#allocation5 + $0x248] ss:$16 sps:$4 sm:$0xff]  }
 0x4ee   :  { %v9298_v41 = vpop.permute.xlu1 %3778 }
 0x4f1   :  { %5049 = vmatmul.mubr.bf16.gmra.mxu1 %v6298_v24  ;;  %4856 = vmatmul.mubr.bf16.gmra.mxu0 %v6343_v9 }
 0x4f2   :  { %5058 = vmatprep.mubr.bf16.mxu1 %v6306_v52  ;;  %4865 = vmatprep.mubr.bf16.mxu0 %v6351_v21  ;;  %v9304_v52 = vpop.permute.xlu0 %3782 }
 0x4f9   :  { %5059 = vmatmul.mubr.bf16.gmra.mxu1 %v6304_v63  ;;  %4866 = vmatmul.mubr.bf16.gmra.mxu0 %v6349_v53  ;;  %v9308_v63 = vpop.permute.xlu1 %3906  ;;  %v6358_v53 = vld [vmem:[#allocation5 + $0x1a8] ss:$16 sps:$4 sm:$0xff]  }
 0x4fa   :  { %5068 = vmatprep.mubr.bf16.mxu1 %v6312_v58  ;;  %4875 = vmatprep.mubr.bf16.mxu0 %v6357_v33  ;;  %10526 = vst [vmem:[#allocation67_spill] sm:$0xff] %v9308_v63  ;;  %v6403_v33 = vld [vmem:[#allocation5 + $0x3a0] ss:$16 sps:$4 sm:$0xff]  }
 0x501   :  { %5069 = vmatmul.mubr.bf16.gmra.mxu1 %v6310_v8  ;;  %4876 = vmatmul.mubr.bf16.gmra.mxu0 %v6355_v17  ;;  %v6366_v8 = vld [vmem:[#allocation5 + $0x1cc] ss:$16 sps:$4 sm:$0xff]   ;;  %v6411_v17 = vld [vmem:[#allocation5 + $0x3c4] ss:$16 sps:$4 sm:$0xff]  }
 0x502   :  { %5078 = vmatprep.mubr.bf16.mxu1 %v6318_v13  ;;  %4885 = vmatprep.mubr.bf16.mxu0 %v6363_v10  ;;  %v9314_v10 = vpop.permute.xlu0 %3910 }
 0x503   :  { %10527 = vst [vmem:[#allocation69_spill] sm:$0xff] %v9314_v10 }
 0x509   :  { %5079 = vmatmul.mubr.bf16.gmra.mxu1 %v6316_v0  ;;  %4886 = vmatmul.mubr.bf16.gmra.mxu0 %v6361_v6  ;;  %v9318_v6 = vpop.permute.xlu1 %3770 }
 0x50a   :  { %5088 = vmatprep.mubr.bf16.mxu1 %v6324_v42  ;;  %4895 = vmatprep.mubr.bf16.mxu0 %v6369_v35  ;;  %v6364_v35 = vld [vmem:[#allocation5 + $0x1c8] ss:$16 sps:$4 sm:$0xff]  }
 0x511   :  { %5089 = vmatmul.mubr.bf16.gmra.mxu1 %v6322_v28  ;;  %4896 = vmatmul.mubr.bf16.gmra.mxu0 %v6367_v2  ;;  %v6409_v2 = vld [vmem:[#allocation5 + $0x3c0] ss:$16 sps:$4 sm:$0xff]  }
 0x512   :  { %5098 = vmatprep.mubr.bf16.mxu1 %v6330_v57  ;;  %4905 = vmatprep.mubr.bf16.mxu0 %v6375_v4  ;;  %v6372_v57 = vld [vmem:[#allocation5 + $0x1ec] ss:$16 sps:$4 sm:$0xff]   ;;  %v9324_v4 = vpop.permute.xlu0 %3774 }
 0x519   :  { %5099 = vmatmul.mubr.bf16.gmra.mxu1 %v6328_v27  ;;  %v9252_v38 = vpop.f32.mrf.mxu0  ;;  %4906 = vmatmul.mubr.bf16.gmra.mxu0 %v6373_v51  ;;  %v6417_v27 = vld [vmem:[#allocation5 + $0x3e4] ss:$16 sps:$4 sm:$0xff]  }
 0x51a   :  { %5108 = vmatprep.mubr.bf16.mxu1 %v6336_v20  ;;  %4915 = vmatprep.mubr.bf16.mxu0 %v6381_v23  ;;  %v9328_v20 = vpop.permute.xlu1 %3898 }
 0x51b   :  { %v9254_v48 = vpop.f32.mrf.mxu0  ;;  %10528 = vst [vmem:[#allocation41_spill] sm:$0xff] %v9328_v20  ;;  %v6394_v20 = vld [vmem:[#allocation5 + $0x268] ss:$16 sps:$4 sm:$0xff]  }
 0x51d   :  { %v9256_v26 = vpop.f32.mrf.mxu0 }
 0x51f   :  { %v9260_v44 = vpop.f32.mrf.mxu0 }
 0x521   :  { %5109 = vmatmul.mubr.bf16.gmra.mxu1 %v6334_v31  ;;  %v9262_v32 = vpop.f32.mrf.mxu0  ;;  %4916 = vmatmul.mubr.bf16.gmra.mxu0 %v6379_v30  ;;  %v9334_v30 = vpop.permute.xlu0 %3902 }
 0x522   :  { %5118 = vmatprep.mubr.bf16.mxu1 %v6342_v15  ;;  %4925 = vmatprep.mubr.bf16.mxu0 %v6387_v59  ;;  %10529 = vst [vmem:[#allocation72_spill] sm:$0xff] %v9334_v30  ;;  %v6370_v15 = vld [vmem:[#allocation5 + $0x1e8] ss:$16 sps:$4 sm:$0xff]  }
 0x523   :  { %v9266_v47 = vpop.f32.mrf.mxu0 }
 0x525   :  { %v9270_v11 = vpop.f32.mrf.mxu0 }
 0x527   :  { %v9272_v54 = vpop.f32.mrf.mxu0 }
 0x529   :  { %5119 = vmatmul.mubr.bf16.gmra.mxu1 %v6340_v60  ;;  %v9276_v45 = vpop.f32.mrf.mxu0  ;;  %4926 = vmatmul.mubr.bf16.gmra.mxu0 %v6385_v18  ;;  %v6415_v60 = vld [vmem:[#allocation5 + $0x3e0] ss:$16 sps:$4 sm:$0xff]   ;;  %v6378_v18 = vld [vmem:[#allocation5 + $0x20c] ss:$16 sps:$4 sm:$0xff]  }
 0x52a   :  { %5128 = vmatprep.mubr.bf16.mxu1 %v6348_v22  ;;  %4935 = vmatprep.mubr.bf16.mxu0 %v6393_v56  ;;  %v9338_v22 = vpop.permute.xlu1 %3762 }
 0x52b   :  { %v9280_v43 = vpop.f32.mrf.mxu0 }
 0x52d   :  { %v9282_v55 = vpop.f32.mrf.mxu0 }
 0x52f   :  { %v9286_v40 = vpop.f32.mrf.mxu0 }
 0x531   :  { %5129 = vmatmul.mubr.bf16.gmra.mxu1 %v6346_v37  ;;  %v9290_v7 = vpop.f32.mrf.mxu0  ;;  %4936 = vmatmul.mubr.bf16.gmra.mxu0 %v6391_v39  ;;  %v9344_v39 = vpop.permute.xlu0 %3766 }
 0x532   :  { %5138 = vmatprep.mubr.bf16.mxu1 %v6354_v3  ;;  %4945 = vmatprep.mubr.bf16.mxu0 %v6399_v29  ;;  %v9348_v29 = vpop.permute.xlu1 %3890 }
 0x533   :  { %v9292_v61 = vpop.f32.mrf.mxu0  ;;  %10530 = vst [vmem:[#allocation68_spill] sm:$0xff] %v9348_v29  ;;  %v6402_v29 = vld [vmem:[#allocation5 + $0x28c] ss:$16 sps:$4 sm:$0xff]  }
 0x535   :  { %v9296_v16 = vpop.f32.mrf.mxu0 }
 0x537   :  { %v9300_v24 = vpop.f32.mrf.mxu0 }
 0x539   :  { %5139 = vmatmul.mubr.bf16.gmra.mxu1 %v6352_v19  ;;  %v9302_v9 = vpop.f32.mrf.mxu0  ;;  %4946 = vmatmul.mubr.bf16.gmra.mxu0 %v6397_v34  ;;  %v6376_v19 = vld [vmem:[#allocation5 + $0x208] ss:$16 sps:$4 sm:$0xff]  }
 0x53a   :  { %5148 = vmatprep.mubr.bf16.mxu1 %v6360_v49  ;;  %4955 = vmatprep.mubr.bf16.mxu0 %v6405_v12  ;;  %v6384_v49 = vld [vmem:[#allocation5 + $0x22c] ss:$16 sps:$4 sm:$0xff]  }
 0x53b   :  { %v9306_v21 = vpop.f32.mrf.mxu0 }
 0x53d   :  { %v9310_v58 = vpop.f32.mrf.mxu0 }
 0x53f   :  { %v9312_v13 = vpop.f32.mrf.mxu0 }
 0x541   :  { %5149 = vmatmul.mubr.bf16.gmra.mxu1 %v6358_v53  ;;  %v9316_v0 = vpop.f32.mrf.mxu0  ;;  %4956 = vmatmul.mubr.bf16.gmra.mxu0 %v6403_v33  ;;  %v9354_v53 = vpop.permute.xlu0 %3894 }
 0x542   :  { %5158 = vmatprep.mubr.bf16.mxu1 %v6366_v8  ;;  %4965 = vmatprep.mubr.bf16.mxu0 %v6411_v17  ;;  %10531 = vst [vmem:[#allocation27_spill] sm:$0xff] %v9354_v53  ;;  %v9358_v8 = vpop.permute.xlu1 %3754 }
 0x543   :  { %v9320_v42 = vpop.f32.mrf.mxu0 }
 0x545   :  { %v9322_v28 = vpop.f32.mrf.mxu0 }
 0x547   :  { %v9326_v51 = vpop.f32.mrf.mxu0 }
 0x549   :  { %5159 = vmatmul.mubr.bf16.gmra.mxu1 %v6364_v35  ;;  %v9330_v23 = vpop.f32.mrf.mxu0  ;;  %4966 = vmatmul.mubr.bf16.gmra.mxu0 %v6409_v2  ;;  %v6382_v35 = vld [vmem:[#allocation5 + $0x228] ss:$16 sps:$4 sm:$0xff]  }
 0x54a   :  { %5168 = vmatprep.mubr.bf16.mxu1 %v6372_v57  ;;  %4975 = vmatprep.mubr.bf16.mxu0 %v6417_v27  ;;  %v6390_v57 = vld [vmem:[#allocation5 + $0x24c] ss:$16 sps:$4 sm:$0xff]   ;;  %v9364_v27 = vpop.permute.xlu0 %3758 }
 0x54b   :  { %v9332_v31 = vpop.f32.mrf.mxu0 }
 0x54d   :  { %v9336_v59 = vpop.f32.mrf.mxu0 }
 0x54f   :  { %v9340_v56 = vpop.f32.mrf.mxu0 }
 0x551   :  { %5169 = vmatmul.mubr.bf16.gmra.mxu1 %v6370_v15  ;;  %v9342_v37 = vpop.f32.mrf.mxu0  ;;  %4976 = vmatmul.mubr.bf16.gmra.mxu0 %v6415_v60  ;;  %v9368_v60 = vpop.permute.xlu1 %3882 }
 0x552   :  { %5178 = vmatprep.mubr.bf16.mxu1 %v6378_v18  ;;  %10535 = vst [vmem:[#allocation23_spill] sm:$0xff] %v9368_v60 }
 0x553   :  { %v9346_v3 = vpop.f32.mrf.mxu0 }
 0x555   :  { %v9350_v34 = vpop.f32.mrf.mxu0  ;;  %v9378_v1 = vpop.permute.xlu1 %3746 }
 0x557   :  { %v9352_v12 = vpop.f32.mrf.mxu0 }
 0x559   :  { %5179 = vmatmul.mubr.bf16.gmra.mxu1 %v6376_v19  ;;  %v9356_v33 = vpop.f32.mrf.mxu0 }
 0x55a   :  { %5188 = vmatprep.mubr.bf16.mxu1 %v6384_v49  ;;  %v9374_v49 = vpop.permute.xlu0 %3886 }
 0x55b   :  { %v9360_v17 = vpop.f32.mrf.mxu0  ;;  %10538 = vst [vmem:[#allocation37_spill] sm:$0xff] %v9374_v49 }
 0x55c   :  { %10532 = vst [vmem:[#allocation70_spill] sm:$0xff] %v9360_v17 }
 0x55d   :  { %v9362_v2 = vpop.f32.mrf.mxu0 }
 0x55e   :  { %10533 = vst [vmem:[#allocation25_spill] sm:$0xff] %v9362_v2 }
 0x55f   :  { %v9366_v15 = vpop.f32.mrf.mxu0 }
 0x560   :  { %10534 = vst [vmem:[#allocation14_spill] sm:$0xff] %v9366_v15 }
 0x561   :  { %5189 = vmatmul.mubr.bf16.gmra.mxu1 %v6382_v35  ;;  %v9370_v18 = vpop.f32.mrf.mxu0  ;;  %v9384_v35 = vpop.permute.xlu0 %3750 }
 0x562   :  { %10536 = vst [vmem:[#allocation46_spill] sm:$0xff] %v9370_v18  ;;  %5198 = vmatprep.mubr.bf16.mxu1 %v6390_v57  ;;  %v9388_v57 = vpop.permute.xlu1 %3874 }
 0x563   :  { %v9372_v19 = vpop.f32.mrf.mxu0  ;;  %10543 = vst [vmem:[#allocation63_spill] sm:$0xff] %v9388_v57 }
 0x564   :  { %10537 = vst [vmem:[#allocation42_spill] sm:$0xff] %v9372_v19 }
 0x565   :  { %v9376_v10 = vpop.f32.mrf.mxu0  ;;  %v9394_v60 = vpop.permute.xlu0 %3878 }
 0x566   :  { %10539 = vst [vmem:[#allocation49_spill] sm:$0xff] %v9376_v10  ;;  %10546 = vst [vmem:[#allocation21_spill] sm:$0xff] %v9394_v60 }
 0x567   :  { %v9380_v36 = vpop.f32.mrf.mxu0 }
 0x568   :  { %10540 = vst [vmem:[#allocation48_spill] sm:$0xff] %v9380_v36 }
 0x569   :  { %5199 = vmatmul.mubr.bf16.gmra.mxu1 %v6388_v46  ;;  %v9382_v63 = vpop.f32.mrf.mxu0  ;;  %v3739_v46 = vpop.permute.xlu1 %3738 }
 0x56a   :  { %10541 = vst [vmem:[#allocation40_spill] sm:$0xff] %v9382_v63  ;;  %5208 = vmatprep.mubr.bf16.mxu1 %v6396_v25  ;;  %v6400_v63 = vld [vmem:[#allocation5 + $0x288] ss:$16 sps:$4 sm:$0xff]   ;;  %v3743_v57 = vpop.permute.xlu0 %3742 }
 0x56b   :  { %v9386_v30 = vpop.f32.mrf.mxu0 }
 0x56c   :  { %10542 = vst [vmem:[#allocation13_spill] sm:$0xff] %v9386_v30  ;;  %v6408_v30 = vld [vmem:[#allocation5 + $0x2ac] ss:$16 sps:$4 sm:$0xff]  }
 0x56d   :  { %v9390_v53 = vpop.f32.mrf.mxu0 }
 0x56e   :  { %10544 = vst [vmem:[#allocation65_spill] sm:$0xff] %v9390_v53  ;;  %v9404_v53 = vpop.permute.xlu1 %3866  ;;  %v9410_v60 = vpop.permute.xlu0 %3870 }
 0x56f   :  { %v9392_v49 = vpop.f32.mrf.mxu0  ;;  %10551 = vst [vmem:[#allocation53_spill] sm:$0xff] %v9404_v53  ;;  %10554 = vst [vmem:[#allocation44_spill] sm:$0xff] %v9410_v60 }
 0x570   :  { %10545 = vst [vmem:[#allocation15_spill] sm:$0xff] %v9392_v49 }
 0x571   :  { %5209 = vmatmul.mubr.bf16.gmra.mxu1 %v6394_v20  ;;  %v9396_v36 = vpop.f32.mrf.mxu0 }
 0x572   :  { %10547 = vst [vmem:[#allocation33_spill] sm:$0xff] %v9396_v36  ;;  %5218 = vmatprep.mubr.bf16.mxu1 %v6402_v29  ;;  %v6406_v29 = vld [vmem:[#allocation5 + $0x2a8] ss:$16 sps:$4 sm:$0xff]   ;;  %v9414_v18 = vpop.permute.xlu1 %3858 }
 0x573   :  { %v9398_v25 = vpop.f32.mrf.mxu0  ;;  %10556 = vst [vmem:[#allocation55_spill] sm:$0xff] %v9414_v18 }
 0x574   :  { %10548 = vst [vmem:[#allocation38_spill] sm:$0xff] %v9398_v25  ;;  %v6414_v25 = vld [vmem:[#allocation5 + $0x2cc] ss:$16 sps:$4 sm:$0xff]  }
 0x575   :  { %v9400_v10 = vpop.f32.mrf.mxu0 }
 0x576   :  { %10549 = vst [vmem:[#allocation61_spill] sm:$0xff] %v9400_v10 }
 0x577   :  { %v9402_v19 = vpop.f32.mrf.mxu0 }
 0x578   :  { %10550 = vst [vmem:[#allocation20_spill] sm:$0xff] %v9402_v19 }
 0x579   :  { %5219 = vmatmul.mubr.bf16.gmra.mxu1 %v6400_v63  ;;  %v9406_v49 = vpop.f32.mrf.mxu0  ;;  %v9420_v63 = vpop.permute.xlu0 %3862 }
 0x57a   :  { %10552 = vst [vmem:[#allocation45_spill] sm:$0xff] %v9406_v49  ;;  %5228 = vmatprep.mubr.bf16.mxu1 %v6408_v30  ;;  %10559 = vst [vmem:[#allocation17_spill] sm:$0xff] %v9420_v63  ;;  %v9424_v30 = vpop.permute.xlu1 %3986  ;;  %v6420_v49 = vld [vmem:[#allocation5 + $0x2ec] ss:$16 sps:$4 sm:$0xff]   ;;  %v6418_v63 = vld [vmem:[#allocation5 + $0x2e8] ss:$16 sps:$4 sm:$0xff]  }
 0x57b   :  { %v9408_v20 = vpop.f32.mrf.mxu0  ;;  %10561 = vst [vmem:[#allocation24_spill] sm:$0xff] %v9424_v30  ;;  %v6423_v30 = vld [vmem:[#allocation5 + $0x30c] ss:$16 sps:$4 sm:$0xff]  }
 0x57c   :  { %10553 = vst [vmem:[#allocation36_spill] sm:$0xff] %v9408_v20  ;;  %v6412_v20 = vld [vmem:[#allocation5 + $0x2c8] ss:$16 sps:$4 sm:$0xff]  }
 0x57d   :  { %v9412_v36 = vpop.f32.mrf.mxu0  ;;  %v9430_v15 = vpop.permute.xlu0 %3990 }
 0x57e   :  { %10555 = vst [vmem:[#allocation43_spill] sm:$0xff] %v9412_v36  ;;  %10564 = vst [vmem:[#allocation22_spill] sm:$0xff] %v9430_v15 }
 0x57f   :  { %v9416_v10 = vpop.f32.mrf.mxu0 }
 0x580   :  { %10557 = vst [vmem:[#allocation31_spill] sm:$0xff] %v9416_v10 }
 0x581   :  { %5229 = vmatmul.mubr.bf16.gmra.mxu1 %v6406_v29  ;;  %v9418_v19 = vpop.f32.mrf.mxu0  ;;  %v9434_v29 = vpop.permute.xlu1 %3850 }
 0x582   :  { %10558 = vst [vmem:[#allocation50_spill] sm:$0xff] %v9418_v19  ;;  %5238 = vmatprep.mubr.bf16.mxu1 %v6414_v25  ;;  %10566 = vst [vmem:[#allocation30_spill] sm:$0xff] %v9434_v29  ;;  %v9440_v19 = vpop.permute.xlu0 %3854 }
 0x583   :  { %v9422_v53 = vpop.f32.mrf.mxu0  ;;  %10569 = vst [vmem:[#allocation58_spill] sm:$0xff] %v9440_v19 }
 0x584   :  { %10560 = vst [vmem:[#allocation35_spill] sm:$0xff] %v9422_v53 }
 0x585   :  { %v9426_v60 = vpop.f32.mrf.mxu0  ;;  %v9444_v10 = vpop.permute.xlu1 %3978 }
 0x586   :  { %10562 = vst [vmem:[#allocation18_spill] sm:$0xff] %v9426_v60  ;;  %10571 = vst [vmem:[#allocation62_spill] sm:$0xff] %v9444_v10 }
 0x587   :  { %v9428_v36 = vpop.f32.mrf.mxu0 }
 0x588   :  { %10563 = vst [vmem:[#allocation19_spill] sm:$0xff] %v9428_v36 }
 0x589   :  { %5239 = vmatmul.mubr.bf16.gmra.mxu1 %v6412_v20  ;;  %v9432_v18 = vpop.f32.mrf.mxu0  ;;  %v9455_v29 = vpop.permute.xlu1 %3842 }
 0x58a   :  { %10565 = vst [vmem:[#allocation32_spill] sm:$0xff] %v9432_v18  ;;  %5248 = vmatprep.mubr.bf16.mxu1 %v6420_v49  ;;  %v9450_v49 = vpop.permute.xlu0 %3982  ;;  %v6421_v18 = vld [vmem:[#allocation5 + $0x308] ss:$16 sps:$4 sm:$0xff]   ;;  %10576 = vst [vmem:[#allocation28_spill] sm:$0xff] %v9455_v29 }
 0x58b   :  { %v9436_v25 = vpop.f32.mrf.mxu0  ;;  %10574 = vst [vmem:[#allocation71_spill] sm:$0xff] %v9450_v49 }
 0x58c   :  { %10567 = vst [vmem:[#allocation52_spill] sm:$0xff] %v9436_v25  ;;  %v6426_v25 = vld [vmem:[#allocation5 + $0x32c] ss:$16 sps:$4 sm:$0xff]  }
 0x58d   :  { %v9438_v53 = vpop.f32.mrf.mxu0  ;;  %v9467_v2 = vpop.permute.xlu1 %3970 }
 0x58e   :  { %10568 = vst [vmem:[#allocation39_spill] sm:$0xff] %v9438_v53  ;;  %v4668_v53 = vadd.f32 %v9252_v38, %v3739_v46  ;;  %v4672_v38 = vadd.f32 %v9256_v26, %v3743_v57  ;;  %10581 = vst [vmem:[#allocation60_spill] sm:$0xff] %v9467_v2  ;;  %v4680_v26 = vadd.f32 %v9266_v47, %v9378_v1 }
 0x58f   :  { %v9442_v60 = vpop.f32.mrf.mxu0 }
 0x590   :  { %10570 = vst [vmem:[#allocation56_spill] sm:$0xff] %v9442_v60 }
 0x591   :  { %5249 = vmatmul.mubr.bf16.gmra.mxu1 %v6418_v63  ;;  %v9446_v15 = vpop.f32.mrf.mxu0 }
 0x592   :  { %10572 = vst [vmem:[#allocation47_spill] sm:$0xff] %v9446_v15  ;;  %5258 = vmatprep.mubr.bf16.mxu1 %v6423_v30  ;;  %v4670_v30 = vadd.f32 %v9254_v48, %v3739_v46 }
 0x593   :  { %v9448_v20 = vpop.f32.mrf.mxu0 }
 0x594   :  { %10573 = vst [vmem:[#allocation51_spill] sm:$0xff] %v9448_v20  ;;  %v9462_v20 = vpop.permute.xlu0 %3846 }
 0x595   :  { %v9452_v36 = vpop.f32.mrf.mxu0  ;;  %10579 = vst [vmem:[#allocation11_spill] sm:$0xff] %v9462_v20 }
 0x596   :  { %10575 = vst [vmem:[#allocation16_spill] sm:$0xff] %v9452_v36 }
 0x597   :  { %v9457_v19 = vpop.f32.mrf.mxu0 }
 0x598   :  { %10577 = vst [vmem:[#allocation29_spill] sm:$0xff] %v9457_v19  ;;  %v6424_v19 = vld [vmem:[#allocation5 + $0x328] ss:$16 sps:$4 sm:$0xff]   ;;  %v9474_v17 = vpop.permute.xlu0 %3974 }
 0x599   :  { %v5020_v60 = vpop.f32.mrf.mxu1  ;;  %5259 = vmatmul.mubr.bf16.gmra.mxu1 %v6421_v18  ;;  %v9459_v63 = vpop.f32.mrf.mxu0  ;;  %v4678_v18 = vadd.f32 %v9262_v32, %v9378_v1  ;;  %10583 = vst [vmem:[#allocation73_spill] sm:$0xff] %v9474_v17  ;;  %v6427_v1 = vld [vmem:[#allocation5 + $0x348] ss:$16 sps:$4 sm:$0xff]  }
 0x59a   :  { %10578 = vst [vmem:[#allocation59_spill] sm:$0xff] %v9459_v63  ;;  %v5021_v10 = vadd.f32 %v5020_v60, %v4668_v53  ;;  %5268 = vmatprep.mubr.bf16.mxu1 %v6426_v25  ;;  %v4674_v63 = vadd.f32 %v9260_v44, %v3743_v57  ;;  %v6429_v53 = vld [vmem:[#allocation5 + $0x34c] ss:$16 sps:$4 sm:$0xff]   ;;  %v9480_v57 = vpop.permute.xlu1 %3834 }
 0x59b   :  { %v5022_v49 = vpop.f32.mrf.mxu1  ;;  %v9464_v15 = vpop.f32.mrf.mxu0  ;;  %10584 = vst [vmem:[#allocation74_spill] sm:$0xff] %v9480_v57  ;;  %v10611_v57 = vld [vmem:[#allocation14_spill] sm:$0xff] }
 0x59c   :  { %10580 = vst [vmem:[#allocation26_spill] sm:$0xff] %v9464_v15  ;;  %v5023_v36 = vadd.f32 %v5022_v49, %v4670_v30  ;;  %v5339_v25 = vmax.f32 %v5021_v10, 0.0  ;;  %v4682_v10 = vadd.f32 %v9270_v11, %v9384_v35 }
 0x59d   :  { %v5024_v29 = vpop.f32.mrf.mxu1  ;;  %v9472_v46 = vpop.f32.mrf.mxu0 }
 0x59e   :  { %v5025_v48 = vadd.f32 %v5024_v29, %v4672_v38  ;;  %10582 = vst [vmem:[#allocation12_spill] sm:$0xff] %v9472_v46  ;;  %v5340_v30 = vmax.f32 %v5023_v36, 0.0  ;;  %v4688_v36 = vadd.f32 %v9276_v45, %v9358_v8 }
 0x59f   :  { %v5026_v60 = vpop.f32.mrf.mxu1  ;;  %v9482_v38 = vpop.f32.mrf.mxu0 }
 0x5a0   :  { %v5341_v20 = vmax.f32 %v5025_v48, 0.0  ;;  %v5027_v15 = vadd.f32 %v5026_v60, %v4674_v63  ;;  %10585 = vst [vmem:[#allocation75_spill] sm:$0xff] %v9482_v38 }
 0x5a1   :  { %v5030_v49 = vpop.f32.mrf.mxu1  ;;  %5269 = vmatmul.mubr.bf16.gmra.mxu1 %v6424_v19  ;;  %v9494_v60 = vpop.f32.mrf.mxu0 }
 0x5a2   :  { %v9478_v2 = vpack.c.bf16 %v5341_v20, %v5339_v25  ;;  %v5342_v32 = vmax.f32 %v5027_v15, 0.0  ;;  %v5031_v44 = vadd.f32 %v5030_v49, %v4678_v18  ;;  %5278 = vmatprep.mubr.bf16.mxu1 %v6429_v53  ;;  %v4684_v15 = vadd.f32 %v9272_v54, %v9384_v35  ;;  %v6432_v20 = vld [vmem:[#allocation5 + $0x36c] ss:$16 sps:$4 sm:$0xff]   ;;  %v9492_v18 = vpop.permute.xlu0 %3838  ;;  %10587 = vst [vmem:[#allocation77_spill] sm:$0xff] %v9494_v60  ;;  %v9496_v49 = vpop.permute.xlu1 %3962 }
 0x5a3   :  { %v5032_v29 = vpop.f32.mrf.mxu1  ;;  %10586 = vst [vmem:[#allocation76_spill] sm:$0xff] %v9492_v18  ;;  %10588 = vst [vmem:[#allocation78_spill] sm:$0xff] %v9496_v49  ;;  %v9500_v35 = vpop.f32.mrf.mxu0 }
 0x5a4   :  { %v5033_v63 = vadd.f32 %v5032_v29, %v4680_v26  ;;  %v9486_v48 = vpack.c.bf16 %v5342_v32, %v5340_v30  ;;  %v5343_v25 = vmax.f32 %v5031_v44, 0.0  ;;  %10589 = vst [vmem:[#allocation79_spill] sm:$0xff] %v9500_v35  ;;  %v4690_v44 = vadd.f32 %v9280_v43, %v9358_v8 }
 0x5a5   :  { %v5034_v47 = vpop.f32.mrf.mxu1  ;;  %v4698_v43 = vadd.f32 %v9290_v7, %v9338_v22  ;;  %v4700_v7 = vadd.f32 %v9292_v61, %v9338_v22 }
 0x5a6   :  { %v5035_v19 = vadd.f32 %v5034_v47, %v4682_v10  ;;  %v5344_v32 = vmax.f32 %v5033_v63, 0.0  ;;  %v4692_v10 = vadd.f32 %v9282_v55, %v9364_v27  ;;  %v9506_v47 = vpop.permute.xlu0 %3966  ;;  %v6430_v63 = vld [vmem:[#allocation5 + $0x368] ss:$16 sps:$4 sm:$0xff]  }
 0x5a7   :  { %v5036_v53 = vpop.f32.mrf.mxu1  ;;  %10590 = vst [vmem:[#allocation80_spill] sm:$0xff] %v9506_v47 }
 0x5a8   :  { %v5345_v11 = vmax.f32 %v5035_v19, 0.0  ;;  %v5037_v26 = vadd.f32 %v5036_v53, %v4684_v15  ;;  %v4694_v19 = vadd.f32 %v9286_v40, %v9364_v27  ;;  %v6435_v53 = vld [vmem:[#allocation5 + $0x38c] ss:$16 sps:$4 sm:$0xff]  }
 0x5a9   :  { %v5040_v30 = vpop.f32.mrf.mxu1  ;;  %5279 = vmatmul.mubr.bf16.gmra.mxu1 %v6427_v1 }
 0x5aa   :  { %v9498_v29 = vpack.c.bf16 %v5345_v11, %v5343_v25  ;;  %v5346_v45 = vmax.f32 %v5037_v26, 0.0  ;;  %v5041_v17 = vadd.f32 %v5040_v30, %v4688_v36  ;;  %5288 = vmatprep.mubr.bf16.mxu1 %v6432_v20  ;;  %v9512_v25 = vpop.permute.xlu1 %3826  ;;  %v9514_v26 = vpop.f32.mrf.mxu0 }
 0x5ab   :  { %v5042_v54 = vpop.f32.mrf.mxu1  ;;  %10591 = vst [vmem:[#allocation81_spill] sm:$0xff] %v9514_v26  ;;  %v9520_v27 = vpop.permute.xlu0 %3830 }
 0x5ac   :  { %v9508_v15 = vpack.c.bf16 %v5346_v45, %v5344_v32  ;;  %v5043_v36 = vadd.f32 %v5042_v54, %v4690_v44  ;;  %v5347_v55 = vmax.f32 %v5041_v17, 0.0  ;;  %10592 = vst [vmem:[#allocation82_spill] sm:$0xff] %v9520_v27  ;;  %v4702_v44 = vadd.f32 %v9296_v16, %v9344_v39 }
 0x5ad   :  { %v5044_v1 = vpop.f32.mrf.mxu1 }
 0x5ae   :  { %v5045_v20 = vadd.f32 %v5044_v1, %v4692_v10  ;;  %v5348_v45 = vmax.f32 %v5043_v36, 0.0  ;;  %v9522_v10 = vpop.f32.mrf.mxu0  ;;  %v9528_v1 = vpop.permute.xlu1 %3954  ;;  %v6433_v36 = vld [vmem:[#allocation5 + $0x388] ss:$16 sps:$4 sm:$0xff]  }
 0x5af   :  { %v5046_v11 = vpop.f32.mrf.mxu1  ;;  %10593 = vst [vmem:[#allocation83_spill] sm:$0xff] %v9522_v10  ;;  %10594 = vst [vmem:[#allocation84_spill] sm:$0xff] %v9528_v1  ;;  %v9536_v61 = vpop.permute.xlu0 %3958 }
 0x5b0   :  { %v5349_v8 = vmax.f32 %v5045_v20, 0.0  ;;  %v5047_v30 = vadd.f32 %v5046_v11, %v4694_v19  ;;  %v4704_v20 = vadd.f32 %v9300_v24, %v9344_v39  ;;  %10596 = vst [vmem:[#allocation86_spill] sm:$0xff] %v9536_v61 }
 0x5b1   :  { %v5050_v32 = vpop.f32.mrf.mxu1  ;;  %5289 = vmatmul.mubr.bf16.gmra.mxu1 %v6430_v63 }
 0x5b2   :  { %v9518_v49 = vpack.c.bf16 %v5349_v8, %v5347_v55  ;;  %v5350_v40 = vmax.f32 %v5047_v30, 0.0  ;;  %5298 = vmatprep.mubr.bf16.mxu1 %v6435_v53  ;;  %v5051_v17 = vadd.f32 %v5050_v32, %v4698_v43  ;;  %v6438_v55 = vld [vmem:[#allocation5 + $0x3ac] ss:$16 sps:$4 sm:$0xff]   ;;  %v9534_v30 = vpop.f32.mrf.mxu0  ;;  %v9542_v24 = vpop.permute.xlu1 %3818 }
 0x5b3   :  { %v5052_v54 = vpop.f32.mrf.mxu1  ;;  %10595 = vst [vmem:[#allocation85_spill] sm:$0xff] %v9534_v30 }
 0x5b4   :  { %v9530_v63 = vpack.c.bf16 %v5350_v40, %v5348_v45  ;;  %v5053_v53 = vadd.f32 %v5052_v54, %v4700_v7  ;;  %v5351_v16 = vmax.f32 %v5051_v17, 0.0  ;;  %v9546_v40 = vpop.f32.mrf.mxu0  ;;  %v6436_v7 = vld [vmem:[#allocation5 + $0x3a8] ss:$16 sps:$4 sm:$0xff]   ;;  %v9552_v17 = vpop.permute.xlu0 %3822 }
 0x5b5   :  { %v5054_v19 = vpop.f32.mrf.mxu1  ;;  %10597 = vst [vmem:[#allocation87_spill] sm:$0xff] %v9546_v40  ;;  %v6442_v40 = vld [vmem:[#allocation5 + $0x3e8] ss:$16 sps:$4 sm:$0xff]  }
 0x5b6   :  { %v5055_v11 = vadd.f32 %v5054_v19, %v4702_v44  ;;  %v5352_v43 = vmax.f32 %v5053_v53, 0.0  ;;  %v6441_v19 = vld [vmem:[#allocation5 + $0x3cc] ss:$16 sps:$4 sm:$0xff]  }
 0x5b7   :  { %v5056_v8 = vpop.f32.mrf.mxu1 }
 0x5b8   :  { %v5353_v47 = vmax.f32 %v5055_v11, 0.0  ;;  %v5057_v10 = vadd.f32 %v5056_v8, %v4704_v20 }
 0x5b9   :  { %v9538_v22 = vpop.f32.mrf.mxu1  ;;  %5299 = vmatmul.mubr.bf16.gmra.mxu1 %v6433_v36 }
 0x5ba   :  { %v9540_v32 = vpack.c.bf16 %v5353_v47, %v5351_v16  ;;  %v5354_v45 = vmax.f32 %v5057_v10, 0.0  ;;  %5308 = vmatprep.mubr.bf16.mxu1 %v6438_v55  ;;  %v9556_v47 = vpop.f32.mrf.mxu0  ;;  %v9558_v10 = vpop.permute.xlu1 %3946  ;;  %v6439_v16 = vld [vmem:[#allocation5 + $0x3c8] ss:$16 sps:$4 sm:$0xff]  }
 0x5bb   :  { %v9544_v39 = vpop.f32.mrf.mxu1  ;;  %10598 = vst [vmem:[#allocation88_spill] sm:$0xff] %v9556_v47  ;;  %10599 = vst [vmem:[#allocation89_spill] sm:$0xff] %v9558_v10  ;;  %v9566_v55 = vpop.permute.xlu0 %3950 }
 0x5bc   :  { %v9548_v54 = vpack.c.bf16 %v5354_v45, %v5352_v43  ;;  %v9564_v11 = vpop.f32.mrf.mxu0  ;;  %10601 = vst [vmem:[#allocation91_spill] sm:$0xff] %v9566_v55  ;;  %v6444_v45 = vld [vmem:[#allocation5 + $0x3ec] ss:$16 sps:$4 sm:$0xff]  }
 0x5bd   :  { %v9550_v44 = vpop.f32.mrf.mxu1  ;;  %10600 = vst [vmem:[#allocation90_spill] sm:$0xff] %v9564_v11 }
 0x5be   :  { %v9570_v43 = vpop.permute.xlu1 %3810  ;;  %v9572_v61 = vpop.f32.mrf.mxu0 }
 0x5bf   :  { %v9554_v36 = vpop.f32.mrf.mxu1  ;;  %10602 = vst [vmem:[#allocation92_spill] sm:$0xff] %v9572_v61  ;;  %v9574_v47 = vpop.permute.xlu0 %3814 }
 0x5c1   :  { %v9560_v20 = vpop.f32.mrf.mxu1  ;;  %5309 = vmatmul.mubr.bf16.gmra.mxu1 %v6436_v7 }
 0x5c2   :  { %5318 = vmatprep.mubr.bf16.mxu1 %v6441_v19  ;;  %v9576_v19 = vpop.f32.mrf.mxu0  ;;  %v9578_v11 = vpop.permute.xlu1 %3938 }
 0x5c3   :  { %v9562_v53 = vpop.f32.mrf.mxu1  ;;  %10603 = vst [vmem:[#allocation93_spill] sm:$0xff] %v9576_v19  ;;  %10604 = vst [vmem:[#allocation94_spill] sm:$0xff] %v9578_v11  ;;  %v9582_v35 = vpop.permute.xlu0 %3942  ;;  %v9592_v11 = vadd.f32 %v9310_v58, %v9324_v4  ;;  %v4738_v19 = vadd.f32 %v9342_v37, %v9264_v62  ;;  %v4718_v58 = vadd.f32 %v9316_v0, %v9298_v41 }
 0x5c4   :  { %v9580_v26 = vpop.f32.mrf.mxu0  ;;  %10606 = vst [vmem:[#allocation96_spill] sm:$0xff] %v9582_v35  ;;  %v4740_v35 = vadd.f32 %v9346_v3, %v9264_v62  ;;  %v4730_v37 = vadd.f32 %v9332_v31, %v9278_v5  ;;  %v4728_v0 = vadd.f32 %v9330_v23, %v9278_v5 }
 0x5c5   :  { %v9568_v8 = vpop.f32.mrf.mxu1  ;;  %10605 = vst [vmem:[#allocation95_spill] sm:$0xff] %v9580_v26 }
 0x5c6   :  { %v3803_v61 = vpop.permute.xlu1 %3802  ;;  %v9596_v38 = vpop.f32.mrf.mxu0 }
 0x5c7   :  { %v5076_v1 = vpop.f32.mrf.mxu1  ;;  %10607 = vst [vmem:[#allocation97_spill] sm:$0xff] %v9596_v38  ;;  %v3807_v62 = vpop.permute.xlu0 %3806  ;;  %v4748_v3 = vadd.f32 %v9356_v33, %v3803_v61 }
 0x5c8   :  { %v9621_v18 = vpop.f32.mrf.mxu0 }
 0x5c9   :  { %v5080_v10 = vpop.f32.mrf.mxu1  ;;  %5319 = vmatmul.mubr.bf16.gmra.mxu1 %v6439_v16  ;;  %v9586_v16 = vadd.f32 %v9302_v9, %v9318_v6  ;;  %v4734_v9 = vadd.f32 %v9340_v56, %v9284_v50  ;;  %10608 = vst [vmem:[#allocation98_spill] sm:$0xff] %v9621_v18 }
 0x5ca   :  { %5328 = vmatprep.mubr.bf16.mxu1 %v6444_v45  ;;  %v4710_v45 = vadd.f32 %v9306_v21, %v9318_v6  ;;  %v4742_v21 = vadd.f32 %v9350_v34, %v9258_v14  ;;  %v4720_v6 = vadd.f32 %v9320_v42, %v9298_v41  ;;  %v4724_v34 = vadd.f32 %v9326_v51, %v9304_v52 }
 0x5cb   :  { %v5082_v7 = vpop.f32.mrf.mxu1  ;;  %v4732_v41 = vadd.f32 %v9336_v59, %v9284_v50 }
 0x5cd   :  { %v5084_v55 = vpop.f32.mrf.mxu1 }
 0x5cf   :  { %v5086_v30 = vpop.f32.mrf.mxu1 }
 0x5d0   :  { %v5087_v56 = vadd.f32 %v5086_v30, %v4734_v9  ;;  %v5077_v30 = vadd.f32 %v5076_v1, %v4724_v34  ;;  %v5085_v9 = vadd.f32 %v5084_v55, %v4732_v41 }
 0x5d1   :  { %v5090_v60 = vpop.f32.mrf.mxu1  ;;  %5329 = vmatmul.mubr.bf16.gmra.mxu1 %v6442_v40  ;;  %v4714_v40 = vadd.f32 %v9312_v13, %v9324_v4  ;;  %v4744_v13 = vadd.f32 %v9352_v12, %v9258_v14  ;;  %v4722_v14 = vadd.f32 %v9322_v28, %v9304_v52  ;;  %v5083_v12 = vadd.f32 %v5082_v7, %v4730_v37  ;;  %v9629_v7 = vpop.f32.mrf.mxu0 }
 0x5d2   :  { %v5091_v42 = vadd.f32 %v5090_v60, %v4738_v19  ;;  %v5366_v23 = vmax.f32 %v5087_v56, 0.0  ;;  %v5073_v60 = vadd.f32 %v9562_v53, %v4720_v6  ;;  %v5081_v19 = vadd.f32 %v5080_v10, %v4728_v0  ;;  %v10613_v53 = vld [vmem:[#allocation46_spill] sm:$0xff] }
 0x5d3   :  { %v5092_v26 = vpop.f32.mrf.mxu1  ;;  %v4754_v52 = vadd.f32 %v10611_v57, %v3807_v62  ;;  %v5067_v1 = vadd.f32 %v9554_v36, %v4714_v40  ;;  %v5075_v37 = vadd.f32 %v9568_v8, %v4722_v14  ;;  %v4758_v10 = vadd.f32 %v10613_v53, %v9570_v43  ;;  %v10614_v6 = vld [vmem:[#allocation42_spill] sm:$0xff]  ;;  %v9639_v41 = vpop.f32.mrf.mxu0 }
 0x5d4   :  { %v5093_v38 = vadd.f32 %v5092_v26, %v4740_v35  ;;  %v10609_v35 = vld [vmem:[#allocation70_spill] sm:$0xff]  ;;  %v5367_v18 = vmax.f32 %v5091_v42, 0.0  ;;  %v4760_v57 = vadd.f32 %v10614_v6, %v9570_v43  ;;  %v5063_v36 = vadd.f32 %v9544_v39, %v4710_v45 }
 0x5d5   :  { %v5094_v4 = vpop.f32.mrf.mxu1  ;;  %v4750_v26 = vadd.f32 %v10609_v35, %v3803_v61  ;;  %10612 = vst [vmem:[#allocation70_spill] sm:$0xff] %v9629_v7  ;;  %v5364_v61 = vmax.f32 %v5083_v12, 0.0  ;;  %v5360_v40 = vmax.f32 %v5073_v60, 0.0  ;;  %v5363_v0 = vmax.f32 %v5081_v19, 0.0  ;;  %v10620_v19 = vld [vmem:[#allocation40_spill] sm:$0xff] }
 0x5d6   :  { %v5095_v46 = vadd.f32 %v5094_v4, %v4742_v21  ;;  %v10610_v21 = vld [vmem:[#allocation25_spill] sm:$0xff]  ;;  %v5368_v27 = vmax.f32 %v5093_v38, 0.0  ;;  %v5365_v38 = vmax.f32 %v5085_v9, 0.0  ;;  %v5358_v43 = vmax.f32 %v5067_v1, 0.0 }
 0x5d7   :  { %v5096_v31 = vpop.f32.mrf.mxu1  ;;  %v4752_v4 = vadd.f32 %v10610_v21, %v3807_v62  ;;  %v5482_v62 = vpack.c.bf16 %v5366_v23, %v5364_v61  ;;  %10615 = vst [vmem:[#allocation25_spill] sm:$0xff] %v9639_v41  ;;  %v5361_v12 = vmax.f32 %v5075_v37, 0.0  ;;  %v10618_v21 = vld [vmem:[#allocation49_spill] sm:$0xff] }
 0x5d8   :  { %v5097_v33 = vadd.f32 %v5096_v31, %v4744_v13  ;;  %v5369_v51 = vmax.f32 %v5095_v46, 0.0  ;;  %v5362_v13 = vmax.f32 %v5077_v30, 0.0  ;;  %v5061_v30 = vadd.f32 %v9538_v22, %v9586_v16  ;;  %v10621_v22 = vld [vmem:[#allocation48_spill] sm:$0xff] }
 0x5d9   :  { %v5100_v5 = vpop.f32.mrf.mxu1  ;;  %v4764_v16 = vadd.f32 %v10621_v22, %v9574_v47  ;;  %v10642_v22 = vld [vmem:[#allocation45_spill] sm:$0xff] }
 0x5da   :  { %v5370_v50 = vmax.f32 %v5097_v33, 0.0  ;;  %v5101_v59 = vadd.f32 %v5100_v5, %v4748_v3  ;;  %v5483_v56 = vpack.c.bf16 %v5369_v51, %v5367_v18  ;;  %v5065_v18 = vadd.f32 %v9550_v44, %v9592_v11  ;;  %v9647_v44 = vpop.f32.mrf.mxu0 }
 0x5db   :  { %v5102_v28 = vpop.f32.mrf.mxu1  ;;  %v5480_v35 = vpack.c.bf16 %v5362_v13, %v5360_v40  ;;  %10617 = vst [vmem:[#allocation46_spill] sm:$0xff] %v9647_v44  ;;  %v5356_v11 = vmax.f32 %v5063_v36, 0.0  ;;  %v5355_v61 = vmax.f32 %v5061_v30, 0.0 }
 0x5dc   :  { %v5484_v46 = vpack.c.bf16 %v5370_v50, %v5368_v27  ;;  %v5103_v55 = vadd.f32 %v5102_v28, %v4750_v26  ;;  %v5071_v27 = vadd.f32 %v9560_v20, %v4718_v58  ;;  %v5371_v42 = vmax.f32 %v5101_v59, 0.0 }
 0x5dd   :  { %v5104_v3 = vpop.f32.mrf.mxu1  ;;  %v5481_v26 = vpack.c.bf16 %v5365_v38, %v5363_v0  ;;  %v5357_v50 = vmax.f32 %v5065_v18, 0.0  ;;  %v5478_v1 = vpack.c.bf16 %v5358_v43, %v5356_v11 }
 0x5de   :  { %v5105_v34 = vadd.f32 %v5104_v3, %v4752_v4  ;;  %5547 = vmatprep.subr.bf16.mxu0 %v5484_v46  ;;  %v5372_v45 = vmax.f32 %v5103_v55, 0.0  ;;  %v5359_v9 = vmax.f32 %v5071_v27, 0.0  ;;  %v4762_v4 = vadd.f32 %v10618_v21, %v9574_v47  ;;  %v9657_v55 = vpop.f32.mrf.mxu0  ;;  %v10638_v21 = vld [vmem:[#allocation65_spill] sm:$0xff] }
 0x5df   :  { %v5106_v8 = vpop.f32.mrf.mxu1  ;;  %5548 = vmatpush1.bf16.msra.mxu0 %v5483_v56  ;;  %10622 = vst [vmem:[#allocation49_spill] sm:$0xff] %v9657_v55  ;;  %v5477_v56 = vpack.c.bf16 %v5357_v50, %v5355_v61  ;;  %v10668_v55 = vld [vmem:[#allocation59_spill] sm:$0xff] }
 0x5e0   :  { %v5373_v31 = vmax.f32 %v5105_v34, 0.0  ;;  %v5107_v14 = vadd.f32 %v5106_v8, %v4754_v52  ;;  %5549 = vmatprep.subr.bf16.mxu0 %v5482_v62  ;;  %v5479_v59 = vpack.c.bf16 %v5361_v12, %v5359_v9  ;;  %v4768_v52 = vadd.f32 %v10620_v19, %v9542_v24  ;;  %v9665_v62 = vpop.f32.mrf.mxu0 }
 0x5e1   :  { %v5110_v39 = vpop.f32.mrf.mxu1  ;;  %10625 = vst [vmem:[#allocation99_spill] sm:$0xff] %v9665_v62 }
 0x5e2   :  { %v9643_v20 = vpack.c.bf16 %v5373_v31, %v5371_v42  ;;  %v5374_v58 = vmax.f32 %v5107_v14, 0.0  ;;  %v5111_v33 = vadd.f32 %v5110_v39, %v4758_v10  ;;  %v9675_v40 = vpop.f32.mrf.mxu0 }
 0x5e3   :  { %v5112_v51 = vpop.f32.mrf.mxu1  ;;  %5550 = vmatpush1.bf16.msra.mxu0 %v5481_v26  ;;  %10628 = vst [vmem:[#allocation102_spill] sm:$0xff] %v9675_v40 }
 0x5e4   :  { %10616 = vst [vmem:[#allocation14_spill] sm:$0xff] %v9643_v20  ;;  %v9651_v5 = vpack.c.bf16 %v5374_v58, %v5372_v45  ;;  %v5113_v23 = vadd.f32 %v5112_v51, %v4760_v57  ;;  %5551 = vmatprep.subr.bf16.mxu0 %v5480_v35  ;;  %v5375_v37 = vmax.f32 %v5111_v33, 0.0  ;;  %v9683_v18 = vpop.f32.mrf.mxu0  ;;  %v10637_v51 = vld [vmem:[#allocation33_spill] sm:$0xff] }
 0x5e5   :  { %v5114_v60 = vpop.f32.mrf.mxu1  ;;  %10629 = vst [vmem:[#allocation103_spill] sm:$0xff] %v9683_v18  ;;  %v9721_v11 = vadd.f32 %v10637_v51, %v9512_v25  ;;  %v10662_v18 = vld [vmem:[#allocation11_spill] sm:$0xff] }
 0x5e6   :  { %10619 = vst [vmem:[#allocation42_spill] sm:$0xff] %v9651_v5  ;;  %v5115_v28 = vadd.f32 %v5114_v60, %v4762_v4  ;;  %v5376_v53 = vmax.f32 %v5113_v23, 0.0  ;;  %v9725_v4 = vadd.f32 %v10638_v21, %v9552_v17  ;;  %v10639_v23 = vld [vmem:[#allocation15_spill] sm:$0xff] }
 0x5e7   :  { %v5116_v46 = vpop.f32.mrf.mxu1  ;;  %5552 = vmatpush1.bf16.msra.mxu0 %v5479_v59  ;;  %v9729_v50 = vadd.f32 %v10639_v23, %v9552_v17  ;;  %v10640_v59 = vld [vmem:[#allocation13_spill] sm:$0xff]  ;;  %v10651_v21 = vld [vmem:[#allocation55_spill] sm:$0xff] }
 0x5e8   :  { %v5377_v13 = vmax.f32 %v5115_v28, 0.0  ;;  %v5117_v38 = vadd.f32 %v5116_v46, %v4764_v16  ;;  %5553 = vmatprep.subr.bf16.mxu0 %v5478_v1  ;;  %v9733_v60 = vadd.f32 %v10640_v59, %v9542_v24  ;;  %v10643_v28 = vld [vmem:[#allocation82_spill] sm:$0xff]  ;;  %v10644_v1 = vld [vmem:[#allocation61_spill] sm:$0xff]  ;;  %v10645_v46 = vld [vmem:[#allocation20_spill] sm:$0xff] }
 0x5e9   :  { %v5120_v3 = vpop.f32.mrf.mxu1  ;;  %v9741_v61 = vadd.f32 %v10644_v1, %v10643_v28  ;;  %v10652_v23 = vld [vmem:[#allocation47_spill] sm:$0xff]  ;;  %v10654_v1 = vld [vmem:[#allocation28_spill] sm:$0xff] }
 0x5ea   :  { %v9659_v10 = vpack.c.bf16 %v5377_v13, %v5375_v37  ;;  %v5378_v6 = vmax.f32 %v5117_v38, 0.0  ;;  %v9661_v57 = vadd.f32 %v5120_v3, %v4768_v52  ;;  %v10641_v52 = vld [vmem:[#allocation74_spill] sm:$0xff]  ;;  %v4784_v37 = vadd.f32 %v10645_v46, %v10643_v28  ;;  %v10647_v38 = vld [vmem:[#allocation36_spill] sm:$0xff]  ;;  %v10649_v3 = vld [vmem:[#allocation43_spill] sm:$0xff] }
 0x5eb   :  { %v9663_v47 = vpop.f32.mrf.mxu1  ;;  %5554 = vmatpush1.bf16.msra.mxu0 %v5477_v56  ;;  %v9737_v16 = vadd.f32 %v10642_v22, %v10641_v52  ;;  %v10646_v13 = vld [vmem:[#allocation38_spill] sm:$0xff]  ;;  %v4790_v24 = vadd.f32 %v10647_v38, %v10641_v52  ;;  %v10648_v56 = vld [vmem:[#allocation76_spill] sm:$0xff]  ;;  %v4818_v59 = vadd.f32 %v10652_v23, %v10651_v21  ;;  %v10658_v52 = vld [vmem:[#allocation51_spill] sm:$0xff] }
 0x5ec   :  { %10623 = vst [vmem:[#allocation40_spill] sm:$0xff] %v9659_v10  ;;  %10624 = vst [vmem:[#allocation48_spill] sm:$0xff] %v9661_v57  ;;  %v9667_v34 = vpack.c.bf16 %v5378_v6, %v5376_v53  ;;  %5555 = vmatprep.subr.bf16.mxu0 %v9548_v54  ;;  %v9747_v17 = vadd.f32 %v10646_v13, %v9512_v25  ;;  %v9753_v53 = vadd.f32 %v10649_v3, %v10648_v56  ;;  %v10650_v6 = vld [vmem:[#allocation31_spill] sm:$0xff]  ;;  %v10655_v46 = vld [vmem:[#allocation50_spill] sm:$0xff] }
 0x5ed   :  { %v9670_v36 = vpop.f32.mrf.mxu1  ;;  %v4794_v51 = vadd.f32 %v10650_v6, %v10648_v56  ;;  %v4798_v25 = vadd.f32 %v10655_v46, %v10654_v1  ;;  %v10656_v13 = vld [vmem:[#allocation58_spill] sm:$0xff]  ;;  %v4820_v38 = vadd.f32 %v10658_v52, %v10651_v21  ;;  %v10659_v3 = vld [vmem:[#allocation17_spill] sm:$0xff]  ;;  %v10661_v56 = vld [vmem:[#allocation35_spill] sm:$0xff] }
 0x5ee   :  { %10626 = vst [vmem:[#allocation100_spill] sm:$0xff] %v9667_v34  ;;  %10627 = vst [vmem:[#allocation101_spill] sm:$0xff] %v9670_v36  ;;  %v4800_v6 = vadd.f32 %v10661_v56, %v10654_v1  ;;  %v10663_v23 = vld [vmem:[#allocation18_spill] sm:$0xff]  ;;  %v10666_v46 = vld [vmem:[#allocation29_spill] sm:$0xff] }
 0x5ef   :  { %v9672_v27 = vpop.f32.mrf.mxu1  ;;  %5556 = vmatpush1.bf16.msra.mxu0 %v9540_v32  ;;  %v9691_v32 = vpop.f32.mrf.mxu0  ;;  %v4802_v40 = vadd.f32 %v10663_v23, %v10662_v18  ;;  %v10670_v1 = vld [vmem:[#allocation32_spill] sm:$0xff]  ;;  %v10671_v23 = vld [vmem:[#allocation39_spill] sm:$0xff]  ;;  %v10678_v34 = vld [vmem:[#allocation77_spill] sm:$0xff] }
 0x5f0   :  { %5557 = vmatprep.subr.bf16.mxu0 %v9530_v63  ;;  %10630 = vst [vmem:[#allocation104_spill] sm:$0xff] %v9691_v32  ;;  %v4812_v20 = vadd.f32 %v10671_v23, %v10656_v13 }
 0x5f1   :  { %v9678_v0 = vpop.f32.mrf.mxu1 }
 0x5f3   :  { %v9680_v8 = vpop.f32.mrf.mxu1  ;;  %5558 = vmatpush1.bf16.msra.mxu0 %v9518_v49  ;;  %v9699_v49 = vpop.f32.mrf.mxu0 }
 0x5f4   :  { %5559 = vmatprep.subr.bf16.mxu0 %v9508_v15  ;;  %10631 = vst [vmem:[#allocation105_spill] sm:$0xff] %v9699_v49 }
 0x5f5   :  { %v9686_v54 = vpop.f32.mrf.mxu1  ;;  %v9705_v43 = vpop.f32.mrf.mxu0 }
 0x5f6   :  { %10632 = vst [vmem:[#allocation106_spill] sm:$0xff] %v9705_v43  ;;  %v10657_v43 = vld [vmem:[#allocation56_spill] sm:$0xff] }
 0x5f7   :  { %v9688_v42 = vpop.f32.mrf.mxu1  ;;  %5560 = vmatpush1.bf16.msra.mxu0 %v9498_v29  ;;  %v9709_v35 = vpop.f32.mrf.mxu0  ;;  %v4814_v32 = vadd.f32 %v10657_v43, %v10656_v13  ;;  %v10667_v43 = vld [vmem:[#allocation53_spill] sm:$0xff] }
 0x5f8   :  { %5561 = vmatprep.subr.bf16.mxu0 %v9486_v48  ;;  %10633 = vst [vmem:[#allocation107_spill] sm:$0xff] %v9709_v35  ;;  %v4824_v35 = vadd.f32 %v10666_v46, %v10659_v3  ;;  %v4828_v44 = vadd.f32 %v10668_v55, %v10667_v43  ;;  %v10673_v46 = vld [vmem:[#allocation26_spill] sm:$0xff]  ;;  %v10674_v55 = vld [vmem:[#allocation44_spill] sm:$0xff] }
 0x5f9   :  { %v9694_v63 = vpop.f32.mrf.mxu1  ;;  %v9713_v39 = vpop.f32.mrf.mxu0  ;;  %v4830_v10 = vadd.f32 %v10673_v46, %v10667_v43 }
 0x5fa   :  { %10634 = vst [vmem:[#allocation108_spill] sm:$0xff] %v9713_v39  ;;  %v10660_v39 = vld [vmem:[#allocation16_spill] sm:$0xff] }
 0x5fb   :  { %v9696_v31 = vpop.f32.mrf.mxu1  ;;  %5562 = vmatpush1.bf16.msra.mxu0 %v9478_v2  ;;  %v9715_v58 = vpop.f32.mrf.mxu0  ;;  %v4822_v49 = vadd.f32 %v10660_v39, %v10659_v3  ;;  %v10669_v39 = vld [vmem:[#allocation19_spill] sm:$0xff] }
 0x5fc   :  { %10635 = vst [vmem:[#allocation109_spill] sm:$0xff] %v9715_v58  ;;  %v4804_v7 = vadd.f32 %v10669_v39, %v10662_v18  ;;  %v10676_v18 = vld [vmem:[#allocation75_spill] sm:$0xff] }
 0x5fd   :  { %v9701_v14 = vpop.f32.mrf.mxu1  ;;  %v9717_v30 = vpop.f32.mrf.mxu0 }
 0x5fe   :  { %10636 = vst [vmem:[#allocation110_spill] sm:$0xff] %v9717_v30  ;;  %v10665_v30 = vld [vmem:[#allocation52_spill] sm:$0xff] }
 0x5ff   :  { %v9703_v15 = vpop.f32.mrf.mxu1  ;;  %v9759_v22 = vpop.f32.mrf.mxu0 }
 0x600   :  { %10653 = vst [vmem:[#allocation33_spill] sm:$0xff] %v9759_v22  ;;  %v10664_v22 = vld [vmem:[#allocation30_spill] sm:$0xff] }
 0x601   :  { %v9707_v12 = vpop.f32.mrf.mxu1  ;;  %v4810_v58 = vadd.f32 %v10665_v30, %v10664_v22  ;;  %v4808_v56 = vadd.f32 %v10670_v1, %v10664_v22  ;;  %v9785_v5 = vpop.f32.mrf.mxu0 }
 0x602   :  { %10672 = vst [vmem:[#allocation65_spill] sm:$0xff] %v9785_v5  ;;  %v10677_v5 = vld [vmem:[#allocation63_spill] sm:$0xff] }
 0x603   :  { %v5152_v29 = vpop.f32.mrf.mxu1  ;;  %v4838_v57 = vadd.f32 %v10678_v34, %v10677_v5 }
 0x604   :  { %v5153_v43 = vadd.f32 %v5152_v29, %v4800_v6  ;;  %v5137_v29 = vadd.f32 %v9688_v42, %v4784_v37 }
 0x605   :  { %v9711_v48 = vpop.f32.mrf.mxu1 }
 0x607   :  { %v5156_v26 = vpop.f32.mrf.mxu1 }
 0x609   :  { %v5160_v45 = vpop.f32.mrf.mxu1 }
 0x60a   :  { %v5161_v46 = vadd.f32 %v5160_v45, %v4808_v56  ;;  %v5143_v56 = vadd.f32 %v9696_v31, %v4790_v24 }
 0x60b   :  { %v5162_v2 = vpop.f32.mrf.mxu1 }
 0x60d   :  { %v5164_v33 = vpop.f32.mrf.mxu1 }
 0x60e   :  { %v5165_v22 = vadd.f32 %v5164_v33, %v4812_v20 }
 0x60f   :  { %v5166_v9 = vpop.f32.mrf.mxu1 }
 0x610   :  { %v5167_v21 = vadd.f32 %v5166_v9, %v4814_v32  ;;  %v10675_v32 = vld [vmem:[#allocation12_spill] sm:$0xff]  ;;  %v5397_v33 = vmax.f32 %v5165_v22, 0.0 }
 0x611   :  { %v5170_v19 = vpop.f32.mrf.mxu1  ;;  %v4832_v9 = vadd.f32 %v10675_v32, %v10674_v55  ;;  %v9795_v32 = vpop.f32.mrf.mxu0 }
 0x612   :  { %v5171_v30 = vadd.f32 %v5170_v19, %v4818_v59  ;;  %v5398_v13 = vmax.f32 %v5167_v21, 0.0 }
 0x613   :  { %v5172_v28 = vpop.f32.mrf.mxu1 }
 0x614   :  { %v5173_v52 = vadd.f32 %v5172_v28, %v4820_v38  ;;  %v4834_v28 = vadd.f32 %v10676_v18, %v10674_v55  ;;  %v5157_v38 = vadd.f32 %v5156_v26, %v4804_v7  ;;  %v5399_v36 = vmax.f32 %v5171_v30, 0.0  ;;  %v9804_v30 = vpop.f32.mrf.mxu0  ;;  %v10682_v18 = vld [vmem:[#allocation81_spill] sm:$0xff] }
 0x615   :  { %v5174_v62 = vpop.f32.mrf.mxu1 }
 0x616   :  { %v5175_v41 = vadd.f32 %v5174_v62, %v4822_v49  ;;  %v5163_v62 = vadd.f32 %v5162_v2, %v4810_v58  ;;  %v5400_v19 = vmax.f32 %v5173_v52, 0.0  ;;  %v5147_v2 = vadd.f32 %v9703_v15, %v4794_v51  ;;  %v10679_v52 = vld [vmem:[#allocation79_spill] sm:$0xff]  ;;  %v9816_v22 = vpop.f32.mrf.mxu0 }
 0x617   :  { %v5176_v3 = vpop.f32.mrf.mxu1  ;;  %v5394_v26 = vmax.f32 %v5157_v38, 0.0  ;;  %v4840_v34 = vadd.f32 %v10679_v52, %v10677_v5  ;;  %v5151_v15 = vadd.f32 %v9707_v12, %v4798_v25  ;;  %v5392_v51 = vmax.f32 %v5153_v43, 0.0 }
 0x618   :  { %v5177_v49 = vadd.f32 %v5176_v3, %v4824_v35  ;;  %v5401_v39 = vmax.f32 %v5175_v41, 0.0  ;;  %v5396_v58 = vmax.f32 %v5163_v62, 0.0  ;;  %v5155_v41 = vadd.f32 %v9711_v48, %v4802_v40 }
 0x619   :  { %v5180_v1 = vpop.f32.mrf.mxu1  ;;  %v5390_v42 = vmax.f32 %v5147_v2, 0.0  ;;  %v5496_v55 = vpack.c.bf16 %v5394_v26, %v5392_v51  ;;  %v10687_v26 = vld [vmem:[#allocation101_spill] sm:$0xff] }
 0x61a   :  { %v5402_v59 = vmax.f32 %v5177_v49, 0.0  ;;  %v5181_v23 = vadd.f32 %v5180_v1, %v4828_v44  ;;  %v5499_v21 = vpack.c.bf16 %v5401_v39, %v5399_v36  ;;  %v5498_v45 = vpack.c.bf16 %v5398_v13, %v5396_v58  ;;  %v10681_v49 = vld [vmem:[#allocation21_spill] sm:$0xff] }
 0x61b   :  { %v5182_v35 = vpop.f32.mrf.mxu1  ;;  %v5145_v36 = vadd.f32 %v9701_v14, %v9753_v53  ;;  %v5393_v37 = vmax.f32 %v5155_v41, 0.0  ;;  %v4842_v38 = vadd.f32 %v10682_v18, %v10681_v49  ;;  %v5133_v14 = vadd.f32 %v9680_v8, %v9747_v17 }
 0x61c   :  { %v5500_v7 = vpack.c.bf16 %v5402_v59, %v5400_v19  ;;  %v5183_v20 = vadd.f32 %v5182_v35, %v4830_v10  ;;  %v5395_v10 = vmax.f32 %v5161_v46, 0.0  ;;  %v5403_v48 = vmax.f32 %v5181_v23, 0.0  ;;  %v10685_v46 = vld [vmem:[#allocation23_spill] sm:$0xff]  ;;  %v10686_v35 = vld [vmem:[#allocation85_spill] sm:$0xff] }
 0x61d   :  { %v5184_v44 = vpop.f32.mrf.mxu1  ;;  %v5141_v53 = vadd.f32 %v9694_v63, %v9737_v16  ;;  %v5127_v1 = vadd.f32 %v9672_v27, %v9729_v50  ;;  %v5388_v13 = vmax.f32 %v5143_v56, 0.0  ;;  %v5135_v59 = vadd.f32 %v9686_v54, %v9741_v61  ;;  %v10684_v16 = vld [vmem:[#allocation83_spill] sm:$0xff]  ;;  %v9832_v61 = vpop.f32.mrf.mxu0 }
 0x61e   :  { %v5185_v6 = vadd.f32 %v5184_v44, %v4832_v9  ;;  %5563 = vmatprep.subr.bf16.mxu0 %v5500_v7  ;;  %v5497_v9 = vpack.c.bf16 %v5397_v33, %v5395_v10  ;;  %v5404_v24 = vmax.f32 %v5183_v20, 0.0  ;;  %v5386_v8 = vmax.f32 %v5137_v29, 0.0 }
 0x61f   :  { %v5186_v40 = vpop.f32.mrf.mxu1  ;;  %5564 = vmatpush2.bf16.msra.mxu0 %v5499_v21  ;;  %v5389_v17 = vmax.f32 %v5145_v36, 0.0  ;;  %v4844_v43 = vadd.f32 %v10684_v16, %v10681_v49  ;;  %v4848_v2 = vadd.f32 %v10686_v35, %v10685_v46  ;;  %v5494_v58 = vpack.c.bf16 %v5390_v42, %v5388_v13  ;;  %v9840_v51 = vpop.f32.mrf.mxu0  ;;  %v10693_v42 = vld [vmem:[#allocation48_spill] sm:$0xff] }
 0x620   :  { %v5405_v5 = vmax.f32 %v5185_v6, 0.0  ;;  %v5187_v3 = vadd.f32 %v5186_v40, %v4834_v28  ;;  %5565 = vmatprep.subr.bf16.mxu0 %v5498_v45  ;;  %v5391_v28 = vmax.f32 %v5151_v15, 0.0  ;;  %v5123_v50 = vadd.f32 %v9663_v47, %v9733_v60  ;;  %v10695_v49 = vld [vmem:[#allocation100_spill] sm:$0xff] }
 0x621   :  { %v5190_v31 = vpop.f32.mrf.mxu1  ;;  %v5131_v7 = vadd.f32 %v9678_v0, %v9721_v11  ;;  %v5384_v20 = vmax.f32 %v5133_v14, 0.0  ;;  %v5387_v54 = vmax.f32 %v5141_v53, 0.0  ;;  %v5125_v33 = vadd.f32 %v10687_v26, %v9725_v4 }
 0x622   :  { %v9808_v12 = vpack.c.bf16 %v5405_v5, %v5403_v48  ;;  %v5406_v25 = vmax.f32 %v5187_v3, 0.0  ;;  %v5191_v62 = vadd.f32 %v5190_v31, %v4838_v57  ;;  %v5495_v23 = vpack.c.bf16 %v5393_v37, %v5391_v28  ;;  %v10697_v28 = vld [vmem:[#allocation40_spill] sm:$0xff] }
 0x623   :  { %v5192_v39 = vpop.f32.mrf.mxu1  ;;  %5566 = vmatpush2.bf16.msra.mxu0 %v5497_v9  ;;  %v5385_v29 = vmax.f32 %v5135_v59, 0.0  ;;  %v5492_v45 = vpack.c.bf16 %v5386_v8, %v5384_v20  ;;  %v5493_v47 = vpack.c.bf16 %v5389_v17, %v5387_v54  ;;  %v5383_v15 = vmax.f32 %v5131_v7, 0.0  ;;  %v10700_v17 = vld [vmem:[#allocation14_spill] sm:$0xff] }
 0x624   :  { %10680 = vst [vmem:[#allocation15_spill] sm:$0xff] %v9808_v12  ;;  %v9820_v19 = vpack.c.bf16 %v5406_v25, %v5404_v24  ;;  %v5193_v57 = vadd.f32 %v5192_v39, %v4840_v34  ;;  %5567 = vmatprep.subr.bf16.mxu0 %v5496_v55  ;;  %v5407_v21 = vmax.f32 %v5191_v62, 0.0  ;;  %v5382_v34 = vmax.f32 %v5127_v1, 0.0  ;;  %v9849_v55 = vpop.f32.mrf.mxu0  ;;  %v10698_v1 = vld [vmem:[#allocation42_spill] sm:$0xff]  ;;  %v10739_v12 = vld [vmem:[#allocation64_spill] sm:$0xff] }
 0x625   :  { %v5194_v63 = vpop.f32.mrf.mxu1  ;;  %v5380_v4 = vmax.f32 %v5123_v50, 0.0  ;;  %v5381_v36 = vmax.f32 %v5125_v33, 0.0  ;;  %v5491_v48 = vpack.c.bf16 %v5385_v29, %v5383_v15  ;;  %v5379_v37 = vmax.f32 %v10693_v42, 0.0  ;;  %v10707_v29 = vld [vmem:[#allocation87_spill] sm:$0xff]  ;;  %v10716_v42 = vld [vmem:[#allocation93_spill] sm:$0xff] }
 0x626   :  { %10683 = vst [vmem:[#allocation13_spill] sm:$0xff] %v9820_v19  ;;  %v5195_v27 = vadd.f32 %v5194_v63, %v4842_v38  ;;  %v5408_v6 = vmax.f32 %v5193_v57, 0.0  ;;  %v9855_v25 = vpop.f32.mrf.mxu0  ;;  %v5467_v38 = vld [vmem:[%s10114_s4] sm:$0xff]  ;;  %v10740_v19 = vld [vmem:[#allocation105_spill] sm:$0xff] }
 0x627   :  { %v5196_v41 = vpop.f32.mrf.mxu1  ;;  %5568 = vmatpush2.bf16.msra.mxu0 %v5495_v23  ;;  %v5490_v3 = vpack.c.bf16 %v5382_v34, %v5380_v4  ;;  %v5489_v31 = vpack.c.bf16 %v5381_v36, %v5379_v37  ;;  %v5943_v39 = vcombine.high %v5467_v38, %v5467_v38  ;;  %v5942_v57 = vcombine.low %v5467_v38, %v5467_v38  ;;  %v9881_v23 = vld [vmem:[%s10114_s4 + $0x8] sm:$0xff]  ;;  %v10719_v38 = vld [vmem:[#allocation97_spill] sm:$0xff] }
 0x628   :  { %v5409_v44 = vmax.f32 %v5195_v27, 0.0  ;;  %v5197_v52 = vadd.f32 %v5196_v41, %v4844_v43  ;;  %5569 = vmatprep.subr.bf16.mxu0 %v5494_v58  ;;  %v9865_v14 = vpop.f32.mrf.mxu0  ;;  %10701 = vst [vmem:[#allocation43_spill] sm:$0xff] %v9881_v23  ;;  %v5945_v16 = vcombine.high %v9881_v23, %v9881_v23  ;;  %v6594_v58 = vld [vmem:[%s10111_s1] sm:$0xff]  ;;  %v10713_v4 = vld [vmem:[#allocation68_spill] sm:$0xff]  ;;  %s6672_s1 = smov [#allocation7]  }
 0x629   :  { %v5200_v60 = vpop.f32.mrf.mxu1  ;;  %10696 = vst [vmem:[#allocation36_spill] sm:$0xff] %v9865_v14  ;;  %5579 = vmatprep.mubr.bf16.mxu0 %v5943_v39  ;;  %v10714_v36 = vld [vmem:[#allocation92_spill] sm:$0xff]  ;;  %v9924_v37 = vadd.f32 %v10716_v42, %v10713_v4  ;;  %v10720_v39 = vld [vmem:[#allocation41_spill] sm:$0xff]  ;;  %v10731_v23 = vld [vmem:[#allocation107_spill] sm:$0xff]  ;;  %s5676_s4 = sshll.u32 %s6672_s1, 4  ;;  %s5677_s4 = int_to_ptr.vmem [resolvable:$true] %s5676_s4 }
 0x62a   :  { %v9836_v0 = vpack.c.bf16 %v5409_v44, %v5407_v21  ;;  %v5410_v11 = vmax.f32 %v5197_v52, 0.0  ;;  %v9838_v56 = vadd.f32 %v5200_v60, %v4848_v2  ;;  %v9873_v59 = vpop.f32.mrf.mxu0  ;;  %5620 = vmatprep.mubr.bf16.mxu1 %v5945_v16  ;;  %v6670_v2 = vmov 6   ;;  %v10710_v60 = vld [vmem:[#allocation88_spill] sm:$0xff]  ;;  %s6635_s24 = scalar_lea.vmem %s5677_s4, 32  ;;  %p6640_p11 = scmp.lt.s32.totalorder %s5677_s4, %s5677_s4 }
 0x62b   :  { %v9842_v10 = vpop.f32.mrf.mxu1  ;;  %5570 = vmatpush2.bf16.msra.mxu0 %v5493_v47  ;;  %10699 = vst [vmem:[#allocation76_spill] sm:$0xff] %v9873_v59  ;;  %6059 = vset.pattern.permute.xlu1 %v6670_v2  ;;  %v10709_v47 = vld [vmem:[#allocation37_spill] sm:$0xff]  ;;  %p6636_p10 = scmp.ne.s32.totalorder %s5677_s4, %s6635_s24  ;;  %p6641_p12 = scmp.lt.s32.totalorder %s6635_s24, %s6635_s24 }
 0x62c   :  { %10688 = vst [vmem:[#allocation74_spill] sm:$0xff] %v9836_v0  ;;  %10689 = vst [vmem:[#allocation45_spill] sm:$0xff] %v9838_v56  ;;  %v9844_v40 = vpack.c.bf16 %v5410_v11, %v5408_v6  ;;  %5571 = vmatprep.subr.bf16.mxu0 %v5492_v45  ;;  %v9887_v43 = vpop.f32.mrf.mxu0  ;;  %5630 = vperm.xlu1 %6059, %v6594_v58   ;;  %v9908_v45 = vadd.f32 %v10707_v29, %v10685_v46  ;;  %v10712_v11 = vld [vmem:[#allocation90_spill] sm:$0xff]  ;;  %v10718_v46 = vld [vmem:[#allocation95_spill] sm:$0xff] }
 0x62d   :  { %10690 = vst [vmem:[#allocation82_spill] sm:$0xff] %v9842_v10  ;;  %v9846_v5 = vpop.f32.mrf.mxu1  ;;  %10702 = vst [vmem:[#allocation31_spill] sm:$0xff] %v9887_v43  ;;  %6060 = vset.pattern.permute.xlu0 %v6670_v2  ;;  %v9912_v6 = vadd.f32 %v10710_v60, %v10709_v47  ;;  %v9916_v15 = vadd.f32 %v10712_v11, %v10709_v47  ;;  %v10723_v2 = vld [vmem:[#allocation72_spill] sm:$0xff]  ;;  %v10724_v58 = vld [vmem:[#allocation25_spill] sm:$0xff]  ;;  %v4890_v0 = vadd.f32 %v10740_v19, %v10739_v12  ;;  %p6642_p13 = por %p6641_p12, %p6640_p11 }
 0x62e   :  { %10691 = vst [vmem:[#allocation61_spill] sm:$0xff] %v9844_v40  ;;  %10692 = vst [vmem:[#allocation20_spill] sm:$0xff] %v9846_v5  ;;  %v9896_v50 = vpop.f32.mrf.mxu0  ;;  %v9940_v29 = vadd.f32 %v10724_v58, %v10723_v2  ;;  %v10725_v47 = vld [vmem:[#allocation46_spill] sm:$0xff]  ;;  %v10726_v11 = vld [vmem:[#allocation67_spill] sm:$0xff] }
 0x62f   :  { %v9851_v9 = vpop.f32.mrf.mxu1  ;;  %5572 = vmatpush2.bf16.msra.mxu0 %v5491_v48  ;;  %10703 = vst [vmem:[#allocation55_spill] sm:$0xff] %v9896_v50  ;;  %10708 = vst [vmem:[#allocation58_spill] sm:$0xff] %v9908_v45  ;;  %v9920_v48 = vadd.f32 %v10714_v36, %v10713_v4  ;;  %v4874_v60 = vadd.f32 %v10725_v47, %v10723_v2  ;;  %v10727_v4 = vld [vmem:[#allocation49_spill] sm:$0xff]  ;;  %v10737_v47 = vld [vmem:[#allocation102_spill] sm:$0xff]  ;;  %p6643_p0 = pnand %p6642_p13, %p6636_p10 }
 0x630   :  { %5573 = vmatprep.subr.bf16.mxu0 %v5490_v3  ;;  %v9900_v54 = vpop.f32.mrf.mxu0  ;;  %10711 = vst [vmem:[#allocation56_spill] sm:$0xff] %v9912_v6  ;;  %v4878_v36 = vadd.f32 %v10727_v4, %v10726_v11  ;;  %v10734_v58 = vld [vmem:[#allocation57_spill] sm:$0xff]  ;;  %v10738_v4 = vld [vmem:[#allocation103_spill] sm:$0xff] }
 0x631   :  { %v9853_v24 = vpop.f32.mrf.mxu1  ;;  %10704 = vst [vmem:[#allocation47_spill] sm:$0xff] %v9900_v54  ;;  %10715 = vst [vmem:[#allocation51_spill] sm:$0xff] %v9920_v48  ;;  %v10735_v54 = vld [vmem:[#allocation110_spill] sm:$0xff]  ;;  %v10736_v2 = vld [vmem:[#allocation69_spill] sm:$0xff] }
 0x632   :  { %10694 = vst [vmem:[#allocation38_spill] sm:$0xff] %v9853_v24  ;;  %v9902_v33 = vpop.f32.mrf.mxu0  ;;  %v4902_v50 = vadd.f32 %v10735_v54, %v10734_v58  ;;  %v10743_v24 = vld [vmem:[#allocation104_spill] sm:$0xff]  ;;  %v10744_v48 = vld [vmem:[#allocation106_spill] sm:$0xff]  ;;  %v10745_v19 = vld [vmem:[#allocation65_spill] sm:$0xff] }
 0x633   :  { %v9857_v62 = vpop.f32.mrf.mxu1  ;;  %5574 = vmatpush2.bf16.msra.mxu0 %v5489_v31  ;;  %10705 = vst [vmem:[#allocation28_spill] sm:$0xff] %v9902_v33  ;;  %v10717_v31 = vld [vmem:[#allocation27_spill] sm:$0xff]  ;;  %v4882_v33 = vadd.f32 %v10737_v47, %v10736_v2  ;;  %v4888_v47 = vadd.f32 %v10743_v24, %v10739_v12 }
 0x634   :  { %5575 = vmatprep.subr.bf16.mxu0 %v10695_v49  ;;  %v9904_v52 = vpop.f32.mrf.mxu0  ;;  %v9928_v49 = vadd.f32 %v10718_v46, %v10717_v31  ;;  %v10729_v46 = vld [vmem:[#allocation99_spill] sm:$0xff] }
 0x635   :  { %v9860_v18 = vpop.f32.mrf.mxu1  ;;  %10706 = vst [vmem:[#allocation50_spill] sm:$0xff] %v9904_v52  ;;  %v3931_v52 = vpop.permute.xlu1 %3930 }
 0x636   :  { %v9946_v42 = vpop.f32.mrf.mxu0  ;;  %v4908_v10 = vadd.f32 %v10745_v19, %v3931_v52 }
 0x637   :  { %v9867_v53 = vpop.f32.mrf.mxu1  ;;  %5576 = vmatpush2.bf16.msra.mxu0 %v10697_v28  ;;  %v4864_v28 = vadd.f32 %v10719_v38, %v10717_v31  ;;  %10728 = vst [vmem:[#allocation17_spill] sm:$0xff] %v9946_v42  ;;  %v4880_v38 = vadd.f32 %v10729_v46, %v10726_v11  ;;  %v4884_v42 = vadd.f32 %v10738_v4, %v10736_v2  ;;  %v10741_v11 = vld [vmem:[#allocation108_spill] sm:$0xff] }
 0x638   :  { %5577 = vmatprep.subr.bf16.mxu0 %v10698_v1  ;;  %v10721_v1 = vld [vmem:[#allocation98_spill] sm:$0xff]  ;;  %v9970_v4 = vpop.f32.mrf.mxu0 }
 0x639   :  { %v9871_v13 = vpop.f32.mrf.mxu1 }
 0x63b   :  { %v9875_v8 = vpop.f32.mrf.mxu1  ;;  %5578 = vmatpush2.bf16.msra.mxu0 %v10700_v17  ;;  %v10722_v17 = vld [vmem:[#allocation70_spill] sm:$0xff] }
 0x63c   :  { %v4870_v16 = vadd.f32 %v10722_v17, %v10720_v39  ;;  %v10733_v17 = vld [vmem:[#allocation109_spill] sm:$0xff] }
 0x63d   :  { %v9883_v63 = vpop.f32.mrf.mxu1 }
 0x63e   :  { %5580 = vmatmul.mubr.bf16.vlgmr.msra.gmra.mxu0 %v5942_v57  ;;  %v9934_v57 = vadd.f32 %v10721_v1, %v10720_v39  ;;  %v10730_v1 = vld [vmem:[#allocation66_spill] sm:$0xff] }
 0x63f   :  { %v9889_v35 = vpop.f32.mrf.mxu1  ;;  %v4894_v43 = vadd.f32 %v10731_v23, %v10730_v1  ;;  %v10732_v39 = vld [vmem:[#allocation54_spill] sm:$0xff]  ;;  %v3935_v23 = vpop.permute.xlu0 %3934  ;;  %v4892_v2 = vadd.f32 %v10744_v48, %v10730_v1 }
 0x640   :  { %v4900_v59 = vadd.f32 %v10733_v17, %v10732_v39  ;;  %v4898_v46 = vadd.f32 %v10741_v11, %v10732_v39  ;;  %v10742_v17 = vld [vmem:[#allocation33_spill] sm:$0xff]  ;;  %v4912_v14 = vadd.f32 %v9804_v30, %v3935_v23 }
 0x641   :  { %v9894_v27 = vpop.f32.mrf.mxu1  ;;  %v4904_v56 = vadd.f32 %v10742_v17, %v10734_v58  ;;  %v4910_v58 = vadd.f32 %v9795_v32, %v3931_v52  ;;  %v10746_v17 = vld [vmem:[#allocation94_spill] sm:$0xff] }
 0x643   :  { %v5232_v7 = vpop.f32.mrf.mxu1 }
 0x645   :  { %v9898_v20 = vpop.f32.mrf.mxu1 }
 0x646   :  { %v5235_v52 = vadd.f32 %v9898_v20, %v4882_v33 }
 0x647   :  { %v5236_v41 = vpop.f32.mrf.mxu1 }
 0x649   :  { %v5240_v26 = vpop.f32.mrf.mxu1 }
 0x64a   :  { %v5241_v30 = vadd.f32 %v5240_v26, %v4888_v47 }
 0x64b   :  { %v5242_v21 = vpop.f32.mrf.mxu1 }
 0x64c   :  { %v5243_v11 = vadd.f32 %v5242_v21, %v4890_v0  ;;  %v5233_v0 = vadd.f32 %v5232_v7, %v4880_v38  ;;  %v5427_v20 = vmax.f32 %v5241_v30, 0.0 }
 0x64d   :  { %v5244_v44 = vpop.f32.mrf.mxu1 }
 0x64e   :  { %v5424_v38 = vmax.f32 %v5233_v0, 0.0  ;;  %v10751_v0 = vld [vmem:[#allocation82_spill] sm:$0xff] }
 0x64f   :  { %v5246_v34 = vpop.f32.mrf.mxu1 }
 0x650   :  { %v5247_v5 = vadd.f32 %v5246_v34, %v4894_v43 }
 0x651   :  { %v5250_v3 = vpop.f32.mrf.mxu1 }
 0x652   :  { %v5251_v45 = vadd.f32 %v5250_v3, %v4898_v46  ;;  %v5430_v34 = vmax.f32 %v5247_v5, 0.0  ;;  %v4918_v3 = vadd.f32 %v9832_v61, %v10746_v17  ;;  %v9978_v46 = vpop.f32.mrf.mxu0  ;;  %v4920_v61 = vadd.f32 %v9840_v51, %v10746_v17 }
 0x653   :  { %v5252_v31 = vpop.f32.mrf.mxu1 }
 0x654   :  { %v5253_v54 = vadd.f32 %v5252_v31, %v4900_v59  ;;  %v5237_v59 = vadd.f32 %v5236_v41, %v4884_v42  ;;  %v5431_v21 = vmax.f32 %v5251_v45, 0.0  ;;  %v5428_v41 = vmax.f32 %v5243_v11, 0.0  ;;  %v9985_v45 = vpop.f32.mrf.mxu0 }
 0x655   :  { %v5254_v40 = vpop.f32.mrf.mxu1 }
 0x656   :  { %v5255_v6 = vadd.f32 %v5254_v40, %v4902_v50  ;;  %v5245_v40 = vadd.f32 %v5244_v44, %v4892_v2  ;;  %v4914_v50 = vadd.f32 %v9816_v22, %v3935_v23  ;;  %v5432_v48 = vmax.f32 %v5253_v54, 0.0 }
 0x657   :  { %v5256_v39 = vpop.f32.mrf.mxu1  ;;  %v5426_v5 = vmax.f32 %v5237_v59, 0.0  ;;  %v5217_v23 = vadd.f32 %v9867_v53, %v4864_v28  ;;  %v5514_v7 = vpack.c.bf16 %v5430_v34, %v5428_v41  ;;  %v5225_v54 = vadd.f32 %v9883_v63, %v9940_v29  ;;  %v9997_v29 = vpop.f32.mrf.mxu0 }
 0x658   :  { %v5257_v43 = vadd.f32 %v5256_v39, %v4904_v56  ;;  %v5433_v12 = vmax.f32 %v5255_v6, 0.0  ;;  %v5227_v56 = vadd.f32 %v9889_v35, %v4874_v60  ;;  %v5429_v6 = vmax.f32 %v5245_v40, 0.0 }
 0x659   :  { %v5260_v24 = vpop.f32.mrf.mxu1  ;;  %v5223_v35 = vadd.f32 %v9875_v8, %v4870_v16  ;;  %v5231_v60 = vadd.f32 %v9894_v27, %v4878_v36  ;;  %v5512_v28 = vpack.c.bf16 %v5426_v5, %v5424_v38  ;;  %v10747_v36 = vld [vmem:[#allocation96_spill] sm:$0xff]  ;;  %v5213_v63 = vadd.f32 %v9857_v62, %v9924_v37 }
 0x65a   :  { %v5434_v31 = vmax.f32 %v5257_v43, 0.0  ;;  %v5261_v1 = vadd.f32 %v5260_v24, %v4908_v10  ;;  %v5515_v42 = vpack.c.bf16 %v5433_v12, %v5431_v21  ;;  %v5422_v53 = vmax.f32 %v5227_v56, 0.0  ;;  %v10752_v21 = vld [vmem:[#allocation51_spill] sm:$0xff] }
 0x65b   :  { %v5262_v32 = vpop.f32.mrf.mxu1  ;;  %v5513_v19 = vpack.c.bf16 %v5429_v6, %v5427_v20  ;;  %v5221_v43 = vadd.f32 %v9871_v13, %v9934_v57  ;;  %v5423_v59 = vmax.f32 %v5231_v60, 0.0  ;;  %v5420_v12 = vmax.f32 %v5223_v35, 0.0  ;;  %v10748_v57 = vld [vmem:[#allocation89_spill] sm:$0xff] }
 0x65c   :  { %v5516_v44 = vpack.c.bf16 %v5434_v31, %v5432_v48  ;;  %v5263_v22 = vadd.f32 %v5262_v32, %v4910_v58  ;;  %v5435_v47 = vmax.f32 %v5261_v1, 0.0  ;;  %v4922_v58 = vadd.f32 %v9849_v55, %v10747_v36  ;;  %v10749_v1 = vld [vmem:[#allocation36_spill] sm:$0xff]  ;;  %v10753_v32 = vld [vmem:[#allocation38_spill] sm:$0xff] }
 0x65d   :  { %v5264_v10 = vpop.f32.mrf.mxu1  ;;  %v5215_v55 = vadd.f32 %v9860_v18, %v9928_v49  ;;  %v5418_v62 = vmax.f32 %v5217_v23, 0.0  ;;  %v5421_v37 = vmax.f32 %v5225_v54, 0.0  ;;  %v4924_v13 = vadd.f32 %v9855_v25, %v10747_v36  ;;  %v10015_v49 = vpop.f32.mrf.mxu0 }
 0x65e   :  { %v5265_v26 = vadd.f32 %v5264_v10, %v4912_v14  ;;  %5588 = vmatprep.subr.bf16.mxu1 %v5516_v44  ;;  %v5425_v14 = vmax.f32 %v5235_v52, 0.0  ;;  %v5436_v11 = vmax.f32 %v5263_v22, 0.0  ;;  %v4928_v17 = vadd.f32 %v10749_v1, %v10748_v57  ;;  %v10754_v22 = vld [vmem:[#allocation56_spill] sm:$0xff] }
 0x65f   :  { %v5266_v33 = vpop.f32.mrf.mxu1  ;;  %5589 = vmatpush1.bf16.msra.mxu1 %v5515_v42  ;;  %v5211_v56 = vadd.f32 %v10753_v32, %v10752_v21  ;;  %v5416_v41 = vmax.f32 %v5213_v63, 0.0  ;;  %v5419_v18 = vmax.f32 %v5221_v43, 0.0  ;;  %v10755_v52 = vld [vmem:[#allocation20_spill] sm:$0xff]  ;;  %v10023_v54 = vpop.f32.mrf.mxu0 }
 0x660   :  { %v5437_v51 = vmax.f32 %v5265_v26, 0.0  ;;  %v5267_v2 = vadd.f32 %v5266_v33, %v4914_v50  ;;  %5590 = vmatprep.subr.bf16.mxu1 %v5514_v7  ;;  %v5207_v50 = vadd.f32 %v9851_v9, %v9916_v15  ;;  %v5511_v48 = vpack.c.bf16 %v5425_v14, %v5423_v59  ;;  %v10750_v15 = vld [vmem:[#allocation58_spill] sm:$0xff]  ;;  %v10757_v59 = vld [vmem:[#allocation61_spill] sm:$0xff] }
 0x661   :  { %v5270_v39 = vpop.f32.mrf.mxu1  ;;  %v5203_v30 = vadd.f32 %v10751_v0, %v10750_v15  ;;  %v5205_v25 = vadd.f32 %v10755_v52, %v10754_v22  ;;  %v5508_v23 = vpack.c.bf16 %v5418_v62, %v5416_v41  ;;  %v5509_v7 = vpack.c.bf16 %v5421_v37, %v5419_v18 }
 0x662   :  { %v9991_v8 = vpack.c.bf16 %v5437_v51, %v5435_v47  ;;  %v5438_v27 = vmax.f32 %v5267_v2, 0.0  ;;  %v5271_v16 = vadd.f32 %v5270_v39, %v4918_v3  ;;  %v5510_v3 = vpack.c.bf16 %v5422_v53, %v5420_v12  ;;  %v10756_v39 = vld [vmem:[#allocation45_spill] sm:$0xff] }
 0x663   :  { %v5272_v40 = vpop.f32.mrf.mxu1  ;;  %5591 = vmatpush1.bf16.msra.mxu1 %v5513_v19  ;;  %v5414_v10 = vmax.f32 %v5207_v50, 0.0  ;;  %v5415_v33 = vmax.f32 %v5211_v56, 0.0  ;;  %v5412_v51 = vmax.f32 %v5203_v30, 0.0  ;;  %v5413_v53 = vmax.f32 %v5205_v25, 0.0 }
 0x664   :  { %v10003_v24 = vpack.c.bf16 %v5438_v27, %v5436_v11  ;;  %v5273_v34 = vadd.f32 %v5272_v40, %v4920_v61  ;;  %5592 = vmatprep.subr.bf16.mxu1 %v5512_v28  ;;  %v5439_v5 = vmax.f32 %v5271_v16, 0.0  ;;  %v5417_v61 = vmax.f32 %v5215_v55, 0.0  ;;  %v4961_v27 = vpop.f32.mrf.mxu0  ;;  %v10759_v55 = vld [vmem:[#allocation13_spill] sm:$0xff] }
 0x665   :  { %v5274_v31 = vpop.f32.mrf.mxu1  ;;  %v5506_v19 = vpack.c.bf16 %v5414_v10, %v5412_v51  ;;  %v5411_v11 = vmax.f32 %v10756_v39, 0.0  ;;  %v10762_v10 = vld [vmem:[#allocation24_spill] sm:$0xff] }
 0x666   :  { %v5275_v9 = vadd.f32 %v5274_v31, %v4922_v58  ;;  %v5440_v35 = vmax.f32 %v5273_v34, 0.0  ;;  %v5507_v14 = vpack.c.bf16 %v5417_v61, %v5415_v33  ;;  %v4963_v63 = vpop.f32.mrf.mxu0  ;;  %v10758_v34 = vld [vmem:[#allocation74_spill] sm:$0xff]  ;;  %v10760_v31 = vld [vmem:[#allocation15_spill] sm:$0xff] }
 0x667   :  { %v5276_v44 = vpop.f32.mrf.mxu1  ;;  %5593 = vmatpush1.bf16.msra.mxu1 %v5511_v48  ;;  %v5505_v36 = vpack.c.bf16 %v5413_v53, %v5411_v11 }
 0x668   :  { %v5441_v6 = vmax.f32 %v5275_v9, 0.0  ;;  %v5277_v42 = vadd.f32 %v5276_v44, %v4924_v13  ;;  %5594 = vmatprep.subr.bf16.mxu1 %v5510_v3  ;;  %v4967_v50 = vpop.f32.mrf.mxu0 }
 0x669   :  { %v5280_v26 = vpop.f32.mrf.mxu1 }
 0x66a   :  { %v10019_v60 = vpack.c.bf16 %v5441_v6, %v5439_v5  ;;  %v5442_v38 = vmax.f32 %v5277_v42, 0.0  ;;  %v10021_v20 = vadd.f32 %v5280_v26, %v4928_v17  ;;  %v4969_v37 = vpop.f32.mrf.mxu0  ;;  %v10761_v6 = vld [vmem:[#allocation71_spill] sm:$0xff]  ;;  %v10764_v26 = vld [vmem:[#allocation62_spill] sm:$0xff] }
 0x66b   :  { %v10025_v47 = vpop.f32.mrf.mxu1  ;;  %5595 = vmatpush1.bf16.msra.mxu1 %v5509_v7 }
 0x66c   :  { %v10027_v2 = vpack.c.bf16 %v5442_v38, %v5440_v35  ;;  %5596 = vmatprep.subr.bf16.mxu1 %v5508_v23  ;;  %v4971_v1 = vpop.f32.mrf.mxu0  ;;  %v10763_v23 = vld [vmem:[#allocation22_spill] sm:$0xff]  ;;  %v4970_v35 = vadd.f32 %v4969_v37, %v10764_v26  ;;  %v4968_v37 = vadd.f32 %v4967_v50, %v10764_v26 }
 0x66d   :  { %v10029_v28 = vpop.f32.mrf.mxu1  ;;  %v4972_v39 = vadd.f32 %v4971_v1, %v10761_v6 }
 0x66e   :  { %v4973_v9 = vpop.f32.mrf.mxu0 }
 0x66f   :  { %v10032_v16 = vpop.f32.mrf.mxu1  ;;  %5597 = vmatpush1.bf16.msra.mxu1 %v5507_v14  ;;  %v4974_v42 = vadd.f32 %v4973_v9, %v10761_v6  ;;  %v10766_v9 = vld [vmem:[#allocation60_spill] sm:$0xff] }
 0x670   :  { %5598 = vmatprep.subr.bf16.mxu1 %v5506_v19  ;;  %v4977_v30 = vpop.f32.mrf.mxu0  ;;  %v10767_v6 = vld [vmem:[#allocation80_spill] sm:$0xff] }
 0x671   :  { %v10034_v58 = vpop.f32.mrf.mxu1  ;;  %v4978_v38 = vadd.f32 %v4977_v30, %v10762_v10 }
 0x672   :  { %v4979_v56 = vpop.f32.mrf.mxu0 }
 0x673   :  { %v10036_v43 = vpop.f32.mrf.mxu1  ;;  %5599 = vmatpush1.bf16.msra.mxu1 %v5505_v36  ;;  %v4980_v61 = vadd.f32 %v4979_v56, %v10762_v10  ;;  %v4960_v56 = vadd.f32 %v10023_v54, %v10766_v9  ;;  %v4958_v54 = vadd.f32 %v10015_v49, %v10766_v9  ;;  %v10774_v9 = vld [vmem:[#allocation91_spill] sm:$0xff] }
 0x674   :  { %5600 = vmatprep.subr.bf16.mxu1 %v10757_v59  ;;  %v4981_v44 = vpop.f32.mrf.mxu0  ;;  %v10765_v59 = vld [vmem:[#allocation73_spill] sm:$0xff] }
 0x675   :  { %v10039_v40 = vpop.f32.mrf.mxu1  ;;  %v4982_v7 = vadd.f32 %v4981_v44, %v10763_v23 }
 0x676   :  { %v4983_v25 = vpop.f32.mrf.mxu0 }
 0x677   :  { %v10041_v12 = vpop.f32.mrf.mxu1  ;;  %5601 = vmatpush1.bf16.msra.mxu1 %v10758_v34  ;;  %v4984_v51 = vadd.f32 %v4983_v25, %v10763_v23  ;;  %v4964_v34 = vadd.f32 %v4963_v63, %v10765_v59  ;;  %v4954_v63 = vadd.f32 %v9997_v29, %v10767_v6 }
 0x678   :  { %5602 = vmatprep.subr.bf16.mxu1 %v10759_v55 }
 0x679   :  { %v10045_v62 = vpop.f32.mrf.mxu1 }
 0x67b   :  { %v10047_v48 = vpop.f32.mrf.mxu1  ;;  %5603 = vmatpush1.bf16.msra.mxu1 %v10760_v31 }
 0x67d   :  { %v10050_v13 = vpop.f32.mrf.mxu1 }
 0x67f   :  { %v5306_v17 = vpop.f32.mrf.mxu1 }
 0x681   :  { %v5310_v3 = vpop.f32.mrf.mxu1 }
 0x682   :  { %v5311_v29 = vadd.f32 %v5310_v3, %v4958_v54 }
 0x683   :  { %v5312_v15 = vpop.f32.mrf.mxu1 }
 0x685   :  { %v5314_v0 = vpop.f32.mrf.mxu1 }
 0x687   :  { %v5316_v21 = vpop.f32.mrf.mxu1 }
 0x688   :  { %v5317_v10 = vadd.f32 %v5316_v21, %v4964_v34  ;;  %v10768_v21 = vld [vmem:[#allocation78_spill] sm:$0xff] }
 0x689   :  { %v5320_v32 = vpop.f32.mrf.mxu1  ;;  %v4950_v26 = vadd.f32 %v9978_v46, %v10768_v21  ;;  %v4948_v46 = vadd.f32 %v9970_v4, %v10768_v21  ;;  %v10773_v34 = vld [vmem:[#allocation50_spill] sm:$0xff]  ;;  %v10775_v4 = vld [vmem:[#allocation55_spill] sm:$0xff] }
 0x68a   :  { %v5321_v1 = vadd.f32 %v5320_v32, %v4968_v37  ;;  %v4952_v32 = vadd.f32 %v9985_v45, %v10767_v6 }
 0x68b   :  { %v5322_v41 = vpop.f32.mrf.mxu1  ;;  %v5303_v49 = vadd.f32 %v10047_v48, %v4950_v26  ;;  %v5301_v48 = vadd.f32 %v10045_v62, %v4948_v46 }
 0x68c   :  { %v5323_v55 = vadd.f32 %v5322_v41, %v4970_v35  ;;  %v5313_v41 = vadd.f32 %v5312_v15, %v4960_v56  ;;  %v5307_v35 = vadd.f32 %v5306_v17, %v4954_v63  ;;  %v5459_v15 = vmax.f32 %v5321_v1, 0.0 }
 0x68d   :  { %v5324_v18 = vpop.f32.mrf.mxu1  ;;  %v5305_v17 = vadd.f32 %v10050_v13, %v4952_v32  ;;  %v4934_v56 = vadd.f32 %v10775_v4, %v10774_v9  ;;  %v5452_v37 = vmax.f32 %v5303_v49, 0.0  ;;  %v5451_v63 = vmax.f32 %v5301_v48, 0.0 }
 0x68e   :  { %v5325_v30 = vadd.f32 %v5324_v18, %v4972_v39  ;;  %v10771_v39 = vld [vmem:[#allocation84_spill] sm:$0xff]  ;;  %v10781_v4 = vlaneseq }
 0x68f   :  { %v5326_v22 = vpop.f32.mrf.mxu1  ;;  %v5287_v62 = vadd.f32 %v10032_v16, %v4934_v56 }
 0x690   :  { %v5327_v53 = vadd.f32 %v5326_v22, %v4974_v42  ;;  %v4962_v42 = vadd.f32 %v4961_v27, %v10765_v59  ;;  %v5461_v18 = vmax.f32 %v5325_v30, 0.0  ;;  %v10776_v30 = vld [vmem:[#allocation47_spill] sm:$0xff]  ;;  %vm5667_vm0 = vcmp.lt.s32.totalorder %v10781_v4, 256 }
 0x691   :  { %v5330_v52 = vpop.f32.mrf.mxu1 }
 0x692   :  { %v5331_v11 = vadd.f32 %v5330_v52, %v4978_v38  ;;  %v5462_v25 = vmax.f32 %v5327_v53, 0.0  ;;  %v5315_v50 = vadd.f32 %v5314_v0, %v4962_v42  ;;  %v5458_v38 = vmax.f32 %v5317_v10, 0.0 }
 0x693   :  { %v5332_v5 = vpop.f32.mrf.mxu1  ;;  %v5456_v0 = vmax.f32 %v5313_v41, 0.0  ;;  %v5453_v10 = vmax.f32 %v5305_v17, 0.0 }
 0x694   :  { %v5333_v14 = vadd.f32 %v5332_v5, %v4980_v61  ;;  %v5463_v52 = vmax.f32 %v5331_v11, 0.0  ;;  %v5460_v61 = vmax.f32 %v5323_v55, 0.0  ;;  %v10772_v11 = vld [vmem:[#allocation28_spill] sm:$0xff] }
 0x695   :  { %v5334_v33 = vpop.f32.mrf.mxu1  ;;  %v4940_v45 = vadd.f32 %v10772_v11, %v10771_v39  ;;  %v5528_v59 = vpack.c.bf16 %v5458_v38, %v5456_v0  ;;  %v5525_v54 = vpack.c.bf16 %v5453_v10, %v5451_v63 }
 0x696   :  { %v5335_v19 = vadd.f32 %v5334_v33, %v4982_v7  ;;  %v5464_v22 = vmax.f32 %v5333_v14, 0.0  ;;  %v5530_v27 = vpack.c.bf16 %v5462_v25, %v5460_v61  ;;  %v10769_v33 = vld [vmem:[#allocation86_spill] sm:$0xff]  ;;  %v5457_v14 = vmax.f32 %v5315_v50, 0.0 }
 0x697   :  { %v5336_v36 = vpop.f32.mrf.mxu1  ;;  %v4942_v55 = vadd.f32 %v10773_v34, %v10769_v33  ;;  %v5293_v13 = vadd.f32 %v10036_v43, %v4940_v45  ;;  %v6671_v45 = vmov 1966171168   ;;  %v10780_v34 = vld [vmem:[#allocation34_spill] sm:$0xff] }
 0x698   :  { %v5337_v31 = vadd.f32 %v5336_v36, %v4984_v51  ;;  %v5465_v44 = vmax.f32 %v5335_v19, 0.0  ;;  %v10770_v51 = vld [vmem:[#allocation17_spill] sm:$0xff]  ;;  %v5529_v19 = vpack.c.bf16 %v5461_v18, %v5459_v15  ;;  %v5454_v36 = vmax.f32 %v5307_v35, 0.0 }
 0x699   :  { %v4944_v53 = vadd.f32 %v10770_v51, %v10769_v33  ;;  %v5448_v61 = vmax.f32 %v5293_v13, 0.0 }
 0x69a   :  { %v5466_v5 = vmax.f32 %v5337_v31, 0.0  ;;  %v5531_v7 = vpack.c.bf16 %v5465_v44, %v5463_v52  ;;  %v5455_v31 = vmax.f32 %v5311_v29, 0.0  ;;  %v4938_v44 = vadd.f32 %v10776_v30, %v10771_v39  ;;  %v10778_v52 = vld [vmem:[#allocation31_spill] sm:$0xff] }
 0x69b   :  { %v5297_v3 = vadd.f32 %v10041_v12, %v4944_v53  ;;  %v5295_v12 = vadd.f32 %v10039_v40, %v4942_v55  ;;  %v5526_v1 = vpack.c.bf16 %v5454_v36, %v5452_v37  ;;  %v4932_v6 = vadd.f32 %v10778_v52, %v10774_v9 }
 0x69c   :  { %v5532_v23 = vpack.c.bf16 %v5466_v5, %v5464_v22  ;;  %v5527_v25 = vpack.c.bf16 %v5457_v14, %v5455_v31  ;;  %v10777_v22 = vld [vmem:[#allocation76_spill] sm:$0xff]  ;;  %v5291_v43 = vadd.f32 %v10034_v58, %v4938_v44  ;;  %v5443_v58 = vmax.f32 %v10021_v20, 0.0 }
 0x69d   :  { %v4930_v5 = vadd.f32 %v10777_v22, %v10748_v57  ;;  %v5450_v42 = vmax.f32 %v5297_v3, 0.0  ;;  %v5285_v40 = vadd.f32 %v10029_v28, %v4932_v6  ;;  %v5446_v57 = vmax.f32 %v5287_v62, 0.0  ;;  %v10779_v28 = vld [vmem:[#allocation43_spill] sm:$0xff] }
 0x69e   :  { %5604 = vmatprep.subr.bf16.mxu1 %v5532_v23  ;;  %v5449_v23 = vmax.f32 %v5295_v12, 0.0  ;;  %v5447_v16 = vmax.f32 %v5291_v43, 0.0  ;;  %v5944_v35 = vcombine.low %v10779_v28, %v10779_v28  ;;  %v5651_v3 = vunpack.c.l.s4 %v6671_v45 }
 0x69f   :  { %5605 = vmatpush2.bf16.msra.mxu1 %v5531_v7  ;;  %v5283_v41 = vadd.f32 %v10025_v47, %v4930_v5  ;;  %v5524_v50 = vpack.c.bf16 %v5450_v42, %v5448_v61  ;;  %v5445_v7 = vmax.f32 %v5285_v40, 0.0 }
 0x6a0   :  { %5606 = vmatprep.subr.bf16.mxu1 %v5530_v27  ;;  %v5523_v21 = vpack.c.bf16 %v5449_v23, %v5447_v16  ;;  %v5652_v36 = vunpack.c.0.s8 %v5651_v3 }
 0x6a1   :  { %v5444_v18 = vmax.f32 %v5283_v41, 0.0  ;;  %v5521_v47 = vpack.c.bf16 %v5445_v7, %v5443_v58 }
 0x6a2   :  { %v5655_v55 = vsub.s32 %v5652_v36, %v10780_v34 }
 0x6a3   :  { %5607 = vmatpush2.bf16.msra.mxu1 %v5529_v19  ;;  %v5522_v26 = vpack.c.bf16 %v5446_v57, %v5444_v18 }
 0x6a4   :  { %5608 = vmatprep.subr.bf16.mxu1 %v5528_v59 }
 0x6a7   :  { %5609 = vmatpush2.bf16.msra.mxu1 %v5527_v25  ;;  %v5631_v15 = vpop.permute.xlu1 %5630 }
 0x6a8   :  { %5610 = vmatprep.subr.bf16.mxu1 %v5526_v1 }
 0x6ab   :  { %5611 = vmatpush2.bf16.msra.mxu1 %v5525_v54 }
 0x6ac   :  { %5612 = vmatprep.subr.bf16.mxu1 %v5524_v50 }
 0x6af   :  { %5613 = vmatpush2.bf16.msra.mxu1 %v5523_v21 }
 0x6b0   :  { %5614 = vmatprep.subr.bf16.mxu1 %v5522_v26 }
 0x6b3   :  { %5615 = vmatpush2.bf16.msra.mxu1 %v5521_v47 }
 0x6b4   :  { %5616 = vmatprep.subr.bf16.mxu1 %v10027_v2 }
 0x6b7   :  { %5617 = vmatpush2.bf16.msra.mxu1 %v10019_v60 }
 0x6b8   :  { %5618 = vmatprep.subr.bf16.mxu1 %v10003_v24 }
 0x6bb   :  { %5619 = vmatpush2.bf16.msra.mxu1 %v9991_v8 }
 0x6be   :  { %5621 = vmatmul.mubr.bf16.vlgmr.msra.gmra.mxu1 %v5944_v35 }
 0x6fe   :  { %v5581_v38 = vpop.f32.mrf.mxu0 }
 0x700   :  { %v5583_v27 = vpop.f32.mrf.mxu0 }
 0x702   :  { %v5585_v32 = vpop.f32.mrf.mxu0 }
 0x704   :  { %v5586_v20 = vpop.f32.mrf.mxu0 }
 0x77e   :  { %v5622_v29 = vpop.f32.mrf.mxu1 }
 0x77f   :  { %v5623_v33 = vadd.f32 %v5622_v29, %v5581_v38 }
 0x780   :  { %v5624_v51 = vpop.f32.mrf.mxu1 }
 0x781   :  { %v5625_v53 = vadd.f32 %v5624_v51, %v5583_v27  ;;  %v5633_v2 = vadd.f32 %v5631_v15, %v5623_v33 }
 0x782   :  { %v5626_v49 = vpop.f32.mrf.mxu1 }
 0x783   :  { %v5634_v60 = vadd.f32 %v5631_v15, %v5625_v53  ;;  %v5635_v0 = vsub.f32 0.0, %v5633_v2 }
 0x784   :  { %v5627_v24 = vpop.f32.mrf.mxu1 }
 0x785   :  { %v5636_v46 = vsub.f32 0.0, %v5634_v60  ;;  %v5637_v17 = vmul.f32 1.442695, %v5635_v0 }
 0x787   :  { %6449 = vpow2.f32 %v5637_v17  ;;  %v5639_v14 = vmul.f32 1.442695, %v5636_v46 }
 0x789   :  { %6451 = vpow2.f32 %v5639_v14 }
 0x794   :  { %v6450_v8 = vpop.eup %6449 }
 0x795   :  { %v5641_v19 = vadd.f32 1.0, %v6450_v8 }
 0x796   :  { %v6452_v39 = vpop.eup %6451 }
 0x797   :  { %v5642_v11 = vadd.f32 1.0, %v6452_v39  ;;  %6453 = vrcp.f32 %v5641_v19 }
 0x799   :  { %6455 = vrcp.f32 %v5642_v11 }
 0x7a4   :  { %v6454_v59 = vpop.eup %6453 }
 0x7a6   :  { %v6456_v48 = vpop.eup %6455 }
 0x7a7   :  { %v5649_v31 = vcombine.low %v6454_v59, %v6456_v48 }
 0x7a9   :  { %v5656_v9 = vrot.slane %v5649_v31, %v5655_v55 }
 0x7ab   :  { %v5663_v56 = vrot.slane %v5656_v9, %v5655_v55 }
 0x7ad   :  { %5669 = vst.msk [vmem:[#allocation7] sm:$0x3] %vm5667_vm0, %v5663_v56 }
 0x7ae   :  { %6646 = shalt.err (!%p6643_p0)
}
 0x7af   :  { %5679 = dma.vmem_to_hbm [thread:$0]  %s5677_s4, 32, %s10115_s5, [#allocation4]  }
 0x7b0   :  { %6659 = dma.done.wait [#allocation4], 32  }
 0x7b1   :  { %6660 = vsyncadd [#allocation4], 4294967264 }
 0x7b2   :  { %5683 = vsyncpa [#allocation3], 1 }
 0x7b3   :  { %5684 = vsyncpa [#allocation6], 1 }
 0x7b4   :  { %5685 = vsyncpa [#allocation4], 1 }

</bundles_post_ra>
